<compile_context>
chip_gen: v7x
topology: tpu7x:2x2x1
jax: 0.10.0
libtpu: 0.0.40
codegen_flags: <defaults>
</compile_context>

<pallas_src>
import functools
import math

import jax
import jax.numpy as jnp
from jax.experimental import pallas as pl
from jax.experimental.pallas import tpu as pltpu


def _round_up(x, m):
    return (x + m - 1) // m * m


def _pick_tile(k, max_tile=4096):
    """Largest multiple-of-128 divisor of k not exceeding max_tile."""
    best = 0
    c = 128
    while c <= min(k, max_tile):
        if k % c == 0:
            best = c
        c += 128
    return best if best else k


# ----------------------------------------------------------------------------
# Pallas kernel: fused fc1 + ReLU + fc2.
#   - featp (activations) is VMEM-resident (constant index map, ~180 KB bf16) and
#     sliced per grid step with pl.ds on a 128-aligned offset.
#   - fc1_w (bf16) streams over the K grid axis as large (tk, 1024) blocks.
#   - fc1 accumulates into a persistent VMEM f32 scratch.
#   - fc1_b / fc2_w / fc2_b have constant index maps -> fetched once, resident.
#   - last k step: ReLU(acc + b1) -> bf16 @ fc2_w + b2 -> output (written once).
# ----------------------------------------------------------------------------
def _fc_kernel(feat_ref, w1_ref, b1_ref, w2_ref, b2_ref, o_ref, acc_ref, *, tk):
    k = pl.program_id(0)

    @pl.when(k == 0)
    def _init():
        acc_ref[...] = jnp.zeros_like(acc_ref)

    start = pl.multiple_of(k * tk, 128)
    feat_blk = feat_ref[:, pl.ds(start, tk)]
    acc_ref[...] += jnp.dot(feat_blk, w1_ref[...],
                            preferred_element_type=jnp.float32)

    @pl.when(k == pl.num_programs(0) - 1)
    def _finish():
        h = jnp.maximum(acc_ref[...] + b1_ref[...], 0.0)
        logits = jnp.dot(h.astype(jnp.bfloat16), w2_ref[...],
                         preferred_element_type=jnp.float32)
        o_ref[...] = logits + b2_ref[...]


def _fc_pallas(featp, w1, b1, w2, b2):
    mp, kdim = featp.shape
    n1 = w1.shape[1]
    nc = w2.shape[1]
    tk = _pick_tile(kdim)
    n_steps = kdim // tk

    # Explicit VMEM budget for the chosen tile (double buffers counted), + headroom.
    vmem_bytes = (2 * tk * n1 * 2        # fc1_w double-buffered (bf16)
                  + 2 * mp * kdim * 2    # resident activations (bf16, 2x to be safe)
                  + 2 * n1 * nc * 2      # resident fc2_w (bf16, 2x to be safe)
                  + mp * n1 * 4          # f32 accumulator scratch
                  + 4 * (n1 + nc) * 4    # biases
                  + 2 * mp * nc * 4      # output block
                  + (2 << 20))           # headroom
    vmem_limit = min(64 * 1024 * 1024, _round_up(vmem_bytes, 1 << 20))

    return pl.pallas_call(
        functools.partial(_fc_kernel, tk=tk),
        out_shape=jax.ShapeDtypeStruct((mp, nc), jnp.float32),
        grid_spec=pltpu.PrefetchScalarGridSpec(
            num_scalar_prefetch=0,
            grid=(n_steps,),
            in_specs=[
                pl.BlockSpec((mp, kdim), lambda k: (0, 0)),  # activations (resident)
                pl.BlockSpec((tk, n1), lambda k: (k, 0)),    # fc1_w stream (bf16)
                pl.BlockSpec((1, n1), lambda k: (0, 0)),     # fc1_b (resident)
                pl.BlockSpec((n1, nc), lambda k: (0, 0)),    # fc2_w (resident)
                pl.BlockSpec((1, nc), lambda k: (0, 0)),     # fc2_b (resident)
            ],
            out_specs=pl.BlockSpec((mp, nc), lambda k: (0, 0)),
            scratch_shapes=[pltpu.VMEM((mp, n1), jnp.float32)],
        ),
        compiler_params=pltpu.CompilerParams(
            dimension_semantics=("arbitrary",),
            vmem_limit_bytes=vmem_limit),
    )(featp, w1, b1, w2, b2)


# ----------------------------------------------------------------------------
# Parameters: kaiming_uniform_ weights / zero biases (like HSI_CNN.weight_init),
# stored directly in kernel-ready layouts (transposed / padded / bf16) ONCE.
# ----------------------------------------------------------------------------
def kaiming_uniform(key, shape, fan_in):
    bound = math.sqrt(6.0 / fan_in)
    return jax.random.uniform(key, shape, jnp.float32, -bound, bound)


def init_params(key, bands, n_classes):
    d_out = (bands - 24) // 9 + 1
    h_out = d_out - 2
    assert h_out >= 1, "need enough bands for conv2's 3x3 window"
    features_size = 64 * h_out * 88

    keys = jax.random.split(key, 4)
    conv1_w = kaiming_uniform(keys[0], (90, 1, 24, 3, 3), 24 * 3 * 3)
    conv2_w = kaiming_uniform(keys[1], (64, 1, 3, 3), 3 * 3)
    fc1_w = kaiming_uniform(keys[2], (1024, features_size), features_size)
    fc2_w = kaiming_uniform(keys[3], (n_classes, 1024), 1024)

    nc_pad = _round_up(n_classes, 128)
    return {
        # conv1: im2col weight (216, 90), f32 -- tiny, handled by XLA.
        "conv1_w": conv1_w.reshape(90, 216).T,
        "conv1_b": jnp.zeros((90,), jnp.float32),
        # conv2: (kh, kw, c_out) layout for the unrolled MAC.
        "conv2_w": jnp.transpose(conv2_w[:, 0], (1, 2, 0)),
        "conv2_b": jnp.zeros((64,), jnp.float32),
        # fc1: pre-transposed (features, 1024), bf16.
        "fc1_w": fc1_w.T.astype(jnp.bfloat16),
        "fc1_b": jnp.zeros((1, 1024), jnp.float32),
        # fc2: pre-transposed + lane-padded (1024, nc_pad), bf16.
        "fc2_w": jnp.zeros((1024, nc_pad), jnp.float32)
                    .at[:, :n_classes].set(fc2_w.T).astype(jnp.bfloat16),
        "fc2_b": jnp.zeros((1, nc_pad), jnp.float32),
    }


# ----------------------------------------------------------------------------
# AugNet forward (== HSI_CNN forward; enable_rap=False / eval mode)
# ----------------------------------------------------------------------------
def augnet_forward(params, x, n_classes, use_pallas=True):
    """x: (B, 1, P, P, bands) -- the PyTorch module's pre-permute layout."""
    B = x.shape[0]
    # x.permute(0, 1, 4, 2, 3) -> NCDHW (B, 1, bands, P, P); squeeze in-channel.
    xs = jnp.transpose(x, (0, 1, 4, 2, 3))[:, 0]            # (B, bands, P, P)
    bands, P = xs.shape[1], xs.shape[2]
    assert P == 3, "HSI_CNN path assumes patch_size=3 (conv1 spatial -> 1x1)"
    d_out = (bands - 24) // 9 + 1
    assert d_out >= 3
    h_out, w_out = d_out - 2, 90 - 2

    # --- conv1 + ReLU (XLA): vectorized im2col gather + small dot, fuses with
    #     the surrounding ops; a pallas_call here is pure launch overhead. -----
    d_idx = jnp.arange(d_out)[:, None] * 9 + jnp.arange(24)[None, :]
    p1 = xs[:, d_idx, :, :].reshape(B * d_out, 216)
    y1 = jnp.maximum(jnp.dot(p1, params["conv1_w"]) + params["conv1_b"], 0.0)
    y1 = y1.reshape(B, d_out, 90)                            # [b, d, c_out]

    # --- PyTorch `x.view(b, 1, -1, 90)`: channel-major flatten -> (d_out, 90)
    m = jnp.transpose(y1, (0, 2, 1)).reshape(B, d_out, 90)

    # --- conv2 + ReLU: 9 unrolled multiply-adds, left to XLA (tiny, ~2 KB map)
    w2, b2 = params["conv2_w"], params["conv2_b"]
    acc = b2[None, None, None, :]
    for kh in range(3):
        for kw in range(3):
            acc = acc + (m[:, kh:kh + h_out, kw:kw + w_out, None]
                         * w2[kh, kw][None, None, None, :])
    o2 = jnp.maximum(acc, 0.0)                               # (B, h_out, 88, 64)

    # --- PyTorch `x.view(-1, features_size)`: channel-major flatten ----------
    feat = jnp.transpose(o2, (0, 3, 1, 2)).reshape(B, 64 * h_out * w_out)

    # --- fused fc1 + ReLU + fc2 (bf16 operands, f32 accumulation) ------------
    mp = _round_up(B, 16)                                    # bf16 sublane packing
    featp = jnp.pad(feat, ((0, mp - B), (0, 0))).astype(jnp.bfloat16)
    if use_pallas:
        out = _fc_pallas(featp, params["fc1_w"], params["fc1_b"],
                         params["fc2_w"], params["fc2_b"])
    else:
        h = jnp.maximum(
            jnp.dot(featp, params["fc1_w"], preferred_element_type=jnp.float32)
            + params["fc1_b"], 0.0)
        out = jnp.dot(h.astype(jnp.bfloat16), params["fc2_w"],
                      preferred_element_type=jnp.float32) + params["fc2_b"]
    return out[:B, :n_classes]

# TODO(synk): EmbGCN and RandomAugmentPipe branches of AugNet are not defined in
# the reference snippet and enable_rap=False, so only the HSI-CNN path is built.


if __name__ == "__main__":
    B, P, BANDS, NCLASSES = 2, 3, 42, 10

    key = jax.random.PRNGKey(0)
    pkey, xkey = jax.random.split(key)
    params = init_params(pkey, BANDS, NCLASSES)

    # (B, 1, patch, patch, bands) -- matches the PyTorch pre-permute input.
    x = jax.random.normal(xkey, (B, 1, P, P, BANDS), jnp.float32)

    fwd = jax.jit(functools.partial(augnet_forward, n_classes=NCLASSES,
                                    use_pallas=True))
    ref = jax.jit(functools.partial(augnet_forward, n_classes=NCLASSES,
                                    use_pallas=False))

    out = fwd(params, x)
    jax.block_until_ready(out)
    out_ref = ref(params, x)
    jax.block_until_ready(out_ref)

    assert out.shape == (B, NCLASSES), out.shape
    assert jnp.all(jnp.isfinite(out))
    assert jnp.allclose(out, out_ref, rtol=1e-2, atol=1e-2), float(
        jnp.max(jnp.abs(out - out_ref)))
    print("KERNEL_OK")
</pallas_src>

<mosaic_0001>
module attributes {stable_mosaic.version = 11 : i64} {
  func.func @_fc_kernel(%arg0: i32, %arg1: memref<16x5632xbf16, #tpu.memory_space<vmem>>, %arg2: memref<2816x1024xbf16, #tpu.memory_space<vmem>>, %arg3: memref<1x1024xf32, #tpu.memory_space<vmem>>, %arg4: memref<1024x128xbf16, #tpu.memory_space<vmem>>, %arg5: memref<1x128xf32, #tpu.memory_space<vmem>>, %arg6: memref<16x128xf32, #tpu.memory_space<vmem>>, %arg7: memref<16x1024xf32, #tpu.memory_space<vmem>>) attributes {dimension_semantics = [#tpu.dimension_semantics<arbitrary>], iteration_bounds = array<i64: 2>, scalar_prefetch = 0 : i64, scratch_operands = 1 : i64, tpu.core_type = #tpu.core_type<tc>, window_params = [{pipeline_mode = #tpu.pipeline_mode<synchronous>, transform_indices = @transform_0, window_bounds = array<i64: 16, 5632>}, {transform_indices = @transform_1, window_bounds = array<i64: 2816, 1024>}, {pipeline_mode = #tpu.pipeline_mode<synchronous>, transform_indices = @transform_2, window_bounds = array<i64: 1, 1024>}, {pipeline_mode = #tpu.pipeline_mode<synchronous>, transform_indices = @transform_3, window_bounds = array<i64: 1024, 128>}, {pipeline_mode = #tpu.pipeline_mode<synchronous>, transform_indices = @transform_4, window_bounds = array<i64: 1, 128>}, {pipeline_mode = #tpu.pipeline_mode<synchronous>, transform_indices = @transform_5, window_bounds = array<i64: 16, 128>}]} {
    %c0_i32 = arith.constant 0 : i32
    %0 = arith.cmpi eq, %arg0, %c0_i32 : i32
    %1 = arith.extui %0 : i1 to i32
    %c0_i32_0 = arith.constant 0 : i32
    %2 = arith.cmpi ne, %1, %c0_i32_0 : i32
    scf.if %2 {
      %cst_8 = arith.constant 0.000000e+00 : f32
      %15 = vector.broadcast %cst_8 : f32 to vector<16x1024xf32>
      %c0_9 = arith.constant 0 : index
      %c0_10 = arith.constant 0 : index
      %16 = vector.load %arg7[%c0_9, %c0_10] : memref<16x1024xf32, #tpu.memory_space<vmem>>, vector<16x1024xf32>
      tpu.vector_store %arg7[%c0_9, %c0_10], %15 {strides = array<i32>} : memref<16x1024xf32, #tpu.memory_space<vmem>>, vector<16x1024xf32>,
    } else {
    }
    %c2816_i32 = arith.constant 2816 : i32
    %3 = arith.muli %arg0, %c2816_i32 : i32
    %4 = tpu.assume_multiple %3, 128 : i32
    %c0 = arith.constant 0 : index
    %5 = arith.index_cast %4 : i32 to index
    %6 = vector.load %arg1[%c0, %5] : memref<16x5632xbf16, #tpu.memory_space<vmem>>, vector<16x2816xbf16>
    %c0_1 = arith.constant 0 : index
    %c0_2 = arith.constant 0 : index
    %7 = vector.load %arg7[%c0_1, %c0_2] : memref<16x1024xf32, #tpu.memory_space<vmem>>, vector<16x1024xf32>
    %c0_3 = arith.constant 0 : index
    %c0_4 = arith.constant 0 : index
    %8 = vector.load %arg2[%c0_3, %c0_4] : memref<2816x1024xbf16, #tpu.memory_space<vmem>>, vector<2816x1024xbf16>
    %cst = arith.constant dense<0.000000e+00> : vector<16x1024xf32>
    %9 = tpu.matmul %6, %8, %cst {dimension_numbers = #tpu.dot_dimension_numbers<[1], [0], [0], [1], [0, 0, 1, 1], [], []>} : vector<16x2816xbf16>, vector<2816x1024xbf16>, vector<16x1024xf32> -> vector<16x1024xf32>
    %10 = arith.addf %7, %9 : vector<16x1024xf32>
    %c0_5 = arith.constant 0 : index
    %c0_6 = arith.constant 0 : index
    %11 = vector.load %arg7[%c0_5, %c0_6] : memref<16x1024xf32, #tpu.memory_space<vmem>>, vector<16x1024xf32>
    tpu.vector_store %arg7[%c0_5, %c0_6], %10 {strides = array<i32>} : memref<16x1024xf32, #tpu.memory_space<vmem>>, vector<16x1024xf32>,
    %c1_i32 = arith.constant 1 : i32
    %12 = arith.cmpi eq, %arg0, %c1_i32 : i32
    %13 = arith.extui %12 : i1 to i32
    %c0_i32_7 = arith.constant 0 : i32
    %14 = arith.cmpi ne, %13, %c0_i32_7 : i32
    scf.if %14 {
      %c0_8 = arith.constant 0 : index
      %c0_9 = arith.constant 0 : index
      %15 = vector.load %arg7[%c0_8, %c0_9] : memref<16x1024xf32, #tpu.memory_space<vmem>>, vector<16x1024xf32>
      %c0_10 = arith.constant 0 : index
      %c0_11 = arith.constant 0 : index
      %16 = vector.load %arg3[%c0_10, %c0_11] : memref<1x1024xf32, #tpu.memory_space<vmem>>, vector<1x1024xf32>
      %17 = vector.broadcast %16 : vector<1x1024xf32> to vector<16x1024xf32>
      %18 = arith.addf %15, %17 : vector<16x1024xf32>
      %cst_12 = arith.constant 0.000000e+00 : f32
      %19 = vector.broadcast %cst_12 : f32 to vector<16x1024xf32>
      %20 = arith.maximumf %18, %19 : vector<16x1024xf32>
      %21 = arith.truncf %20 : vector<16x1024xf32> to vector<16x1024xbf16>
      %c0_13 = arith.constant 0 : index
      %c0_14 = arith.constant 0 : index
      %22 = vector.load %arg4[%c0_13, %c0_14] : memref<1024x128xbf16, #tpu.memory_space<vmem>>, vector<1024x128xbf16>
      %cst_15 = arith.constant dense<0.000000e+00> : vector<16x128xf32>
      %23 = tpu.matmul %21, %22, %cst_15 {dimension_numbers = #tpu.dot_dimension_numbers<[1], [0], [0], [1], [0, 0, 1, 1], [], []>} : vector<16x1024xbf16>, vector<1024x128xbf16>, vector<16x128xf32> -> vector<16x128xf32>
      %c0_16 = arith.constant 0 : index
      %c0_17 = arith.constant 0 : index
      %24 = vector.load %arg5[%c0_16, %c0_17] : memref<1x128xf32, #tpu.memory_space<vmem>>, vector<1x128xf32>
      %25 = vector.broadcast %24 : vector<1x128xf32> to vector<16x128xf32>
      %26 = arith.addf %23, %25 : vector<16x128xf32>
      %c0_18 = arith.constant 0 : index
      %c0_19 = arith.constant 0 : index
      %27 = vector.load %arg6[%c0_18, %c0_19] : memref<16x128xf32, #tpu.memory_space<vmem>>, vector<16x128xf32>
      tpu.vector_store %arg6[%c0_18, %c0_19], %26 {strides = array<i32>} : memref<16x128xf32, #tpu.memory_space<vmem>>, vector<16x128xf32>,
    } else {
    }
    return
  }
  func.func @transform_0(%arg0: i32) -> (i32, i32) {
    %c0_i32 = arith.constant 0 : i32
    %c0_i32_0 = arith.constant 0 : i32
    %c0_i32_1 = arith.constant 0 : i32
    return %c0_i32, %c0_i32_0 : i32, i32
  }
  func.func @transform_1(%arg0: i32) -> (i32, i32) {
    %c0_i32 = arith.constant 0 : i32
    %c0_i32_0 = arith.constant 0 : i32
    return %arg0, %c0_i32 : i32, i32
  }
  func.func @transform_2(%arg0: i32) -> (i32, i32) {
    %c0_i32 = arith.constant 0 : i32
    %c0_i32_0 = arith.constant 0 : i32
    %c0_i32_1 = arith.constant 0 : i32
    return %c0_i32, %c0_i32_0 : i32, i32
  }
  func.func @transform_3(%arg0: i32) -> (i32, i32) {
    %c0_i32 = arith.constant 0 : i32
    %c0_i32_0 = arith.constant 0 : i32
    %c0_i32_1 = arith.constant 0 : i32
    return %c0_i32, %c0_i32_0 : i32, i32
  }
  func.func @transform_4(%arg0: i32) -> (i32, i32) {
    %c0_i32 = arith.constant 0 : i32
    %c0_i32_0 = arith.constant 0 : i32
    %c0_i32_1 = arith.constant 0 : i32
    return %c0_i32, %c0_i32_0 : i32, i32
  }
  func.func @transform_5(%arg0: i32) -> (i32, i32) {
    %c0_i32 = arith.constant 0 : i32
    %c0_i32_0 = arith.constant 0 : i32
    %c0_i32_1 = arith.constant 0 : i32
    return %c0_i32, %c0_i32_0 : i32, i32
  }
}

</mosaic_0001>

<bundles_post_ra>
// kernel: augnet_forward.1
= control target key start
LH: loop header
LB: loop body
LE: loop exit
PB: predicated region body
PF: predicated region fallthrough
CT: control target
= control target key end

     0   :  { %10 = vsyncpa [#allocation4], 0  ;;  %s15516_s0 = inlined_call_operand.vmem [shape: bf16[16,5632], index: 0, kind: input, shape index: {}]   ;;  %s15517_s1 = inlined_call_operand.hbm [shape: bf16[5632,1024], index: 1, kind: input, shape index: {}]   ;;  %s15518_s2 = inlined_call_operand.hbm [shape: f32[1,1024], index: 2, kind: input, shape index: {}]   ;;  %s15519_s3 = inlined_call_operand.hbm [shape: bf16[1024,128], index: 3, kind: input, shape index: {}]   ;;  %s15520_s4 = inlined_call_operand.hbm [shape: f32[1,128], index: 4, kind: input, shape index: {}]   ;;  %s15521_s5 = inlined_call_operand.vmem [shape: f32[16,128], index: 5, kind: output, shape index: {}]  }
   0x1   :  { %12 = vsyncpa [#allocation4 + $0x1], 0 }
   0x2   :  { %13 = vsyncpa [#allocation6], 0 }
   0x3   :  { %14 = vsyncpa [#allocation9], 0  ;;  %s13831_s18 = smov 0   ;;  %s13833_s19 = smov 0  }
   0x4   :  { %s13835_s20 = smov 0   ;;  %s13837_s21 = smov 0  }
   0x5 LB: > { %s13850_s22 = sadd.s32 4294967295, %s13790_s21   ;;  %p61_p0 = scmp.ne.s32.totalorder %s13782_s19, %s13778_s18  ;;  %s13790_s21 = sphi %s13837_s21, %s15540_s21   ;;  %s13786_s20 = sphi %s13835_s20, %s15539_s20   ;;  %s13782_s19 = sphi %s13833_s19, %s15538_s19   ;;  %s13778_s18 = sphi %s13831_s18, %s15537_s18  }
   0x6   : > { %p15522_p1 = scmp.eq.s32.totalorder %s13850_s22, 0  ;;  %p11676_p2 = scmp.ge.s32.totalorder %s13790_s21, 1 }
   0x7   : > { %p156_p3 = scmp.lt.s32.totalorder %s13790_s21, 3  ;;  %s13792_s25 = smov [#allocation5]  }
   0x8   : > { %p13859_p5 = por %p15522_p1, %p61_p0  ;;  %s172_s26 = sshll.u32 %s13792_s25, 4  ;;  %s173_s26 = int_to_ptr.vmem [resolvable:$true] %s172_s26 }
   0x9   : > { %p13863_p6 = pnand %p11676_p2, %p156_p3  ;;  %s13793_s27 = smov [#allocation7]  }
   0xa   : > { %s15525_s23 = scalar_select %p13859_p5, 1, 0 }
   0xb   : > { %s15526_s24 = scalar_select %p13863_p6, 1, 0 }
   0xc   : > { %p13454_p7 = pneg %p13863_p6  ;;  %s182_s28 = sshll.u32 %s13793_s27, 4  ;;  %s13875_s28 = int_to_ptr.vmem [resolvable:$true] %s182_s28 }
   0xd   : > { %s13794_s30 = smov [#allocation8]   ;;  %s13634_s9 = scalar_lea.hbm %s15518_s2, 128 }
   0xe   : > { %p13871_p8 = pnand %p13454_p7, %p15522_p1  ;;  %s13877_s6 = sshll.u32 %s13794_s30, 4  ;;  %s197_s6 = int_to_ptr.vmem [resolvable:$true] %s13877_s6 }
   0xf   : > { %p13635_p9 = scmp.ne.s32.totalorder %s15518_s2, %s13634_s9  ;;  %p13641_p13 = scmp.lt.u32.totalorder %s13634_s9, %s15518_s2 }
  0x10   : > { %p13887_p10 = pneg %p13871_p8 }
  0x12   : > { %p13637_p11 = pnand %p13887_p10, %p13635_p9 }
  0x14   : > { %p13638_p12 = pneg %p13637_p11 }
  0x16   : > { %p13643_p0 = pnand %p13641_p13, %p13638_p12 }
  0x18   : > { %13646 = shalt.err (!%p13643_p0)
}
  0x19   : > { %s13647_s15 = scalar_lea.vmem %s173_s26, 128  ;;  %p13655_p4 = scmp.lt.s32.totalorder %s173_s26, %s173_s26 }
  0x1a   : > { %p13648_p2 = scmp.ne.s32.totalorder %s173_s26, %s13647_s15  ;;  %p13656_p1 = scmp.lt.s32.totalorder %s13647_s15, %s13647_s15 }
  0x1c   : > { %p13650_p3 = pnand %p13648_p2, %p13887_p10  ;;  %p13657_p5 = por %p13656_p1, %p13655_p4 }
  0x1e   : > { %p13651_p7 = pneg %p13650_p3 }
  0x20   : > { %p13658_p6 = pnand %p13657_p5, %p13651_p7 }
  0x22   : > { %13661 = shalt.err (!%p13658_p6)
}
  0x23   : > { %13457 = dma.hbm_to_vmem [thread:$0]  (!%p13871_p8), %s15518_s2, 128, %s173_s26, [#allocation6]  }
  0x24   : > { %s13662_s27 = scalar_lea.hbm %s15519_s3, 8192 }
  0x25   : > { %p13663_p9 = scmp.ne.s32.totalorder %s15519_s3, %s13662_s27  ;;  %p13669_p4 = scmp.lt.u32.totalorder %s13662_s27, %s15519_s3 }
  0x27   : > { %p13665_p11 = pnand %p13663_p9, %p13887_p10 }
  0x29   : > { %p13666_p1 = pneg %p13665_p11 }
  0x2b   : > { %p13671_p5 = pnand %p13669_p4, %p13666_p1 }
  0x2d   : > { %13674 = shalt.err (!%p13671_p5)
}
  0x2e   : > { %s13675_s26 = scalar_lea.vmem %s13875_s28, 8192  ;;  %p13683_p0 = scmp.lt.s32.totalorder %s13875_s28, %s13875_s28 }
  0x2f   : > { %p13676_p6 = scmp.ne.s32.totalorder %s13875_s28, %s13675_s26  ;;  %p13684_p2 = scmp.lt.s32.totalorder %s13675_s26, %s13675_s26 }
  0x31   : > { %p13678_p12 = pnand %p13676_p6, %p13887_p10  ;;  %p13685_p3 = por %p13684_p2, %p13683_p0 }
  0x33   : > { %p13679_p13 = pneg %p13678_p12 }
  0x35   : > { %p13686_p7 = pnand %p13685_p3, %p13679_p13 }
  0x37   : > { %13689 = shalt.err (!%p13686_p7)
}
  0x38   : > { %s13795_s10 = smov 64   ;;  %s13796_s11 = smov 4  }
  0x39   : > { %13460 = dma.hbm_to_vmem [thread:$0]  (!%p13871_p8), %s15519_s3, 8192, %s13875_s28, [#allocation6], %s13795_s10, %s13795_s10, %s13796_s11  }
  0x3a   : > { %s13690_s17 = scalar_lea.hbm %s15520_s4, 16 }
  0x3b   : > { %p13691_p9 = scmp.ne.s32.totalorder %s15520_s4, %s13690_s17  ;;  %p13697_p4 = scmp.lt.u32.totalorder %s13690_s17, %s15520_s4 }
  0x3d   : > { %p13693_p11 = pnand %p13691_p9, %p13887_p10 }
  0x3f   : > { %p13694_p1 = pneg %p13693_p11 }
  0x41   : > { %p13699_p5 = pnand %p13697_p4, %p13694_p1 }
  0x43   : > { %13702 = shalt.err (!%p13699_p5)
}
  0x44   : > { %s13703_s7 = scalar_lea.vmem %s197_s6, 16  ;;  %s13710_s28 = scalar_lea.vmem %s197_s6, 32 }
  0x45   : > { %p13704_p6 = scmp.ne.s32.totalorder %s197_s6, %s13703_s7  ;;  %p13711_p0 = scmp.lt.s32.totalorder %s197_s6, %s197_s6 }
  0x46   : > { %p13712_p2 = scmp.lt.s32.totalorder %s13710_s28, %s13703_s7 }
  0x47   : > { %p13706_p12 = pnand %p13704_p6, %p13887_p10 }
  0x48   : > { %p13713_p3 = por %p13712_p2, %p13711_p0 }
  0x49   : > { %p13707_p13 = pneg %p13706_p12 }
  0x4b   : > { %p13714_p7 = pnand %p13713_p3, %p13707_p13 }
  0x4d   : > { %13717 = shalt.err (!%p13714_p7)
}
  0x4e   : > { %13463 = dma.hbm_to_vmem [thread:$0]  (!%p13871_p8), %s15520_s4, 16, %s197_s6, [#allocation9]  }
  0x4f   : > { %s13946_s12 = sadd.s32 1, %s13790_s21   ;;  %s48_s10 = sadd.s32 1, %s13786_s20 }
  0x50   : > { %s45_s26 = ssub.s32 %s13790_s21, %s13946_s12  ;;  %p55_p9 = scmp.ne.s32.totalorder %s13786_s20, %s13782_s19 }
  0x51   : > { %p46_p10 = scmp.eq.s32.totalorder %s45_s26, 0  ;;  %p56_p11 = scmp.eq.s32.totalorder %s13790_s21, 0 }
  0x52   : > { %p13471_p1 = scmp.lt.s32.totalorder %s13790_s21, 2  ;;  %s207_s11 = sand.u32 1, %s13786_s20  }
  0x53   : > { %s13956_s29 = scalar_select %p46_p10, %s13786_s20, %s48_s10  }
  0x54   : > { %p57_p4 = por %p56_p11, %p55_p9  ;;  %s13438_s13 = smul.u32 11264, %s207_s11 }
  0x55   : > { %s13189_s14 = smul.u32 180224, %s13790_s21  ;;  %s13971_s21 = scalar_lea.sflag [#allocation4], %s207_s11 }
  0x56   : > { %p13960_p5 = pnand %p13471_p1, %p57_p4  ;;  %s211_s18 = scalar_lea.vmem [#allocation3], %s13438_s13 }
  0x57   : > { %s13967_s17 = scalar_lea.hbm %s15517_s1, %s13189_s14  ;;  %s219_s25 = sshll.u32 %s211_s18, 4  ;;  %s13969_s25 = int_to_ptr.vmem [resolvable:$true] %s219_s25 }
  0x58   : > { %s13718_s27 = scalar_lea.hbm %s13967_s17, 180224  ;;  %p13720_p6 = pneg %p13960_p5 }
  0x59   : > { %p13719_p8 = scmp.ne.s32.totalorder %s13967_s17, %s13718_s27  ;;  %s13723_s28 = scalar_lea.hbm %s15517_s1, 360448 }
  0x5a   : > { %p13724_p0 = scmp.lt.u32.totalorder %s13967_s17, %s15517_s1  ;;  %p13725_p2 = scmp.lt.u32.totalorder %s13723_s28, %s13718_s27 }
  0x5b   : > { %p13721_p12 = pnand %p13720_p6, %p13719_p8  ;;  %p13727_p7 = scmp.lt.u32.totalorder %s13718_s27, %s13967_s17 }
  0x5c   : > { %p13726_p3 = por %p13725_p2, %p13724_p0 }
  0x5d   : > { %p13722_p13 = pneg %p13721_p12 }
  0x5e   : > { %p13728_p10 = por %p13727_p7, %p13726_p3 }
  0x60   : > { %p13729_p9 = pnand %p13728_p10, %p13722_p13 }
  0x62   : > { %13732 = shalt.err (!%p13729_p9)
}
  0x63   : > { %s13733_s26 = scalar_lea.vmem %s13969_s25, 180224  ;;  %s13797_s10 = smov [#allocation3]  }
  0x64   : > { %p13734_p11 = scmp.ne.s32.totalorder %s13969_s25, %s13733_s26  ;;  %s13738_s11 = sshll.u32 %s13797_s10, 4  ;;  %s13739_s11 = int_to_ptr.vmem [resolvable:$false] %s13738_s11 }
  0x65   : > { %s13740_s13 = scalar_lea.vmem %s13739_s11, 360448  ;;  %p13741_p8 = scmp.lt.s32.totalorder %s13969_s25, %s13739_s11 }
  0x66   : > { %p13736_p1 = pnand %p13734_p11, %p13720_p6  ;;  %p13742_p12 = scmp.lt.s32.totalorder %s13740_s13, %s13733_s26 }
  0x68   : > { %p13737_p4 = pneg %p13736_p1  ;;  %p13743_p0 = por %p13742_p12, %p13741_p8 }
  0x6a   : > { %p13744_p2 = pnand %p13743_p0, %p13737_p4 }
  0x6c   : > { %13747 = shalt.err (!%p13744_p2)
}
  0x6d   : > { %s13798_s14 = smov 512   ;;  %s13799_s6 = smov 32  }
  0x6e   : > { %13467 = dma.hbm_to_vmem [thread:$0]  (!%p13960_p5), %s13967_s17, 180224, %s13969_s25, %s13971_s21, %s13798_s14, %s13798_s14, %s13799_s6  }
  0x6f   : > { %p15530_p6 = scmp.ne.s32.totalorder %s15526_s24, 0 }
  0x70   : > { %s233_s16 = sand.u32 (!%p15530_p6), 1, %s13782_s19   ;;  %p15531_p13 = scmp.ne.s32.totalorder (!%p15530_p6), %s15525_s23, 0 }
  0x71   : > { %231 = sbr.rel (%p15530_p6) target bundleno = 2026 (0x7ea), region = 40  ;;  %s234_s27 = scalar_lea.sflag (!%p15530_p6), [#allocation4], %s233_s16 }
  0x72   : > { %s13439_s18 = smul.u32 (!%p15530_p6), 11264, %s233_s16 }
  0x74   : > { %s14002_s30 = scalar_lea.vmem (!%p15530_p6), [#allocation3], %s13439_s18 }
  0x78   : > { %13765 = dma.done.wait (%p15531_p13), %s234_s27, 180224  }
  0x79   : > { %13767 = vsyncadd (%p15531_p13), %s234_s27, 4294787072  ;;  %p15532_p3 = scmp.eq.s32.totalorder %s13850_s22, 0 }
  0x7b   : > { %13769 = dma.done.wait (%p15532_p3), [#allocation6], 8320   ;;  %p15533_p5 = pmov %p15532_p3 }
  0x7c   : > { %p15534_p7 = pmov %p15532_p3 }
  0x7d   : > { %13771 = vsyncadd (%p15533_p5), [#allocation6], 4294958976 }
  0x7e   : > { %13773 = dma.done.wait (%p15534_p7), [#allocation9], 16   ;;  %p15535_p10 = pmov %p15532_p3 }
  0x7f   : > { %p15536_p9 = scmp.ne.s32.totalorder %s13850_s22, 0 }
  0x80   : > { %13775 = vsyncadd (%p15535_p10), [#allocation9], 4294967280  ;;  %v13800_v0 = vmov (!%p15536_p9), 0.0  }
  0x81   : > { %276 = sbr.rel (%p15536_p9) target bundleno = 137 (0x89), region = 60  ;;  %277 = vst [vmem:[#allocation2] sm:$0xff] (!%p15536_p9), %v13800_v0  ;;  %278 = vst [vmem:[#allocation2 + $0x8] sm:$0xff] (!%p15536_p9), %v13800_v0 }
  0x82   : > { %279 = vst [vmem:[#allocation2 + $0x10] sm:$0xff] (!%p15536_p9), %v13800_v0  ;;  %280 = vst [vmem:[#allocation2 + $0x18] sm:$0xff] (!%p15536_p9), %v13800_v0 }
  0x83   : > { %281 = vst [vmem:[#allocation2 + $0x20] sm:$0xff] (!%p15536_p9), %v13800_v0  ;;  %282 = vst [vmem:[#allocation2 + $0x28] sm:$0xff] (!%p15536_p9), %v13800_v0 }
  0x84   : > { %283 = vst [vmem:[#allocation2 + $0x30] sm:$0xff] (!%p15536_p9), %v13800_v0  ;;  %284 = vst [vmem:[#allocation2 + $0x38] sm:$0xff] (!%p15536_p9), %v13800_v0 }
  0x85   : > { %285 = vst [vmem:[#allocation2 + $0x40] sm:$0xff] (!%p15536_p9), %v13800_v0  ;;  %286 = vst [vmem:[#allocation2 + $0x48] sm:$0xff] (!%p15536_p9), %v13800_v0 }
  0x86   : > { %287 = vst [vmem:[#allocation2 + $0x50] sm:$0xff] (!%p15536_p9), %v13800_v0  ;;  %288 = vst [vmem:[#allocation2 + $0x58] sm:$0xff] (!%p15536_p9), %v13800_v0 }
  0x87   : > { %289 = vst [vmem:[#allocation2 + $0x60] sm:$0xff] (!%p15536_p9), %v13800_v0  ;;  %290 = vst [vmem:[#allocation2 + $0x68] sm:$0xff] (!%p15536_p9), %v13800_v0 }
  0x88   : > { %291 = vst [vmem:[#allocation2 + $0x70] sm:$0xff] %v13800_v0  ;;  %292 = vst [vmem:[#allocation2 + $0x78] sm:$0xff] %v13800_v0 }
  0x89 PF: > { %v336_v1 = vld [vmem:[%s14002_s30] sm:$0xff]  ;;  %v337_v3 = vld [vmem:[%s14002_s30 + $0x8] sm:$0xff]  ;;  %s293_s23 = smul.u32 2816, %s13850_s22  ;;  %p13119_p11 = scmp.ne.s32.totalorder %s13850_s22, 1 }
  0x8a   : > { %v340_v2 = vld [vmem:[%s14002_s30 + $0x20] sm:$0xff]  ;;  %v341_v5 = vld [vmem:[%s14002_s30 + $0x28] sm:$0xff] }
  0x8b   : > { %v11712_v4 = vcombine.high %v336_v1, %v340_v2  ;;  %v11711_v6 = vcombine.low %v336_v1, %v340_v2  ;;  %v344_v7 = vld [vmem:[%s14002_s30 + $0x40] sm:$0xff]  ;;  %v11714_v9 = vcombine.high %v337_v3, %v341_v5  ;;  %v11713_v10 = vcombine.low %v337_v3, %v341_v5  ;;  %v345_v12 = vld [vmem:[%s14002_s30 + $0x48] sm:$0xff]  ;;  %s294_s24 = sshra.s32 %s293_s23, 7 }
  0x8c   : > { %v348_v8 = vld [vmem:[%s14002_s30 + $0x60] sm:$0xff]  ;;  %v349_v13 = vld [vmem:[%s14002_s30 + $0x68] sm:$0xff]  ;;  %s11688_s15 = sshll.u32 %s294_s24, 2 }
  0x8d   : > { %v11720_v11 = vcombine.high %v344_v7, %v348_v8  ;;  %v352_v14 = vld [vmem:[%s14002_s30 + $0x80] sm:$0xff]  ;;  %8894 = vmatprep.subr.bf16.mxu0 %v11712_v4  ;;  %v11722_v15 = vcombine.high %v345_v12, %v349_v13  ;;  %v353_v17 = vld [vmem:[%s14002_s30 + $0x88] sm:$0xff]  ;;  %9367 = vmatprep.subr.bf16.mxu1 %v11714_v9  ;;  %v11719_v19 = vcombine.low %v344_v7, %v348_v8  ;;  %s14050_s21 = scalar_lea.vmem %s15516_s0, %s11688_s15 }
  0x8e   : > { %v356_v16 = vld [vmem:[%s14002_s30 + $0xa0] sm:$0xff]  ;;  %v357_v18 = vld [vmem:[%s14002_s30 + $0xa8] sm:$0xff]  ;;  %8895 = vmatpush1.bf16.msra.mxu0 %v11711_v6  ;;  %9368 = vmatpush1.bf16.msra.mxu1 %v11713_v10  ;;  %v11721_v20 = vcombine.low %v345_v12, %v349_v13 }
  0x8f   : > { %8896 = vmatprep.subr.bf16.mxu0 %v11720_v11  ;;  %v11728_v21 = vcombine.high %v352_v14, %v356_v16  ;;  %9369 = vmatprep.subr.bf16.mxu1 %v11722_v15  ;;  %v11730_v22 = vcombine.high %v353_v17, %v357_v18  ;;  %v360_v23 = vld [vmem:[%s14002_s30 + $0xc0] sm:$0xff]  ;;  %v361_v25 = vld [vmem:[%s14002_s30 + $0xc8] sm:$0xff]  ;;  %v11727_v27 = vcombine.low %v352_v14, %v356_v16 }
  0x90   : > { %v364_v24 = vld [vmem:[%s14002_s30 + $0xe0] sm:$0xff]  ;;  %v365_v26 = vld [vmem:[%s14002_s30 + $0xe8] sm:$0xff]  ;;  %v11729_v28 = vcombine.low %v353_v17, %v357_v18 }
  0x91   : > { %v11736_v29 = vcombine.high %v360_v23, %v364_v24  ;;  %v11738_v30 = vcombine.high %v361_v25, %v365_v26  ;;  %v368_v31 = vld [vmem:[%s14002_s30 + $0x100] sm:$0xff]  ;;  %v369_v33 = vld [vmem:[%s14002_s30 + $0x108] sm:$0xff]  ;;  %v11735_v35 = vcombine.low %v360_v23, %v364_v24  ;;  %v11737_v36 = vcombine.low %v361_v25, %v365_v26 }
  0x92   : > { %8897 = vmatpush1.bf16.msra.mxu0 %v11719_v19  ;;  %9370 = vmatpush1.bf16.msra.mxu1 %v11721_v20  ;;  %v372_v32 = vld [vmem:[%s14002_s30 + $0x120] sm:$0xff]  ;;  %v373_v34 = vld [vmem:[%s14002_s30 + $0x128] sm:$0xff] }
  0x93   : > { %8898 = vmatprep.subr.bf16.mxu0 %v11728_v21  ;;  %9371 = vmatprep.subr.bf16.mxu1 %v11730_v22  ;;  %v11744_v37 = vcombine.high %v368_v31, %v372_v32  ;;  %v11746_v38 = vcombine.high %v369_v33, %v373_v34  ;;  %v376_v39 = vld [vmem:[%s14002_s30 + $0x140] sm:$0xff]  ;;  %v377_v41 = vld [vmem:[%s14002_s30 + $0x148] sm:$0xff]  ;;  %v11743_v43 = vcombine.low %v368_v31, %v372_v32 }
  0x94   : > { %v380_v40 = vld [vmem:[%s14002_s30 + $0x160] sm:$0xff]  ;;  %v381_v42 = vld [vmem:[%s14002_s30 + $0x168] sm:$0xff]  ;;  %v11745_v44 = vcombine.low %v369_v33, %v373_v34 }
  0x95   : > { %v11752_v45 = vcombine.high %v376_v39, %v380_v40  ;;  %v11754_v46 = vcombine.high %v377_v41, %v381_v42  ;;  %v384_v47 = vld [vmem:[%s14002_s30 + $0x180] sm:$0xff]  ;;  %v385_v49 = vld [vmem:[%s14002_s30 + $0x188] sm:$0xff]  ;;  %v11751_v51 = vcombine.low %v376_v39, %v380_v40  ;;  %v11753_v52 = vcombine.low %v377_v41, %v381_v42 }
  0x96   : > { %8899 = vmatpush1.bf16.msra.mxu0 %v11727_v27  ;;  %9372 = vmatpush1.bf16.msra.mxu1 %v11729_v28  ;;  %v388_v48 = vld [vmem:[%s14002_s30 + $0x1a0] sm:$0xff]  ;;  %v389_v50 = vld [vmem:[%s14002_s30 + $0x1a8] sm:$0xff] }
  0x97   : > { %8900 = vmatprep.subr.bf16.mxu0 %v11736_v29  ;;  %9373 = vmatprep.subr.bf16.mxu1 %v11738_v30  ;;  %v11760_v53 = vcombine.high %v384_v47, %v388_v48  ;;  %v11762_v54 = vcombine.high %v385_v49, %v389_v50  ;;  %v392_v55 = vld [vmem:[%s14002_s30 + $0x1c0] sm:$0xff]  ;;  %v393_v58 = vld [vmem:[%s14002_s30 + $0x1c8] sm:$0xff]  ;;  %v11759_v60 = vcombine.low %v384_v47, %v388_v48 }
  0x98   : > { %v396_v56 = vld [vmem:[%s14002_s30 + $0x1e0] sm:$0xff]  ;;  %v397_v59 = vld [vmem:[%s14002_s30 + $0x1e8] sm:$0xff]  ;;  %v11761_v61 = vcombine.low %v385_v49, %v389_v50 }
  0x99   : > { %v13515_v57 = vld [vmem:[%s14050_s21 + $0x4] ss:$176 sps:$4 sm:$0xff]   ;;  %v11768_v62 = vcombine.high %v392_v55, %v396_v56  ;;  %v11770_v63 = vcombine.high %v393_v58, %v397_v59  ;;  %v401_v2 = vld [vmem:[%s14002_s30 + $0x208] sm:$0xff]  ;;  %v11767_v4 = vcombine.low %v392_v55, %v396_v56  ;;  %v11769_v5 = vcombine.low %v393_v58, %v397_v59 }
  0x9a   : > { %8901 = vmatpush1.bf16.msra.mxu0 %v11735_v35  ;;  %9374 = vmatpush1.bf16.msra.mxu1 %v11737_v36  ;;  %v400_v0 = vld [vmem:[%s14002_s30 + $0x200] sm:$0xff]  ;;  %v405_v3 = vld [vmem:[%s14002_s30 + $0x228] sm:$0xff] }
  0x9b   : > { %8902 = vmatprep.subr.bf16.mxu0 %v11744_v37  ;;  %9375 = vmatprep.subr.bf16.mxu1 %v11746_v38  ;;  %v404_v1 = vld [vmem:[%s14002_s30 + $0x220] sm:$0xff]  ;;  %v11778_v7 = vcombine.high %v401_v2, %v405_v3  ;;  %v409_v10 = vld [vmem:[%s14002_s30 + $0x248] sm:$0xff]  ;;  %v11777_v13 = vcombine.low %v401_v2, %v405_v3 }
  0x9c   : > { %8926 = vmatprep.mubr.bf16.mxu0 %v13515_v57  ;;  %9399 = vmatprep.mubr.bf16.mxu1 %v13515_v57  ;;  %v11776_v6 = vcombine.high %v400_v0, %v404_v1  ;;  %v408_v8 = vld [vmem:[%s14002_s30 + $0x240] sm:$0xff]  ;;  %v413_v11 = vld [vmem:[%s14002_s30 + $0x268] sm:$0xff]  ;;  %v11775_v12 = vcombine.low %v400_v0, %v404_v1 }
  0x9d   : > { %v412_v9 = vld [vmem:[%s14002_s30 + $0x260] sm:$0xff]  ;;  %v11786_v15 = vcombine.high %v409_v10, %v413_v11  ;;  %v417_v18 = vld [vmem:[%s14002_s30 + $0x288] sm:$0xff]  ;;  %v11785_v21 = vcombine.low %v409_v10, %v413_v11 }
  0x9e   : > { %8903 = vmatpush1.bf16.msra.mxu0 %v11743_v43  ;;  %9376 = vmatpush1.bf16.msra.mxu1 %v11745_v44  ;;  %v11784_v14 = vcombine.high %v408_v8, %v412_v9  ;;  %v416_v16 = vld [vmem:[%s14002_s30 + $0x280] sm:$0xff]  ;;  %v421_v19 = vld [vmem:[%s14002_s30 + $0x2a8] sm:$0xff]  ;;  %v11783_v20 = vcombine.low %v408_v8, %v412_v9 }
  0x9f   : > { %8904 = vmatprep.subr.bf16.mxu0 %v11752_v45  ;;  %9377 = vmatprep.subr.bf16.mxu1 %v11754_v46  ;;  %v420_v17 = vld [vmem:[%s14002_s30 + $0x2a0] sm:$0xff]  ;;  %v11794_v23 = vcombine.high %v417_v18, %v421_v19  ;;  %v425_v26 = vld [vmem:[%s14002_s30 + $0x2c8] sm:$0xff]  ;;  %v11793_v29 = vcombine.low %v417_v18, %v421_v19 }
  0xa0   : > { %v11792_v22 = vcombine.high %v416_v16, %v420_v17  ;;  %v424_v24 = vld [vmem:[%s14002_s30 + $0x2c0] sm:$0xff]  ;;  %v429_v27 = vld [vmem:[%s14002_s30 + $0x2e8] sm:$0xff]  ;;  %v11791_v28 = vcombine.low %v416_v16, %v420_v17 }
  0xa1   : > { %v428_v25 = vld [vmem:[%s14002_s30 + $0x2e0] sm:$0xff]  ;;  %v11802_v31 = vcombine.high %v425_v26, %v429_v27  ;;  %v433_v34 = vld [vmem:[%s14002_s30 + $0x308] sm:$0xff]  ;;  %v11801_v37 = vcombine.low %v425_v26, %v429_v27 }
  0xa2   : > { %8905 = vmatpush1.bf16.msra.mxu0 %v11751_v51  ;;  %9378 = vmatpush1.bf16.msra.mxu1 %v11753_v52  ;;  %v11800_v30 = vcombine.high %v424_v24, %v428_v25  ;;  %v432_v32 = vld [vmem:[%s14002_s30 + $0x300] sm:$0xff]  ;;  %v437_v35 = vld [vmem:[%s14002_s30 + $0x328] sm:$0xff]  ;;  %v11799_v36 = vcombine.low %v424_v24, %v428_v25 }
  0xa3   : > { %8906 = vmatprep.subr.bf16.mxu0 %v11760_v53  ;;  %9379 = vmatprep.subr.bf16.mxu1 %v11762_v54  ;;  %v436_v33 = vld [vmem:[%s14002_s30 + $0x320] sm:$0xff]  ;;  %v11810_v39 = vcombine.high %v433_v34, %v437_v35  ;;  %v441_v42 = vld [vmem:[%s14002_s30 + $0x348] sm:$0xff]  ;;  %v11809_v45 = vcombine.low %v433_v34, %v437_v35 }
  0xa4   : > { %v11808_v38 = vcombine.high %v432_v32, %v436_v33  ;;  %v440_v40 = vld [vmem:[%s14002_s30 + $0x340] sm:$0xff]  ;;  %v445_v43 = vld [vmem:[%s14002_s30 + $0x368] sm:$0xff]  ;;  %v11807_v44 = vcombine.low %v432_v32, %v436_v33 }
  0xa5   : > { %v444_v41 = vld [vmem:[%s14002_s30 + $0x360] sm:$0xff]  ;;  %v11818_v47 = vcombine.high %v441_v42, %v445_v43  ;;  %v449_v50 = vld [vmem:[%s14002_s30 + $0x388] sm:$0xff]  ;;  %v11817_v53 = vcombine.low %v441_v42, %v445_v43 }
  0xa6   : > { %8907 = vmatpush1.bf16.msra.mxu0 %v11759_v60  ;;  %9380 = vmatpush1.bf16.msra.mxu1 %v11761_v61  ;;  %v11816_v46 = vcombine.high %v440_v40, %v444_v41  ;;  %v448_v48 = vld [vmem:[%s14002_s30 + $0x380] sm:$0xff]  ;;  %v453_v51 = vld [vmem:[%s14002_s30 + $0x3a8] sm:$0xff]  ;;  %v11815_v52 = vcombine.low %v440_v40, %v444_v41 }
  0xa7   : > { %8908 = vmatprep.subr.bf16.mxu0 %v11768_v62  ;;  %9381 = vmatprep.subr.bf16.mxu1 %v11770_v63  ;;  %v452_v49 = vld [vmem:[%s14002_s30 + $0x3a0] sm:$0xff]  ;;  %v11826_v55 = vcombine.high %v449_v50, %v453_v51  ;;  %v457_v58 = vld [vmem:[%s14002_s30 + $0x3c8] sm:$0xff]  ;;  %v11825_v61 = vcombine.low %v449_v50, %v453_v51 }
  0xa8   : > { %v11824_v54 = vcombine.high %v448_v48, %v452_v49  ;;  %v456_v56 = vld [vmem:[%s14002_s30 + $0x3c0] sm:$0xff]  ;;  %v461_v59 = vld [vmem:[%s14002_s30 + $0x3e8] sm:$0xff]  ;;  %v11823_v60 = vcombine.low %v448_v48, %v452_v49 }
  0xa9   : > { %v460_v57 = vld [vmem:[%s14002_s30 + $0x3e0] sm:$0xff]  ;;  %v11834_v63 = vcombine.high %v457_v58, %v461_v59  ;;  %v465_v2 = vld [vmem:[%s14002_s30 + $0x408] sm:$0xff] }
  0xaa   : > { %8909 = vmatpush1.bf16.msra.mxu0 %v11767_v4  ;;  %9382 = vmatpush1.bf16.msra.mxu1 %v11769_v5  ;;  %v11832_v62 = vcombine.high %v456_v56, %v460_v57  ;;  %v464_v0 = vld [vmem:[%s14002_s30 + $0x400] sm:$0xff]  ;;  %v469_v3 = vld [vmem:[%s14002_s30 + $0x428] sm:$0xff]  ;;  %v11831_v4 = vcombine.low %v456_v56, %v460_v57  ;;  %v11833_v5 = vcombine.low %v457_v58, %v461_v59 }
  0xab   : > { %8910 = vmatprep.subr.bf16.mxu0 %v11776_v6  ;;  %9383 = vmatprep.subr.bf16.mxu1 %v11778_v7  ;;  %v468_v1 = vld [vmem:[%s14002_s30 + $0x420] sm:$0xff]  ;;  %v11842_v7 = vcombine.high %v465_v2, %v469_v3  ;;  %v473_v11 = vld [vmem:[%s14002_s30 + $0x448] sm:$0xff] }
  0xac   : > { %v11840_v6 = vcombine.high %v464_v0, %v468_v1  ;;  %v472_v8 = vld [vmem:[%s14002_s30 + $0x440] sm:$0xff]  ;;  %v13518_v19 = vld [vmem:[%s14050_s21 + $0xc] ss:$176 sps:$4 sm:$0xff]  }
  0xad   : > { %v476_v9 = vld [vmem:[%s14002_s30 + $0x460] sm:$0xff]  ;;  %v497_v35 = vld [vmem:[%s14002_s30 + $0x508] sm:$0xff] }
  0xae   : > { %8911 = vmatpush1.bf16.msra.mxu0 %v11775_v12  ;;  %9384 = vmatpush1.bf16.msra.mxu1 %v11777_v13  ;;  %v13517_v10 = vld [vmem:[%s14050_s21] ss:$176 sps:$4 sm:$0xff]   ;;  %v477_v12 = vld [vmem:[%s14002_s30 + $0x468] sm:$0xff]  ;;  %v11839_v13 = vcombine.low %v464_v0, %v468_v1 }
  0xaf   : > { %8912 = vmatprep.subr.bf16.mxu0 %v11784_v14  ;;  %9385 = vmatprep.subr.bf16.mxu1 %v11786_v15  ;;  %v11841_v14 = vcombine.low %v465_v2, %v469_v3  ;;  %v11848_v15 = vcombine.high %v472_v8, %v476_v9  ;;  %v480_v16 = vld [vmem:[%s14002_s30 + $0x480] sm:$0xff]  ;;  %v11850_v17 = vcombine.high %v473_v11, %v477_v12 }
  0xb0   : > { %v484_v18 = vld [vmem:[%s14002_s30 + $0x4a0] sm:$0xff] }
  0xb1   : > { %v11856_v24 = vcombine.high %v480_v16, %v484_v18  ;;  %v488_v25 = vld [vmem:[%s14002_s30 + $0x4c0] sm:$0xff] }
  0xb2   : > { %8913 = vmatpush1.bf16.msra.mxu0 %v11783_v20  ;;  %9386 = vmatpush1.bf16.msra.mxu1 %v11785_v21  ;;  %v481_v20 = vld [vmem:[%s14002_s30 + $0x488] sm:$0xff]  ;;  %v492_v26 = vld [vmem:[%s14002_s30 + $0x4e0] sm:$0xff] }
  0xb3   : > { %8914 = vmatprep.subr.bf16.mxu0 %v11792_v22  ;;  %9387 = vmatprep.subr.bf16.mxu1 %v11794_v23  ;;  %v485_v21 = vld [vmem:[%s14002_s30 + $0x4a8] sm:$0xff]  ;;  %v11847_v22 = vcombine.low %v472_v8, %v476_v9  ;;  %v11849_v23 = vcombine.low %v473_v11, %v477_v12  ;;  %v11864_v32 = vcombine.high %v488_v25, %v492_v26  ;;  %v496_v33 = vld [vmem:[%s14002_s30 + $0x500] sm:$0xff] }
  0xb4   : > { %v11858_v27 = vcombine.high %v481_v20, %v485_v21  ;;  %v500_v34 = vld [vmem:[%s14002_s30 + $0x520] sm:$0xff]  ;;  %v537_v12 = vld [vmem:[%s14002_s30 + $0x648] sm:$0xff] }
  0xb5   : > { %v11872_v40 = vcombine.high %v496_v33, %v500_v34  ;;  %v504_v42 = vld [vmem:[%s14002_s30 + $0x540] sm:$0xff] }
  0xb6   : > { %8915 = vmatpush1.bf16.msra.mxu0 %v11791_v28  ;;  %9388 = vmatpush1.bf16.msra.mxu1 %v11793_v29  ;;  %v489_v28 = vld [vmem:[%s14002_s30 + $0x4c8] sm:$0xff]  ;;  %v508_v43 = vld [vmem:[%s14002_s30 + $0x560] sm:$0xff] }
  0xb7   : > { %8916 = vmatprep.subr.bf16.mxu0 %v11800_v30  ;;  %9389 = vmatprep.subr.bf16.mxu1 %v11802_v31  ;;  %v493_v29 = vld [vmem:[%s14002_s30 + $0x4e8] sm:$0xff]  ;;  %v11855_v30 = vcombine.low %v480_v16, %v484_v18  ;;  %v11857_v31 = vcombine.low %v481_v20, %v485_v21  ;;  %v11880_v48 = vcombine.high %v504_v42, %v508_v43  ;;  %v512_v50 = vld [vmem:[%s14002_s30 + $0x580] sm:$0xff] }
  0xb8   : > { %v516_v51 = vld [vmem:[%s14002_s30 + $0x5a0] sm:$0xff]  ;;  %v545_v20 = vld [vmem:[%s14002_s30 + $0x688] sm:$0xff] }
  0xb9   : > { %v11888_v56 = vcombine.high %v512_v50, %v516_v51  ;;  %v520_v58 = vld [vmem:[%s14002_s30 + $0x5c0] sm:$0xff]  ;;  %v549_v21 = vld [vmem:[%s14002_s30 + $0x6a8] sm:$0xff] }
  0xba   : > { %8917 = vmatpush1.bf16.msra.mxu0 %v11799_v36  ;;  %9390 = vmatpush1.bf16.msra.mxu1 %v11801_v37  ;;  %v11866_v36 = vcombine.high %v489_v28, %v493_v29  ;;  %v501_v37 = vld [vmem:[%s14002_s30 + $0x528] sm:$0xff]  ;;  %v524_v59 = vld [vmem:[%s14002_s30 + $0x5e0] sm:$0xff] }
  0xbb   : > { %8918 = vmatprep.subr.bf16.mxu0 %v11808_v38  ;;  %9391 = vmatprep.subr.bf16.mxu1 %v11810_v39  ;;  %v11863_v38 = vcombine.low %v488_v25, %v492_v26  ;;  %v11865_v39 = vcombine.low %v489_v28, %v493_v29  ;;  %v11874_v41 = vcombine.high %v497_v35, %v501_v37  ;;  %v528_v2 = vld [vmem:[%s14002_s30 + $0x600] sm:$0xff]  ;;  %v553_v28 = vld [vmem:[%s14002_s30 + $0x6c8] sm:$0xff] }
  0xbc   : > { %v11896_v0 = vcombine.high %v520_v58, %v524_v59  ;;  %v532_v3 = vld [vmem:[%s14002_s30 + $0x620] sm:$0xff]  ;;  %v11922_v25 = vcombine.high %v545_v20, %v549_v21  ;;  %v557_v29 = vld [vmem:[%s14002_s30 + $0x6e8] sm:$0xff] }
  0xbd   : > { %v11904_v8 = vcombine.high %v528_v2, %v532_v3  ;;  %v540_v11 = vld [vmem:[%s14002_s30 + $0x660] sm:$0xff] }
  0xbe   : > { %8919 = vmatpush1.bf16.msra.mxu0 %v11807_v44  ;;  %9392 = vmatpush1.bf16.msra.mxu1 %v11809_v45  ;;  %v505_v44 = vld [vmem:[%s14002_s30 + $0x548] sm:$0xff]  ;;  %v544_v18 = vld [vmem:[%s14002_s30 + $0x680] sm:$0xff] }
  0xbf   : > { %8920 = vmatprep.subr.bf16.mxu0 %v11816_v46  ;;  %9393 = vmatprep.subr.bf16.mxu1 %v11818_v47  ;;  %v509_v45 = vld [vmem:[%s14002_s30 + $0x568] sm:$0xff]  ;;  %v11871_v46 = vcombine.low %v496_v33, %v500_v34  ;;  %v11873_v47 = vcombine.low %v497_v35, %v501_v37  ;;  %v552_v26 = vld [vmem:[%s14002_s30 + $0x6c0] sm:$0xff]  ;;  %v11930_v33 = vcombine.high %v553_v28, %v557_v29 }
  0xc0   : > { %v11882_v49 = vcombine.high %v505_v44, %v509_v45  ;;  %v560_v34 = vld [vmem:[%s14002_s30 + $0x700] sm:$0xff]  ;;  %v565_v37 = vld [vmem:[%s14002_s30 + $0x728] sm:$0xff] }
  0xc1   : > { %v564_v35 = vld [vmem:[%s14002_s30 + $0x720] sm:$0xff] }
  0xc2   : > { %8921 = vmatpush1.bf16.msra.mxu0 %v11815_v52  ;;  %9394 = vmatpush1.bf16.msra.mxu1 %v11817_v53  ;;  %v513_v52 = vld [vmem:[%s14002_s30 + $0x588] sm:$0xff] }
  0xc3   : > { %8922 = vmatprep.subr.bf16.mxu0 %v11824_v54  ;;  %9395 = vmatprep.subr.bf16.mxu1 %v11826_v55  ;;  %v517_v53 = vld [vmem:[%s14002_s30 + $0x5a8] sm:$0xff]  ;;  %v11879_v54 = vcombine.low %v504_v42, %v508_v43  ;;  %v11881_v55 = vcombine.low %v505_v44, %v509_v45  ;;  %v568_v42 = vld [vmem:[%s14002_s30 + $0x740] sm:$0xff] }
  0xc4   : > { %v11890_v57 = vcombine.high %v513_v52, %v517_v53  ;;  %v572_v43 = vld [vmem:[%s14002_s30 + $0x760] sm:$0xff]  ;;  %v569_v44 = vld [vmem:[%s14002_s30 + $0x748] sm:$0xff] }
  0xc5   : > { %v573_v45 = vld [vmem:[%s14002_s30 + $0x768] sm:$0xff] }
  0xc6   : > { %8923 = vmatpush1.bf16.msra.mxu0 %v11823_v60  ;;  %9396 = vmatpush1.bf16.msra.mxu1 %v11825_v61  ;;  %v521_v60 = vld [vmem:[%s14002_s30 + $0x5c8] sm:$0xff] }
  0xc7   : > { %8924 = vmatprep.subr.bf16.mxu0 %v11832_v62  ;;  %9397 = vmatprep.subr.bf16.mxu1 %v11834_v63  ;;  %v525_v61 = vld [vmem:[%s14002_s30 + $0x5e8] sm:$0xff]  ;;  %v11887_v62 = vcombine.low %v512_v50, %v516_v51  ;;  %v11889_v63 = vcombine.low %v513_v52, %v517_v53  ;;  %v576_v50 = vld [vmem:[%s14002_s30 + $0x780] sm:$0xff] }
  0xc8   : > { %v11898_v1 = vcombine.high %v521_v60, %v525_v61  ;;  %v580_v51 = vld [vmem:[%s14002_s30 + $0x7a0] sm:$0xff]  ;;  %v577_v52 = vld [vmem:[%s14002_s30 + $0x788] sm:$0xff] }
  0xc9   : > { %v581_v53 = vld [vmem:[%s14002_s30 + $0x7a8] sm:$0xff] }
  0xca   : > { %8925 = vmatpush1.bf16.msra.mxu0 %v11831_v4  ;;  %9398 = vmatpush1.bf16.msra.mxu1 %v11833_v5  ;;  %v529_v4 = vld [vmem:[%s14002_s30 + $0x608] sm:$0xff] }
  0xcb   : > { %8937 = vmatprep.subr.bf16.mxu0 %v11840_v6  ;;  %9410 = vmatprep.subr.bf16.mxu1 %v11842_v7  ;;  %v533_v5 = vld [vmem:[%s14002_s30 + $0x628] sm:$0xff]  ;;  %v11895_v6 = vcombine.low %v520_v58, %v524_v59  ;;  %v11897_v7 = vcombine.low %v521_v60, %v525_v61  ;;  %v584_v58 = vld [vmem:[%s14002_s30 + $0x7c0] sm:$0xff] }
  0xcc   : > { %v11906_v9 = vcombine.high %v529_v4, %v533_v5  ;;  %v588_v59 = vld [vmem:[%s14002_s30 + $0x7e0] sm:$0xff]  ;;  %v585_v60 = vld [vmem:[%s14002_s30 + $0x7c8] sm:$0xff] }
  0xcd   : > { %8927 = vmatmul.mubr.bf16.vlgmr.msra.gmra.mrb[0].mxu0 %v13517_v10  ;;  %9400 = vmatmul.mubr.bf16.vlgmr.msra.gmra.mrb[0].mxu1 %v13517_v10  ;;  %v536_v10 = vld [vmem:[%s14002_s30 + $0x640] sm:$0xff]  ;;  %v589_v61 = vld [vmem:[%s14002_s30 + $0x7e8] sm:$0xff] }
  0xce   : > { %8938 = vmatpush1.bf16.msra.mxu0 %v11839_v13  ;;  %9411 = vmatpush1.bf16.msra.mxu1 %v11841_v14  ;;  %v541_v13 = vld [vmem:[%s14002_s30 + $0x668] sm:$0xff]  ;;  %v11903_v14 = vcombine.low %v528_v2, %v532_v3  ;;  %v11912_v16 = vcombine.high %v536_v10, %v540_v11  ;;  %v592_v2 = vld [vmem:[%s14002_s30 + $0x800] sm:$0xff] }
  0xcf   : > { %8939 = vmatprep.subr.bf16.mxu0 %v11848_v15  ;;  %9412 = vmatprep.subr.bf16.mxu1 %v11850_v17  ;;  %v11905_v15 = vcombine.low %v529_v4, %v533_v5  ;;  %v11914_v17 = vcombine.high %v537_v12, %v541_v13  ;;  %v596_v3 = vld [vmem:[%s14002_s30 + $0x820] sm:$0xff]  ;;  %v593_v4 = vld [vmem:[%s14002_s30 + $0x808] sm:$0xff] }
  0xd0   : > { %8969 = vmatprep.mubr.bf16.mxu0 %v13518_v19  ;;  %9442 = vmatprep.mubr.bf16.mxu1 %v13518_v19  ;;  %v548_v19 = vld [vmem:[%s14002_s30 + $0x6a0] sm:$0xff]  ;;  %v597_v5 = vld [vmem:[%s14002_s30 + $0x828] sm:$0xff] }
  0xd2   : > { %8940 = vmatpush1.bf16.msra.mxu0 %v11847_v22  ;;  %9413 = vmatpush1.bf16.msra.mxu1 %v11849_v23  ;;  %v11911_v22 = vcombine.low %v536_v10, %v540_v11  ;;  %v11913_v23 = vcombine.low %v537_v12, %v541_v13  ;;  %v600_v10 = vld [vmem:[%s14002_s30 + $0x840] sm:$0xff]  ;;  %v13520_v12 = vld [vmem:[%s14050_s21 + $0x8] ss:$176 sps:$4 sm:$0xff]  }
  0xd3   : > { %8941 = vmatprep.subr.bf16.mxu0 %v11856_v24  ;;  %9414 = vmatprep.subr.bf16.mxu1 %v11858_v27  ;;  %v11920_v24 = vcombine.high %v544_v18, %v548_v19  ;;  %v556_v27 = vld [vmem:[%s14002_s30 + $0x6e0] sm:$0xff]  ;;  %v601_v13 = vld [vmem:[%s14002_s30 + $0x848] sm:$0xff] }
  0xd4   : > { %v604_v11 = vld [vmem:[%s14002_s30 + $0x860] sm:$0xff] }
  0xd6   : > { %8942 = vmatpush1.bf16.msra.mxu0 %v11855_v30  ;;  %9415 = vmatpush1.bf16.msra.mxu1 %v11857_v31  ;;  %v11919_v30 = vcombine.low %v544_v18, %v548_v19  ;;  %v11921_v31 = vcombine.low %v545_v20, %v549_v21  ;;  %v608_v19 = vld [vmem:[%s14002_s30 + $0x880] sm:$0xff] }
  0xd7   : > { %8943 = vmatprep.subr.bf16.mxu0 %v11864_v32  ;;  %9416 = vmatprep.subr.bf16.mxu1 %v11866_v36  ;;  %v11928_v32 = vcombine.high %v552_v26, %v556_v27  ;;  %v561_v36 = vld [vmem:[%s14002_s30 + $0x708] sm:$0xff]  ;;  %v612_v20 = vld [vmem:[%s14002_s30 + $0x8a0] sm:$0xff] }
  0xd8   : > { %v13521_v21 = vld [vmem:[%s14050_s21 + $0x14] ss:$176 sps:$4 sm:$0xff]  }
  0xda   : > { %8944 = vmatpush1.bf16.msra.mxu0 %v11863_v38  ;;  %9417 = vmatpush1.bf16.msra.mxu1 %v11865_v39  ;;  %v11927_v38 = vcombine.low %v552_v26, %v556_v27  ;;  %v11929_v39 = vcombine.low %v553_v28, %v557_v29  ;;  %v11984_v26 = vcombine.high %v608_v19, %v612_v20  ;;  %v616_v28 = vld [vmem:[%s14002_s30 + $0x8c0] sm:$0xff] }
  0xdb   : > { %8945 = vmatprep.subr.bf16.mxu0 %v11872_v40  ;;  %9418 = vmatprep.subr.bf16.mxu1 %v11874_v41  ;;  %v11936_v40 = vcombine.high %v560_v34, %v564_v35  ;;  %v11938_v41 = vcombine.high %v561_v36, %v565_v37  ;;  %v620_v29 = vld [vmem:[%s14002_s30 + $0x8e0] sm:$0xff] }
  0xde   : > { %8946 = vmatpush1.bf16.msra.mxu0 %v11871_v46  ;;  %9419 = vmatpush1.bf16.msra.mxu1 %v11873_v47  ;;  %v11935_v46 = vcombine.low %v560_v34, %v564_v35  ;;  %v11937_v47 = vcombine.low %v561_v36, %v565_v37  ;;  %v11992_v34 = vcombine.high %v616_v28, %v620_v29  ;;  %v624_v36 = vld [vmem:[%s14002_s30 + $0x900] sm:$0xff] }
  0xdf   : > { %8947 = vmatprep.subr.bf16.mxu0 %v11880_v48  ;;  %9420 = vmatprep.subr.bf16.mxu1 %v11882_v49  ;;  %v11944_v48 = vcombine.high %v568_v42, %v572_v43  ;;  %v11946_v49 = vcombine.high %v569_v44, %v573_v45  ;;  %v628_v37 = vld [vmem:[%s14002_s30 + $0x920] sm:$0xff] }
  0xe2   : > { %8948 = vmatpush1.bf16.msra.mxu0 %v11879_v54  ;;  %9421 = vmatpush1.bf16.msra.mxu1 %v11881_v55  ;;  %v11943_v54 = vcombine.low %v568_v42, %v572_v43  ;;  %v11945_v55 = vcombine.low %v569_v44, %v573_v45  ;;  %v12000_v42 = vcombine.high %v624_v36, %v628_v37  ;;  %v632_v44 = vld [vmem:[%s14002_s30 + $0x940] sm:$0xff] }
  0xe3   : > { %8949 = vmatprep.subr.bf16.mxu0 %v11888_v56  ;;  %9422 = vmatprep.subr.bf16.mxu1 %v11890_v57  ;;  %v11952_v56 = vcombine.high %v576_v50, %v580_v51  ;;  %v11954_v57 = vcombine.high %v577_v52, %v581_v53  ;;  %v636_v45 = vld [vmem:[%s14002_s30 + $0x960] sm:$0xff] }
  0xe6   : > { %8950 = vmatpush1.bf16.msra.mxu0 %v11887_v62  ;;  %9423 = vmatpush1.bf16.msra.mxu1 %v11889_v63  ;;  %v11951_v62 = vcombine.low %v576_v50, %v580_v51  ;;  %v11953_v63 = vcombine.low %v577_v52, %v581_v53  ;;  %v12008_v50 = vcombine.high %v632_v44, %v636_v45  ;;  %v640_v52 = vld [vmem:[%s14002_s30 + $0x980] sm:$0xff] }
  0xe7   : > { %8951 = vmatprep.subr.bf16.mxu0 %v11896_v0  ;;  %9424 = vmatprep.subr.bf16.mxu1 %v11898_v1  ;;  %v11960_v0 = vcombine.high %v584_v58, %v588_v59  ;;  %v11962_v1 = vcombine.high %v585_v60, %v589_v61  ;;  %v644_v53 = vld [vmem:[%s14002_s30 + $0x9a0] sm:$0xff] }
  0xea   : > { %8952 = vmatpush1.bf16.msra.mxu0 %v11895_v6  ;;  %9425 = vmatpush1.bf16.msra.mxu1 %v11897_v7  ;;  %v11959_v6 = vcombine.low %v584_v58, %v588_v59  ;;  %v11961_v7 = vcombine.low %v585_v60, %v589_v61  ;;  %v12016_v58 = vcombine.high %v640_v52, %v644_v53  ;;  %v648_v60 = vld [vmem:[%s14002_s30 + $0x9c0] sm:$0xff] }
  0xeb   : > { %8953 = vmatprep.subr.bf16.mxu0 %v11904_v8  ;;  %9426 = vmatprep.subr.bf16.mxu1 %v11906_v9  ;;  %v11968_v8 = vcombine.high %v592_v2, %v596_v3  ;;  %v11970_v9 = vcombine.high %v593_v4, %v597_v5  ;;  %v652_v61 = vld [vmem:[%s14002_s30 + $0x9e0] sm:$0xff] }
  0xee   : > { %8954 = vmatpush1.bf16.msra.mxu0 %v11903_v14  ;;  %9427 = vmatpush1.bf16.msra.mxu1 %v11905_v15  ;;  %v605_v14 = vld [vmem:[%s14002_s30 + $0x868] sm:$0xff]  ;;  %v11967_v15 = vcombine.low %v592_v2, %v596_v3  ;;  %v12024_v2 = vcombine.high %v648_v60, %v652_v61 }
  0xef   : > { %8955 = vmatprep.subr.bf16.mxu0 %v11912_v16  ;;  %9428 = vmatprep.subr.bf16.mxu1 %v11914_v17  ;;  %v11969_v16 = vcombine.low %v593_v4, %v597_v5  ;;  %v11976_v17 = vcombine.high %v600_v10, %v604_v11  ;;  %v11978_v18 = vcombine.high %v601_v13, %v605_v14  ;;  %v656_v4 = vld [vmem:[%s14002_s30 + $0xa00] sm:$0xff] }
  0xf0   : > { %v660_v5 = vld [vmem:[%s14002_s30 + $0xa20] sm:$0xff] }
  0xf2   : > { %8956 = vmatpush1.bf16.msra.mxu0 %v11911_v22  ;;  %9429 = vmatpush1.bf16.msra.mxu1 %v11913_v23  ;;  %v609_v22 = vld [vmem:[%s14002_s30 + $0x888] sm:$0xff] }
  0xf3   : > { %8957 = vmatprep.subr.bf16.mxu0 %v11920_v24  ;;  %9430 = vmatprep.subr.bf16.mxu1 %v11922_v25  ;;  %v613_v23 = vld [vmem:[%s14002_s30 + $0x8a8] sm:$0xff]  ;;  %v11975_v24 = vcombine.low %v600_v10, %v604_v11  ;;  %v11977_v25 = vcombine.low %v601_v13, %v605_v14  ;;  %v12032_v10 = vcombine.high %v656_v4, %v660_v5  ;;  %v668_v13 = vld [vmem:[%s14002_s30 + $0xa60] sm:$0xff] }
  0xf4   : > { %v11986_v27 = vcombine.high %v609_v22, %v613_v23  ;;  %v665_v14 = vld [vmem:[%s14002_s30 + $0xa48] sm:$0xff] }
  0xf6   : > { %8958 = vmatpush1.bf16.msra.mxu0 %v11919_v30  ;;  %9431 = vmatpush1.bf16.msra.mxu1 %v11921_v31  ;;  %v617_v30 = vld [vmem:[%s14002_s30 + $0x8c8] sm:$0xff] }
  0xf7   : > { %8959 = vmatprep.subr.bf16.mxu0 %v11928_v32  ;;  %9432 = vmatprep.subr.bf16.mxu1 %v11930_v33  ;;  %v621_v31 = vld [vmem:[%s14002_s30 + $0x8e8] sm:$0xff]  ;;  %v11983_v32 = vcombine.low %v608_v19, %v612_v20  ;;  %v11985_v33 = vcombine.low %v609_v22, %v613_v23  ;;  %v672_v20 = vld [vmem:[%s14002_s30 + $0xa80] sm:$0xff] }
  0xf8   : > { %v11994_v35 = vcombine.high %v617_v30, %v621_v31  ;;  %v673_v22 = vld [vmem:[%s14002_s30 + $0xa88] sm:$0xff] }
  0xf9   : > { %v677_v23 = vld [vmem:[%s14002_s30 + $0xaa8] sm:$0xff] }
  0xfa   : > { %8960 = vmatpush1.bf16.msra.mxu0 %v11927_v38  ;;  %9433 = vmatpush1.bf16.msra.mxu1 %v11929_v39  ;;  %v625_v38 = vld [vmem:[%s14002_s30 + $0x908] sm:$0xff] }
  0xfb   : > { %8961 = vmatprep.subr.bf16.mxu0 %v11936_v40  ;;  %9434 = vmatprep.subr.bf16.mxu1 %v11938_v41  ;;  %v629_v39 = vld [vmem:[%s14002_s30 + $0x928] sm:$0xff]  ;;  %v11991_v40 = vcombine.low %v616_v28, %v620_v29  ;;  %v11993_v41 = vcombine.low %v617_v30, %v621_v31  ;;  %v680_v28 = vld [vmem:[%s14002_s30 + $0xac0] sm:$0xff] }
  0xfc   : > { %v12002_v43 = vcombine.high %v625_v38, %v629_v39  ;;  %v684_v29 = vld [vmem:[%s14002_s30 + $0xae0] sm:$0xff]  ;;  %v681_v30 = vld [vmem:[%s14002_s30 + $0xac8] sm:$0xff] }
  0xfd   : > { %v685_v31 = vld [vmem:[%s14002_s30 + $0xae8] sm:$0xff] }
  0xfe   : > { %8962 = vmatpush1.bf16.msra.mxu0 %v11935_v46  ;;  %9435 = vmatpush1.bf16.msra.mxu1 %v11937_v47  ;;  %v633_v46 = vld [vmem:[%s14002_s30 + $0x948] sm:$0xff] }
  0xff   : > { %8963 = vmatprep.subr.bf16.mxu0 %v11944_v48  ;;  %9436 = vmatprep.subr.bf16.mxu1 %v11946_v49  ;;  %v637_v47 = vld [vmem:[%s14002_s30 + $0x968] sm:$0xff]  ;;  %v11999_v48 = vcombine.low %v624_v36, %v628_v37  ;;  %v12001_v49 = vcombine.low %v625_v38, %v629_v39  ;;  %v688_v36 = vld [vmem:[%s14002_s30 + $0xb00] sm:$0xff] }
 0x100   : > { %v12010_v51 = vcombine.high %v633_v46, %v637_v47  ;;  %v692_v37 = vld [vmem:[%s14002_s30 + $0xb20] sm:$0xff]  ;;  %v689_v38 = vld [vmem:[%s14002_s30 + $0xb08] sm:$0xff] }
 0x101   : > { %v693_v39 = vld [vmem:[%s14002_s30 + $0xb28] sm:$0xff] }
 0x102   : > { %8964 = vmatpush1.bf16.msra.mxu0 %v11943_v54  ;;  %9437 = vmatpush1.bf16.msra.mxu1 %v11945_v55  ;;  %v641_v54 = vld [vmem:[%s14002_s30 + $0x988] sm:$0xff] }
 0x103   : > { %8965 = vmatprep.subr.bf16.mxu0 %v11952_v56  ;;  %9438 = vmatprep.subr.bf16.mxu1 %v11954_v57  ;;  %v645_v55 = vld [vmem:[%s14002_s30 + $0x9a8] sm:$0xff]  ;;  %v12007_v56 = vcombine.low %v632_v44, %v636_v45  ;;  %v12009_v57 = vcombine.low %v633_v46, %v637_v47  ;;  %v696_v44 = vld [vmem:[%s14002_s30 + $0xb40] sm:$0xff] }
 0x104   : > { %v12018_v59 = vcombine.high %v641_v54, %v645_v55  ;;  %v700_v45 = vld [vmem:[%s14002_s30 + $0xb60] sm:$0xff]  ;;  %v697_v46 = vld [vmem:[%s14002_s30 + $0xb48] sm:$0xff] }
 0x105   : > { %v701_v47 = vld [vmem:[%s14002_s30 + $0xb68] sm:$0xff] }
 0x106   : > { %8966 = vmatpush1.bf16.msra.mxu0 %v11951_v62  ;;  %9439 = vmatpush1.bf16.msra.mxu1 %v11953_v63  ;;  %v649_v62 = vld [vmem:[%s14002_s30 + $0x9c8] sm:$0xff] }
 0x107   : > { %8967 = vmatprep.subr.bf16.mxu0 %v11960_v0  ;;  %9440 = vmatprep.subr.bf16.mxu1 %v11962_v1  ;;  %v653_v63 = vld [vmem:[%s14002_s30 + $0x9e8] sm:$0xff]  ;;  %v12015_v0 = vcombine.low %v640_v52, %v644_v53  ;;  %v12017_v1 = vcombine.low %v641_v54, %v645_v55  ;;  %v704_v52 = vld [vmem:[%s14002_s30 + $0xb80] sm:$0xff] }
 0x108   : > { %v12026_v3 = vcombine.high %v649_v62, %v653_v63  ;;  %v708_v53 = vld [vmem:[%s14002_s30 + $0xba0] sm:$0xff]  ;;  %v705_v54 = vld [vmem:[%s14002_s30 + $0xb88] sm:$0xff] }
 0x109   : > { %v709_v55 = vld [vmem:[%s14002_s30 + $0xba8] sm:$0xff] }
 0x10a   : > { %8968 = vmatpush1.bf16.msra.mxu0 %v11959_v6  ;;  %9441 = vmatpush1.bf16.msra.mxu1 %v11961_v7  ;;  %v657_v6 = vld [vmem:[%s14002_s30 + $0xa08] sm:$0xff] }
 0x10b   : > { %8980 = vmatprep.subr.bf16.mxu0 %v11968_v8  ;;  %9453 = vmatprep.subr.bf16.mxu1 %v11970_v9  ;;  %v661_v7 = vld [vmem:[%s14002_s30 + $0xa28] sm:$0xff]  ;;  %v12023_v8 = vcombine.low %v648_v60, %v652_v61  ;;  %v12025_v9 = vcombine.low %v649_v62, %v653_v63  ;;  %v712_v60 = vld [vmem:[%s14002_s30 + $0xbc0] sm:$0xff] }
 0x10c   : > { %v12034_v11 = vcombine.high %v657_v6, %v661_v7  ;;  %v716_v61 = vld [vmem:[%s14002_s30 + $0xbe0] sm:$0xff]  ;;  %v713_v62 = vld [vmem:[%s14002_s30 + $0xbc8] sm:$0xff] }
 0x10d   : > { %8970 = vmatmul.mubr.bf16.vlgmr.msra.gmra.mrb[0].mxu0 %v13520_v12  ;;  %9443 = vmatmul.mubr.bf16.vlgmr.msra.gmra.mrb[0].mxu1 %v13520_v12  ;;  %v664_v12 = vld [vmem:[%s14002_s30 + $0xa40] sm:$0xff]  ;;  %v717_v63 = vld [vmem:[%s14002_s30 + $0xbe8] sm:$0xff] }
 0x10e   : > { %8981 = vmatpush1.bf16.msra.mxu0 %v11967_v15  ;;  %9454 = vmatpush1.bf16.msra.mxu1 %v11969_v16  ;;  %v669_v15 = vld [vmem:[%s14002_s30 + $0xa68] sm:$0xff]  ;;  %v12031_v16 = vcombine.low %v656_v4, %v660_v5  ;;  %v720_v4 = vld [vmem:[%s14002_s30 + $0xc00] sm:$0xff] }
 0x10f   : > { %8982 = vmatprep.subr.bf16.mxu0 %v11976_v17  ;;  %9455 = vmatprep.subr.bf16.mxu1 %v11978_v18  ;;  %v12033_v17 = vcombine.low %v657_v6, %v661_v7  ;;  %v12040_v18 = vcombine.high %v664_v12, %v668_v13  ;;  %v12042_v19 = vcombine.high %v665_v14, %v669_v15  ;;  %v724_v5 = vld [vmem:[%s14002_s30 + $0xc20] sm:$0xff]  ;;  %v721_v6 = vld [vmem:[%s14002_s30 + $0xc08] sm:$0xff] }
 0x110   : > { %9012 = vmatprep.mubr.bf16.mxu0 %v13521_v21  ;;  %9485 = vmatprep.mubr.bf16.mxu1 %v13521_v21  ;;  %v676_v21 = vld [vmem:[%s14002_s30 + $0xaa0] sm:$0xff]  ;;  %v725_v7 = vld [vmem:[%s14002_s30 + $0xc28] sm:$0xff] }
 0x112   : > { %8983 = vmatpush1.bf16.msra.mxu0 %v11975_v24  ;;  %9456 = vmatpush1.bf16.msra.mxu1 %v11977_v25  ;;  %v12039_v24 = vcombine.low %v664_v12, %v668_v13  ;;  %v12041_v25 = vcombine.low %v665_v14, %v669_v15  ;;  %v728_v12 = vld [vmem:[%s14002_s30 + $0xc40] sm:$0xff]  ;;  %v729_v15 = vld [vmem:[%s14002_s30 + $0xc48] sm:$0xff] }
 0x113   : > { %8984 = vmatprep.subr.bf16.mxu0 %v11984_v26  ;;  %9457 = vmatprep.subr.bf16.mxu1 %v11986_v27  ;;  %v12048_v26 = vcombine.high %v672_v20, %v676_v21  ;;  %v12050_v27 = vcombine.high %v673_v22, %v677_v23  ;;  %v732_v13 = vld [vmem:[%s14002_s30 + $0xc60] sm:$0xff] }
 0x114   : > { %v13523_v14 = vld [vmem:[%s14050_s21 + $0x10] ss:$176 sps:$4 sm:$0xff]  }
 0x116   : > { %8985 = vmatpush1.bf16.msra.mxu0 %v11983_v32  ;;  %9458 = vmatpush1.bf16.msra.mxu1 %v11985_v33  ;;  %v12047_v32 = vcombine.low %v672_v20, %v676_v21  ;;  %v12049_v33 = vcombine.low %v673_v22, %v677_v23  ;;  %v736_v21 = vld [vmem:[%s14002_s30 + $0xc80] sm:$0xff]  ;;  %v13524_v23 = vld [vmem:[%s14050_s21 + $0x1c] ss:$176 sps:$4 sm:$0xff]  }
 0x117   : > { %8986 = vmatprep.subr.bf16.mxu0 %v11992_v34  ;;  %9459 = vmatprep.subr.bf16.mxu1 %v11994_v35  ;;  %v12056_v34 = vcombine.high %v680_v28, %v684_v29  ;;  %v12058_v35 = vcombine.high %v681_v30, %v685_v31  ;;  %v740_v22 = vld [vmem:[%s14002_s30 + $0xca0] sm:$0xff] }
 0x11a   : > { %8987 = vmatpush1.bf16.msra.mxu0 %v11991_v40  ;;  %9460 = vmatpush1.bf16.msra.mxu1 %v11993_v41  ;;  %v12055_v40 = vcombine.low %v680_v28, %v684_v29  ;;  %v12057_v41 = vcombine.low %v681_v30, %v685_v31  ;;  %v12112_v28 = vcombine.high %v736_v21, %v740_v22  ;;  %v744_v30 = vld [vmem:[%s14002_s30 + $0xcc0] sm:$0xff] }
 0x11b   : > { %8988 = vmatprep.subr.bf16.mxu0 %v12000_v42  ;;  %9461 = vmatprep.subr.bf16.mxu1 %v12002_v43  ;;  %v12064_v42 = vcombine.high %v688_v36, %v692_v37  ;;  %v12066_v43 = vcombine.high %v689_v38, %v693_v39  ;;  %v748_v31 = vld [vmem:[%s14002_s30 + $0xce0] sm:$0xff] }
 0x11e   : > { %8989 = vmatpush1.bf16.msra.mxu0 %v11999_v48  ;;  %9462 = vmatpush1.bf16.msra.mxu1 %v12001_v49  ;;  %v12063_v48 = vcombine.low %v688_v36, %v692_v37  ;;  %v12065_v49 = vcombine.low %v689_v38, %v693_v39  ;;  %v12120_v36 = vcombine.high %v744_v30, %v748_v31  ;;  %v752_v38 = vld [vmem:[%s14002_s30 + $0xd00] sm:$0xff] }
 0x11f   : > { %8990 = vmatprep.subr.bf16.mxu0 %v12008_v50  ;;  %9463 = vmatprep.subr.bf16.mxu1 %v12010_v51  ;;  %v12072_v50 = vcombine.high %v696_v44, %v700_v45  ;;  %v12074_v51 = vcombine.high %v697_v46, %v701_v47  ;;  %v756_v39 = vld [vmem:[%s14002_s30 + $0xd20] sm:$0xff] }
 0x122   : > { %8991 = vmatpush1.bf16.msra.mxu0 %v12007_v56  ;;  %9464 = vmatpush1.bf16.msra.mxu1 %v12009_v57  ;;  %v12071_v56 = vcombine.low %v696_v44, %v700_v45  ;;  %v12073_v57 = vcombine.low %v697_v46, %v701_v47  ;;  %v12128_v44 = vcombine.high %v752_v38, %v756_v39  ;;  %v760_v46 = vld [vmem:[%s14002_s30 + $0xd40] sm:$0xff] }
 0x123   : > { %8992 = vmatprep.subr.bf16.mxu0 %v12016_v58  ;;  %9465 = vmatprep.subr.bf16.mxu1 %v12018_v59  ;;  %v12080_v58 = vcombine.high %v704_v52, %v708_v53  ;;  %v12082_v59 = vcombine.high %v705_v54, %v709_v55  ;;  %v764_v47 = vld [vmem:[%s14002_s30 + $0xd60] sm:$0xff] }
 0x126   : > { %8993 = vmatpush1.bf16.msra.mxu0 %v12015_v0  ;;  %9466 = vmatpush1.bf16.msra.mxu1 %v12017_v1  ;;  %v12079_v0 = vcombine.low %v704_v52, %v708_v53  ;;  %v12081_v1 = vcombine.low %v705_v54, %v709_v55  ;;  %v12136_v52 = vcombine.high %v760_v46, %v764_v47  ;;  %v768_v54 = vld [vmem:[%s14002_s30 + $0xd80] sm:$0xff] }
 0x127   : > { %8994 = vmatprep.subr.bf16.mxu0 %v12024_v2  ;;  %9467 = vmatprep.subr.bf16.mxu1 %v12026_v3  ;;  %v12088_v2 = vcombine.high %v712_v60, %v716_v61  ;;  %v12090_v3 = vcombine.high %v713_v62, %v717_v63  ;;  %v772_v55 = vld [vmem:[%s14002_s30 + $0xda0] sm:$0xff] }
 0x12a   : > { %8995 = vmatpush1.bf16.msra.mxu0 %v12023_v8  ;;  %9468 = vmatpush1.bf16.msra.mxu1 %v12025_v9  ;;  %v12087_v8 = vcombine.low %v712_v60, %v716_v61  ;;  %v12089_v9 = vcombine.low %v713_v62, %v717_v63  ;;  %v12144_v60 = vcombine.high %v768_v54, %v772_v55  ;;  %v776_v62 = vld [vmem:[%s14002_s30 + $0xdc0] sm:$0xff] }
 0x12b   : > { %8996 = vmatprep.subr.bf16.mxu0 %v12032_v10  ;;  %9469 = vmatprep.subr.bf16.mxu1 %v12034_v11  ;;  %v12096_v10 = vcombine.high %v720_v4, %v724_v5  ;;  %v12098_v11 = vcombine.high %v721_v6, %v725_v7  ;;  %v780_v63 = vld [vmem:[%s14002_s30 + $0xde0] sm:$0xff] }
 0x12e   : > { %8997 = vmatpush1.bf16.msra.mxu0 %v12031_v16  ;;  %9470 = vmatpush1.bf16.msra.mxu1 %v12033_v17  ;;  %v733_v16 = vld [vmem:[%s14002_s30 + $0xc68] sm:$0xff]  ;;  %v12095_v17 = vcombine.low %v720_v4, %v724_v5  ;;  %v12152_v4 = vcombine.high %v776_v62, %v780_v63 }
 0x12f   : > { %8998 = vmatprep.subr.bf16.mxu0 %v12040_v18  ;;  %9471 = vmatprep.subr.bf16.mxu1 %v12042_v19  ;;  %v12097_v18 = vcombine.low %v721_v6, %v725_v7  ;;  %v12104_v19 = vcombine.high %v728_v12, %v732_v13  ;;  %v12106_v20 = vcombine.high %v729_v15, %v733_v16  ;;  %v784_v6 = vld [vmem:[%s14002_s30 + $0xe00] sm:$0xff] }
 0x130   : > { %v788_v7 = vld [vmem:[%s14002_s30 + $0xe20] sm:$0xff] }
 0x132   : > { %8999 = vmatpush1.bf16.msra.mxu0 %v12039_v24  ;;  %9472 = vmatpush1.bf16.msra.mxu1 %v12041_v25  ;;  %v737_v24 = vld [vmem:[%s14002_s30 + $0xc88] sm:$0xff] }
 0x133   : > { %9000 = vmatprep.subr.bf16.mxu0 %v12048_v26  ;;  %9473 = vmatprep.subr.bf16.mxu1 %v12050_v27  ;;  %v741_v25 = vld [vmem:[%s14002_s30 + $0xca8] sm:$0xff]  ;;  %v12103_v26 = vcombine.low %v728_v12, %v732_v13  ;;  %v12105_v27 = vcombine.low %v729_v15, %v733_v16  ;;  %v12160_v12 = vcombine.high %v784_v6, %v788_v7  ;;  %v796_v15 = vld [vmem:[%s14002_s30 + $0xe60] sm:$0xff] }
 0x134   : > { %v12114_v29 = vcombine.high %v737_v24, %v741_v25  ;;  %v793_v16 = vld [vmem:[%s14002_s30 + $0xe48] sm:$0xff] }
 0x136   : > { %9001 = vmatpush1.bf16.msra.mxu0 %v12047_v32  ;;  %9474 = vmatpush1.bf16.msra.mxu1 %v12049_v33  ;;  %v745_v32 = vld [vmem:[%s14002_s30 + $0xcc8] sm:$0xff] }
 0x137   : > { %9002 = vmatprep.subr.bf16.mxu0 %v12056_v34  ;;  %9475 = vmatprep.subr.bf16.mxu1 %v12058_v35  ;;  %v749_v33 = vld [vmem:[%s14002_s30 + $0xce8] sm:$0xff]  ;;  %v12111_v34 = vcombine.low %v736_v21, %v740_v22  ;;  %v12113_v35 = vcombine.low %v737_v24, %v741_v25  ;;  %v800_v22 = vld [vmem:[%s14002_s30 + $0xe80] sm:$0xff] }
 0x138   : > { %v12122_v37 = vcombine.high %v745_v32, %v749_v33  ;;  %v801_v24 = vld [vmem:[%s14002_s30 + $0xe88] sm:$0xff] }
 0x139   : > { %v805_v25 = vld [vmem:[%s14002_s30 + $0xea8] sm:$0xff] }
 0x13a   : > { %9003 = vmatpush1.bf16.msra.mxu0 %v12055_v40  ;;  %9476 = vmatpush1.bf16.msra.mxu1 %v12057_v41  ;;  %v753_v40 = vld [vmem:[%s14002_s30 + $0xd08] sm:$0xff] }
 0x13b   : > { %9004 = vmatprep.subr.bf16.mxu0 %v12064_v42  ;;  %9477 = vmatprep.subr.bf16.mxu1 %v12066_v43  ;;  %v757_v41 = vld [vmem:[%s14002_s30 + $0xd28] sm:$0xff]  ;;  %v12119_v42 = vcombine.low %v744_v30, %v748_v31  ;;  %v12121_v43 = vcombine.low %v745_v32, %v749_v33  ;;  %v808_v30 = vld [vmem:[%s14002_s30 + $0xec0] sm:$0xff] }
 0x13c   : > { %v12130_v45 = vcombine.high %v753_v40, %v757_v41  ;;  %v812_v31 = vld [vmem:[%s14002_s30 + $0xee0] sm:$0xff]  ;;  %v809_v32 = vld [vmem:[%s14002_s30 + $0xec8] sm:$0xff] }
 0x13d   : > { %v813_v33 = vld [vmem:[%s14002_s30 + $0xee8] sm:$0xff] }
 0x13e   : > { %9005 = vmatpush1.bf16.msra.mxu0 %v12063_v48  ;;  %9478 = vmatpush1.bf16.msra.mxu1 %v12065_v49  ;;  %v761_v48 = vld [vmem:[%s14002_s30 + $0xd48] sm:$0xff] }
 0x13f   : > { %9006 = vmatprep.subr.bf16.mxu0 %v12072_v50  ;;  %9479 = vmatprep.subr.bf16.mxu1 %v12074_v51  ;;  %v765_v49 = vld [vmem:[%s14002_s30 + $0xd68] sm:$0xff]  ;;  %v12127_v50 = vcombine.low %v752_v38, %v756_v39  ;;  %v12129_v51 = vcombine.low %v753_v40, %v757_v41  ;;  %v816_v38 = vld [vmem:[%s14002_s30 + $0xf00] sm:$0xff] }
 0x140   : > { %v12138_v53 = vcombine.high %v761_v48, %v765_v49  ;;  %v820_v39 = vld [vmem:[%s14002_s30 + $0xf20] sm:$0xff]  ;;  %v817_v40 = vld [vmem:[%s14002_s30 + $0xf08] sm:$0xff] }
 0x141   : > { %v821_v41 = vld [vmem:[%s14002_s30 + $0xf28] sm:$0xff] }
 0x142   : > { %9007 = vmatpush1.bf16.msra.mxu0 %v12071_v56  ;;  %9480 = vmatpush1.bf16.msra.mxu1 %v12073_v57  ;;  %v769_v56 = vld [vmem:[%s14002_s30 + $0xd88] sm:$0xff] }
 0x143   : > { %9008 = vmatprep.subr.bf16.mxu0 %v12080_v58  ;;  %9481 = vmatprep.subr.bf16.mxu1 %v12082_v59  ;;  %v773_v57 = vld [vmem:[%s14002_s30 + $0xda8] sm:$0xff]  ;;  %v12135_v58 = vcombine.low %v760_v46, %v764_v47  ;;  %v12137_v59 = vcombine.low %v761_v48, %v765_v49  ;;  %v824_v46 = vld [vmem:[%s14002_s30 + $0xf40] sm:$0xff] }
 0x144   : > { %v12146_v61 = vcombine.high %v769_v56, %v773_v57  ;;  %v828_v47 = vld [vmem:[%s14002_s30 + $0xf60] sm:$0xff]  ;;  %v825_v48 = vld [vmem:[%s14002_s30 + $0xf48] sm:$0xff] }
 0x145   : > { %v829_v49 = vld [vmem:[%s14002_s30 + $0xf68] sm:$0xff] }
 0x146   : > { %9009 = vmatpush1.bf16.msra.mxu0 %v12079_v0  ;;  %9482 = vmatpush1.bf16.msra.mxu1 %v12081_v1  ;;  %v777_v0 = vld [vmem:[%s14002_s30 + $0xdc8] sm:$0xff] }
 0x147   : > { %9010 = vmatprep.subr.bf16.mxu0 %v12088_v2  ;;  %9483 = vmatprep.subr.bf16.mxu1 %v12090_v3  ;;  %v781_v1 = vld [vmem:[%s14002_s30 + $0xde8] sm:$0xff]  ;;  %v12143_v2 = vcombine.low %v768_v54, %v772_v55  ;;  %v12145_v3 = vcombine.low %v769_v56, %v773_v57  ;;  %v832_v54 = vld [vmem:[%s14002_s30 + $0xf80] sm:$0xff] }
 0x148   : > { %v12154_v5 = vcombine.high %v777_v0, %v781_v1  ;;  %v836_v55 = vld [vmem:[%s14002_s30 + $0xfa0] sm:$0xff]  ;;  %v833_v56 = vld [vmem:[%s14002_s30 + $0xf88] sm:$0xff] }
 0x149   : > { %v837_v57 = vld [vmem:[%s14002_s30 + $0xfa8] sm:$0xff] }
 0x14a   : > { %9011 = vmatpush1.bf16.msra.mxu0 %v12087_v8  ;;  %9484 = vmatpush1.bf16.msra.mxu1 %v12089_v9  ;;  %v785_v8 = vld [vmem:[%s14002_s30 + $0xe08] sm:$0xff] }
 0x14b   : > { %9023 = vmatprep.subr.bf16.mxu0 %v12096_v10  ;;  %9496 = vmatprep.subr.bf16.mxu1 %v12098_v11  ;;  %v789_v9 = vld [vmem:[%s14002_s30 + $0xe28] sm:$0xff]  ;;  %v12151_v10 = vcombine.low %v776_v62, %v780_v63  ;;  %v12153_v11 = vcombine.low %v777_v0, %v781_v1  ;;  %v840_v62 = vld [vmem:[%s14002_s30 + $0xfc0] sm:$0xff] }
 0x14c   : > { %v12162_v13 = vcombine.high %v785_v8, %v789_v9  ;;  %v844_v63 = vld [vmem:[%s14002_s30 + $0xfe0] sm:$0xff]  ;;  %v841_v0 = vld [vmem:[%s14002_s30 + $0xfc8] sm:$0xff] }
 0x14d   : > { %9013 = vmatmul.mubr.bf16.vlgmr.msra.gmra.mrb[0].mxu0 %v13523_v14  ;;  %9486 = vmatmul.mubr.bf16.vlgmr.msra.gmra.mrb[0].mxu1 %v13523_v14  ;;  %v792_v14 = vld [vmem:[%s14002_s30 + $0xe40] sm:$0xff]  ;;  %v845_v1 = vld [vmem:[%s14002_s30 + $0xfe8] sm:$0xff] }
 0x14e   : > { %9024 = vmatpush1.bf16.msra.mxu0 %v12095_v17  ;;  %9497 = vmatpush1.bf16.msra.mxu1 %v12097_v18  ;;  %v797_v17 = vld [vmem:[%s14002_s30 + $0xe68] sm:$0xff]  ;;  %v12159_v18 = vcombine.low %v784_v6, %v788_v7  ;;  %v848_v6 = vld [vmem:[%s14002_s30 + $0x1000] sm:$0xff] }
 0x14f   : > { %9025 = vmatprep.subr.bf16.mxu0 %v12104_v19  ;;  %9498 = vmatprep.subr.bf16.mxu1 %v12106_v20  ;;  %v12161_v19 = vcombine.low %v785_v8, %v789_v9  ;;  %v12168_v20 = vcombine.high %v792_v14, %v796_v15  ;;  %v12170_v21 = vcombine.high %v793_v16, %v797_v17  ;;  %v852_v7 = vld [vmem:[%s14002_s30 + $0x1020] sm:$0xff]  ;;  %v849_v8 = vld [vmem:[%s14002_s30 + $0x1008] sm:$0xff] }
 0x150   : > { %9055 = vmatprep.mubr.bf16.mxu0 %v13524_v23  ;;  %9528 = vmatprep.mubr.bf16.mxu1 %v13524_v23  ;;  %v804_v23 = vld [vmem:[%s14002_s30 + $0xea0] sm:$0xff]  ;;  %v853_v9 = vld [vmem:[%s14002_s30 + $0x1028] sm:$0xff] }
 0x152   : > { %9026 = vmatpush1.bf16.msra.mxu0 %v12103_v26  ;;  %9499 = vmatpush1.bf16.msra.mxu1 %v12105_v27  ;;  %v12167_v26 = vcombine.low %v792_v14, %v796_v15  ;;  %v12169_v27 = vcombine.low %v793_v16, %v797_v17  ;;  %v856_v14 = vld [vmem:[%s14002_s30 + $0x1040] sm:$0xff]  ;;  %v13526_v16 = vld [vmem:[%s14050_s21 + $0x18] ss:$176 sps:$4 sm:$0xff]  }
 0x153   : > { %9027 = vmatprep.subr.bf16.mxu0 %v12112_v28  ;;  %9500 = vmatprep.subr.bf16.mxu1 %v12114_v29  ;;  %v12176_v28 = vcombine.high %v800_v22, %v804_v23  ;;  %v12178_v29 = vcombine.high %v801_v24, %v805_v25  ;;  %v860_v15 = vld [vmem:[%s14002_s30 + $0x1060] sm:$0xff]  ;;  %v857_v17 = vld [vmem:[%s14002_s30 + $0x1048] sm:$0xff] }
 0x156   : > { %9028 = vmatpush1.bf16.msra.mxu0 %v12111_v34  ;;  %9501 = vmatpush1.bf16.msra.mxu1 %v12113_v35  ;;  %v12175_v34 = vcombine.low %v800_v22, %v804_v23  ;;  %v12177_v35 = vcombine.low %v801_v24, %v805_v25  ;;  %v864_v23 = vld [vmem:[%s14002_s30 + $0x1080] sm:$0xff] }
 0x157   : > { %9029 = vmatprep.subr.bf16.mxu0 %v12120_v36  ;;  %9502 = vmatprep.subr.bf16.mxu1 %v12122_v37  ;;  %v12184_v36 = vcombine.high %v808_v30, %v812_v31  ;;  %v12186_v37 = vcombine.high %v809_v32, %v813_v33  ;;  %v868_v24 = vld [vmem:[%s14002_s30 + $0x10a0] sm:$0xff] }
 0x158   : > { %v13527_v25 = vld [vmem:[%s14050_s21 + $0x24] ss:$176 sps:$4 sm:$0xff]  }
 0x15a   : > { %9030 = vmatpush1.bf16.msra.mxu0 %v12119_v42  ;;  %9503 = vmatpush1.bf16.msra.mxu1 %v12121_v43  ;;  %v12183_v42 = vcombine.low %v808_v30, %v812_v31  ;;  %v12185_v43 = vcombine.low %v809_v32, %v813_v33  ;;  %v12240_v30 = vcombine.high %v864_v23, %v868_v24  ;;  %v872_v32 = vld [vmem:[%s14002_s30 + $0x10c0] sm:$0xff] }
 0x15b   : > { %9031 = vmatprep.subr.bf16.mxu0 %v12128_v44  ;;  %9504 = vmatprep.subr.bf16.mxu1 %v12130_v45  ;;  %v12192_v44 = vcombine.high %v816_v38, %v820_v39  ;;  %v12194_v45 = vcombine.high %v817_v40, %v821_v41  ;;  %v876_v33 = vld [vmem:[%s14002_s30 + $0x10e0] sm:$0xff] }
 0x15e   : > { %9032 = vmatpush1.bf16.msra.mxu0 %v12127_v50  ;;  %9505 = vmatpush1.bf16.msra.mxu1 %v12129_v51  ;;  %v12191_v50 = vcombine.low %v816_v38, %v820_v39  ;;  %v12193_v51 = vcombine.low %v817_v40, %v821_v41  ;;  %v12248_v38 = vcombine.high %v872_v32, %v876_v33  ;;  %v880_v40 = vld [vmem:[%s14002_s30 + $0x1100] sm:$0xff] }
 0x15f   : > { %9033 = vmatprep.subr.bf16.mxu0 %v12136_v52  ;;  %9506 = vmatprep.subr.bf16.mxu1 %v12138_v53  ;;  %v12200_v52 = vcombine.high %v824_v46, %v828_v47  ;;  %v12202_v53 = vcombine.high %v825_v48, %v829_v49  ;;  %v884_v41 = vld [vmem:[%s14002_s30 + $0x1120] sm:$0xff] }
 0x162   : > { %9034 = vmatpush1.bf16.msra.mxu0 %v12135_v58  ;;  %9507 = vmatpush1.bf16.msra.mxu1 %v12137_v59  ;;  %v12199_v58 = vcombine.low %v824_v46, %v828_v47  ;;  %v12201_v59 = vcombine.low %v825_v48, %v829_v49  ;;  %v12256_v46 = vcombine.high %v880_v40, %v884_v41  ;;  %v888_v48 = vld [vmem:[%s14002_s30 + $0x1140] sm:$0xff] }
 0x163   : > { %9035 = vmatprep.subr.bf16.mxu0 %v12144_v60  ;;  %9508 = vmatprep.subr.bf16.mxu1 %v12146_v61  ;;  %v12208_v60 = vcombine.high %v832_v54, %v836_v55  ;;  %v12210_v61 = vcombine.high %v833_v56, %v837_v57  ;;  %v892_v49 = vld [vmem:[%s14002_s30 + $0x1160] sm:$0xff] }
 0x166   : > { %9036 = vmatpush1.bf16.msra.mxu0 %v12143_v2  ;;  %9509 = vmatpush1.bf16.msra.mxu1 %v12145_v3  ;;  %v12207_v2 = vcombine.low %v832_v54, %v836_v55  ;;  %v12209_v3 = vcombine.low %v833_v56, %v837_v57  ;;  %v12264_v54 = vcombine.high %v888_v48, %v892_v49  ;;  %v896_v56 = vld [vmem:[%s14002_s30 + $0x1180] sm:$0xff] }
 0x167   : > { %9037 = vmatprep.subr.bf16.mxu0 %v12152_v4  ;;  %9510 = vmatprep.subr.bf16.mxu1 %v12154_v5  ;;  %v12216_v4 = vcombine.high %v840_v62, %v844_v63  ;;  %v12218_v5 = vcombine.high %v841_v0, %v845_v1  ;;  %v900_v57 = vld [vmem:[%s14002_s30 + $0x11a0] sm:$0xff] }
 0x16a   : > { %9038 = vmatpush1.bf16.msra.mxu0 %v12151_v10  ;;  %9511 = vmatpush1.bf16.msra.mxu1 %v12153_v11  ;;  %v12215_v10 = vcombine.low %v840_v62, %v844_v63  ;;  %v12217_v11 = vcombine.low %v841_v0, %v845_v1  ;;  %v12272_v62 = vcombine.high %v896_v56, %v900_v57  ;;  %v904_v0 = vld [vmem:[%s14002_s30 + $0x11c0] sm:$0xff] }
 0x16b   : > { %9039 = vmatprep.subr.bf16.mxu0 %v12160_v12  ;;  %9512 = vmatprep.subr.bf16.mxu1 %v12162_v13  ;;  %v12224_v12 = vcombine.high %v848_v6, %v852_v7  ;;  %v12226_v13 = vcombine.high %v849_v8, %v853_v9  ;;  %v908_v1 = vld [vmem:[%s14002_s30 + $0x11e0] sm:$0xff] }
 0x16e   : > { %9040 = vmatpush1.bf16.msra.mxu0 %v12159_v18  ;;  %9513 = vmatpush1.bf16.msra.mxu1 %v12161_v19  ;;  %v861_v18 = vld [vmem:[%s14002_s30 + $0x1068] sm:$0xff]  ;;  %v12223_v19 = vcombine.low %v848_v6, %v852_v7  ;;  %v12280_v6 = vcombine.high %v904_v0, %v908_v1 }
 0x16f   : > { %9041 = vmatprep.subr.bf16.mxu0 %v12168_v20  ;;  %9514 = vmatprep.subr.bf16.mxu1 %v12170_v21  ;;  %v12225_v20 = vcombine.low %v849_v8, %v853_v9  ;;  %v12232_v21 = vcombine.high %v856_v14, %v860_v15  ;;  %v12234_v22 = vcombine.high %v857_v17, %v861_v18  ;;  %v912_v8 = vld [vmem:[%s14002_s30 + $0x1200] sm:$0xff] }
 0x170   : > { %v916_v9 = vld [vmem:[%s14002_s30 + $0x1220] sm:$0xff] }
 0x172   : > { %9042 = vmatpush1.bf16.msra.mxu0 %v12167_v26  ;;  %9515 = vmatpush1.bf16.msra.mxu1 %v12169_v27  ;;  %v865_v26 = vld [vmem:[%s14002_s30 + $0x1088] sm:$0xff] }
 0x173   : > { %9043 = vmatprep.subr.bf16.mxu0 %v12176_v28  ;;  %9516 = vmatprep.subr.bf16.mxu1 %v12178_v29  ;;  %v869_v27 = vld [vmem:[%s14002_s30 + $0x10a8] sm:$0xff]  ;;  %v12231_v28 = vcombine.low %v856_v14, %v860_v15  ;;  %v12233_v29 = vcombine.low %v857_v17, %v861_v18  ;;  %v12288_v14 = vcombine.high %v912_v8, %v916_v9  ;;  %v924_v17 = vld [vmem:[%s14002_s30 + $0x1260] sm:$0xff] }
 0x174   : > { %v12242_v31 = vcombine.high %v865_v26, %v869_v27  ;;  %v921_v18 = vld [vmem:[%s14002_s30 + $0x1248] sm:$0xff] }
 0x176   : > { %9044 = vmatpush1.bf16.msra.mxu0 %v12175_v34  ;;  %9517 = vmatpush1.bf16.msra.mxu1 %v12177_v35  ;;  %v873_v34 = vld [vmem:[%s14002_s30 + $0x10c8] sm:$0xff] }
 0x177   : > { %9045 = vmatprep.subr.bf16.mxu0 %v12184_v36  ;;  %9518 = vmatprep.subr.bf16.mxu1 %v12186_v37  ;;  %v877_v35 = vld [vmem:[%s14002_s30 + $0x10e8] sm:$0xff]  ;;  %v12239_v36 = vcombine.low %v864_v23, %v868_v24  ;;  %v12241_v37 = vcombine.low %v865_v26, %v869_v27  ;;  %v928_v24 = vld [vmem:[%s14002_s30 + $0x1280] sm:$0xff] }
 0x178   : > { %v12250_v39 = vcombine.high %v873_v34, %v877_v35  ;;  %v929_v26 = vld [vmem:[%s14002_s30 + $0x1288] sm:$0xff] }
 0x179   : > { %v933_v27 = vld [vmem:[%s14002_s30 + $0x12a8] sm:$0xff] }
 0x17a   : > { %9046 = vmatpush1.bf16.msra.mxu0 %v12183_v42  ;;  %9519 = vmatpush1.bf16.msra.mxu1 %v12185_v43  ;;  %v881_v42 = vld [vmem:[%s14002_s30 + $0x1108] sm:$0xff] }
 0x17b   : > { %9047 = vmatprep.subr.bf16.mxu0 %v12192_v44  ;;  %9520 = vmatprep.subr.bf16.mxu1 %v12194_v45  ;;  %v885_v43 = vld [vmem:[%s14002_s30 + $0x1128] sm:$0xff]  ;;  %v12247_v44 = vcombine.low %v872_v32, %v876_v33  ;;  %v12249_v45 = vcombine.low %v873_v34, %v877_v35  ;;  %v936_v32 = vld [vmem:[%s14002_s30 + $0x12c0] sm:$0xff] }
 0x17c   : > { %v12258_v47 = vcombine.high %v881_v42, %v885_v43  ;;  %v940_v33 = vld [vmem:[%s14002_s30 + $0x12e0] sm:$0xff]  ;;  %v937_v34 = vld [vmem:[%s14002_s30 + $0x12c8] sm:$0xff] }
 0x17d   : > { %v941_v35 = vld [vmem:[%s14002_s30 + $0x12e8] sm:$0xff] }
 0x17e   : > { %9048 = vmatpush1.bf16.msra.mxu0 %v12191_v50  ;;  %9521 = vmatpush1.bf16.msra.mxu1 %v12193_v51  ;;  %v889_v50 = vld [vmem:[%s14002_s30 + $0x1148] sm:$0xff] }
 0x17f   : > { %9049 = vmatprep.subr.bf16.mxu0 %v12200_v52  ;;  %9522 = vmatprep.subr.bf16.mxu1 %v12202_v53  ;;  %v893_v51 = vld [vmem:[%s14002_s30 + $0x1168] sm:$0xff]  ;;  %v12255_v52 = vcombine.low %v880_v40, %v884_v41  ;;  %v12257_v53 = vcombine.low %v881_v42, %v885_v43  ;;  %v944_v40 = vld [vmem:[%s14002_s30 + $0x1300] sm:$0xff] }
 0x180   : > { %v12266_v55 = vcombine.high %v889_v50, %v893_v51  ;;  %v948_v41 = vld [vmem:[%s14002_s30 + $0x1320] sm:$0xff]  ;;  %v945_v42 = vld [vmem:[%s14002_s30 + $0x1308] sm:$0xff] }
 0x181   : > { %v949_v43 = vld [vmem:[%s14002_s30 + $0x1328] sm:$0xff] }
 0x182   : > { %9050 = vmatpush1.bf16.msra.mxu0 %v12199_v58  ;;  %9523 = vmatpush1.bf16.msra.mxu1 %v12201_v59  ;;  %v897_v58 = vld [vmem:[%s14002_s30 + $0x1188] sm:$0xff] }
 0x183   : > { %9051 = vmatprep.subr.bf16.mxu0 %v12208_v60  ;;  %9524 = vmatprep.subr.bf16.mxu1 %v12210_v61  ;;  %v901_v59 = vld [vmem:[%s14002_s30 + $0x11a8] sm:$0xff]  ;;  %v12263_v60 = vcombine.low %v888_v48, %v892_v49  ;;  %v12265_v61 = vcombine.low %v889_v50, %v893_v51  ;;  %v952_v48 = vld [vmem:[%s14002_s30 + $0x1340] sm:$0xff] }
 0x184   : > { %v12274_v63 = vcombine.high %v897_v58, %v901_v59  ;;  %v956_v49 = vld [vmem:[%s14002_s30 + $0x1360] sm:$0xff]  ;;  %v953_v50 = vld [vmem:[%s14002_s30 + $0x1348] sm:$0xff] }
 0x185   : > { %v957_v51 = vld [vmem:[%s14002_s30 + $0x1368] sm:$0xff] }
 0x186   : > { %9052 = vmatpush1.bf16.msra.mxu0 %v12207_v2  ;;  %9525 = vmatpush1.bf16.msra.mxu1 %v12209_v3  ;;  %v905_v2 = vld [vmem:[%s14002_s30 + $0x11c8] sm:$0xff] }
 0x187   : > { %9053 = vmatprep.subr.bf16.mxu0 %v12216_v4  ;;  %9526 = vmatprep.subr.bf16.mxu1 %v12218_v5  ;;  %v909_v3 = vld [vmem:[%s14002_s30 + $0x11e8] sm:$0xff]  ;;  %v12271_v4 = vcombine.low %v896_v56, %v900_v57  ;;  %v12273_v5 = vcombine.low %v897_v58, %v901_v59  ;;  %v960_v56 = vld [vmem:[%s14002_s30 + $0x1380] sm:$0xff] }
 0x188   : > { %v12282_v7 = vcombine.high %v905_v2, %v909_v3  ;;  %v964_v57 = vld [vmem:[%s14002_s30 + $0x13a0] sm:$0xff]  ;;  %v961_v58 = vld [vmem:[%s14002_s30 + $0x1388] sm:$0xff] }
 0x189   : > { %v965_v59 = vld [vmem:[%s14002_s30 + $0x13a8] sm:$0xff] }
 0x18a   : > { %9054 = vmatpush1.bf16.msra.mxu0 %v12215_v10  ;;  %9527 = vmatpush1.bf16.msra.mxu1 %v12217_v11  ;;  %v913_v10 = vld [vmem:[%s14002_s30 + $0x1208] sm:$0xff] }
 0x18b   : > { %9066 = vmatprep.subr.bf16.mxu0 %v12224_v12  ;;  %9539 = vmatprep.subr.bf16.mxu1 %v12226_v13  ;;  %v917_v11 = vld [vmem:[%s14002_s30 + $0x1228] sm:$0xff]  ;;  %v12279_v12 = vcombine.low %v904_v0, %v908_v1  ;;  %v12281_v13 = vcombine.low %v905_v2, %v909_v3  ;;  %v968_v0 = vld [vmem:[%s14002_s30 + $0x13c0] sm:$0xff] }
 0x18c   : > { %v12290_v15 = vcombine.high %v913_v10, %v917_v11  ;;  %v972_v1 = vld [vmem:[%s14002_s30 + $0x13e0] sm:$0xff]  ;;  %v969_v2 = vld [vmem:[%s14002_s30 + $0x13c8] sm:$0xff] }
 0x18d   : > { %9056 = vmatmul.mubr.bf16.vlgmr.msra.gmra.mrb[0].mxu0 %v13526_v16  ;;  %9529 = vmatmul.mubr.bf16.vlgmr.msra.gmra.mrb[0].mxu1 %v13526_v16  ;;  %v920_v16 = vld [vmem:[%s14002_s30 + $0x1240] sm:$0xff]  ;;  %v973_v3 = vld [vmem:[%s14002_s30 + $0x13e8] sm:$0xff] }
 0x18e   : > { %9067 = vmatpush1.bf16.msra.mxu0 %v12223_v19  ;;  %9540 = vmatpush1.bf16.msra.mxu1 %v12225_v20  ;;  %v925_v19 = vld [vmem:[%s14002_s30 + $0x1268] sm:$0xff]  ;;  %v12287_v20 = vcombine.low %v912_v8, %v916_v9  ;;  %v976_v8 = vld [vmem:[%s14002_s30 + $0x1400] sm:$0xff] }
 0x18f   : > { %9068 = vmatprep.subr.bf16.mxu0 %v12232_v21  ;;  %9541 = vmatprep.subr.bf16.mxu1 %v12234_v22  ;;  %v12289_v21 = vcombine.low %v913_v10, %v917_v11  ;;  %v12296_v22 = vcombine.high %v920_v16, %v924_v17  ;;  %v12298_v23 = vcombine.high %v921_v18, %v925_v19  ;;  %v980_v9 = vld [vmem:[%s14002_s30 + $0x1420] sm:$0xff]  ;;  %v977_v10 = vld [vmem:[%s14002_s30 + $0x1408] sm:$0xff] }
 0x190   : > { %9098 = vmatprep.mubr.bf16.mxu0 %v13527_v25  ;;  %9571 = vmatprep.mubr.bf16.mxu1 %v13527_v25  ;;  %v932_v25 = vld [vmem:[%s14002_s30 + $0x12a0] sm:$0xff]  ;;  %v981_v11 = vld [vmem:[%s14002_s30 + $0x1428] sm:$0xff] }
 0x192   : > { %9069 = vmatpush1.bf16.msra.mxu0 %v12231_v28  ;;  %9542 = vmatpush1.bf16.msra.mxu1 %v12233_v29  ;;  %v12295_v28 = vcombine.low %v920_v16, %v924_v17  ;;  %v12297_v29 = vcombine.low %v921_v18, %v925_v19  ;;  %v984_v16 = vld [vmem:[%s14002_s30 + $0x1440] sm:$0xff]  ;;  %v985_v19 = vld [vmem:[%s14002_s30 + $0x1448] sm:$0xff] }
 0x193   : > { %9070 = vmatprep.subr.bf16.mxu0 %v12240_v30  ;;  %9543 = vmatprep.subr.bf16.mxu1 %v12242_v31  ;;  %v12304_v30 = vcombine.high %v928_v24, %v932_v25  ;;  %v12306_v31 = vcombine.high %v929_v26, %v933_v27  ;;  %v988_v17 = vld [vmem:[%s14002_s30 + $0x1460] sm:$0xff] }
 0x194   : > { %v13529_v18 = vld [vmem:[%s14050_s21 + $0x20] ss:$176 sps:$4 sm:$0xff]  }
 0x196   : > { %9071 = vmatpush1.bf16.msra.mxu0 %v12239_v36  ;;  %9544 = vmatpush1.bf16.msra.mxu1 %v12241_v37  ;;  %v12303_v36 = vcombine.low %v928_v24, %v932_v25  ;;  %v12305_v37 = vcombine.low %v929_v26, %v933_v27  ;;  %v992_v25 = vld [vmem:[%s14002_s30 + $0x1480] sm:$0xff]  ;;  %v13530_v27 = vld [vmem:[%s14050_s21 + $0x2c] ss:$176 sps:$4 sm:$0xff]  }
 0x197   : > { %9072 = vmatprep.subr.bf16.mxu0 %v12248_v38  ;;  %9545 = vmatprep.subr.bf16.mxu1 %v12250_v39  ;;  %v12312_v38 = vcombine.high %v936_v32, %v940_v33  ;;  %v12314_v39 = vcombine.high %v937_v34, %v941_v35  ;;  %v996_v26 = vld [vmem:[%s14002_s30 + $0x14a0] sm:$0xff] }
 0x19a   : > { %9073 = vmatpush1.bf16.msra.mxu0 %v12247_v44  ;;  %9546 = vmatpush1.bf16.msra.mxu1 %v12249_v45  ;;  %v12311_v44 = vcombine.low %v936_v32, %v940_v33  ;;  %v12313_v45 = vcombine.low %v937_v34, %v941_v35  ;;  %v12368_v32 = vcombine.high %v992_v25, %v996_v26  ;;  %v1000_v34 = vld [vmem:[%s14002_s30 + $0x14c0] sm:$0xff] }
 0x19b   : > { %9074 = vmatprep.subr.bf16.mxu0 %v12256_v46  ;;  %9547 = vmatprep.subr.bf16.mxu1 %v12258_v47  ;;  %v12320_v46 = vcombine.high %v944_v40, %v948_v41  ;;  %v12322_v47 = vcombine.high %v945_v42, %v949_v43  ;;  %v1004_v35 = vld [vmem:[%s14002_s30 + $0x14e0] sm:$0xff] }
 0x19e   : > { %9075 = vmatpush1.bf16.msra.mxu0 %v12255_v52  ;;  %9548 = vmatpush1.bf16.msra.mxu1 %v12257_v53  ;;  %v12319_v52 = vcombine.low %v944_v40, %v948_v41  ;;  %v12321_v53 = vcombine.low %v945_v42, %v949_v43  ;;  %v12376_v40 = vcombine.high %v1000_v34, %v1004_v35  ;;  %v1008_v42 = vld [vmem:[%s14002_s30 + $0x1500] sm:$0xff] }
 0x19f   : > { %9076 = vmatprep.subr.bf16.mxu0 %v12264_v54  ;;  %9549 = vmatprep.subr.bf16.mxu1 %v12266_v55  ;;  %v12328_v54 = vcombine.high %v952_v48, %v956_v49  ;;  %v12330_v55 = vcombine.high %v953_v50, %v957_v51  ;;  %v1012_v43 = vld [vmem:[%s14002_s30 + $0x1520] sm:$0xff] }
 0x1a2   : > { %9077 = vmatpush1.bf16.msra.mxu0 %v12263_v60  ;;  %9550 = vmatpush1.bf16.msra.mxu1 %v12265_v61  ;;  %v12327_v60 = vcombine.low %v952_v48, %v956_v49  ;;  %v12329_v61 = vcombine.low %v953_v50, %v957_v51  ;;  %v12384_v48 = vcombine.high %v1008_v42, %v1012_v43  ;;  %v1016_v50 = vld [vmem:[%s14002_s30 + $0x1540] sm:$0xff] }
 0x1a3   : > { %9078 = vmatprep.subr.bf16.mxu0 %v12272_v62  ;;  %9551 = vmatprep.subr.bf16.mxu1 %v12274_v63  ;;  %v12336_v62 = vcombine.high %v960_v56, %v964_v57  ;;  %v12338_v63 = vcombine.high %v961_v58, %v965_v59  ;;  %v1020_v51 = vld [vmem:[%s14002_s30 + $0x1560] sm:$0xff] }
 0x1a6   : > { %9079 = vmatpush1.bf16.msra.mxu0 %v12271_v4  ;;  %9552 = vmatpush1.bf16.msra.mxu1 %v12273_v5  ;;  %v12335_v4 = vcombine.low %v960_v56, %v964_v57  ;;  %v12337_v5 = vcombine.low %v961_v58, %v965_v59  ;;  %v12392_v56 = vcombine.high %v1016_v50, %v1020_v51  ;;  %v1024_v58 = vld [vmem:[%s14002_s30 + $0x1580] sm:$0xff] }
 0x1a7   : > { %9080 = vmatprep.subr.bf16.mxu0 %v12280_v6  ;;  %9553 = vmatprep.subr.bf16.mxu1 %v12282_v7  ;;  %v12344_v6 = vcombine.high %v968_v0, %v972_v1  ;;  %v12346_v7 = vcombine.high %v969_v2, %v973_v3  ;;  %v1028_v59 = vld [vmem:[%s14002_s30 + $0x15a0] sm:$0xff] }
 0x1aa   : > { %9081 = vmatpush1.bf16.msra.mxu0 %v12279_v12  ;;  %9554 = vmatpush1.bf16.msra.mxu1 %v12281_v13  ;;  %v12343_v12 = vcombine.low %v968_v0, %v972_v1  ;;  %v12345_v13 = vcombine.low %v969_v2, %v973_v3  ;;  %v12400_v0 = vcombine.high %v1024_v58, %v1028_v59  ;;  %v1032_v2 = vld [vmem:[%s14002_s30 + $0x15c0] sm:$0xff] }
 0x1ab   : > { %9082 = vmatprep.subr.bf16.mxu0 %v12288_v14  ;;  %9555 = vmatprep.subr.bf16.mxu1 %v12290_v15  ;;  %v12352_v14 = vcombine.high %v976_v8, %v980_v9  ;;  %v12354_v15 = vcombine.high %v977_v10, %v981_v11  ;;  %v1036_v3 = vld [vmem:[%s14002_s30 + $0x15e0] sm:$0xff] }
 0x1ae   : > { %9083 = vmatpush1.bf16.msra.mxu0 %v12287_v20  ;;  %9556 = vmatpush1.bf16.msra.mxu1 %v12289_v21  ;;  %v989_v20 = vld [vmem:[%s14002_s30 + $0x1468] sm:$0xff]  ;;  %v12351_v21 = vcombine.low %v976_v8, %v980_v9  ;;  %v12408_v8 = vcombine.high %v1032_v2, %v1036_v3 }
 0x1af   : > { %9084 = vmatprep.subr.bf16.mxu0 %v12296_v22  ;;  %9557 = vmatprep.subr.bf16.mxu1 %v12298_v23  ;;  %v12353_v22 = vcombine.low %v977_v10, %v981_v11  ;;  %v12360_v23 = vcombine.high %v984_v16, %v988_v17  ;;  %v12362_v24 = vcombine.high %v985_v19, %v989_v20  ;;  %v1040_v10 = vld [vmem:[%s14002_s30 + $0x1600] sm:$0xff] }
 0x1b0   : > { %v1044_v11 = vld [vmem:[%s14002_s30 + $0x1620] sm:$0xff] }
 0x1b2   : > { %9085 = vmatpush1.bf16.msra.mxu0 %v12295_v28  ;;  %9558 = vmatpush1.bf16.msra.mxu1 %v12297_v29  ;;  %v993_v28 = vld [vmem:[%s14002_s30 + $0x1488] sm:$0xff] }
 0x1b3   : > { %9086 = vmatprep.subr.bf16.mxu0 %v12304_v30  ;;  %9559 = vmatprep.subr.bf16.mxu1 %v12306_v31  ;;  %v997_v29 = vld [vmem:[%s14002_s30 + $0x14a8] sm:$0xff]  ;;  %v12359_v30 = vcombine.low %v984_v16, %v988_v17  ;;  %v12361_v31 = vcombine.low %v985_v19, %v989_v20  ;;  %v12416_v16 = vcombine.high %v1040_v10, %v1044_v11  ;;  %v1052_v19 = vld [vmem:[%s14002_s30 + $0x1660] sm:$0xff] }
 0x1b4   : > { %v12370_v33 = vcombine.high %v993_v28, %v997_v29  ;;  %v1049_v20 = vld [vmem:[%s14002_s30 + $0x1648] sm:$0xff] }
 0x1b6   : > { %9087 = vmatpush1.bf16.msra.mxu0 %v12303_v36  ;;  %9560 = vmatpush1.bf16.msra.mxu1 %v12305_v37  ;;  %v1001_v36 = vld [vmem:[%s14002_s30 + $0x14c8] sm:$0xff] }
 0x1b7   : > { %9088 = vmatprep.subr.bf16.mxu0 %v12312_v38  ;;  %9561 = vmatprep.subr.bf16.mxu1 %v12314_v39  ;;  %v1005_v37 = vld [vmem:[%s14002_s30 + $0x14e8] sm:$0xff]  ;;  %v12367_v38 = vcombine.low %v992_v25, %v996_v26  ;;  %v12369_v39 = vcombine.low %v993_v28, %v997_v29  ;;  %v1056_v26 = vld [vmem:[%s14002_s30 + $0x1680] sm:$0xff] }
 0x1b8   : > { %v12378_v41 = vcombine.high %v1001_v36, %v1005_v37  ;;  %v1057_v28 = vld [vmem:[%s14002_s30 + $0x1688] sm:$0xff] }
 0x1b9   : > { %v1061_v29 = vld [vmem:[%s14002_s30 + $0x16a8] sm:$0xff] }
 0x1ba   : > { %9089 = vmatpush1.bf16.msra.mxu0 %v12311_v44  ;;  %9562 = vmatpush1.bf16.msra.mxu1 %v12313_v45  ;;  %v1009_v44 = vld [vmem:[%s14002_s30 + $0x1508] sm:$0xff] }
 0x1bb   : > { %9090 = vmatprep.subr.bf16.mxu0 %v12320_v46  ;;  %9563 = vmatprep.subr.bf16.mxu1 %v12322_v47  ;;  %v1013_v45 = vld [vmem:[%s14002_s30 + $0x1528] sm:$0xff]  ;;  %v12375_v46 = vcombine.low %v1000_v34, %v1004_v35  ;;  %v12377_v47 = vcombine.low %v1001_v36, %v1005_v37  ;;  %v1064_v34 = vld [vmem:[%s14002_s30 + $0x16c0] sm:$0xff] }
 0x1bc   : > { %v12386_v49 = vcombine.high %v1009_v44, %v1013_v45  ;;  %v1068_v35 = vld [vmem:[%s14002_s30 + $0x16e0] sm:$0xff]  ;;  %v1065_v36 = vld [vmem:[%s14002_s30 + $0x16c8] sm:$0xff] }
 0x1bd   : > { %v1069_v37 = vld [vmem:[%s14002_s30 + $0x16e8] sm:$0xff] }
 0x1be   : > { %9091 = vmatpush1.bf16.msra.mxu0 %v12319_v52  ;;  %9564 = vmatpush1.bf16.msra.mxu1 %v12321_v53  ;;  %v1017_v52 = vld [vmem:[%s14002_s30 + $0x1548] sm:$0xff] }
 0x1bf   : > { %9092 = vmatprep.subr.bf16.mxu0 %v12328_v54  ;;  %9565 = vmatprep.subr.bf16.mxu1 %v12330_v55  ;;  %v1021_v53 = vld [vmem:[%s14002_s30 + $0x1568] sm:$0xff]  ;;  %v12383_v54 = vcombine.low %v1008_v42, %v1012_v43  ;;  %v12385_v55 = vcombine.low %v1009_v44, %v1013_v45  ;;  %v1072_v42 = vld [vmem:[%s14002_s30 + $0x1700] sm:$0xff] }
 0x1c0   : > { %v12394_v57 = vcombine.high %v1017_v52, %v1021_v53  ;;  %v1076_v43 = vld [vmem:[%s14002_s30 + $0x1720] sm:$0xff]  ;;  %v1073_v44 = vld [vmem:[%s14002_s30 + $0x1708] sm:$0xff] }
 0x1c1   : > { %v1077_v45 = vld [vmem:[%s14002_s30 + $0x1728] sm:$0xff] }
 0x1c2   : > { %9093 = vmatpush1.bf16.msra.mxu0 %v12327_v60  ;;  %9566 = vmatpush1.bf16.msra.mxu1 %v12329_v61  ;;  %v1025_v60 = vld [vmem:[%s14002_s30 + $0x1588] sm:$0xff] }
 0x1c3   : > { %9094 = vmatprep.subr.bf16.mxu0 %v12336_v62  ;;  %9567 = vmatprep.subr.bf16.mxu1 %v12338_v63  ;;  %v1029_v61 = vld [vmem:[%s14002_s30 + $0x15a8] sm:$0xff]  ;;  %v12391_v62 = vcombine.low %v1016_v50, %v1020_v51  ;;  %v12393_v63 = vcombine.low %v1017_v52, %v1021_v53  ;;  %v1080_v50 = vld [vmem:[%s14002_s30 + $0x1740] sm:$0xff] }
 0x1c4   : > { %v12402_v1 = vcombine.high %v1025_v60, %v1029_v61  ;;  %v1084_v51 = vld [vmem:[%s14002_s30 + $0x1760] sm:$0xff]  ;;  %v1081_v52 = vld [vmem:[%s14002_s30 + $0x1748] sm:$0xff] }
 0x1c5   : > { %v1085_v53 = vld [vmem:[%s14002_s30 + $0x1768] sm:$0xff] }
 0x1c6   : > { %9095 = vmatpush1.bf16.msra.mxu0 %v12335_v4  ;;  %9568 = vmatpush1.bf16.msra.mxu1 %v12337_v5  ;;  %v1033_v4 = vld [vmem:[%s14002_s30 + $0x15c8] sm:$0xff] }
 0x1c7   : > { %9096 = vmatprep.subr.bf16.mxu0 %v12344_v6  ;;  %9569 = vmatprep.subr.bf16.mxu1 %v12346_v7  ;;  %v1037_v5 = vld [vmem:[%s14002_s30 + $0x15e8] sm:$0xff]  ;;  %v12399_v6 = vcombine.low %v1024_v58, %v1028_v59  ;;  %v12401_v7 = vcombine.low %v1025_v60, %v1029_v61  ;;  %v1088_v58 = vld [vmem:[%s14002_s30 + $0x1780] sm:$0xff] }
 0x1c8   : > { %v12410_v9 = vcombine.high %v1033_v4, %v1037_v5  ;;  %v1092_v59 = vld [vmem:[%s14002_s30 + $0x17a0] sm:$0xff]  ;;  %v1089_v60 = vld [vmem:[%s14002_s30 + $0x1788] sm:$0xff] }
 0x1c9   : > { %v1093_v61 = vld [vmem:[%s14002_s30 + $0x17a8] sm:$0xff] }
 0x1ca   : > { %9097 = vmatpush1.bf16.msra.mxu0 %v12343_v12  ;;  %9570 = vmatpush1.bf16.msra.mxu1 %v12345_v13  ;;  %v1041_v12 = vld [vmem:[%s14002_s30 + $0x1608] sm:$0xff] }
 0x1cb   : > { %9109 = vmatprep.subr.bf16.mxu0 %v12352_v14  ;;  %9582 = vmatprep.subr.bf16.mxu1 %v12354_v15  ;;  %v1045_v13 = vld [vmem:[%s14002_s30 + $0x1628] sm:$0xff]  ;;  %v12407_v14 = vcombine.low %v1032_v2, %v1036_v3  ;;  %v12409_v15 = vcombine.low %v1033_v4, %v1037_v5  ;;  %v1096_v2 = vld [vmem:[%s14002_s30 + $0x17c0] sm:$0xff] }
 0x1cc   : > { %v12418_v17 = vcombine.high %v1041_v12, %v1045_v13  ;;  %v1100_v3 = vld [vmem:[%s14002_s30 + $0x17e0] sm:$0xff]  ;;  %v1097_v4 = vld [vmem:[%s14002_s30 + $0x17c8] sm:$0xff] }
 0x1cd   : > { %9099 = vmatmul.mubr.bf16.vlgmr.msra.gmra.mrb[0].mxu0 %v13529_v18  ;;  %9572 = vmatmul.mubr.bf16.vlgmr.msra.gmra.mrb[0].mxu1 %v13529_v18  ;;  %v1048_v18 = vld [vmem:[%s14002_s30 + $0x1640] sm:$0xff]  ;;  %v1101_v5 = vld [vmem:[%s14002_s30 + $0x17e8] sm:$0xff] }
 0x1ce   : > { %9110 = vmatpush1.bf16.msra.mxu0 %v12351_v21  ;;  %9583 = vmatpush1.bf16.msra.mxu1 %v12353_v22  ;;  %v1053_v21 = vld [vmem:[%s14002_s30 + $0x1668] sm:$0xff]  ;;  %v12415_v22 = vcombine.low %v1040_v10, %v1044_v11  ;;  %v1104_v10 = vld [vmem:[%s14002_s30 + $0x1800] sm:$0xff] }
 0x1cf   : > { %9111 = vmatprep.subr.bf16.mxu0 %v12360_v23  ;;  %9584 = vmatprep.subr.bf16.mxu1 %v12362_v24  ;;  %v12417_v23 = vcombine.low %v1041_v12, %v1045_v13  ;;  %v12424_v24 = vcombine.high %v1048_v18, %v1052_v19  ;;  %v12426_v25 = vcombine.high %v1049_v20, %v1053_v21  ;;  %v1108_v11 = vld [vmem:[%s14002_s30 + $0x1820] sm:$0xff]  ;;  %v1105_v12 = vld [vmem:[%s14002_s30 + $0x1808] sm:$0xff] }
 0x1d0   : > { %9141 = vmatprep.mubr.bf16.mxu0 %v13530_v27  ;;  %9614 = vmatprep.mubr.bf16.mxu1 %v13530_v27  ;;  %v1060_v27 = vld [vmem:[%s14002_s30 + $0x16a0] sm:$0xff]  ;;  %v1109_v13 = vld [vmem:[%s14002_s30 + $0x1828] sm:$0xff] }
 0x1d2   : > { %9112 = vmatpush1.bf16.msra.mxu0 %v12359_v30  ;;  %9585 = vmatpush1.bf16.msra.mxu1 %v12361_v31  ;;  %v12423_v30 = vcombine.low %v1048_v18, %v1052_v19  ;;  %v12425_v31 = vcombine.low %v1049_v20, %v1053_v21  ;;  %v1112_v18 = vld [vmem:[%s14002_s30 + $0x1840] sm:$0xff]  ;;  %v13532_v20 = vld [vmem:[%s14050_s21 + $0x28] ss:$176 sps:$4 sm:$0xff]  }
 0x1d3   : > { %9113 = vmatprep.subr.bf16.mxu0 %v12368_v32  ;;  %9586 = vmatprep.subr.bf16.mxu1 %v12370_v33  ;;  %v12432_v32 = vcombine.high %v1056_v26, %v1060_v27  ;;  %v12434_v33 = vcombine.high %v1057_v28, %v1061_v29  ;;  %v1116_v19 = vld [vmem:[%s14002_s30 + $0x1860] sm:$0xff]  ;;  %v1113_v21 = vld [vmem:[%s14002_s30 + $0x1848] sm:$0xff] }
 0x1d6   : > { %9114 = vmatpush1.bf16.msra.mxu0 %v12367_v38  ;;  %9587 = vmatpush1.bf16.msra.mxu1 %v12369_v39  ;;  %v12431_v38 = vcombine.low %v1056_v26, %v1060_v27  ;;  %v12433_v39 = vcombine.low %v1057_v28, %v1061_v29  ;;  %v1120_v27 = vld [vmem:[%s14002_s30 + $0x1880] sm:$0xff] }
 0x1d7   : > { %9115 = vmatprep.subr.bf16.mxu0 %v12376_v40  ;;  %9588 = vmatprep.subr.bf16.mxu1 %v12378_v41  ;;  %v12440_v40 = vcombine.high %v1064_v34, %v1068_v35  ;;  %v12442_v41 = vcombine.high %v1065_v36, %v1069_v37  ;;  %v1124_v28 = vld [vmem:[%s14002_s30 + $0x18a0] sm:$0xff] }
 0x1d8   : > { %v13533_v29 = vld [vmem:[%s14050_s21 + $0x34] ss:$176 sps:$4 sm:$0xff]  }
 0x1da   : > { %9116 = vmatpush1.bf16.msra.mxu0 %v12375_v46  ;;  %9589 = vmatpush1.bf16.msra.mxu1 %v12377_v47  ;;  %v12439_v46 = vcombine.low %v1064_v34, %v1068_v35  ;;  %v12441_v47 = vcombine.low %v1065_v36, %v1069_v37  ;;  %v12496_v34 = vcombine.high %v1120_v27, %v1124_v28  ;;  %v1128_v36 = vld [vmem:[%s14002_s30 + $0x18c0] sm:$0xff] }
 0x1db   : > { %9117 = vmatprep.subr.bf16.mxu0 %v12384_v48  ;;  %9590 = vmatprep.subr.bf16.mxu1 %v12386_v49  ;;  %v12448_v48 = vcombine.high %v1072_v42, %v1076_v43  ;;  %v12450_v49 = vcombine.high %v1073_v44, %v1077_v45  ;;  %v1132_v37 = vld [vmem:[%s14002_s30 + $0x18e0] sm:$0xff] }
 0x1de   : > { %9118 = vmatpush1.bf16.msra.mxu0 %v12383_v54  ;;  %9591 = vmatpush1.bf16.msra.mxu1 %v12385_v55  ;;  %v12447_v54 = vcombine.low %v1072_v42, %v1076_v43  ;;  %v12449_v55 = vcombine.low %v1073_v44, %v1077_v45  ;;  %v12504_v42 = vcombine.high %v1128_v36, %v1132_v37  ;;  %v1136_v44 = vld [vmem:[%s14002_s30 + $0x1900] sm:$0xff] }
 0x1df   : > { %9119 = vmatprep.subr.bf16.mxu0 %v12392_v56  ;;  %9592 = vmatprep.subr.bf16.mxu1 %v12394_v57  ;;  %v12456_v56 = vcombine.high %v1080_v50, %v1084_v51  ;;  %v12458_v57 = vcombine.high %v1081_v52, %v1085_v53  ;;  %v1140_v45 = vld [vmem:[%s14002_s30 + $0x1920] sm:$0xff] }
 0x1e2   : > { %9120 = vmatpush1.bf16.msra.mxu0 %v12391_v62  ;;  %9593 = vmatpush1.bf16.msra.mxu1 %v12393_v63  ;;  %v12455_v62 = vcombine.low %v1080_v50, %v1084_v51  ;;  %v12457_v63 = vcombine.low %v1081_v52, %v1085_v53  ;;  %v12512_v50 = vcombine.high %v1136_v44, %v1140_v45  ;;  %v1144_v52 = vld [vmem:[%s14002_s30 + $0x1940] sm:$0xff] }
 0x1e3   : > { %9121 = vmatprep.subr.bf16.mxu0 %v12400_v0  ;;  %9594 = vmatprep.subr.bf16.mxu1 %v12402_v1  ;;  %v12464_v0 = vcombine.high %v1088_v58, %v1092_v59  ;;  %v12466_v1 = vcombine.high %v1089_v60, %v1093_v61  ;;  %v1148_v53 = vld [vmem:[%s14002_s30 + $0x1960] sm:$0xff] }
 0x1e6   : > { %9122 = vmatpush1.bf16.msra.mxu0 %v12399_v6  ;;  %9595 = vmatpush1.bf16.msra.mxu1 %v12401_v7  ;;  %v12463_v6 = vcombine.low %v1088_v58, %v1092_v59  ;;  %v12465_v7 = vcombine.low %v1089_v60, %v1093_v61  ;;  %v12520_v58 = vcombine.high %v1144_v52, %v1148_v53  ;;  %v1152_v60 = vld [vmem:[%s14002_s30 + $0x1980] sm:$0xff] }
 0x1e7   : > { %9123 = vmatprep.subr.bf16.mxu0 %v12408_v8  ;;  %9596 = vmatprep.subr.bf16.mxu1 %v12410_v9  ;;  %v12472_v8 = vcombine.high %v1096_v2, %v1100_v3  ;;  %v12474_v9 = vcombine.high %v1097_v4, %v1101_v5  ;;  %v1156_v61 = vld [vmem:[%s14002_s30 + $0x19a0] sm:$0xff] }
 0x1ea   : > { %9124 = vmatpush1.bf16.msra.mxu0 %v12407_v14  ;;  %9597 = vmatpush1.bf16.msra.mxu1 %v12409_v15  ;;  %v12471_v14 = vcombine.low %v1096_v2, %v1100_v3  ;;  %v12473_v15 = vcombine.low %v1097_v4, %v1101_v5  ;;  %v12528_v2 = vcombine.high %v1152_v60, %v1156_v61  ;;  %v1160_v4 = vld [vmem:[%s14002_s30 + $0x19c0] sm:$0xff] }
 0x1eb   : > { %9125 = vmatprep.subr.bf16.mxu0 %v12416_v16  ;;  %9598 = vmatprep.subr.bf16.mxu1 %v12418_v17  ;;  %v12480_v16 = vcombine.high %v1104_v10, %v1108_v11  ;;  %v12482_v17 = vcombine.high %v1105_v12, %v1109_v13  ;;  %v1164_v5 = vld [vmem:[%s14002_s30 + $0x19e0] sm:$0xff] }
 0x1ee   : > { %9126 = vmatpush1.bf16.msra.mxu0 %v12415_v22  ;;  %9599 = vmatpush1.bf16.msra.mxu1 %v12417_v23  ;;  %v1117_v22 = vld [vmem:[%s14002_s30 + $0x1868] sm:$0xff]  ;;  %v12479_v23 = vcombine.low %v1104_v10, %v1108_v11  ;;  %v12536_v10 = vcombine.high %v1160_v4, %v1164_v5 }
 0x1ef   : > { %9127 = vmatprep.subr.bf16.mxu0 %v12424_v24  ;;  %9600 = vmatprep.subr.bf16.mxu1 %v12426_v25  ;;  %v12481_v24 = vcombine.low %v1105_v12, %v1109_v13  ;;  %v12488_v25 = vcombine.high %v1112_v18, %v1116_v19  ;;  %v12490_v26 = vcombine.high %v1113_v21, %v1117_v22  ;;  %v1168_v12 = vld [vmem:[%s14002_s30 + $0x1a00] sm:$0xff] }
 0x1f0   : > { %v1172_v13 = vld [vmem:[%s14002_s30 + $0x1a20] sm:$0xff] }
 0x1f2   : > { %9128 = vmatpush1.bf16.msra.mxu0 %v12423_v30  ;;  %9601 = vmatpush1.bf16.msra.mxu1 %v12425_v31  ;;  %v1121_v30 = vld [vmem:[%s14002_s30 + $0x1888] sm:$0xff] }
 0x1f3   : > { %9129 = vmatprep.subr.bf16.mxu0 %v12432_v32  ;;  %9602 = vmatprep.subr.bf16.mxu1 %v12434_v33  ;;  %v1125_v31 = vld [vmem:[%s14002_s30 + $0x18a8] sm:$0xff]  ;;  %v12487_v32 = vcombine.low %v1112_v18, %v1116_v19  ;;  %v12489_v33 = vcombine.low %v1113_v21, %v1117_v22  ;;  %v12544_v18 = vcombine.high %v1168_v12, %v1172_v13  ;;  %v1180_v21 = vld [vmem:[%s14002_s30 + $0x1a60] sm:$0xff] }
 0x1f4   : > { %v12498_v35 = vcombine.high %v1121_v30, %v1125_v31  ;;  %v1177_v22 = vld [vmem:[%s14002_s30 + $0x1a48] sm:$0xff] }
 0x1f6   : > { %9130 = vmatpush1.bf16.msra.mxu0 %v12431_v38  ;;  %9603 = vmatpush1.bf16.msra.mxu1 %v12433_v39  ;;  %v1129_v38 = vld [vmem:[%s14002_s30 + $0x18c8] sm:$0xff] }
 0x1f7   : > { %9131 = vmatprep.subr.bf16.mxu0 %v12440_v40  ;;  %9604 = vmatprep.subr.bf16.mxu1 %v12442_v41  ;;  %v1133_v39 = vld [vmem:[%s14002_s30 + $0x18e8] sm:$0xff]  ;;  %v12495_v40 = vcombine.low %v1120_v27, %v1124_v28  ;;  %v12497_v41 = vcombine.low %v1121_v30, %v1125_v31  ;;  %v1184_v28 = vld [vmem:[%s14002_s30 + $0x1a80] sm:$0xff] }
 0x1f8   : > { %v12506_v43 = vcombine.high %v1129_v38, %v1133_v39  ;;  %v1185_v30 = vld [vmem:[%s14002_s30 + $0x1a88] sm:$0xff] }
 0x1f9   : > { %v1189_v31 = vld [vmem:[%s14002_s30 + $0x1aa8] sm:$0xff] }
 0x1fa   : > { %9132 = vmatpush1.bf16.msra.mxu0 %v12439_v46  ;;  %9605 = vmatpush1.bf16.msra.mxu1 %v12441_v47  ;;  %v1137_v46 = vld [vmem:[%s14002_s30 + $0x1908] sm:$0xff] }
 0x1fb   : > { %9133 = vmatprep.subr.bf16.mxu0 %v12448_v48  ;;  %9606 = vmatprep.subr.bf16.mxu1 %v12450_v49  ;;  %v1141_v47 = vld [vmem:[%s14002_s30 + $0x1928] sm:$0xff]  ;;  %v12503_v48 = vcombine.low %v1128_v36, %v1132_v37  ;;  %v12505_v49 = vcombine.low %v1129_v38, %v1133_v39  ;;  %v1192_v36 = vld [vmem:[%s14002_s30 + $0x1ac0] sm:$0xff] }
 0x1fc   : > { %v12514_v51 = vcombine.high %v1137_v46, %v1141_v47  ;;  %v1196_v37 = vld [vmem:[%s14002_s30 + $0x1ae0] sm:$0xff]  ;;  %v1193_v38 = vld [vmem:[%s14002_s30 + $0x1ac8] sm:$0xff] }
 0x1fd   : > { %v1197_v39 = vld [vmem:[%s14002_s30 + $0x1ae8] sm:$0xff] }
 0x1fe   : > { %9134 = vmatpush1.bf16.msra.mxu0 %v12447_v54  ;;  %9607 = vmatpush1.bf16.msra.mxu1 %v12449_v55  ;;  %v1145_v54 = vld [vmem:[%s14002_s30 + $0x1948] sm:$0xff] }
 0x1ff   : > { %9135 = vmatprep.subr.bf16.mxu0 %v12456_v56  ;;  %9608 = vmatprep.subr.bf16.mxu1 %v12458_v57  ;;  %v1149_v55 = vld [vmem:[%s14002_s30 + $0x1968] sm:$0xff]  ;;  %v12511_v56 = vcombine.low %v1136_v44, %v1140_v45  ;;  %v12513_v57 = vcombine.low %v1137_v46, %v1141_v47  ;;  %v1200_v44 = vld [vmem:[%s14002_s30 + $0x1b00] sm:$0xff] }
 0x200   : > { %v12522_v59 = vcombine.high %v1145_v54, %v1149_v55  ;;  %v1204_v45 = vld [vmem:[%s14002_s30 + $0x1b20] sm:$0xff]  ;;  %v1201_v46 = vld [vmem:[%s14002_s30 + $0x1b08] sm:$0xff] }
 0x201   : > { %v1205_v47 = vld [vmem:[%s14002_s30 + $0x1b28] sm:$0xff] }
 0x202   : > { %9136 = vmatpush1.bf16.msra.mxu0 %v12455_v62  ;;  %9609 = vmatpush1.bf16.msra.mxu1 %v12457_v63  ;;  %v1153_v62 = vld [vmem:[%s14002_s30 + $0x1988] sm:$0xff] }
 0x203   : > { %9137 = vmatprep.subr.bf16.mxu0 %v12464_v0  ;;  %9610 = vmatprep.subr.bf16.mxu1 %v12466_v1  ;;  %v1157_v63 = vld [vmem:[%s14002_s30 + $0x19a8] sm:$0xff]  ;;  %v12519_v0 = vcombine.low %v1144_v52, %v1148_v53  ;;  %v12521_v1 = vcombine.low %v1145_v54, %v1149_v55  ;;  %v1208_v52 = vld [vmem:[%s14002_s30 + $0x1b40] sm:$0xff] }
 0x204   : > { %v12530_v3 = vcombine.high %v1153_v62, %v1157_v63  ;;  %v1212_v53 = vld [vmem:[%s14002_s30 + $0x1b60] sm:$0xff]  ;;  %v1209_v54 = vld [vmem:[%s14002_s30 + $0x1b48] sm:$0xff] }
 0x205   : > { %v1213_v55 = vld [vmem:[%s14002_s30 + $0x1b68] sm:$0xff] }
 0x206   : > { %9138 = vmatpush1.bf16.msra.mxu0 %v12463_v6  ;;  %9611 = vmatpush1.bf16.msra.mxu1 %v12465_v7  ;;  %v1161_v6 = vld [vmem:[%s14002_s30 + $0x19c8] sm:$0xff] }
 0x207   : > { %9139 = vmatprep.subr.bf16.mxu0 %v12472_v8  ;;  %9612 = vmatprep.subr.bf16.mxu1 %v12474_v9  ;;  %v1165_v7 = vld [vmem:[%s14002_s30 + $0x19e8] sm:$0xff]  ;;  %v12527_v8 = vcombine.low %v1152_v60, %v1156_v61  ;;  %v12529_v9 = vcombine.low %v1153_v62, %v1157_v63  ;;  %v1216_v60 = vld [vmem:[%s14002_s30 + $0x1b80] sm:$0xff] }
 0x208   : > { %v12538_v11 = vcombine.high %v1161_v6, %v1165_v7  ;;  %v1220_v61 = vld [vmem:[%s14002_s30 + $0x1ba0] sm:$0xff]  ;;  %v1217_v62 = vld [vmem:[%s14002_s30 + $0x1b88] sm:$0xff] }
 0x209   : > { %v1221_v63 = vld [vmem:[%s14002_s30 + $0x1ba8] sm:$0xff] }
 0x20a   : > { %9140 = vmatpush1.bf16.msra.mxu0 %v12471_v14  ;;  %9613 = vmatpush1.bf16.msra.mxu1 %v12473_v15  ;;  %v1169_v14 = vld [vmem:[%s14002_s30 + $0x1a08] sm:$0xff] }
 0x20b   : > { %9152 = vmatprep.subr.bf16.mxu0 %v12480_v16  ;;  %9625 = vmatprep.subr.bf16.mxu1 %v12482_v17  ;;  %v1173_v15 = vld [vmem:[%s14002_s30 + $0x1a28] sm:$0xff]  ;;  %v12535_v16 = vcombine.low %v1160_v4, %v1164_v5  ;;  %v12537_v17 = vcombine.low %v1161_v6, %v1165_v7  ;;  %v1224_v4 = vld [vmem:[%s14002_s30 + $0x1bc0] sm:$0xff] }
 0x20c   : > { %v12546_v19 = vcombine.high %v1169_v14, %v1173_v15  ;;  %v1228_v5 = vld [vmem:[%s14002_s30 + $0x1be0] sm:$0xff]  ;;  %v1225_v6 = vld [vmem:[%s14002_s30 + $0x1bc8] sm:$0xff] }
 0x20d   : > { %9142 = vmatmul.mubr.bf16.vlgmr.msra.gmra.mrb[0].mxu0 %v13532_v20  ;;  %9615 = vmatmul.mubr.bf16.vlgmr.msra.gmra.mrb[0].mxu1 %v13532_v20  ;;  %v1176_v20 = vld [vmem:[%s14002_s30 + $0x1a40] sm:$0xff]  ;;  %v1229_v7 = vld [vmem:[%s14002_s30 + $0x1be8] sm:$0xff] }
 0x20e   : > { %9153 = vmatpush1.bf16.msra.mxu0 %v12479_v23  ;;  %9626 = vmatpush1.bf16.msra.mxu1 %v12481_v24  ;;  %v1181_v23 = vld [vmem:[%s14002_s30 + $0x1a68] sm:$0xff]  ;;  %v12543_v24 = vcombine.low %v1168_v12, %v1172_v13  ;;  %v1232_v12 = vld [vmem:[%s14002_s30 + $0x1c00] sm:$0xff] }
 0x20f   : > { %9154 = vmatprep.subr.bf16.mxu0 %v12488_v25  ;;  %9627 = vmatprep.subr.bf16.mxu1 %v12490_v26  ;;  %v12545_v25 = vcombine.low %v1169_v14, %v1173_v15  ;;  %v12552_v26 = vcombine.high %v1176_v20, %v1180_v21  ;;  %v12554_v27 = vcombine.high %v1177_v22, %v1181_v23  ;;  %v1236_v13 = vld [vmem:[%s14002_s30 + $0x1c20] sm:$0xff]  ;;  %v1233_v14 = vld [vmem:[%s14002_s30 + $0x1c08] sm:$0xff] }
 0x210   : > { %9184 = vmatprep.mubr.bf16.mxu0 %v13533_v29  ;;  %9657 = vmatprep.mubr.bf16.mxu1 %v13533_v29  ;;  %v1188_v29 = vld [vmem:[%s14002_s30 + $0x1aa0] sm:$0xff]  ;;  %v1237_v15 = vld [vmem:[%s14002_s30 + $0x1c28] sm:$0xff] }
 0x212   : > { %9155 = vmatpush1.bf16.msra.mxu0 %v12487_v32  ;;  %9628 = vmatpush1.bf16.msra.mxu1 %v12489_v33  ;;  %v12551_v32 = vcombine.low %v1176_v20, %v1180_v21  ;;  %v12553_v33 = vcombine.low %v1177_v22, %v1181_v23  ;;  %v1240_v20 = vld [vmem:[%s14002_s30 + $0x1c40] sm:$0xff]  ;;  %v1241_v23 = vld [vmem:[%s14002_s30 + $0x1c48] sm:$0xff] }
 0x213   : > { %9156 = vmatprep.subr.bf16.mxu0 %v12496_v34  ;;  %9629 = vmatprep.subr.bf16.mxu1 %v12498_v35  ;;  %v12560_v34 = vcombine.high %v1184_v28, %v1188_v29  ;;  %v12562_v35 = vcombine.high %v1185_v30, %v1189_v31  ;;  %v1244_v21 = vld [vmem:[%s14002_s30 + $0x1c60] sm:$0xff] }
 0x214   : > { %v13535_v22 = vld [vmem:[%s14050_s21 + $0x30] ss:$176 sps:$4 sm:$0xff]  }
 0x216   : > { %9157 = vmatpush1.bf16.msra.mxu0 %v12495_v40  ;;  %9630 = vmatpush1.bf16.msra.mxu1 %v12497_v41  ;;  %v12559_v40 = vcombine.low %v1184_v28, %v1188_v29  ;;  %v12561_v41 = vcombine.low %v1185_v30, %v1189_v31  ;;  %v1248_v29 = vld [vmem:[%s14002_s30 + $0x1c80] sm:$0xff]  ;;  %v13536_v31 = vld [vmem:[%s14050_s21 + $0x3c] ss:$176 sps:$4 sm:$0xff]  }
 0x217   : > { %9158 = vmatprep.subr.bf16.mxu0 %v12504_v42  ;;  %9631 = vmatprep.subr.bf16.mxu1 %v12506_v43  ;;  %v12568_v42 = vcombine.high %v1192_v36, %v1196_v37  ;;  %v12570_v43 = vcombine.high %v1193_v38, %v1197_v39  ;;  %v1252_v30 = vld [vmem:[%s14002_s30 + $0x1ca0] sm:$0xff] }
 0x21a   : > { %9159 = vmatpush1.bf16.msra.mxu0 %v12503_v48  ;;  %9632 = vmatpush1.bf16.msra.mxu1 %v12505_v49  ;;  %v12567_v48 = vcombine.low %v1192_v36, %v1196_v37  ;;  %v12569_v49 = vcombine.low %v1193_v38, %v1197_v39  ;;  %v12624_v36 = vcombine.high %v1248_v29, %v1252_v30  ;;  %v1256_v38 = vld [vmem:[%s14002_s30 + $0x1cc0] sm:$0xff] }
 0x21b   : > { %9160 = vmatprep.subr.bf16.mxu0 %v12512_v50  ;;  %9633 = vmatprep.subr.bf16.mxu1 %v12514_v51  ;;  %v12576_v50 = vcombine.high %v1200_v44, %v1204_v45  ;;  %v12578_v51 = vcombine.high %v1201_v46, %v1205_v47  ;;  %v1260_v39 = vld [vmem:[%s14002_s30 + $0x1ce0] sm:$0xff] }
 0x21e   : > { %9161 = vmatpush1.bf16.msra.mxu0 %v12511_v56  ;;  %9634 = vmatpush1.bf16.msra.mxu1 %v12513_v57  ;;  %v12575_v56 = vcombine.low %v1200_v44, %v1204_v45  ;;  %v12577_v57 = vcombine.low %v1201_v46, %v1205_v47  ;;  %v12632_v44 = vcombine.high %v1256_v38, %v1260_v39  ;;  %v1264_v46 = vld [vmem:[%s14002_s30 + $0x1d00] sm:$0xff] }
 0x21f   : > { %9162 = vmatprep.subr.bf16.mxu0 %v12520_v58  ;;  %9635 = vmatprep.subr.bf16.mxu1 %v12522_v59  ;;  %v12584_v58 = vcombine.high %v1208_v52, %v1212_v53  ;;  %v12586_v59 = vcombine.high %v1209_v54, %v1213_v55  ;;  %v1268_v47 = vld [vmem:[%s14002_s30 + $0x1d20] sm:$0xff] }
 0x222   : > { %9163 = vmatpush1.bf16.msra.mxu0 %v12519_v0  ;;  %9636 = vmatpush1.bf16.msra.mxu1 %v12521_v1  ;;  %v12583_v0 = vcombine.low %v1208_v52, %v1212_v53  ;;  %v12585_v1 = vcombine.low %v1209_v54, %v1213_v55  ;;  %v12640_v52 = vcombine.high %v1264_v46, %v1268_v47  ;;  %v1272_v54 = vld [vmem:[%s14002_s30 + $0x1d40] sm:$0xff] }
 0x223   : > { %9164 = vmatprep.subr.bf16.mxu0 %v12528_v2  ;;  %9637 = vmatprep.subr.bf16.mxu1 %v12530_v3  ;;  %v12592_v2 = vcombine.high %v1216_v60, %v1220_v61  ;;  %v12594_v3 = vcombine.high %v1217_v62, %v1221_v63  ;;  %v1276_v55 = vld [vmem:[%s14002_s30 + $0x1d60] sm:$0xff] }
 0x226   : > { %9165 = vmatpush1.bf16.msra.mxu0 %v12527_v8  ;;  %9638 = vmatpush1.bf16.msra.mxu1 %v12529_v9  ;;  %v12591_v8 = vcombine.low %v1216_v60, %v1220_v61  ;;  %v12593_v9 = vcombine.low %v1217_v62, %v1221_v63  ;;  %v12648_v60 = vcombine.high %v1272_v54, %v1276_v55  ;;  %v1280_v62 = vld [vmem:[%s14002_s30 + $0x1d80] sm:$0xff] }
 0x227   : > { %9166 = vmatprep.subr.bf16.mxu0 %v12536_v10  ;;  %9639 = vmatprep.subr.bf16.mxu1 %v12538_v11  ;;  %v12600_v10 = vcombine.high %v1224_v4, %v1228_v5  ;;  %v12602_v11 = vcombine.high %v1225_v6, %v1229_v7  ;;  %v1284_v63 = vld [vmem:[%s14002_s30 + $0x1da0] sm:$0xff] }
 0x22a   : > { %9167 = vmatpush1.bf16.msra.mxu0 %v12535_v16  ;;  %9640 = vmatpush1.bf16.msra.mxu1 %v12537_v17  ;;  %v12599_v16 = vcombine.low %v1224_v4, %v1228_v5  ;;  %v12601_v17 = vcombine.low %v1225_v6, %v1229_v7  ;;  %v12656_v4 = vcombine.high %v1280_v62, %v1284_v63  ;;  %v1288_v6 = vld [vmem:[%s14002_s30 + $0x1dc0] sm:$0xff] }
 0x22b   : > { %9168 = vmatprep.subr.bf16.mxu0 %v12544_v18  ;;  %9641 = vmatprep.subr.bf16.mxu1 %v12546_v19  ;;  %v12608_v18 = vcombine.high %v1232_v12, %v1236_v13  ;;  %v12610_v19 = vcombine.high %v1233_v14, %v1237_v15  ;;  %v1292_v7 = vld [vmem:[%s14002_s30 + $0x1de0] sm:$0xff] }
 0x22e   : > { %9169 = vmatpush1.bf16.msra.mxu0 %v12543_v24  ;;  %9642 = vmatpush1.bf16.msra.mxu1 %v12545_v25  ;;  %v1245_v24 = vld [vmem:[%s14002_s30 + $0x1c68] sm:$0xff]  ;;  %v12607_v25 = vcombine.low %v1232_v12, %v1236_v13  ;;  %v12664_v12 = vcombine.high %v1288_v6, %v1292_v7 }
 0x22f   : > { %9170 = vmatprep.subr.bf16.mxu0 %v12552_v26  ;;  %9643 = vmatprep.subr.bf16.mxu1 %v12554_v27  ;;  %v12609_v26 = vcombine.low %v1233_v14, %v1237_v15  ;;  %v12616_v27 = vcombine.high %v1240_v20, %v1244_v21  ;;  %v12618_v28 = vcombine.high %v1241_v23, %v1245_v24  ;;  %v1296_v14 = vld [vmem:[%s14002_s30 + $0x1e00] sm:$0xff] }
 0x230   : > { %v1300_v15 = vld [vmem:[%s14002_s30 + $0x1e20] sm:$0xff] }
 0x232   : > { %9171 = vmatpush1.bf16.msra.mxu0 %v12551_v32  ;;  %9644 = vmatpush1.bf16.msra.mxu1 %v12553_v33  ;;  %v1249_v32 = vld [vmem:[%s14002_s30 + $0x1c88] sm:$0xff] }
 0x233   : > { %9172 = vmatprep.subr.bf16.mxu0 %v12560_v34  ;;  %9645 = vmatprep.subr.bf16.mxu1 %v12562_v35  ;;  %v1253_v33 = vld [vmem:[%s14002_s30 + $0x1ca8] sm:$0xff]  ;;  %v12615_v34 = vcombine.low %v1240_v20, %v1244_v21  ;;  %v12617_v35 = vcombine.low %v1241_v23, %v1245_v24  ;;  %v12672_v20 = vcombine.high %v1296_v14, %v1300_v15  ;;  %v1308_v23 = vld [vmem:[%s14002_s30 + $0x1e60] sm:$0xff] }
 0x234   : > { %v12626_v37 = vcombine.high %v1249_v32, %v1253_v33  ;;  %v1305_v24 = vld [vmem:[%s14002_s30 + $0x1e48] sm:$0xff] }
 0x236   : > { %9173 = vmatpush1.bf16.msra.mxu0 %v12559_v40  ;;  %9646 = vmatpush1.bf16.msra.mxu1 %v12561_v41  ;;  %v1257_v40 = vld [vmem:[%s14002_s30 + $0x1cc8] sm:$0xff] }
 0x237   : > { %9174 = vmatprep.subr.bf16.mxu0 %v12568_v42  ;;  %9647 = vmatprep.subr.bf16.mxu1 %v12570_v43  ;;  %v1261_v41 = vld [vmem:[%s14002_s30 + $0x1ce8] sm:$0xff]  ;;  %v12623_v42 = vcombine.low %v1248_v29, %v1252_v30  ;;  %v12625_v43 = vcombine.low %v1249_v32, %v1253_v33  ;;  %v1312_v30 = vld [vmem:[%s14002_s30 + $0x1e80] sm:$0xff] }
 0x238   : > { %v12634_v45 = vcombine.high %v1257_v40, %v1261_v41  ;;  %v1313_v32 = vld [vmem:[%s14002_s30 + $0x1e88] sm:$0xff] }
 0x239   : > { %v1317_v33 = vld [vmem:[%s14002_s30 + $0x1ea8] sm:$0xff] }
 0x23a   : > { %9175 = vmatpush1.bf16.msra.mxu0 %v12567_v48  ;;  %9648 = vmatpush1.bf16.msra.mxu1 %v12569_v49  ;;  %v1265_v48 = vld [vmem:[%s14002_s30 + $0x1d08] sm:$0xff] }
 0x23b   : > { %9176 = vmatprep.subr.bf16.mxu0 %v12576_v50  ;;  %9649 = vmatprep.subr.bf16.mxu1 %v12578_v51  ;;  %v1269_v49 = vld [vmem:[%s14002_s30 + $0x1d28] sm:$0xff]  ;;  %v12631_v50 = vcombine.low %v1256_v38, %v1260_v39  ;;  %v12633_v51 = vcombine.low %v1257_v40, %v1261_v41  ;;  %v1320_v38 = vld [vmem:[%s14002_s30 + $0x1ec0] sm:$0xff] }
 0x23c   : > { %v12642_v53 = vcombine.high %v1265_v48, %v1269_v49  ;;  %v1324_v39 = vld [vmem:[%s14002_s30 + $0x1ee0] sm:$0xff]  ;;  %v1321_v40 = vld [vmem:[%s14002_s30 + $0x1ec8] sm:$0xff] }
 0x23d   : > { %v1325_v41 = vld [vmem:[%s14002_s30 + $0x1ee8] sm:$0xff] }
 0x23e   : > { %9177 = vmatpush1.bf16.msra.mxu0 %v12575_v56  ;;  %9650 = vmatpush1.bf16.msra.mxu1 %v12577_v57  ;;  %v1273_v56 = vld [vmem:[%s14002_s30 + $0x1d48] sm:$0xff] }
 0x23f   : > { %9178 = vmatprep.subr.bf16.mxu0 %v12584_v58  ;;  %9651 = vmatprep.subr.bf16.mxu1 %v12586_v59  ;;  %v1277_v57 = vld [vmem:[%s14002_s30 + $0x1d68] sm:$0xff]  ;;  %v12639_v58 = vcombine.low %v1264_v46, %v1268_v47  ;;  %v12641_v59 = vcombine.low %v1265_v48, %v1269_v49  ;;  %v1328_v46 = vld [vmem:[%s14002_s30 + $0x1f00] sm:$0xff] }
 0x240   : > { %v12650_v61 = vcombine.high %v1273_v56, %v1277_v57  ;;  %v1332_v47 = vld [vmem:[%s14002_s30 + $0x1f20] sm:$0xff]  ;;  %v1329_v48 = vld [vmem:[%s14002_s30 + $0x1f08] sm:$0xff] }
 0x241   : > { %v1333_v49 = vld [vmem:[%s14002_s30 + $0x1f28] sm:$0xff] }
 0x242   : > { %9179 = vmatpush1.bf16.msra.mxu0 %v12583_v0  ;;  %9652 = vmatpush1.bf16.msra.mxu1 %v12585_v1  ;;  %v1281_v0 = vld [vmem:[%s14002_s30 + $0x1d88] sm:$0xff] }
 0x243   : > { %9180 = vmatprep.subr.bf16.mxu0 %v12592_v2  ;;  %9653 = vmatprep.subr.bf16.mxu1 %v12594_v3  ;;  %v1285_v1 = vld [vmem:[%s14002_s30 + $0x1da8] sm:$0xff]  ;;  %v12647_v2 = vcombine.low %v1272_v54, %v1276_v55  ;;  %v12649_v3 = vcombine.low %v1273_v56, %v1277_v57  ;;  %v1336_v54 = vld [vmem:[%s14002_s30 + $0x1f40] sm:$0xff] }
 0x244   : > { %v12658_v5 = vcombine.high %v1281_v0, %v1285_v1  ;;  %v1340_v55 = vld [vmem:[%s14002_s30 + $0x1f60] sm:$0xff]  ;;  %v1337_v56 = vld [vmem:[%s14002_s30 + $0x1f48] sm:$0xff] }
 0x245   : > { %v1341_v57 = vld [vmem:[%s14002_s30 + $0x1f68] sm:$0xff] }
 0x246   : > { %9181 = vmatpush1.bf16.msra.mxu0 %v12591_v8  ;;  %9654 = vmatpush1.bf16.msra.mxu1 %v12593_v9  ;;  %v1289_v8 = vld [vmem:[%s14002_s30 + $0x1dc8] sm:$0xff] }
 0x247   : > { %9182 = vmatprep.subr.bf16.mxu0 %v12600_v10  ;;  %9655 = vmatprep.subr.bf16.mxu1 %v12602_v11  ;;  %v1293_v9 = vld [vmem:[%s14002_s30 + $0x1de8] sm:$0xff]  ;;  %v12655_v10 = vcombine.low %v1280_v62, %v1284_v63  ;;  %v12657_v11 = vcombine.low %v1281_v0, %v1285_v1  ;;  %v1344_v62 = vld [vmem:[%s14002_s30 + $0x1f80] sm:$0xff] }
 0x248   : > { %v12666_v13 = vcombine.high %v1289_v8, %v1293_v9  ;;  %v1348_v63 = vld [vmem:[%s14002_s30 + $0x1fa0] sm:$0xff]  ;;  %v1345_v0 = vld [vmem:[%s14002_s30 + $0x1f88] sm:$0xff] }
 0x249   : > { %v1349_v1 = vld [vmem:[%s14002_s30 + $0x1fa8] sm:$0xff] }
 0x24a   : > { %9183 = vmatpush1.bf16.msra.mxu0 %v12599_v16  ;;  %9656 = vmatpush1.bf16.msra.mxu1 %v12601_v17  ;;  %v1297_v16 = vld [vmem:[%s14002_s30 + $0x1e08] sm:$0xff] }
 0x24b   : > { %9195 = vmatprep.subr.bf16.mxu0 %v12608_v18  ;;  %9668 = vmatprep.subr.bf16.mxu1 %v12610_v19  ;;  %v1301_v17 = vld [vmem:[%s14002_s30 + $0x1e28] sm:$0xff]  ;;  %v12663_v18 = vcombine.low %v1288_v6, %v1292_v7  ;;  %v12665_v19 = vcombine.low %v1289_v8, %v1293_v9  ;;  %v1352_v6 = vld [vmem:[%s14002_s30 + $0x1fc0] sm:$0xff] }
 0x24c   : > { %v12674_v21 = vcombine.high %v1297_v16, %v1301_v17  ;;  %v1356_v7 = vld [vmem:[%s14002_s30 + $0x1fe0] sm:$0xff]  ;;  %v1353_v8 = vld [vmem:[%s14002_s30 + $0x1fc8] sm:$0xff] }
 0x24d   : > { %9185 = vmatmul.mubr.bf16.vlgmr.msra.gmra.mrb[0].mxu0 %v13535_v22  ;;  %9658 = vmatmul.mubr.bf16.vlgmr.msra.gmra.mrb[0].mxu1 %v13535_v22  ;;  %v1304_v22 = vld [vmem:[%s14002_s30 + $0x1e40] sm:$0xff]  ;;  %v1357_v9 = vld [vmem:[%s14002_s30 + $0x1fe8] sm:$0xff] }
 0x24e   : > { %9196 = vmatpush1.bf16.msra.mxu0 %v12607_v25  ;;  %9669 = vmatpush1.bf16.msra.mxu1 %v12609_v26  ;;  %v1309_v25 = vld [vmem:[%s14002_s30 + $0x1e68] sm:$0xff]  ;;  %v12671_v26 = vcombine.low %v1296_v14, %v1300_v15  ;;  %v1360_v14 = vld [vmem:[%s14002_s30 + $0x2000] sm:$0xff] }
 0x24f   : > { %9197 = vmatprep.subr.bf16.mxu0 %v12616_v27  ;;  %9670 = vmatprep.subr.bf16.mxu1 %v12618_v28  ;;  %v12673_v27 = vcombine.low %v1297_v16, %v1301_v17  ;;  %v12680_v28 = vcombine.high %v1304_v22, %v1308_v23  ;;  %v12682_v29 = vcombine.high %v1305_v24, %v1309_v25  ;;  %v1364_v15 = vld [vmem:[%s14002_s30 + $0x2020] sm:$0xff]  ;;  %v1361_v16 = vld [vmem:[%s14002_s30 + $0x2008] sm:$0xff] }
 0x250   : > { %9227 = vmatprep.mubr.bf16.mxu0 %v13536_v31  ;;  %9700 = vmatprep.mubr.bf16.mxu1 %v13536_v31  ;;  %v1316_v31 = vld [vmem:[%s14002_s30 + $0x1ea0] sm:$0xff]  ;;  %v1365_v17 = vld [vmem:[%s14002_s30 + $0x2028] sm:$0xff] }
 0x252   : > { %9198 = vmatpush1.bf16.msra.mxu0 %v12615_v34  ;;  %9671 = vmatpush1.bf16.msra.mxu1 %v12617_v35  ;;  %v12679_v34 = vcombine.low %v1304_v22, %v1308_v23  ;;  %v12681_v35 = vcombine.low %v1305_v24, %v1309_v25  ;;  %v1368_v22 = vld [vmem:[%s14002_s30 + $0x2040] sm:$0xff]  ;;  %v13538_v24 = vld [vmem:[%s14050_s21 + $0x38] ss:$176 sps:$4 sm:$0xff]  }
 0x253   : > { %9199 = vmatprep.subr.bf16.mxu0 %v12624_v36  ;;  %9672 = vmatprep.subr.bf16.mxu1 %v12626_v37  ;;  %v12688_v36 = vcombine.high %v1312_v30, %v1316_v31  ;;  %v12690_v37 = vcombine.high %v1313_v32, %v1317_v33  ;;  %v1372_v23 = vld [vmem:[%s14002_s30 + $0x2060] sm:$0xff]  ;;  %v1369_v25 = vld [vmem:[%s14002_s30 + $0x2048] sm:$0xff] }
 0x256   : > { %9200 = vmatpush1.bf16.msra.mxu0 %v12623_v42  ;;  %9673 = vmatpush1.bf16.msra.mxu1 %v12625_v43  ;;  %v12687_v42 = vcombine.low %v1312_v30, %v1316_v31  ;;  %v12689_v43 = vcombine.low %v1313_v32, %v1317_v33  ;;  %v1376_v31 = vld [vmem:[%s14002_s30 + $0x2080] sm:$0xff] }
 0x257   : > { %9201 = vmatprep.subr.bf16.mxu0 %v12632_v44  ;;  %9674 = vmatprep.subr.bf16.mxu1 %v12634_v45  ;;  %v12696_v44 = vcombine.high %v1320_v38, %v1324_v39  ;;  %v12698_v45 = vcombine.high %v1321_v40, %v1325_v41  ;;  %v1380_v32 = vld [vmem:[%s14002_s30 + $0x20a0] sm:$0xff] }
 0x258   : > { %v13539_v33 = vld [vmem:[%s14050_s21 + $0x44] ss:$176 sps:$4 sm:$0xff]  }
 0x25a   : > { %9202 = vmatpush1.bf16.msra.mxu0 %v12631_v50  ;;  %9675 = vmatpush1.bf16.msra.mxu1 %v12633_v51  ;;  %v12695_v50 = vcombine.low %v1320_v38, %v1324_v39  ;;  %v12697_v51 = vcombine.low %v1321_v40, %v1325_v41  ;;  %v12752_v38 = vcombine.high %v1376_v31, %v1380_v32  ;;  %v1384_v40 = vld [vmem:[%s14002_s30 + $0x20c0] sm:$0xff] }
 0x25b   : > { %9203 = vmatprep.subr.bf16.mxu0 %v12640_v52  ;;  %9676 = vmatprep.subr.bf16.mxu1 %v12642_v53  ;;  %v12704_v52 = vcombine.high %v1328_v46, %v1332_v47  ;;  %v12706_v53 = vcombine.high %v1329_v48, %v1333_v49  ;;  %v1388_v41 = vld [vmem:[%s14002_s30 + $0x20e0] sm:$0xff] }
 0x25e   : > { %9204 = vmatpush1.bf16.msra.mxu0 %v12639_v58  ;;  %9677 = vmatpush1.bf16.msra.mxu1 %v12641_v59  ;;  %v12703_v58 = vcombine.low %v1328_v46, %v1332_v47  ;;  %v12705_v59 = vcombine.low %v1329_v48, %v1333_v49  ;;  %v12760_v46 = vcombine.high %v1384_v40, %v1388_v41  ;;  %v1392_v48 = vld [vmem:[%s14002_s30 + $0x2100] sm:$0xff] }
 0x25f   : > { %9205 = vmatprep.subr.bf16.mxu0 %v12648_v60  ;;  %9678 = vmatprep.subr.bf16.mxu1 %v12650_v61  ;;  %v12712_v60 = vcombine.high %v1336_v54, %v1340_v55  ;;  %v12714_v61 = vcombine.high %v1337_v56, %v1341_v57  ;;  %v1396_v49 = vld [vmem:[%s14002_s30 + $0x2120] sm:$0xff] }
 0x262   : > { %9206 = vmatpush1.bf16.msra.mxu0 %v12647_v2  ;;  %9679 = vmatpush1.bf16.msra.mxu1 %v12649_v3  ;;  %v12711_v2 = vcombine.low %v1336_v54, %v1340_v55  ;;  %v12713_v3 = vcombine.low %v1337_v56, %v1341_v57  ;;  %v12768_v54 = vcombine.high %v1392_v48, %v1396_v49  ;;  %v1400_v56 = vld [vmem:[%s14002_s30 + $0x2140] sm:$0xff] }
 0x263   : > { %9207 = vmatprep.subr.bf16.mxu0 %v12656_v4  ;;  %9680 = vmatprep.subr.bf16.mxu1 %v12658_v5  ;;  %v12720_v4 = vcombine.high %v1344_v62, %v1348_v63  ;;  %v12722_v5 = vcombine.high %v1345_v0, %v1349_v1  ;;  %v1404_v57 = vld [vmem:[%s14002_s30 + $0x2160] sm:$0xff] }
 0x266   : > { %9208 = vmatpush1.bf16.msra.mxu0 %v12655_v10  ;;  %9681 = vmatpush1.bf16.msra.mxu1 %v12657_v11  ;;  %v12719_v10 = vcombine.low %v1344_v62, %v1348_v63  ;;  %v12721_v11 = vcombine.low %v1345_v0, %v1349_v1  ;;  %v12776_v62 = vcombine.high %v1400_v56, %v1404_v57  ;;  %v1408_v0 = vld [vmem:[%s14002_s30 + $0x2180] sm:$0xff] }
 0x267   : > { %9209 = vmatprep.subr.bf16.mxu0 %v12664_v12  ;;  %9682 = vmatprep.subr.bf16.mxu1 %v12666_v13  ;;  %v12728_v12 = vcombine.high %v1352_v6, %v1356_v7  ;;  %v12730_v13 = vcombine.high %v1353_v8, %v1357_v9  ;;  %v1412_v1 = vld [vmem:[%s14002_s30 + $0x21a0] sm:$0xff] }
 0x26a   : > { %9210 = vmatpush1.bf16.msra.mxu0 %v12663_v18  ;;  %9683 = vmatpush1.bf16.msra.mxu1 %v12665_v19  ;;  %v12727_v18 = vcombine.low %v1352_v6, %v1356_v7  ;;  %v12729_v19 = vcombine.low %v1353_v8, %v1357_v9  ;;  %v12784_v6 = vcombine.high %v1408_v0, %v1412_v1  ;;  %v1416_v8 = vld [vmem:[%s14002_s30 + $0x21c0] sm:$0xff] }
 0x26b   : > { %9211 = vmatprep.subr.bf16.mxu0 %v12672_v20  ;;  %9684 = vmatprep.subr.bf16.mxu1 %v12674_v21  ;;  %v12736_v20 = vcombine.high %v1360_v14, %v1364_v15  ;;  %v12738_v21 = vcombine.high %v1361_v16, %v1365_v17  ;;  %v1420_v9 = vld [vmem:[%s14002_s30 + $0x21e0] sm:$0xff] }
 0x26e   : > { %9212 = vmatpush1.bf16.msra.mxu0 %v12671_v26  ;;  %9685 = vmatpush1.bf16.msra.mxu1 %v12673_v27  ;;  %v1373_v26 = vld [vmem:[%s14002_s30 + $0x2068] sm:$0xff]  ;;  %v12735_v27 = vcombine.low %v1360_v14, %v1364_v15  ;;  %v12792_v14 = vcombine.high %v1416_v8, %v1420_v9 }
 0x26f   : > { %9213 = vmatprep.subr.bf16.mxu0 %v12680_v28  ;;  %9686 = vmatprep.subr.bf16.mxu1 %v12682_v29  ;;  %v12737_v28 = vcombine.low %v1361_v16, %v1365_v17  ;;  %v12744_v29 = vcombine.high %v1368_v22, %v1372_v23  ;;  %v12746_v30 = vcombine.high %v1369_v25, %v1373_v26  ;;  %v1424_v16 = vld [vmem:[%s14002_s30 + $0x2200] sm:$0xff] }
 0x270   : > { %v1428_v17 = vld [vmem:[%s14002_s30 + $0x2220] sm:$0xff] }
 0x272   : > { %9214 = vmatpush1.bf16.msra.mxu0 %v12679_v34  ;;  %9687 = vmatpush1.bf16.msra.mxu1 %v12681_v35  ;;  %v1377_v34 = vld [vmem:[%s14002_s30 + $0x2088] sm:$0xff] }
 0x273   : > { %9215 = vmatprep.subr.bf16.mxu0 %v12688_v36  ;;  %9688 = vmatprep.subr.bf16.mxu1 %v12690_v37  ;;  %v1381_v35 = vld [vmem:[%s14002_s30 + $0x20a8] sm:$0xff]  ;;  %v12743_v36 = vcombine.low %v1368_v22, %v1372_v23  ;;  %v12745_v37 = vcombine.low %v1369_v25, %v1373_v26  ;;  %v12800_v22 = vcombine.high %v1424_v16, %v1428_v17  ;;  %v1436_v25 = vld [vmem:[%s14002_s30 + $0x2260] sm:$0xff] }
 0x274   : > { %v12754_v39 = vcombine.high %v1377_v34, %v1381_v35  ;;  %v1433_v26 = vld [vmem:[%s14002_s30 + $0x2248] sm:$0xff] }
 0x276   : > { %9216 = vmatpush1.bf16.msra.mxu0 %v12687_v42  ;;  %9689 = vmatpush1.bf16.msra.mxu1 %v12689_v43  ;;  %v1385_v42 = vld [vmem:[%s14002_s30 + $0x20c8] sm:$0xff] }
 0x277   : > { %9217 = vmatprep.subr.bf16.mxu0 %v12696_v44  ;;  %9690 = vmatprep.subr.bf16.mxu1 %v12698_v45  ;;  %v1389_v43 = vld [vmem:[%s14002_s30 + $0x20e8] sm:$0xff]  ;;  %v12751_v44 = vcombine.low %v1376_v31, %v1380_v32  ;;  %v12753_v45 = vcombine.low %v1377_v34, %v1381_v35  ;;  %v1440_v32 = vld [vmem:[%s14002_s30 + $0x2280] sm:$0xff] }
 0x278   : > { %v12762_v47 = vcombine.high %v1385_v42, %v1389_v43  ;;  %v1441_v34 = vld [vmem:[%s14002_s30 + $0x2288] sm:$0xff] }
 0x279   : > { %v1445_v35 = vld [vmem:[%s14002_s30 + $0x22a8] sm:$0xff] }
 0x27a   : > { %9218 = vmatpush1.bf16.msra.mxu0 %v12695_v50  ;;  %9691 = vmatpush1.bf16.msra.mxu1 %v12697_v51  ;;  %v1393_v50 = vld [vmem:[%s14002_s30 + $0x2108] sm:$0xff] }
 0x27b   : > { %9219 = vmatprep.subr.bf16.mxu0 %v12704_v52  ;;  %9692 = vmatprep.subr.bf16.mxu1 %v12706_v53  ;;  %v1397_v51 = vld [vmem:[%s14002_s30 + $0x2128] sm:$0xff]  ;;  %v12759_v52 = vcombine.low %v1384_v40, %v1388_v41  ;;  %v12761_v53 = vcombine.low %v1385_v42, %v1389_v43  ;;  %v1448_v40 = vld [vmem:[%s14002_s30 + $0x22c0] sm:$0xff] }
 0x27c   : > { %v12770_v55 = vcombine.high %v1393_v50, %v1397_v51  ;;  %v1452_v41 = vld [vmem:[%s14002_s30 + $0x22e0] sm:$0xff]  ;;  %v1449_v42 = vld [vmem:[%s14002_s30 + $0x22c8] sm:$0xff] }
 0x27d   : > { %v1453_v43 = vld [vmem:[%s14002_s30 + $0x22e8] sm:$0xff] }
 0x27e   : > { %9220 = vmatpush1.bf16.msra.mxu0 %v12703_v58  ;;  %9693 = vmatpush1.bf16.msra.mxu1 %v12705_v59  ;;  %v1401_v58 = vld [vmem:[%s14002_s30 + $0x2148] sm:$0xff] }
 0x27f   : > { %9221 = vmatprep.subr.bf16.mxu0 %v12712_v60  ;;  %9694 = vmatprep.subr.bf16.mxu1 %v12714_v61  ;;  %v1405_v59 = vld [vmem:[%s14002_s30 + $0x2168] sm:$0xff]  ;;  %v12767_v60 = vcombine.low %v1392_v48, %v1396_v49  ;;  %v12769_v61 = vcombine.low %v1393_v50, %v1397_v51  ;;  %v1456_v48 = vld [vmem:[%s14002_s30 + $0x2300] sm:$0xff] }
 0x280   : > { %v12778_v63 = vcombine.high %v1401_v58, %v1405_v59  ;;  %v1460_v49 = vld [vmem:[%s14002_s30 + $0x2320] sm:$0xff]  ;;  %v1457_v50 = vld [vmem:[%s14002_s30 + $0x2308] sm:$0xff] }
 0x281   : > { %v1461_v51 = vld [vmem:[%s14002_s30 + $0x2328] sm:$0xff] }
 0x282   : > { %9222 = vmatpush1.bf16.msra.mxu0 %v12711_v2  ;;  %9695 = vmatpush1.bf16.msra.mxu1 %v12713_v3  ;;  %v1409_v2 = vld [vmem:[%s14002_s30 + $0x2188] sm:$0xff] }
 0x283   : > { %9223 = vmatprep.subr.bf16.mxu0 %v12720_v4  ;;  %9696 = vmatprep.subr.bf16.mxu1 %v12722_v5  ;;  %v1413_v3 = vld [vmem:[%s14002_s30 + $0x21a8] sm:$0xff]  ;;  %v12775_v4 = vcombine.low %v1400_v56, %v1404_v57  ;;  %v12777_v5 = vcombine.low %v1401_v58, %v1405_v59  ;;  %v1464_v56 = vld [vmem:[%s14002_s30 + $0x2340] sm:$0xff] }
 0x284   : > { %v12786_v7 = vcombine.high %v1409_v2, %v1413_v3  ;;  %v1468_v57 = vld [vmem:[%s14002_s30 + $0x2360] sm:$0xff]  ;;  %v1465_v58 = vld [vmem:[%s14002_s30 + $0x2348] sm:$0xff] }
 0x285   : > { %v1469_v59 = vld [vmem:[%s14002_s30 + $0x2368] sm:$0xff] }
 0x286   : > { %9224 = vmatpush1.bf16.msra.mxu0 %v12719_v10  ;;  %9697 = vmatpush1.bf16.msra.mxu1 %v12721_v11  ;;  %v1417_v10 = vld [vmem:[%s14002_s30 + $0x21c8] sm:$0xff] }
 0x287   : > { %9225 = vmatprep.subr.bf16.mxu0 %v12728_v12  ;;  %9698 = vmatprep.subr.bf16.mxu1 %v12730_v13  ;;  %v1421_v11 = vld [vmem:[%s14002_s30 + $0x21e8] sm:$0xff]  ;;  %v12783_v12 = vcombine.low %v1408_v0, %v1412_v1  ;;  %v12785_v13 = vcombine.low %v1409_v2, %v1413_v3  ;;  %v1472_v0 = vld [vmem:[%s14002_s30 + $0x2380] sm:$0xff] }
 0x288   : > { %v12794_v15 = vcombine.high %v1417_v10, %v1421_v11  ;;  %v1476_v1 = vld [vmem:[%s14002_s30 + $0x23a0] sm:$0xff]  ;;  %v1473_v2 = vld [vmem:[%s14002_s30 + $0x2388] sm:$0xff] }
 0x289   : > { %v1477_v3 = vld [vmem:[%s14002_s30 + $0x23a8] sm:$0xff] }
 0x28a   : > { %9226 = vmatpush1.bf16.msra.mxu0 %v12727_v18  ;;  %9699 = vmatpush1.bf16.msra.mxu1 %v12729_v19  ;;  %v1425_v18 = vld [vmem:[%s14002_s30 + $0x2208] sm:$0xff] }
 0x28b   : > { %9238 = vmatprep.subr.bf16.mxu0 %v12736_v20  ;;  %9711 = vmatprep.subr.bf16.mxu1 %v12738_v21  ;;  %v1429_v19 = vld [vmem:[%s14002_s30 + $0x2228] sm:$0xff]  ;;  %v12791_v20 = vcombine.low %v1416_v8, %v1420_v9  ;;  %v12793_v21 = vcombine.low %v1417_v10, %v1421_v11  ;;  %v1480_v8 = vld [vmem:[%s14002_s30 + $0x23c0] sm:$0xff] }
 0x28c   : > { %v12802_v23 = vcombine.high %v1425_v18, %v1429_v19  ;;  %v1484_v9 = vld [vmem:[%s14002_s30 + $0x23e0] sm:$0xff]  ;;  %v1481_v10 = vld [vmem:[%s14002_s30 + $0x23c8] sm:$0xff] }
 0x28d   : > { %9228 = vmatmul.mubr.bf16.vlgmr.msra.gmra.mrb[0].mxu0 %v13538_v24  ;;  %9701 = vmatmul.mubr.bf16.vlgmr.msra.gmra.mrb[0].mxu1 %v13538_v24  ;;  %v1432_v24 = vld [vmem:[%s14002_s30 + $0x2240] sm:$0xff]  ;;  %v1485_v11 = vld [vmem:[%s14002_s30 + $0x23e8] sm:$0xff] }
 0x28e   : > { %9239 = vmatpush1.bf16.msra.mxu0 %v12735_v27  ;;  %9712 = vmatpush1.bf16.msra.mxu1 %v12737_v28  ;;  %v1437_v27 = vld [vmem:[%s14002_s30 + $0x2268] sm:$0xff]  ;;  %v12799_v28 = vcombine.low %v1424_v16, %v1428_v17  ;;  %v1488_v16 = vld [vmem:[%s14002_s30 + $0x2400] sm:$0xff] }
 0x28f   : > { %9240 = vmatprep.subr.bf16.mxu0 %v12744_v29  ;;  %9713 = vmatprep.subr.bf16.mxu1 %v12746_v30  ;;  %v12801_v29 = vcombine.low %v1425_v18, %v1429_v19  ;;  %v12808_v30 = vcombine.high %v1432_v24, %v1436_v25  ;;  %v12810_v31 = vcombine.high %v1433_v26, %v1437_v27  ;;  %v1492_v17 = vld [vmem:[%s14002_s30 + $0x2420] sm:$0xff]  ;;  %v1489_v18 = vld [vmem:[%s14002_s30 + $0x2408] sm:$0xff] }
 0x290   : > { %9270 = vmatprep.mubr.bf16.mxu0 %v13539_v33  ;;  %9743 = vmatprep.mubr.bf16.mxu1 %v13539_v33  ;;  %v1444_v33 = vld [vmem:[%s14002_s30 + $0x22a0] sm:$0xff]  ;;  %v1493_v19 = vld [vmem:[%s14002_s30 + $0x2428] sm:$0xff] }
 0x292   : > { %9241 = vmatpush1.bf16.msra.mxu0 %v12743_v36  ;;  %9714 = vmatpush1.bf16.msra.mxu1 %v12745_v37  ;;  %v12807_v36 = vcombine.low %v1432_v24, %v1436_v25  ;;  %v12809_v37 = vcombine.low %v1433_v26, %v1437_v27  ;;  %v1496_v24 = vld [vmem:[%s14002_s30 + $0x2440] sm:$0xff]  ;;  %v1497_v27 = vld [vmem:[%s14002_s30 + $0x2448] sm:$0xff] }
 0x293   : > { %9242 = vmatprep.subr.bf16.mxu0 %v12752_v38  ;;  %9715 = vmatprep.subr.bf16.mxu1 %v12754_v39  ;;  %v12816_v38 = vcombine.high %v1440_v32, %v1444_v33  ;;  %v12818_v39 = vcombine.high %v1441_v34, %v1445_v35  ;;  %v1500_v25 = vld [vmem:[%s14002_s30 + $0x2460] sm:$0xff] }
 0x294   : > { %v13541_v26 = vld [vmem:[%s14050_s21 + $0x40] ss:$176 sps:$4 sm:$0xff]  }
 0x296   : > { %9243 = vmatpush1.bf16.msra.mxu0 %v12751_v44  ;;  %9716 = vmatpush1.bf16.msra.mxu1 %v12753_v45  ;;  %v12815_v44 = vcombine.low %v1440_v32, %v1444_v33  ;;  %v12817_v45 = vcombine.low %v1441_v34, %v1445_v35  ;;  %v1504_v33 = vld [vmem:[%s14002_s30 + $0x2480] sm:$0xff]  ;;  %v13542_v35 = vld [vmem:[%s14050_s21 + $0x4c] ss:$176 sps:$4 sm:$0xff]  }
 0x297   : > { %9244 = vmatprep.subr.bf16.mxu0 %v12760_v46  ;;  %9717 = vmatprep.subr.bf16.mxu1 %v12762_v47  ;;  %v12824_v46 = vcombine.high %v1448_v40, %v1452_v41  ;;  %v12826_v47 = vcombine.high %v1449_v42, %v1453_v43  ;;  %v1508_v34 = vld [vmem:[%s14002_s30 + $0x24a0] sm:$0xff] }
 0x29a   : > { %9245 = vmatpush1.bf16.msra.mxu0 %v12759_v52  ;;  %9718 = vmatpush1.bf16.msra.mxu1 %v12761_v53  ;;  %v12823_v52 = vcombine.low %v1448_v40, %v1452_v41  ;;  %v12825_v53 = vcombine.low %v1449_v42, %v1453_v43  ;;  %v12880_v40 = vcombine.high %v1504_v33, %v1508_v34  ;;  %v1512_v42 = vld [vmem:[%s14002_s30 + $0x24c0] sm:$0xff] }
 0x29b   : > { %9246 = vmatprep.subr.bf16.mxu0 %v12768_v54  ;;  %9719 = vmatprep.subr.bf16.mxu1 %v12770_v55  ;;  %v12832_v54 = vcombine.high %v1456_v48, %v1460_v49  ;;  %v12834_v55 = vcombine.high %v1457_v50, %v1461_v51  ;;  %v1516_v43 = vld [vmem:[%s14002_s30 + $0x24e0] sm:$0xff] }
 0x29e   : > { %9247 = vmatpush1.bf16.msra.mxu0 %v12767_v60  ;;  %9720 = vmatpush1.bf16.msra.mxu1 %v12769_v61  ;;  %v12831_v60 = vcombine.low %v1456_v48, %v1460_v49  ;;  %v12833_v61 = vcombine.low %v1457_v50, %v1461_v51  ;;  %v12888_v48 = vcombine.high %v1512_v42, %v1516_v43  ;;  %v1520_v50 = vld [vmem:[%s14002_s30 + $0x2500] sm:$0xff] }
 0x29f   : > { %9248 = vmatprep.subr.bf16.mxu0 %v12776_v62  ;;  %9721 = vmatprep.subr.bf16.mxu1 %v12778_v63  ;;  %v12840_v62 = vcombine.high %v1464_v56, %v1468_v57  ;;  %v12842_v63 = vcombine.high %v1465_v58, %v1469_v59  ;;  %v1524_v51 = vld [vmem:[%s14002_s30 + $0x2520] sm:$0xff] }
 0x2a2   : > { %9249 = vmatpush1.bf16.msra.mxu0 %v12775_v4  ;;  %9722 = vmatpush1.bf16.msra.mxu1 %v12777_v5  ;;  %v12839_v4 = vcombine.low %v1464_v56, %v1468_v57  ;;  %v12841_v5 = vcombine.low %v1465_v58, %v1469_v59  ;;  %v12896_v56 = vcombine.high %v1520_v50, %v1524_v51  ;;  %v1528_v58 = vld [vmem:[%s14002_s30 + $0x2540] sm:$0xff] }
 0x2a3   : > { %9250 = vmatprep.subr.bf16.mxu0 %v12784_v6  ;;  %9723 = vmatprep.subr.bf16.mxu1 %v12786_v7  ;;  %v12848_v6 = vcombine.high %v1472_v0, %v1476_v1  ;;  %v12850_v7 = vcombine.high %v1473_v2, %v1477_v3  ;;  %v1532_v59 = vld [vmem:[%s14002_s30 + $0x2560] sm:$0xff] }
 0x2a6   : > { %9251 = vmatpush1.bf16.msra.mxu0 %v12783_v12  ;;  %9724 = vmatpush1.bf16.msra.mxu1 %v12785_v13  ;;  %v12847_v12 = vcombine.low %v1472_v0, %v1476_v1  ;;  %v12849_v13 = vcombine.low %v1473_v2, %v1477_v3  ;;  %v12904_v0 = vcombine.high %v1528_v58, %v1532_v59  ;;  %v1536_v2 = vld [vmem:[%s14002_s30 + $0x2580] sm:$0xff] }
 0x2a7   : > { %9252 = vmatprep.subr.bf16.mxu0 %v12792_v14  ;;  %9725 = vmatprep.subr.bf16.mxu1 %v12794_v15  ;;  %v12856_v14 = vcombine.high %v1480_v8, %v1484_v9  ;;  %v12858_v15 = vcombine.high %v1481_v10, %v1485_v11  ;;  %v1540_v3 = vld [vmem:[%s14002_s30 + $0x25a0] sm:$0xff] }
 0x2aa   : > { %9253 = vmatpush1.bf16.msra.mxu0 %v12791_v20  ;;  %9726 = vmatpush1.bf16.msra.mxu1 %v12793_v21  ;;  %v12855_v20 = vcombine.low %v1480_v8, %v1484_v9  ;;  %v12857_v21 = vcombine.low %v1481_v10, %v1485_v11  ;;  %v12912_v8 = vcombine.high %v1536_v2, %v1540_v3  ;;  %v1544_v10 = vld [vmem:[%s14002_s30 + $0x25c0] sm:$0xff] }
 0x2ab   : > { %9254 = vmatprep.subr.bf16.mxu0 %v12800_v22  ;;  %9727 = vmatprep.subr.bf16.mxu1 %v12802_v23  ;;  %v12864_v22 = vcombine.high %v1488_v16, %v1492_v17  ;;  %v12866_v23 = vcombine.high %v1489_v18, %v1493_v19  ;;  %v1548_v11 = vld [vmem:[%s14002_s30 + $0x25e0] sm:$0xff] }
 0x2ae   : > { %9255 = vmatpush1.bf16.msra.mxu0 %v12799_v28  ;;  %9728 = vmatpush1.bf16.msra.mxu1 %v12801_v29  ;;  %v1501_v28 = vld [vmem:[%s14002_s30 + $0x2468] sm:$0xff]  ;;  %v12863_v29 = vcombine.low %v1488_v16, %v1492_v17  ;;  %v12920_v16 = vcombine.high %v1544_v10, %v1548_v11 }
 0x2af   : > { %9256 = vmatprep.subr.bf16.mxu0 %v12808_v30  ;;  %9729 = vmatprep.subr.bf16.mxu1 %v12810_v31  ;;  %v12865_v30 = vcombine.low %v1489_v18, %v1493_v19  ;;  %v12872_v31 = vcombine.high %v1496_v24, %v1500_v25  ;;  %v12874_v32 = vcombine.high %v1497_v27, %v1501_v28  ;;  %v1552_v18 = vld [vmem:[%s14002_s30 + $0x2600] sm:$0xff] }
 0x2b0   : > { %v1556_v19 = vld [vmem:[%s14002_s30 + $0x2620] sm:$0xff] }
 0x2b2   : > { %9257 = vmatpush1.bf16.msra.mxu0 %v12807_v36  ;;  %9730 = vmatpush1.bf16.msra.mxu1 %v12809_v37  ;;  %v1505_v36 = vld [vmem:[%s14002_s30 + $0x2488] sm:$0xff] }
 0x2b3   : > { %9258 = vmatprep.subr.bf16.mxu0 %v12816_v38  ;;  %9731 = vmatprep.subr.bf16.mxu1 %v12818_v39  ;;  %v1509_v37 = vld [vmem:[%s14002_s30 + $0x24a8] sm:$0xff]  ;;  %v12871_v38 = vcombine.low %v1496_v24, %v1500_v25  ;;  %v12873_v39 = vcombine.low %v1497_v27, %v1501_v28  ;;  %v12928_v24 = vcombine.high %v1552_v18, %v1556_v19  ;;  %v1564_v27 = vld [vmem:[%s14002_s30 + $0x2660] sm:$0xff] }
 0x2b4   : > { %v12882_v41 = vcombine.high %v1505_v36, %v1509_v37  ;;  %v1561_v28 = vld [vmem:[%s14002_s30 + $0x2648] sm:$0xff] }
 0x2b6   : > { %9259 = vmatpush1.bf16.msra.mxu0 %v12815_v44  ;;  %9732 = vmatpush1.bf16.msra.mxu1 %v12817_v45  ;;  %v1513_v44 = vld [vmem:[%s14002_s30 + $0x24c8] sm:$0xff] }
 0x2b7   : > { %9260 = vmatprep.subr.bf16.mxu0 %v12824_v46  ;;  %9733 = vmatprep.subr.bf16.mxu1 %v12826_v47  ;;  %v1517_v45 = vld [vmem:[%s14002_s30 + $0x24e8] sm:$0xff]  ;;  %v12879_v46 = vcombine.low %v1504_v33, %v1508_v34  ;;  %v12881_v47 = vcombine.low %v1505_v36, %v1509_v37  ;;  %v1568_v34 = vld [vmem:[%s14002_s30 + $0x2680] sm:$0xff] }
 0x2b8   : > { %v12890_v49 = vcombine.high %v1513_v44, %v1517_v45  ;;  %v1569_v36 = vld [vmem:[%s14002_s30 + $0x2688] sm:$0xff] }
 0x2b9   : > { %v1573_v37 = vld [vmem:[%s14002_s30 + $0x26a8] sm:$0xff] }
 0x2ba   : > { %9261 = vmatpush1.bf16.msra.mxu0 %v12823_v52  ;;  %9734 = vmatpush1.bf16.msra.mxu1 %v12825_v53  ;;  %v1521_v52 = vld [vmem:[%s14002_s30 + $0x2508] sm:$0xff] }
 0x2bb   : > { %9262 = vmatprep.subr.bf16.mxu0 %v12832_v54  ;;  %9735 = vmatprep.subr.bf16.mxu1 %v12834_v55  ;;  %v1525_v53 = vld [vmem:[%s14002_s30 + $0x2528] sm:$0xff]  ;;  %v12887_v54 = vcombine.low %v1512_v42, %v1516_v43  ;;  %v12889_v55 = vcombine.low %v1513_v44, %v1517_v45  ;;  %v1576_v42 = vld [vmem:[%s14002_s30 + $0x26c0] sm:$0xff] }
 0x2bc   : > { %v12898_v57 = vcombine.high %v1521_v52, %v1525_v53  ;;  %v1580_v43 = vld [vmem:[%s14002_s30 + $0x26e0] sm:$0xff]  ;;  %v1577_v44 = vld [vmem:[%s14002_s30 + $0x26c8] sm:$0xff] }
 0x2bd   : > { %v1581_v45 = vld [vmem:[%s14002_s30 + $0x26e8] sm:$0xff] }
 0x2be   : > { %9263 = vmatpush1.bf16.msra.mxu0 %v12831_v60  ;;  %9736 = vmatpush1.bf16.msra.mxu1 %v12833_v61  ;;  %v1529_v60 = vld [vmem:[%s14002_s30 + $0x2548] sm:$0xff] }
 0x2bf   : > { %9264 = vmatprep.subr.bf16.mxu0 %v12840_v62  ;;  %9737 = vmatprep.subr.bf16.mxu1 %v12842_v63  ;;  %v1533_v61 = vld [vmem:[%s14002_s30 + $0x2568] sm:$0xff]  ;;  %v12895_v62 = vcombine.low %v1520_v50, %v1524_v51  ;;  %v12897_v63 = vcombine.low %v1521_v52, %v1525_v53  ;;  %v1584_v50 = vld [vmem:[%s14002_s30 + $0x2700] sm:$0xff] }
 0x2c0   : > { %v12906_v1 = vcombine.high %v1529_v60, %v1533_v61  ;;  %v1588_v51 = vld [vmem:[%s14002_s30 + $0x2720] sm:$0xff]  ;;  %v1585_v52 = vld [vmem:[%s14002_s30 + $0x2708] sm:$0xff] }
 0x2c1   : > { %v1589_v53 = vld [vmem:[%s14002_s30 + $0x2728] sm:$0xff] }
 0x2c2   : > { %9265 = vmatpush1.bf16.msra.mxu0 %v12839_v4  ;;  %9738 = vmatpush1.bf16.msra.mxu1 %v12841_v5  ;;  %v1537_v4 = vld [vmem:[%s14002_s30 + $0x2588] sm:$0xff] }
 0x2c3   : > { %9266 = vmatprep.subr.bf16.mxu0 %v12848_v6  ;;  %9739 = vmatprep.subr.bf16.mxu1 %v12850_v7  ;;  %v1541_v5 = vld [vmem:[%s14002_s30 + $0x25a8] sm:$0xff]  ;;  %v12903_v6 = vcombine.low %v1528_v58, %v1532_v59  ;;  %v12905_v7 = vcombine.low %v1529_v60, %v1533_v61  ;;  %v1592_v58 = vld [vmem:[%s14002_s30 + $0x2740] sm:$0xff] }
 0x2c4   : > { %v12914_v9 = vcombine.high %v1537_v4, %v1541_v5  ;;  %v1596_v59 = vld [vmem:[%s14002_s30 + $0x2760] sm:$0xff]  ;;  %v1593_v60 = vld [vmem:[%s14002_s30 + $0x2748] sm:$0xff] }
 0x2c5   : > { %v1597_v61 = vld [vmem:[%s14002_s30 + $0x2768] sm:$0xff] }
 0x2c6   : > { %9267 = vmatpush1.bf16.msra.mxu0 %v12847_v12  ;;  %9740 = vmatpush1.bf16.msra.mxu1 %v12849_v13  ;;  %v1545_v12 = vld [vmem:[%s14002_s30 + $0x25c8] sm:$0xff] }
 0x2c7   : > { %9268 = vmatprep.subr.bf16.mxu0 %v12856_v14  ;;  %9741 = vmatprep.subr.bf16.mxu1 %v12858_v15  ;;  %v1549_v13 = vld [vmem:[%s14002_s30 + $0x25e8] sm:$0xff]  ;;  %v12911_v14 = vcombine.low %v1536_v2, %v1540_v3  ;;  %v12913_v15 = vcombine.low %v1537_v4, %v1541_v5  ;;  %v1600_v2 = vld [vmem:[%s14002_s30 + $0x2780] sm:$0xff] }
 0x2c8   : > { %v12922_v17 = vcombine.high %v1545_v12, %v1549_v13  ;;  %v1604_v3 = vld [vmem:[%s14002_s30 + $0x27a0] sm:$0xff]  ;;  %v1601_v4 = vld [vmem:[%s14002_s30 + $0x2788] sm:$0xff] }
 0x2c9   : > { %v1605_v5 = vld [vmem:[%s14002_s30 + $0x27a8] sm:$0xff] }
 0x2ca   : > { %9269 = vmatpush1.bf16.msra.mxu0 %v12855_v20  ;;  %9742 = vmatpush1.bf16.msra.mxu1 %v12857_v21  ;;  %v1553_v20 = vld [vmem:[%s14002_s30 + $0x2608] sm:$0xff] }
 0x2cb   : > { %9281 = vmatprep.subr.bf16.mxu0 %v12864_v22  ;;  %9754 = vmatprep.subr.bf16.mxu1 %v12866_v23  ;;  %v1557_v21 = vld [vmem:[%s14002_s30 + $0x2628] sm:$0xff]  ;;  %v12919_v22 = vcombine.low %v1544_v10, %v1548_v11  ;;  %v12921_v23 = vcombine.low %v1545_v12, %v1549_v13  ;;  %v1608_v10 = vld [vmem:[%s14002_s30 + $0x27c0] sm:$0xff] }
 0x2cc   : > { %v12930_v25 = vcombine.high %v1553_v20, %v1557_v21  ;;  %v1612_v11 = vld [vmem:[%s14002_s30 + $0x27e0] sm:$0xff]  ;;  %v1609_v12 = vld [vmem:[%s14002_s30 + $0x27c8] sm:$0xff] }
 0x2cd   : > { %9271 = vmatmul.mubr.bf16.vlgmr.msra.gmra.mrb[0].mxu0 %v13541_v26  ;;  %9744 = vmatmul.mubr.bf16.vlgmr.msra.gmra.mrb[0].mxu1 %v13541_v26  ;;  %v1560_v26 = vld [vmem:[%s14002_s30 + $0x2640] sm:$0xff]  ;;  %v1613_v13 = vld [vmem:[%s14002_s30 + $0x27e8] sm:$0xff] }
 0x2ce   : > { %9282 = vmatpush1.bf16.msra.mxu0 %v12863_v29  ;;  %9755 = vmatpush1.bf16.msra.mxu1 %v12865_v30  ;;  %v1565_v29 = vld [vmem:[%s14002_s30 + $0x2668] sm:$0xff]  ;;  %v12927_v30 = vcombine.low %v1552_v18, %v1556_v19  ;;  %v1616_v18 = vld [vmem:[%s14002_s30 + $0x2800] sm:$0xff] }
 0x2cf   : > { %9283 = vmatprep.subr.bf16.mxu0 %v12872_v31  ;;  %9756 = vmatprep.subr.bf16.mxu1 %v12874_v32  ;;  %v12929_v31 = vcombine.low %v1553_v20, %v1557_v21  ;;  %v12936_v32 = vcombine.high %v1560_v26, %v1564_v27  ;;  %v12938_v33 = vcombine.high %v1561_v28, %v1565_v29  ;;  %v1620_v19 = vld [vmem:[%s14002_s30 + $0x2820] sm:$0xff]  ;;  %v1617_v20 = vld [vmem:[%s14002_s30 + $0x2808] sm:$0xff] }
 0x2d0   : > { %9313 = vmatprep.mubr.bf16.mxu0 %v13542_v35  ;;  %9786 = vmatprep.mubr.bf16.mxu1 %v13542_v35  ;;  %v1572_v35 = vld [vmem:[%s14002_s30 + $0x26a0] sm:$0xff]  ;;  %v1621_v21 = vld [vmem:[%s14002_s30 + $0x2828] sm:$0xff] }
 0x2d2   : > { %9284 = vmatpush1.bf16.msra.mxu0 %v12871_v38  ;;  %9757 = vmatpush1.bf16.msra.mxu1 %v12873_v39  ;;  %v12935_v38 = vcombine.low %v1560_v26, %v1564_v27  ;;  %v12937_v39 = vcombine.low %v1561_v28, %v1565_v29  ;;  %v1624_v26 = vld [vmem:[%s14002_s30 + $0x2840] sm:$0xff]  ;;  %v13544_v28 = vld [vmem:[%s14050_s21 + $0x48] ss:$176 sps:$4 sm:$0xff]  }
 0x2d3   : > { %9285 = vmatprep.subr.bf16.mxu0 %v12880_v40  ;;  %9758 = vmatprep.subr.bf16.mxu1 %v12882_v41  ;;  %v12944_v40 = vcombine.high %v1568_v34, %v1572_v35  ;;  %v12946_v41 = vcombine.high %v1569_v36, %v1573_v37  ;;  %v1628_v27 = vld [vmem:[%s14002_s30 + $0x2860] sm:$0xff]  ;;  %v1625_v29 = vld [vmem:[%s14002_s30 + $0x2848] sm:$0xff] }
 0x2d6   : > { %9286 = vmatpush1.bf16.msra.mxu0 %v12879_v46  ;;  %9759 = vmatpush1.bf16.msra.mxu1 %v12881_v47  ;;  %v12943_v46 = vcombine.low %v1568_v34, %v1572_v35  ;;  %v12945_v47 = vcombine.low %v1569_v36, %v1573_v37  ;;  %v1632_v35 = vld [vmem:[%s14002_s30 + $0x2880] sm:$0xff] }
 0x2d7   : > { %9287 = vmatprep.subr.bf16.mxu0 %v12888_v48  ;;  %9760 = vmatprep.subr.bf16.mxu1 %v12890_v49  ;;  %v12952_v48 = vcombine.high %v1576_v42, %v1580_v43  ;;  %v12954_v49 = vcombine.high %v1577_v44, %v1581_v45  ;;  %v1636_v36 = vld [vmem:[%s14002_s30 + $0x28a0] sm:$0xff] }
 0x2d8   : > { %v13545_v37 = vld [vmem:[%s14050_s21 + $0x54] ss:$176 sps:$4 sm:$0xff]  }
 0x2da   : > { %9288 = vmatpush1.bf16.msra.mxu0 %v12887_v54  ;;  %9761 = vmatpush1.bf16.msra.mxu1 %v12889_v55  ;;  %v12951_v54 = vcombine.low %v1576_v42, %v1580_v43  ;;  %v12953_v55 = vcombine.low %v1577_v44, %v1581_v45  ;;  %v13008_v42 = vcombine.high %v1632_v35, %v1636_v36  ;;  %v1640_v44 = vld [vmem:[%s14002_s30 + $0x28c0] sm:$0xff] }
 0x2db   : > { %9289 = vmatprep.subr.bf16.mxu0 %v12896_v56  ;;  %9762 = vmatprep.subr.bf16.mxu1 %v12898_v57  ;;  %v12960_v56 = vcombine.high %v1584_v50, %v1588_v51  ;;  %v12962_v57 = vcombine.high %v1585_v52, %v1589_v53  ;;  %v1644_v45 = vld [vmem:[%s14002_s30 + $0x28e0] sm:$0xff] }
 0x2de   : > { %9290 = vmatpush1.bf16.msra.mxu0 %v12895_v62  ;;  %9763 = vmatpush1.bf16.msra.mxu1 %v12897_v63  ;;  %v12959_v62 = vcombine.low %v1584_v50, %v1588_v51  ;;  %v12961_v63 = vcombine.low %v1585_v52, %v1589_v53  ;;  %v13016_v50 = vcombine.high %v1640_v44, %v1644_v45  ;;  %v1648_v52 = vld [vmem:[%s14002_s30 + $0x2900] sm:$0xff] }
 0x2df   : > { %9291 = vmatprep.subr.bf16.mxu0 %v12904_v0  ;;  %9764 = vmatprep.subr.bf16.mxu1 %v12906_v1  ;;  %v12968_v0 = vcombine.high %v1592_v58, %v1596_v59  ;;  %v12970_v1 = vcombine.high %v1593_v60, %v1597_v61  ;;  %v1652_v53 = vld [vmem:[%s14002_s30 + $0x2920] sm:$0xff] }
 0x2e2   : > { %9292 = vmatpush1.bf16.msra.mxu0 %v12903_v6  ;;  %9765 = vmatpush1.bf16.msra.mxu1 %v12905_v7  ;;  %v12967_v6 = vcombine.low %v1592_v58, %v1596_v59  ;;  %v12969_v7 = vcombine.low %v1593_v60, %v1597_v61  ;;  %v13024_v58 = vcombine.high %v1648_v52, %v1652_v53  ;;  %v1656_v60 = vld [vmem:[%s14002_s30 + $0x2940] sm:$0xff] }
 0x2e3   : > { %9293 = vmatprep.subr.bf16.mxu0 %v12912_v8  ;;  %9766 = vmatprep.subr.bf16.mxu1 %v12914_v9  ;;  %v12976_v8 = vcombine.high %v1600_v2, %v1604_v3  ;;  %v12978_v9 = vcombine.high %v1601_v4, %v1605_v5  ;;  %v1660_v61 = vld [vmem:[%s14002_s30 + $0x2960] sm:$0xff] }
 0x2e6   : > { %9294 = vmatpush1.bf16.msra.mxu0 %v12911_v14  ;;  %9767 = vmatpush1.bf16.msra.mxu1 %v12913_v15  ;;  %v12975_v14 = vcombine.low %v1600_v2, %v1604_v3  ;;  %v12977_v15 = vcombine.low %v1601_v4, %v1605_v5  ;;  %v13032_v2 = vcombine.high %v1656_v60, %v1660_v61  ;;  %v1664_v4 = vld [vmem:[%s14002_s30 + $0x2980] sm:$0xff] }
 0x2e7   : > { %9295 = vmatprep.subr.bf16.mxu0 %v12920_v16  ;;  %9768 = vmatprep.subr.bf16.mxu1 %v12922_v17  ;;  %v12984_v16 = vcombine.high %v1608_v10, %v1612_v11  ;;  %v12986_v17 = vcombine.high %v1609_v12, %v1613_v13  ;;  %v1668_v5 = vld [vmem:[%s14002_s30 + $0x29a0] sm:$0xff] }
 0x2ea   : > { %9296 = vmatpush1.bf16.msra.mxu0 %v12919_v22  ;;  %9769 = vmatpush1.bf16.msra.mxu1 %v12921_v23  ;;  %v12983_v22 = vcombine.low %v1608_v10, %v1612_v11  ;;  %v12985_v23 = vcombine.low %v1609_v12, %v1613_v13  ;;  %v13040_v10 = vcombine.high %v1664_v4, %v1668_v5  ;;  %v1672_v12 = vld [vmem:[%s14002_s30 + $0x29c0] sm:$0xff] }
 0x2eb   : > { %9297 = vmatprep.subr.bf16.mxu0 %v12928_v24  ;;  %9770 = vmatprep.subr.bf16.mxu1 %v12930_v25  ;;  %v12992_v24 = vcombine.high %v1616_v18, %v1620_v19  ;;  %v12994_v25 = vcombine.high %v1617_v20, %v1621_v21  ;;  %v1676_v13 = vld [vmem:[%s14002_s30 + $0x29e0] sm:$0xff] }
 0x2ee   : > { %9298 = vmatpush1.bf16.msra.mxu0 %v12927_v30  ;;  %9771 = vmatpush1.bf16.msra.mxu1 %v12929_v31  ;;  %v1629_v30 = vld [vmem:[%s14002_s30 + $0x2868] sm:$0xff]  ;;  %v12991_v31 = vcombine.low %v1616_v18, %v1620_v19  ;;  %v13048_v18 = vcombine.high %v1672_v12, %v1676_v13 }
 0x2ef   : > { %9299 = vmatprep.subr.bf16.mxu0 %v12936_v32  ;;  %9772 = vmatprep.subr.bf16.mxu1 %v12938_v33  ;;  %v12993_v32 = vcombine.low %v1617_v20, %v1621_v21  ;;  %v13000_v33 = vcombine.high %v1624_v26, %v1628_v27  ;;  %v13002_v34 = vcombine.high %v1625_v29, %v1629_v30  ;;  %v1680_v20 = vld [vmem:[%s14002_s30 + $0x2a00] sm:$0xff] }
 0x2f0   : > { %v1684_v21 = vld [vmem:[%s14002_s30 + $0x2a20] sm:$0xff] }
 0x2f2   : > { %9300 = vmatpush1.bf16.msra.mxu0 %v12935_v38  ;;  %9773 = vmatpush1.bf16.msra.mxu1 %v12937_v39  ;;  %v1633_v38 = vld [vmem:[%s14002_s30 + $0x2888] sm:$0xff] }
 0x2f3   : > { %9301 = vmatprep.subr.bf16.mxu0 %v12944_v40  ;;  %9774 = vmatprep.subr.bf16.mxu1 %v12946_v41  ;;  %v1637_v39 = vld [vmem:[%s14002_s30 + $0x28a8] sm:$0xff]  ;;  %v12999_v40 = vcombine.low %v1624_v26, %v1628_v27  ;;  %v13001_v41 = vcombine.low %v1625_v29, %v1629_v30  ;;  %v13056_v26 = vcombine.high %v1680_v20, %v1684_v21  ;;  %v1692_v29 = vld [vmem:[%s14002_s30 + $0x2a60] sm:$0xff] }
 0x2f4   : > { %v13010_v43 = vcombine.high %v1633_v38, %v1637_v39  ;;  %v1689_v30 = vld [vmem:[%s14002_s30 + $0x2a48] sm:$0xff] }
 0x2f6   : > { %9302 = vmatpush1.bf16.msra.mxu0 %v12943_v46  ;;  %9775 = vmatpush1.bf16.msra.mxu1 %v12945_v47  ;;  %v1641_v46 = vld [vmem:[%s14002_s30 + $0x28c8] sm:$0xff] }
 0x2f7   : > { %9303 = vmatprep.subr.bf16.mxu0 %v12952_v48  ;;  %9776 = vmatprep.subr.bf16.mxu1 %v12954_v49  ;;  %v1645_v47 = vld [vmem:[%s14002_s30 + $0x28e8] sm:$0xff]  ;;  %v13007_v48 = vcombine.low %v1632_v35, %v1636_v36  ;;  %v13009_v49 = vcombine.low %v1633_v38, %v1637_v39  ;;  %v1696_v36 = vld [vmem:[%s14002_s30 + $0x2a80] sm:$0xff] }
 0x2f8   : > { %v13018_v51 = vcombine.high %v1641_v46, %v1645_v47  ;;  %v1697_v38 = vld [vmem:[%s14002_s30 + $0x2a88] sm:$0xff] }
 0x2f9   : > { %v1701_v39 = vld [vmem:[%s14002_s30 + $0x2aa8] sm:$0xff] }
 0x2fa   : > { %9304 = vmatpush1.bf16.msra.mxu0 %v12951_v54  ;;  %9777 = vmatpush1.bf16.msra.mxu1 %v12953_v55  ;;  %v1649_v54 = vld [vmem:[%s14002_s30 + $0x2908] sm:$0xff] }
 0x2fb   : > { %9305 = vmatprep.subr.bf16.mxu0 %v12960_v56  ;;  %9778 = vmatprep.subr.bf16.mxu1 %v12962_v57  ;;  %v1653_v55 = vld [vmem:[%s14002_s30 + $0x2928] sm:$0xff]  ;;  %v13015_v56 = vcombine.low %v1640_v44, %v1644_v45  ;;  %v13017_v57 = vcombine.low %v1641_v46, %v1645_v47  ;;  %v1704_v44 = vld [vmem:[%s14002_s30 + $0x2ac0] sm:$0xff] }
 0x2fc   : > { %v13026_v59 = vcombine.high %v1649_v54, %v1653_v55  ;;  %v1708_v45 = vld [vmem:[%s14002_s30 + $0x2ae0] sm:$0xff]  ;;  %v1705_v46 = vld [vmem:[%s14002_s30 + $0x2ac8] sm:$0xff] }
 0x2fd   : > { %v1709_v47 = vld [vmem:[%s14002_s30 + $0x2ae8] sm:$0xff] }
 0x2fe   : > { %9306 = vmatpush1.bf16.msra.mxu0 %v12959_v62  ;;  %9779 = vmatpush1.bf16.msra.mxu1 %v12961_v63  ;;  %v1657_v62 = vld [vmem:[%s14002_s30 + $0x2948] sm:$0xff] }
 0x2ff   : > { %9307 = vmatprep.subr.bf16.mxu0 %v12968_v0  ;;  %9780 = vmatprep.subr.bf16.mxu1 %v12970_v1  ;;  %v1661_v63 = vld [vmem:[%s14002_s30 + $0x2968] sm:$0xff]  ;;  %v13023_v0 = vcombine.low %v1648_v52, %v1652_v53  ;;  %v13025_v1 = vcombine.low %v1649_v54, %v1653_v55  ;;  %v1712_v52 = vld [vmem:[%s14002_s30 + $0x2b00] sm:$0xff] }
 0x300   : > { %v13034_v3 = vcombine.high %v1657_v62, %v1661_v63  ;;  %v1716_v53 = vld [vmem:[%s14002_s30 + $0x2b20] sm:$0xff]  ;;  %v1713_v54 = vld [vmem:[%s14002_s30 + $0x2b08] sm:$0xff] }
 0x301   : > { %v1717_v55 = vld [vmem:[%s14002_s30 + $0x2b28] sm:$0xff] }
 0x302   : > { %9308 = vmatpush1.bf16.msra.mxu0 %v12967_v6  ;;  %9781 = vmatpush1.bf16.msra.mxu1 %v12969_v7  ;;  %v1665_v6 = vld [vmem:[%s14002_s30 + $0x2988] sm:$0xff] }
 0x303   : > { %9309 = vmatprep.subr.bf16.mxu0 %v12976_v8  ;;  %9782 = vmatprep.subr.bf16.mxu1 %v12978_v9  ;;  %v1669_v7 = vld [vmem:[%s14002_s30 + $0x29a8] sm:$0xff]  ;;  %v13031_v8 = vcombine.low %v1656_v60, %v1660_v61  ;;  %v13033_v9 = vcombine.low %v1657_v62, %v1661_v63  ;;  %v1720_v60 = vld [vmem:[%s14002_s30 + $0x2b40] sm:$0xff] }
 0x304   : > { %v13042_v11 = vcombine.high %v1665_v6, %v1669_v7  ;;  %v1724_v61 = vld [vmem:[%s14002_s30 + $0x2b60] sm:$0xff]  ;;  %v1721_v62 = vld [vmem:[%s14002_s30 + $0x2b48] sm:$0xff] }
 0x305   : > { %v1725_v63 = vld [vmem:[%s14002_s30 + $0x2b68] sm:$0xff] }
 0x306   : > { %9310 = vmatpush1.bf16.msra.mxu0 %v12975_v14  ;;  %9783 = vmatpush1.bf16.msra.mxu1 %v12977_v15  ;;  %v1673_v14 = vld [vmem:[%s14002_s30 + $0x29c8] sm:$0xff] }
 0x307   : > { %9311 = vmatprep.subr.bf16.mxu0 %v12984_v16  ;;  %9784 = vmatprep.subr.bf16.mxu1 %v12986_v17  ;;  %v1677_v15 = vld [vmem:[%s14002_s30 + $0x29e8] sm:$0xff]  ;;  %v13039_v16 = vcombine.low %v1664_v4, %v1668_v5  ;;  %v13041_v17 = vcombine.low %v1665_v6, %v1669_v7  ;;  %v1728_v4 = vld [vmem:[%s14002_s30 + $0x2b80] sm:$0xff] }
 0x308   : > { %v13050_v19 = vcombine.high %v1673_v14, %v1677_v15  ;;  %v1732_v5 = vld [vmem:[%s14002_s30 + $0x2ba0] sm:$0xff]  ;;  %v1729_v6 = vld [vmem:[%s14002_s30 + $0x2b88] sm:$0xff] }
 0x309   : > { %v1733_v7 = vld [vmem:[%s14002_s30 + $0x2ba8] sm:$0xff] }
 0x30a   : > { %9312 = vmatpush1.bf16.msra.mxu0 %v12983_v22  ;;  %9785 = vmatpush1.bf16.msra.mxu1 %v12985_v23  ;;  %v1681_v22 = vld [vmem:[%s14002_s30 + $0x2a08] sm:$0xff] }
 0x30b   : > { %9324 = vmatprep.subr.bf16.mxu0 %v12992_v24  ;;  %9797 = vmatprep.subr.bf16.mxu1 %v12994_v25  ;;  %v1685_v23 = vld [vmem:[%s14002_s30 + $0x2a28] sm:$0xff]  ;;  %v13047_v24 = vcombine.low %v1672_v12, %v1676_v13  ;;  %v13049_v25 = vcombine.low %v1673_v14, %v1677_v15  ;;  %v1736_v12 = vld [vmem:[%s14002_s30 + $0x2bc0] sm:$0xff] }
 0x30c   : > { %v13058_v27 = vcombine.high %v1681_v22, %v1685_v23  ;;  %v1740_v13 = vld [vmem:[%s14002_s30 + $0x2be0] sm:$0xff]  ;;  %v1737_v14 = vld [vmem:[%s14002_s30 + $0x2bc8] sm:$0xff] }
 0x30d   : > { %9314 = vmatmul.mubr.bf16.vlgmr.msra.gmra.mrb[0].mxu0 %v13544_v28  ;;  %9787 = vmatmul.mubr.bf16.vlgmr.msra.gmra.mrb[0].mxu1 %v13544_v28  ;;  %v1688_v28 = vld [vmem:[%s14002_s30 + $0x2a40] sm:$0xff]  ;;  %v1741_v15 = vld [vmem:[%s14002_s30 + $0x2be8] sm:$0xff] }
 0x30e   : > { %9325 = vmatpush1.bf16.msra.mxu0 %v12991_v31  ;;  %9798 = vmatpush1.bf16.msra.mxu1 %v12993_v32  ;;  %v1693_v31 = vld [vmem:[%s14002_s30 + $0x2a68] sm:$0xff]  ;;  %v13055_v32 = vcombine.low %v1680_v20, %v1684_v21  ;;  %v338_v20 = vld [vmem:[%s14002_s30 + $0x10] sm:$0xff] }
 0x30f   : > { %9326 = vmatprep.subr.bf16.mxu0 %v13000_v33  ;;  %9799 = vmatprep.subr.bf16.mxu1 %v13002_v34  ;;  %v13057_v33 = vcombine.low %v1681_v22, %v1685_v23  ;;  %v13064_v34 = vcombine.high %v1688_v28, %v1692_v29  ;;  %v13066_v35 = vcombine.high %v1689_v30, %v1693_v31  ;;  %v342_v21 = vld [vmem:[%s14002_s30 + $0x30] sm:$0xff]  ;;  %v339_v22 = vld [vmem:[%s14002_s30 + $0x18] sm:$0xff] }
 0x310   : > { %9356 = vmatprep.mubr.bf16.mxu0 %v13545_v37  ;;  %9829 = vmatprep.mubr.bf16.mxu1 %v13545_v37  ;;  %v1700_v37 = vld [vmem:[%s14002_s30 + $0x2aa0] sm:$0xff]  ;;  %v343_v23 = vld [vmem:[%s14002_s30 + $0x38] sm:$0xff] }
 0x312   : > { %9327 = vmatpush1.bf16.msra.mxu0 %v12999_v40  ;;  %9800 = vmatpush1.bf16.msra.mxu1 %v13001_v41  ;;  %v13063_v40 = vcombine.low %v1688_v28, %v1692_v29  ;;  %v13065_v41 = vcombine.low %v1689_v30, %v1693_v31  ;;  %v346_v28 = vld [vmem:[%s14002_s30 + $0x50] sm:$0xff]  ;;  %v347_v31 = vld [vmem:[%s14002_s30 + $0x58] sm:$0xff] }
 0x313   : > { %9328 = vmatprep.subr.bf16.mxu0 %v13008_v42  ;;  %9801 = vmatprep.subr.bf16.mxu1 %v13010_v43  ;;  %v13072_v42 = vcombine.high %v1696_v36, %v1700_v37  ;;  %v13074_v43 = vcombine.high %v1697_v38, %v1701_v39  ;;  %v350_v29 = vld [vmem:[%s14002_s30 + $0x70] sm:$0xff] }
 0x314   : > { %v13547_v30 = vld [vmem:[%s14050_s21 + $0x50] ss:$176 sps:$4 sm:$0xff]  }
 0x316   : > { %9329 = vmatpush1.bf16.msra.mxu0 %v13007_v48  ;;  %9802 = vmatpush1.bf16.msra.mxu1 %v13009_v49  ;;  %v13071_v48 = vcombine.low %v1696_v36, %v1700_v37  ;;  %v13073_v49 = vcombine.low %v1697_v38, %v1701_v39  ;;  %v354_v37 = vld [vmem:[%s14002_s30 + $0x90] sm:$0xff]  ;;  %v355_v39 = vld [vmem:[%s14002_s30 + $0x98] sm:$0xff] }
 0x317   : > { %9330 = vmatprep.subr.bf16.mxu0 %v13016_v50  ;;  %9803 = vmatprep.subr.bf16.mxu1 %v13018_v51  ;;  %v13080_v50 = vcombine.high %v1704_v44, %v1708_v45  ;;  %v13082_v51 = vcombine.high %v1705_v46, %v1709_v47  ;;  %v358_v38 = vld [vmem:[%s14002_s30 + $0xb0] sm:$0xff] }
 0x31a   : > { %9331 = vmatpush1.bf16.msra.mxu0 %v13015_v56  ;;  %9804 = vmatpush1.bf16.msra.mxu1 %v13017_v57  ;;  %v13079_v56 = vcombine.low %v1704_v44, %v1708_v45  ;;  %v13081_v57 = vcombine.low %v1705_v46, %v1709_v47  ;;  %v362_v45 = vld [vmem:[%s14002_s30 + $0xd0] sm:$0xff] }
 0x31b   : > { %9332 = vmatprep.subr.bf16.mxu0 %v13024_v58  ;;  %9805 = vmatprep.subr.bf16.mxu1 %v13026_v59  ;;  %v13088_v58 = vcombine.high %v1712_v52, %v1716_v53  ;;  %v13090_v59 = vcombine.high %v1713_v54, %v1717_v55  ;;  %v366_v46 = vld [vmem:[%s14002_s30 + $0xf0] sm:$0xff] }
 0x31c   : > { %v13548_v47 = vld [vmem:[%s14050_s21 + $0x4] ss:$176 sps:$4 sm:$0xff]  }
 0x31e   : > { %9333 = vmatpush1.bf16.msra.mxu0 %v13023_v0  ;;  %9806 = vmatpush1.bf16.msra.mxu1 %v13025_v1  ;;  %v13087_v0 = vcombine.low %v1712_v52, %v1716_v53  ;;  %v13089_v1 = vcombine.low %v1713_v54, %v1717_v55  ;;  %v11740_v52 = vcombine.high %v362_v45, %v366_v46  ;;  %v370_v54 = vld [vmem:[%s14002_s30 + $0x110] sm:$0xff] }
 0x31f   : > { %9334 = vmatprep.subr.bf16.mxu0 %v13032_v2  ;;  %9807 = vmatprep.subr.bf16.mxu1 %v13034_v3  ;;  %v13096_v2 = vcombine.high %v1720_v60, %v1724_v61  ;;  %v13098_v3 = vcombine.high %v1721_v62, %v1725_v63  ;;  %v374_v55 = vld [vmem:[%s14002_s30 + $0x130] sm:$0xff] }
 0x322   : > { %9335 = vmatpush1.bf16.msra.mxu0 %v13031_v8  ;;  %9808 = vmatpush1.bf16.msra.mxu1 %v13033_v9  ;;  %v13095_v8 = vcombine.low %v1720_v60, %v1724_v61  ;;  %v13097_v9 = vcombine.low %v1721_v62, %v1725_v63  ;;  %v11748_v60 = vcombine.high %v370_v54, %v374_v55  ;;  %v378_v62 = vld [vmem:[%s14002_s30 + $0x150] sm:$0xff] }
 0x323   : > { %9336 = vmatprep.subr.bf16.mxu0 %v13040_v10  ;;  %9809 = vmatprep.subr.bf16.mxu1 %v13042_v11  ;;  %v13104_v10 = vcombine.high %v1728_v4, %v1732_v5  ;;  %v13106_v11 = vcombine.high %v1729_v6, %v1733_v7  ;;  %v382_v63 = vld [vmem:[%s14002_s30 + $0x170] sm:$0xff] }
 0x326   : > { %9337 = vmatpush1.bf16.msra.mxu0 %v13039_v16  ;;  %9810 = vmatpush1.bf16.msra.mxu1 %v13041_v17  ;;  %v13103_v16 = vcombine.low %v1728_v4, %v1732_v5  ;;  %v13105_v17 = vcombine.low %v1729_v6, %v1733_v7  ;;  %v11756_v4 = vcombine.high %v378_v62, %v382_v63  ;;  %v386_v6 = vld [vmem:[%s14002_s30 + $0x190] sm:$0xff] }
 0x327   : > { %9338 = vmatprep.subr.bf16.mxu0 %v13048_v18  ;;  %9811 = vmatprep.subr.bf16.mxu1 %v13050_v19  ;;  %v13112_v18 = vcombine.high %v1736_v12, %v1740_v13  ;;  %v13114_v19 = vcombine.high %v1737_v14, %v1741_v15  ;;  %v390_v7 = vld [vmem:[%s14002_s30 + $0x1b0] sm:$0xff] }
 0x32a   : > { %9339 = vmatpush1.bf16.msra.mxu0 %v13047_v24  ;;  %9812 = vmatpush1.bf16.msra.mxu1 %v13049_v25  ;;  %v13111_v24 = vcombine.low %v1736_v12, %v1740_v13  ;;  %v13113_v25 = vcombine.low %v1737_v14, %v1741_v15  ;;  %v11764_v12 = vcombine.high %v386_v6, %v390_v7  ;;  %v394_v14 = vld [vmem:[%s14002_s30 + $0x1d0] sm:$0xff] }
 0x32b   : > { %9340 = vmatprep.subr.bf16.mxu0 %v13056_v26  ;;  %9813 = vmatprep.subr.bf16.mxu1 %v13058_v27  ;;  %v11716_v26 = vcombine.high %v338_v20, %v342_v21  ;;  %v11718_v27 = vcombine.high %v339_v22, %v343_v23  ;;  %v398_v15 = vld [vmem:[%s14002_s30 + $0x1f0] sm:$0xff] }
 0x32e   : > { %9341 = vmatpush1.bf16.msra.mxu0 %v13055_v32  ;;  %9814 = vmatpush1.bf16.msra.mxu1 %v13057_v33  ;;  %v351_v32 = vld [vmem:[%s14002_s30 + $0x78] sm:$0xff]  ;;  %v11715_v33 = vcombine.low %v338_v20, %v342_v21  ;;  %v11772_v20 = vcombine.high %v394_v14, %v398_v15 }
 0x32f   : > { %9342 = vmatprep.subr.bf16.mxu0 %v13064_v34  ;;  %9815 = vmatprep.subr.bf16.mxu1 %v13066_v35  ;;  %v11717_v34 = vcombine.low %v339_v22, %v343_v23  ;;  %v11724_v35 = vcombine.high %v346_v28, %v350_v29  ;;  %v11726_v36 = vcombine.high %v347_v31, %v351_v32  ;;  %v402_v22 = vld [vmem:[%s14002_s30 + $0x210] sm:$0xff] }
 0x330   : > { %v406_v23 = vld [vmem:[%s14002_s30 + $0x230] sm:$0xff] }
 0x332   : > { %9343 = vmatpush1.bf16.msra.mxu0 %v13063_v40  ;;  %9816 = vmatpush1.bf16.msra.mxu1 %v13065_v41  ;;  %v359_v40 = vld [vmem:[%s14002_s30 + $0xb8] sm:$0xff]  ;;  %v11723_v41 = vcombine.low %v346_v28, %v350_v29  ;;  %v11780_v28 = vcombine.high %v402_v22, %v406_v23 }
 0x333   : > { %9344 = vmatprep.subr.bf16.mxu0 %v13072_v42  ;;  %9817 = vmatprep.subr.bf16.mxu1 %v13074_v43  ;;  %v11725_v42 = vcombine.low %v347_v31, %v351_v32  ;;  %v11732_v43 = vcombine.high %v354_v37, %v358_v38  ;;  %v11734_v44 = vcombine.high %v355_v39, %v359_v40  ;;  %v414_v31 = vld [vmem:[%s14002_s30 + $0x270] sm:$0xff]  ;;  %v411_v32 = vld [vmem:[%s14002_s30 + $0x258] sm:$0xff] }
 0x336   : > { %9345 = vmatpush1.bf16.msra.mxu0 %v13071_v48  ;;  %9818 = vmatpush1.bf16.msra.mxu1 %v13073_v49  ;;  %v363_v48 = vld [vmem:[%s14002_s30 + $0xd8] sm:$0xff] }
 0x337   : > { %9346 = vmatprep.subr.bf16.mxu0 %v13080_v50  ;;  %9819 = vmatprep.subr.bf16.mxu1 %v13082_v51  ;;  %v367_v49 = vld [vmem:[%s14002_s30 + $0xf8] sm:$0xff]  ;;  %v11731_v50 = vcombine.low %v354_v37, %v358_v38  ;;  %v11733_v51 = vcombine.low %v355_v39, %v359_v40  ;;  %v418_v38 = vld [vmem:[%s14002_s30 + $0x290] sm:$0xff] }
 0x338   : > { %v11742_v53 = vcombine.high %v363_v48, %v367_v49  ;;  %v422_v39 = vld [vmem:[%s14002_s30 + $0x2b0] sm:$0xff]  ;;  %v419_v40 = vld [vmem:[%s14002_s30 + $0x298] sm:$0xff] }
 0x33a   : > { %9347 = vmatpush1.bf16.msra.mxu0 %v13079_v56  ;;  %9820 = vmatpush1.bf16.msra.mxu1 %v13081_v57  ;;  %v371_v56 = vld [vmem:[%s14002_s30 + $0x118] sm:$0xff] }
 0x33b   : > { %9348 = vmatprep.subr.bf16.mxu0 %v13088_v58  ;;  %9821 = vmatprep.subr.bf16.mxu1 %v13090_v59  ;;  %v375_v57 = vld [vmem:[%s14002_s30 + $0x138] sm:$0xff]  ;;  %v11739_v58 = vcombine.low %v362_v45, %v366_v46  ;;  %v11741_v59 = vcombine.low %v363_v48, %v367_v49  ;;  %v426_v46 = vld [vmem:[%s14002_s30 + $0x2d0] sm:$0xff] }
 0x33c   : > { %v11750_v61 = vcombine.high %v371_v56, %v375_v57  ;;  %v427_v48 = vld [vmem:[%s14002_s30 + $0x2d8] sm:$0xff] }
 0x33d   : > { %v431_v49 = vld [vmem:[%s14002_s30 + $0x2f8] sm:$0xff] }
 0x33e   : > { %9349 = vmatpush1.bf16.msra.mxu0 %v13087_v0  ;;  %9822 = vmatpush1.bf16.msra.mxu1 %v13089_v1  ;;  %v379_v0 = vld [vmem:[%s14002_s30 + $0x158] sm:$0xff] }
 0x33f   : > { %9350 = vmatprep.subr.bf16.mxu0 %v13096_v2  ;;  %9823 = vmatprep.subr.bf16.mxu1 %v13098_v3  ;;  %v383_v1 = vld [vmem:[%s14002_s30 + $0x178] sm:$0xff]  ;;  %v11747_v2 = vcombine.low %v370_v54, %v374_v55  ;;  %v11749_v3 = vcombine.low %v371_v56, %v375_v57  ;;  %v434_v54 = vld [vmem:[%s14002_s30 + $0x310] sm:$0xff] }
 0x340   : > { %v11758_v5 = vcombine.high %v379_v0, %v383_v1  ;;  %v438_v55 = vld [vmem:[%s14002_s30 + $0x330] sm:$0xff]  ;;  %v435_v56 = vld [vmem:[%s14002_s30 + $0x318] sm:$0xff] }
 0x341   : > { %v439_v57 = vld [vmem:[%s14002_s30 + $0x338] sm:$0xff] }
 0x342   : > { %9351 = vmatpush1.bf16.msra.mxu0 %v13095_v8  ;;  %9824 = vmatpush1.bf16.msra.mxu1 %v13097_v9  ;;  %v387_v8 = vld [vmem:[%s14002_s30 + $0x198] sm:$0xff] }
 0x343   : > { %9352 = vmatprep.subr.bf16.mxu0 %v13104_v10  ;;  %9825 = vmatprep.subr.bf16.mxu1 %v13106_v11  ;;  %v391_v9 = vld [vmem:[%s14002_s30 + $0x1b8] sm:$0xff]  ;;  %v11755_v10 = vcombine.low %v378_v62, %v382_v63  ;;  %v11757_v11 = vcombine.low %v379_v0, %v383_v1  ;;  %v442_v62 = vld [vmem:[%s14002_s30 + $0x350] sm:$0xff] }
 0x344   : > { %v11766_v13 = vcombine.high %v387_v8, %v391_v9  ;;  %v446_v63 = vld [vmem:[%s14002_s30 + $0x370] sm:$0xff]  ;;  %v443_v0 = vld [vmem:[%s14002_s30 + $0x358] sm:$0xff] }
 0x345   : > { %v447_v1 = vld [vmem:[%s14002_s30 + $0x378] sm:$0xff] }
 0x346   : > { %9353 = vmatpush1.bf16.msra.mxu0 %v13103_v16  ;;  %9826 = vmatpush1.bf16.msra.mxu1 %v13105_v17  ;;  %v395_v16 = vld [vmem:[%s14002_s30 + $0x1d8] sm:$0xff] }
 0x347   : > { %9354 = vmatprep.subr.bf16.mxu0 %v13112_v18  ;;  %9827 = vmatprep.subr.bf16.mxu1 %v13114_v19  ;;  %v399_v17 = vld [vmem:[%s14002_s30 + $0x1f8] sm:$0xff]  ;;  %v11763_v18 = vcombine.low %v386_v6, %v390_v7  ;;  %v11765_v19 = vcombine.low %v387_v8, %v391_v9  ;;  %v450_v6 = vld [vmem:[%s14002_s30 + $0x390] sm:$0xff] }
 0x348   : > { %v11774_v21 = vcombine.high %v395_v16, %v399_v17  ;;  %v454_v7 = vld [vmem:[%s14002_s30 + $0x3b0] sm:$0xff]  ;;  %v451_v8 = vld [vmem:[%s14002_s30 + $0x398] sm:$0xff] }
 0x349   : > { %v455_v9 = vld [vmem:[%s14002_s30 + $0x3b8] sm:$0xff] }
 0x34a   : > { %9355 = vmatpush1.bf16.msra.mxu0 %v13111_v24  ;;  %9828 = vmatpush1.bf16.msra.mxu1 %v13113_v25  ;;  %v403_v24 = vld [vmem:[%s14002_s30 + $0x218] sm:$0xff] }
 0x34b   : > { %9840 = vmatprep.subr.bf16.mxu0 %v11716_v26  ;;  %10313 = vmatprep.subr.bf16.mxu1 %v11718_v27  ;;  %v407_v25 = vld [vmem:[%s14002_s30 + $0x238] sm:$0xff]  ;;  %v11771_v26 = vcombine.low %v394_v14, %v398_v15  ;;  %v11773_v27 = vcombine.low %v395_v16, %v399_v17  ;;  %v458_v14 = vld [vmem:[%s14002_s30 + $0x3d0] sm:$0xff] }
 0x34c   : > { %v11782_v29 = vcombine.high %v403_v24, %v407_v25  ;;  %v462_v15 = vld [vmem:[%s14002_s30 + $0x3f0] sm:$0xff]  ;;  %v459_v16 = vld [vmem:[%s14002_s30 + $0x3d8] sm:$0xff] }
 0x34d   : > { %9357 = vmatmul.mubr.bf16.vlgmr.msra.gmra.mrb[0].mxu0 %v13547_v30  ;;  %9830 = vmatmul.mubr.bf16.vlgmr.msra.gmra.mrb[0].mxu1 %v13547_v30  ;;  %v410_v30 = vld [vmem:[%s14002_s30 + $0x250] sm:$0xff]  ;;  %v463_v17 = vld [vmem:[%s14002_s30 + $0x3f8] sm:$0xff] }
 0x34e   : > { %9841 = vmatpush1.bf16.msra.mxu0 %v11715_v33  ;;  %10314 = vmatpush1.bf16.msra.mxu1 %v11717_v34  ;;  %v415_v33 = vld [vmem:[%s14002_s30 + $0x278] sm:$0xff]  ;;  %v11779_v34 = vcombine.low %v402_v22, %v406_v23  ;;  %v466_v22 = vld [vmem:[%s14002_s30 + $0x410] sm:$0xff] }
 0x34f   : > { %9842 = vmatprep.subr.bf16.mxu0 %v11724_v35  ;;  %10315 = vmatprep.subr.bf16.mxu1 %v11726_v36  ;;  %v11781_v35 = vcombine.low %v403_v24, %v407_v25  ;;  %v11788_v36 = vcombine.high %v410_v30, %v414_v31  ;;  %v11790_v37 = vcombine.high %v411_v32, %v415_v33  ;;  %v470_v23 = vld [vmem:[%s14002_s30 + $0x430] sm:$0xff]  ;;  %v467_v24 = vld [vmem:[%s14002_s30 + $0x418] sm:$0xff] }
 0x350   : > { %9872 = vmatprep.mubr.bf16.mxu0 %v13548_v47  ;;  %10345 = vmatprep.mubr.bf16.mxu1 %v13548_v47  ;;  %v430_v47 = vld [vmem:[%s14002_s30 + $0x2f0] sm:$0xff]  ;;  %v471_v25 = vld [vmem:[%s14002_s30 + $0x438] sm:$0xff] }
 0x352   : > { %9843 = vmatpush1.bf16.msra.mxu0 %v11723_v41  ;;  %10316 = vmatpush1.bf16.msra.mxu1 %v11725_v42  ;;  %v423_v41 = vld [vmem:[%s14002_s30 + $0x2b8] sm:$0xff]  ;;  %v11787_v42 = vcombine.low %v410_v30, %v414_v31  ;;  %v474_v30 = vld [vmem:[%s14002_s30 + $0x450] sm:$0xff] }
 0x353   : > { %9844 = vmatprep.subr.bf16.mxu0 %v11732_v43  ;;  %10317 = vmatprep.subr.bf16.mxu1 %v11734_v44  ;;  %v11789_v43 = vcombine.low %v411_v32, %v415_v33  ;;  %v11796_v44 = vcombine.high %v418_v38, %v422_v39  ;;  %v11798_v45 = vcombine.high %v419_v40, %v423_v41  ;;  %v478_v31 = vld [vmem:[%s14002_s30 + $0x470] sm:$0xff]  ;;  %v475_v32 = vld [vmem:[%s14002_s30 + $0x458] sm:$0xff] }
 0x354   : > { %v479_v33 = vld [vmem:[%s14002_s30 + $0x478] sm:$0xff] }
 0x356   : > { %9845 = vmatpush1.bf16.msra.mxu0 %v11731_v50  ;;  %10318 = vmatpush1.bf16.msra.mxu1 %v11733_v51  ;;  %v11795_v50 = vcombine.low %v418_v38, %v422_v39  ;;  %v11797_v51 = vcombine.low %v419_v40, %v423_v41  ;;  %v482_v38 = vld [vmem:[%s14002_s30 + $0x490] sm:$0xff]  ;;  %v483_v41 = vld [vmem:[%s14002_s30 + $0x498] sm:$0xff] }
 0x357   : > { %9846 = vmatprep.subr.bf16.mxu0 %v11740_v52  ;;  %10319 = vmatprep.subr.bf16.mxu1 %v11742_v53  ;;  %v11804_v52 = vcombine.high %v426_v46, %v430_v47  ;;  %v11806_v53 = vcombine.high %v427_v48, %v431_v49  ;;  %v486_v39 = vld [vmem:[%s14002_s30 + $0x4b0] sm:$0xff] }
 0x358   : > { %v13549_v40 = vld [vmem:[%s14050_s21] ss:$176 sps:$4 sm:$0xff]  }
 0x35a   : > { %9847 = vmatpush1.bf16.msra.mxu0 %v11739_v58  ;;  %10320 = vmatpush1.bf16.msra.mxu1 %v11741_v59  ;;  %v11803_v58 = vcombine.low %v426_v46, %v430_v47  ;;  %v11805_v59 = vcombine.low %v427_v48, %v431_v49  ;;  %v490_v47 = vld [vmem:[%s14002_s30 + $0x4d0] sm:$0xff]  ;;  %v13550_v49 = vld [vmem:[%s14050_s21 + $0xc] ss:$176 sps:$4 sm:$0xff]  }
 0x35b   : > { %9848 = vmatprep.subr.bf16.mxu0 %v11748_v60  ;;  %10321 = vmatprep.subr.bf16.mxu1 %v11750_v61  ;;  %v11812_v60 = vcombine.high %v434_v54, %v438_v55  ;;  %v11814_v61 = vcombine.high %v435_v56, %v439_v57  ;;  %v494_v48 = vld [vmem:[%s14002_s30 + $0x4f0] sm:$0xff] }
 0x35e   : > { %9849 = vmatpush1.bf16.msra.mxu0 %v11747_v2  ;;  %10322 = vmatpush1.bf16.msra.mxu1 %v11749_v3  ;;  %v11811_v2 = vcombine.low %v434_v54, %v438_v55  ;;  %v11813_v3 = vcombine.low %v435_v56, %v439_v57  ;;  %v11868_v54 = vcombine.high %v490_v47, %v494_v48  ;;  %v498_v56 = vld [vmem:[%s14002_s30 + $0x510] sm:$0xff] }
 0x35f   : > { %9850 = vmatprep.subr.bf16.mxu0 %v11756_v4  ;;  %10323 = vmatprep.subr.bf16.mxu1 %v11758_v5  ;;  %v11820_v4 = vcombine.high %v442_v62, %v446_v63  ;;  %v11822_v5 = vcombine.high %v443_v0, %v447_v1  ;;  %v502_v57 = vld [vmem:[%s14002_s30 + $0x530] sm:$0xff] }
 0x362   : > { %9851 = vmatpush1.bf16.msra.mxu0 %v11755_v10  ;;  %10324 = vmatpush1.bf16.msra.mxu1 %v11757_v11  ;;  %v11819_v10 = vcombine.low %v442_v62, %v446_v63  ;;  %v11821_v11 = vcombine.low %v443_v0, %v447_v1  ;;  %v11876_v62 = vcombine.high %v498_v56, %v502_v57  ;;  %v506_v0 = vld [vmem:[%s14002_s30 + $0x550] sm:$0xff] }
 0x363   : > { %9852 = vmatprep.subr.bf16.mxu0 %v11764_v12  ;;  %10325 = vmatprep.subr.bf16.mxu1 %v11766_v13  ;;  %v11828_v12 = vcombine.high %v450_v6, %v454_v7  ;;  %v11830_v13 = vcombine.high %v451_v8, %v455_v9  ;;  %v510_v1 = vld [vmem:[%s14002_s30 + $0x570] sm:$0xff] }
 0x366   : > { %9853 = vmatpush1.bf16.msra.mxu0 %v11763_v18  ;;  %10326 = vmatpush1.bf16.msra.mxu1 %v11765_v19  ;;  %v11827_v18 = vcombine.low %v450_v6, %v454_v7  ;;  %v11829_v19 = vcombine.low %v451_v8, %v455_v9  ;;  %v11884_v6 = vcombine.high %v506_v0, %v510_v1  ;;  %v514_v8 = vld [vmem:[%s14002_s30 + $0x590] sm:$0xff] }
 0x367   : > { %9854 = vmatprep.subr.bf16.mxu0 %v11772_v20  ;;  %10327 = vmatprep.subr.bf16.mxu1 %v11774_v21  ;;  %v11836_v20 = vcombine.high %v458_v14, %v462_v15  ;;  %v11838_v21 = vcombine.high %v459_v16, %v463_v17  ;;  %v518_v9 = vld [vmem:[%s14002_s30 + $0x5b0] sm:$0xff] }
 0x36a   : > { %9855 = vmatpush1.bf16.msra.mxu0 %v11771_v26  ;;  %10328 = vmatpush1.bf16.msra.mxu1 %v11773_v27  ;;  %v11835_v26 = vcombine.low %v458_v14, %v462_v15  ;;  %v11837_v27 = vcombine.low %v459_v16, %v463_v17  ;;  %v11892_v14 = vcombine.high %v514_v8, %v518_v9  ;;  %v522_v16 = vld [vmem:[%s14002_s30 + $0x5d0] sm:$0xff] }
 0x36b   : > { %9856 = vmatprep.subr.bf16.mxu0 %v11780_v28  ;;  %10329 = vmatprep.subr.bf16.mxu1 %v11782_v29  ;;  %v11844_v28 = vcombine.high %v466_v22, %v470_v23  ;;  %v11846_v29 = vcombine.high %v467_v24, %v471_v25  ;;  %v526_v17 = vld [vmem:[%s14002_s30 + $0x5f0] sm:$0xff] }
 0x36e   : > { %9857 = vmatpush1.bf16.msra.mxu0 %v11779_v34  ;;  %10330 = vmatpush1.bf16.msra.mxu1 %v11781_v35  ;;  %v11843_v34 = vcombine.low %v466_v22, %v470_v23  ;;  %v11845_v35 = vcombine.low %v467_v24, %v471_v25  ;;  %v11900_v22 = vcombine.high %v522_v16, %v526_v17  ;;  %v530_v24 = vld [vmem:[%s14002_s30 + $0x610] sm:$0xff] }
 0x36f   : > { %9858 = vmatprep.subr.bf16.mxu0 %v11788_v36  ;;  %10331 = vmatprep.subr.bf16.mxu1 %v11790_v37  ;;  %v11852_v36 = vcombine.high %v474_v30, %v478_v31  ;;  %v11854_v37 = vcombine.high %v475_v32, %v479_v33  ;;  %v534_v25 = vld [vmem:[%s14002_s30 + $0x630] sm:$0xff] }
 0x372   : > { %9859 = vmatpush1.bf16.msra.mxu0 %v11787_v42  ;;  %10332 = vmatpush1.bf16.msra.mxu1 %v11789_v43  ;;  %v487_v42 = vld [vmem:[%s14002_s30 + $0x4b8] sm:$0xff]  ;;  %v11851_v43 = vcombine.low %v474_v30, %v478_v31  ;;  %v11908_v30 = vcombine.high %v530_v24, %v534_v25 }
 0x373   : > { %9860 = vmatprep.subr.bf16.mxu0 %v11796_v44  ;;  %10333 = vmatprep.subr.bf16.mxu1 %v11798_v45  ;;  %v11853_v44 = vcombine.low %v475_v32, %v479_v33  ;;  %v11860_v45 = vcombine.high %v482_v38, %v486_v39  ;;  %v11862_v46 = vcombine.high %v483_v41, %v487_v42  ;;  %v538_v32 = vld [vmem:[%s14002_s30 + $0x650] sm:$0xff] }
 0x374   : > { %v542_v33 = vld [vmem:[%s14002_s30 + $0x670] sm:$0xff] }
 0x376   : > { %9861 = vmatpush1.bf16.msra.mxu0 %v11795_v50  ;;  %10334 = vmatpush1.bf16.msra.mxu1 %v11797_v51  ;;  %v491_v50 = vld [vmem:[%s14002_s30 + $0x4d8] sm:$0xff] }
 0x377   : > { %9862 = vmatprep.subr.bf16.mxu0 %v11804_v52  ;;  %10335 = vmatprep.subr.bf16.mxu1 %v11806_v53  ;;  %v495_v51 = vld [vmem:[%s14002_s30 + $0x4f8] sm:$0xff]  ;;  %v11859_v52 = vcombine.low %v482_v38, %v486_v39  ;;  %v11861_v53 = vcombine.low %v483_v41, %v487_v42  ;;  %v11916_v38 = vcombine.high %v538_v32, %v542_v33  ;;  %v550_v41 = vld [vmem:[%s14002_s30 + $0x6b0] sm:$0xff] }
 0x378   : > { %v11870_v55 = vcombine.high %v491_v50, %v495_v51  ;;  %v547_v42 = vld [vmem:[%s14002_s30 + $0x698] sm:$0xff] }
 0x37a   : > { %9863 = vmatpush1.bf16.msra.mxu0 %v11803_v58  ;;  %10336 = vmatpush1.bf16.msra.mxu1 %v11805_v59  ;;  %v499_v58 = vld [vmem:[%s14002_s30 + $0x518] sm:$0xff] }
 0x37b   : > { %9864 = vmatprep.subr.bf16.mxu0 %v11812_v60  ;;  %10337 = vmatprep.subr.bf16.mxu1 %v11814_v61  ;;  %v503_v59 = vld [vmem:[%s14002_s30 + $0x538] sm:$0xff]  ;;  %v11867_v60 = vcombine.low %v490_v47, %v494_v48  ;;  %v11869_v61 = vcombine.low %v491_v50, %v495_v51  ;;  %v554_v48 = vld [vmem:[%s14002_s30 + $0x6d0] sm:$0xff] }
 0x37c   : > { %v11878_v63 = vcombine.high %v499_v58, %v503_v59  ;;  %v555_v50 = vld [vmem:[%s14002_s30 + $0x6d8] sm:$0xff] }
 0x37d   : > { %v559_v51 = vld [vmem:[%s14002_s30 + $0x6f8] sm:$0xff] }
 0x37e   : > { %9865 = vmatpush1.bf16.msra.mxu0 %v11811_v2  ;;  %10338 = vmatpush1.bf16.msra.mxu1 %v11813_v3  ;;  %v507_v2 = vld [vmem:[%s14002_s30 + $0x558] sm:$0xff] }
 0x37f   : > { %9866 = vmatprep.subr.bf16.mxu0 %v11820_v4  ;;  %10339 = vmatprep.subr.bf16.mxu1 %v11822_v5  ;;  %v511_v3 = vld [vmem:[%s14002_s30 + $0x578] sm:$0xff]  ;;  %v11875_v4 = vcombine.low %v498_v56, %v502_v57  ;;  %v11877_v5 = vcombine.low %v499_v58, %v503_v59  ;;  %v562_v56 = vld [vmem:[%s14002_s30 + $0x710] sm:$0xff] }
 0x380   : > { %v11886_v7 = vcombine.high %v507_v2, %v511_v3  ;;  %v566_v57 = vld [vmem:[%s14002_s30 + $0x730] sm:$0xff]  ;;  %v563_v58 = vld [vmem:[%s14002_s30 + $0x718] sm:$0xff] }
 0x381   : > { %v567_v59 = vld [vmem:[%s14002_s30 + $0x738] sm:$0xff] }
 0x382   : > { %9867 = vmatpush1.bf16.msra.mxu0 %v11819_v10  ;;  %10340 = vmatpush1.bf16.msra.mxu1 %v11821_v11  ;;  %v515_v10 = vld [vmem:[%s14002_s30 + $0x598] sm:$0xff] }
 0x383   : > { %9868 = vmatprep.subr.bf16.mxu0 %v11828_v12  ;;  %10341 = vmatprep.subr.bf16.mxu1 %v11830_v13  ;;  %v519_v11 = vld [vmem:[%s14002_s30 + $0x5b8] sm:$0xff]  ;;  %v11883_v12 = vcombine.low %v506_v0, %v510_v1  ;;  %v11885_v13 = vcombine.low %v507_v2, %v511_v3  ;;  %v570_v0 = vld [vmem:[%s14002_s30 + $0x750] sm:$0xff] }
 0x384   : > { %v11894_v15 = vcombine.high %v515_v10, %v519_v11  ;;  %v574_v1 = vld [vmem:[%s14002_s30 + $0x770] sm:$0xff]  ;;  %v571_v2 = vld [vmem:[%s14002_s30 + $0x758] sm:$0xff] }
 0x385   : > { %v575_v3 = vld [vmem:[%s14002_s30 + $0x778] sm:$0xff] }
 0x386   : > { %9869 = vmatpush1.bf16.msra.mxu0 %v11827_v18  ;;  %10342 = vmatpush1.bf16.msra.mxu1 %v11829_v19  ;;  %v523_v18 = vld [vmem:[%s14002_s30 + $0x5d8] sm:$0xff] }
 0x387   : > { %9870 = vmatprep.subr.bf16.mxu0 %v11836_v20  ;;  %10343 = vmatprep.subr.bf16.mxu1 %v11838_v21  ;;  %v527_v19 = vld [vmem:[%s14002_s30 + $0x5f8] sm:$0xff]  ;;  %v11891_v20 = vcombine.low %v514_v8, %v518_v9  ;;  %v11893_v21 = vcombine.low %v515_v10, %v519_v11  ;;  %v578_v8 = vld [vmem:[%s14002_s30 + $0x790] sm:$0xff] }
 0x388   : > { %v11902_v23 = vcombine.high %v523_v18, %v527_v19  ;;  %v582_v9 = vld [vmem:[%s14002_s30 + $0x7b0] sm:$0xff]  ;;  %v579_v10 = vld [vmem:[%s14002_s30 + $0x798] sm:$0xff] }
 0x389   : > { %v583_v11 = vld [vmem:[%s14002_s30 + $0x7b8] sm:$0xff] }
 0x38a   : > { %9871 = vmatpush1.bf16.msra.mxu0 %v11835_v26  ;;  %10344 = vmatpush1.bf16.msra.mxu1 %v11837_v27  ;;  %v531_v26 = vld [vmem:[%s14002_s30 + $0x618] sm:$0xff] }
 0x38b   : > { %9883 = vmatprep.subr.bf16.mxu0 %v11844_v28  ;;  %10356 = vmatprep.subr.bf16.mxu1 %v11846_v29  ;;  %v535_v27 = vld [vmem:[%s14002_s30 + $0x638] sm:$0xff]  ;;  %v11899_v28 = vcombine.low %v522_v16, %v526_v17  ;;  %v11901_v29 = vcombine.low %v523_v18, %v527_v19  ;;  %v586_v16 = vld [vmem:[%s14002_s30 + $0x7d0] sm:$0xff] }
 0x38c   : > { %v11910_v31 = vcombine.high %v531_v26, %v535_v27  ;;  %v590_v17 = vld [vmem:[%s14002_s30 + $0x7f0] sm:$0xff]  ;;  %v587_v18 = vld [vmem:[%s14002_s30 + $0x7d8] sm:$0xff] }
 0x38d   : > { %9873 = vmatmul.mubr.bf16.vlgmr.msra.gmra.mrb[4].mxu0 %v13549_v40  ;;  %10346 = vmatmul.mubr.bf16.vlgmr.msra.gmra.mrb[4].mxu1 %v13549_v40  ;;  %v546_v40 = vld [vmem:[%s14002_s30 + $0x690] sm:$0xff]  ;;  %v591_v19 = vld [vmem:[%s14002_s30 + $0x7f8] sm:$0xff] }
 0x38e   : > { %9884 = vmatpush1.bf16.msra.mxu0 %v11843_v34  ;;  %10357 = vmatpush1.bf16.msra.mxu1 %v11845_v35  ;;  %v539_v34 = vld [vmem:[%s14002_s30 + $0x658] sm:$0xff] }
 0x38f   : > { %9885 = vmatprep.subr.bf16.mxu0 %v11852_v36  ;;  %10358 = vmatprep.subr.bf16.mxu1 %v11854_v37  ;;  %v543_v35 = vld [vmem:[%s14002_s30 + $0x678] sm:$0xff]  ;;  %v11907_v36 = vcombine.low %v530_v24, %v534_v25  ;;  %v11909_v37 = vcombine.low %v531_v26, %v535_v27  ;;  %v594_v24 = vld [vmem:[%s14002_s30 + $0x810] sm:$0xff] }
 0x390   : > { %9915 = vmatprep.mubr.bf16.mxu0 %v13550_v49  ;;  %10388 = vmatprep.mubr.bf16.mxu1 %v13550_v49  ;;  %v11918_v39 = vcombine.high %v539_v34, %v543_v35  ;;  %v558_v49 = vld [vmem:[%s14002_s30 + $0x6f0] sm:$0xff]  ;;  %v595_v26 = vld [vmem:[%s14002_s30 + $0x818] sm:$0xff] }
 0x391   : > { %v598_v25 = vld [vmem:[%s14002_s30 + $0x830] sm:$0xff]  ;;  %v599_v27 = vld [vmem:[%s14002_s30 + $0x838] sm:$0xff] }
 0x392   : > { %9886 = vmatpush1.bf16.msra.mxu0 %v11851_v43  ;;  %10359 = vmatpush1.bf16.msra.mxu1 %v11853_v44  ;;  %v551_v43 = vld [vmem:[%s14002_s30 + $0x6b8] sm:$0xff]  ;;  %v11915_v44 = vcombine.low %v538_v32, %v542_v33  ;;  %v602_v32 = vld [vmem:[%s14002_s30 + $0x850] sm:$0xff] }
 0x393   : > { %9887 = vmatprep.subr.bf16.mxu0 %v11860_v45  ;;  %10360 = vmatprep.subr.bf16.mxu1 %v11862_v46  ;;  %v11917_v45 = vcombine.low %v539_v34, %v543_v35  ;;  %v11924_v46 = vcombine.high %v546_v40, %v550_v41  ;;  %v11926_v47 = vcombine.high %v547_v42, %v551_v43  ;;  %v606_v33 = vld [vmem:[%s14002_s30 + $0x870] sm:$0xff]  ;;  %v603_v34 = vld [vmem:[%s14002_s30 + $0x858] sm:$0xff] }
 0x394   : > { %v607_v35 = vld [vmem:[%s14002_s30 + $0x878] sm:$0xff] }
 0x396   : > { %9888 = vmatpush1.bf16.msra.mxu0 %v11859_v52  ;;  %10361 = vmatpush1.bf16.msra.mxu1 %v11861_v53  ;;  %v11923_v52 = vcombine.low %v546_v40, %v550_v41  ;;  %v11925_v53 = vcombine.low %v547_v42, %v551_v43  ;;  %v610_v40 = vld [vmem:[%s14002_s30 + $0x890] sm:$0xff]  ;;  %v13551_v42 = vld [vmem:[%s14050_s21 + $0x8] ss:$176 sps:$4 sm:$0xff]  }
 0x397   : > { %9889 = vmatprep.subr.bf16.mxu0 %v11868_v54  ;;  %10362 = vmatprep.subr.bf16.mxu1 %v11870_v55  ;;  %v11932_v54 = vcombine.high %v554_v48, %v558_v49  ;;  %v11934_v55 = vcombine.high %v555_v50, %v559_v51  ;;  %v614_v41 = vld [vmem:[%s14002_s30 + $0x8b0] sm:$0xff]  ;;  %v611_v43 = vld [vmem:[%s14002_s30 + $0x898] sm:$0xff] }
 0x39a   : > { %9890 = vmatpush1.bf16.msra.mxu0 %v11867_v60  ;;  %10363 = vmatpush1.bf16.msra.mxu1 %v11869_v61  ;;  %v11931_v60 = vcombine.low %v554_v48, %v558_v49  ;;  %v11933_v61 = vcombine.low %v555_v50, %v559_v51  ;;  %v618_v49 = vld [vmem:[%s14002_s30 + $0x8d0] sm:$0xff] }
 0x39b   : > { %9891 = vmatprep.subr.bf16.mxu0 %v11876_v62  ;;  %10364 = vmatprep.subr.bf16.mxu1 %v11878_v63  ;;  %v11940_v62 = vcombine.high %v562_v56, %v566_v57  ;;  %v11942_v63 = vcombine.high %v563_v58, %v567_v59  ;;  %v622_v50 = vld [vmem:[%s14002_s30 + $0x8f0] sm:$0xff] }
 0x39c   : > { %v13552_v51 = vld [vmem:[%s14050_s21 + $0x14] ss:$176 sps:$4 sm:$0xff]  }
 0x39e   : > { %9892 = vmatpush1.bf16.msra.mxu0 %v11875_v4  ;;  %10365 = vmatpush1.bf16.msra.mxu1 %v11877_v5  ;;  %v11939_v4 = vcombine.low %v562_v56, %v566_v57  ;;  %v11941_v5 = vcombine.low %v563_v58, %v567_v59  ;;  %v11996_v56 = vcombine.high %v618_v49, %v622_v50  ;;  %v626_v58 = vld [vmem:[%s14002_s30 + $0x910] sm:$0xff] }
 0x39f   : > { %9893 = vmatprep.subr.bf16.mxu0 %v11884_v6  ;;  %10366 = vmatprep.subr.bf16.mxu1 %v11886_v7  ;;  %v11948_v6 = vcombine.high %v570_v0, %v574_v1  ;;  %v11950_v7 = vcombine.high %v571_v2, %v575_v3  ;;  %v630_v59 = vld [vmem:[%s14002_s30 + $0x930] sm:$0xff] }
 0x3a2   : > { %9894 = vmatpush1.bf16.msra.mxu0 %v11883_v12  ;;  %10367 = vmatpush1.bf16.msra.mxu1 %v11885_v13  ;;  %v11947_v12 = vcombine.low %v570_v0, %v574_v1  ;;  %v11949_v13 = vcombine.low %v571_v2, %v575_v3  ;;  %v12004_v0 = vcombine.high %v626_v58, %v630_v59  ;;  %v634_v2 = vld [vmem:[%s14002_s30 + $0x950] sm:$0xff] }
 0x3a3   : > { %9895 = vmatprep.subr.bf16.mxu0 %v11892_v14  ;;  %10368 = vmatprep.subr.bf16.mxu1 %v11894_v15  ;;  %v11956_v14 = vcombine.high %v578_v8, %v582_v9  ;;  %v11958_v15 = vcombine.high %v579_v10, %v583_v11  ;;  %v638_v3 = vld [vmem:[%s14002_s30 + $0x970] sm:$0xff] }
 0x3a6   : > { %9896 = vmatpush1.bf16.msra.mxu0 %v11891_v20  ;;  %10369 = vmatpush1.bf16.msra.mxu1 %v11893_v21  ;;  %v11955_v20 = vcombine.low %v578_v8, %v582_v9  ;;  %v11957_v21 = vcombine.low %v579_v10, %v583_v11  ;;  %v12012_v8 = vcombine.high %v634_v2, %v638_v3  ;;  %v642_v10 = vld [vmem:[%s14002_s30 + $0x990] sm:$0xff] }
 0x3a7   : > { %9897 = vmatprep.subr.bf16.mxu0 %v11900_v22  ;;  %10370 = vmatprep.subr.bf16.mxu1 %v11902_v23  ;;  %v11964_v22 = vcombine.high %v586_v16, %v590_v17  ;;  %v11966_v23 = vcombine.high %v587_v18, %v591_v19  ;;  %v646_v11 = vld [vmem:[%s14002_s30 + $0x9b0] sm:$0xff] }
 0x3aa   : > { %9898 = vmatpush1.bf16.msra.mxu0 %v11899_v28  ;;  %10371 = vmatpush1.bf16.msra.mxu1 %v11901_v29  ;;  %v11963_v28 = vcombine.low %v586_v16, %v590_v17  ;;  %v11965_v29 = vcombine.low %v587_v18, %v591_v19  ;;  %v12020_v16 = vcombine.high %v642_v10, %v646_v11  ;;  %v650_v18 = vld [vmem:[%s14002_s30 + $0x9d0] sm:$0xff] }
 0x3ab   : > { %9899 = vmatprep.subr.bf16.mxu0 %v11908_v30  ;;  %10372 = vmatprep.subr.bf16.mxu1 %v11910_v31  ;;  %v11972_v30 = vcombine.high %v594_v24, %v598_v25  ;;  %v11974_v31 = vcombine.high %v595_v26, %v599_v27  ;;  %v654_v19 = vld [vmem:[%s14002_s30 + $0x9f0] sm:$0xff] }
 0x3ae   : > { %9900 = vmatpush1.bf16.msra.mxu0 %v11907_v36  ;;  %10373 = vmatpush1.bf16.msra.mxu1 %v11909_v37  ;;  %v11971_v36 = vcombine.low %v594_v24, %v598_v25  ;;  %v11973_v37 = vcombine.low %v595_v26, %v599_v27  ;;  %v12028_v24 = vcombine.high %v650_v18, %v654_v19  ;;  %v658_v26 = vld [vmem:[%s14002_s30 + $0xa10] sm:$0xff] }
 0x3af   : > { %9901 = vmatprep.subr.bf16.mxu0 %v11916_v38  ;;  %10374 = vmatprep.subr.bf16.mxu1 %v11918_v39  ;;  %v11980_v38 = vcombine.high %v602_v32, %v606_v33  ;;  %v11982_v39 = vcombine.high %v603_v34, %v607_v35  ;;  %v662_v27 = vld [vmem:[%s14002_s30 + $0xa30] sm:$0xff] }
 0x3b2   : > { %9902 = vmatpush1.bf16.msra.mxu0 %v11915_v44  ;;  %10375 = vmatpush1.bf16.msra.mxu1 %v11917_v45  ;;  %v615_v44 = vld [vmem:[%s14002_s30 + $0x8b8] sm:$0xff]  ;;  %v11979_v45 = vcombine.low %v602_v32, %v606_v33  ;;  %v12036_v32 = vcombine.high %v658_v26, %v662_v27 }
 0x3b3   : > { %9903 = vmatprep.subr.bf16.mxu0 %v11924_v46  ;;  %10376 = vmatprep.subr.bf16.mxu1 %v11926_v47  ;;  %v11981_v46 = vcombine.low %v603_v34, %v607_v35  ;;  %v11988_v47 = vcombine.high %v610_v40, %v614_v41  ;;  %v11990_v48 = vcombine.high %v611_v43, %v615_v44  ;;  %v666_v34 = vld [vmem:[%s14002_s30 + $0xa50] sm:$0xff] }
 0x3b4   : > { %v670_v35 = vld [vmem:[%s14002_s30 + $0xa70] sm:$0xff] }
 0x3b6   : > { %9904 = vmatpush1.bf16.msra.mxu0 %v11923_v52  ;;  %10377 = vmatpush1.bf16.msra.mxu1 %v11925_v53  ;;  %v619_v52 = vld [vmem:[%s14002_s30 + $0x8d8] sm:$0xff] }
 0x3b7   : > { %9905 = vmatprep.subr.bf16.mxu0 %v11932_v54  ;;  %10378 = vmatprep.subr.bf16.mxu1 %v11934_v55  ;;  %v623_v53 = vld [vmem:[%s14002_s30 + $0x8f8] sm:$0xff]  ;;  %v11987_v54 = vcombine.low %v610_v40, %v614_v41  ;;  %v11989_v55 = vcombine.low %v611_v43, %v615_v44  ;;  %v12044_v40 = vcombine.high %v666_v34, %v670_v35  ;;  %v678_v43 = vld [vmem:[%s14002_s30 + $0xab0] sm:$0xff] }
 0x3b8   : > { %v11998_v57 = vcombine.high %v619_v52, %v623_v53  ;;  %v675_v44 = vld [vmem:[%s14002_s30 + $0xa98] sm:$0xff] }
 0x3ba   : > { %9906 = vmatpush1.bf16.msra.mxu0 %v11931_v60  ;;  %10379 = vmatpush1.bf16.msra.mxu1 %v11933_v61  ;;  %v627_v60 = vld [vmem:[%s14002_s30 + $0x918] sm:$0xff] }
 0x3bb   : > { %9907 = vmatprep.subr.bf16.mxu0 %v11940_v62  ;;  %10380 = vmatprep.subr.bf16.mxu1 %v11942_v63  ;;  %v631_v61 = vld [vmem:[%s14002_s30 + $0x938] sm:$0xff]  ;;  %v11995_v62 = vcombine.low %v618_v49, %v622_v50  ;;  %v11997_v63 = vcombine.low %v619_v52, %v623_v53  ;;  %v682_v50 = vld [vmem:[%s14002_s30 + $0xad0] sm:$0xff] }
 0x3bc   : > { %v12006_v1 = vcombine.high %v627_v60, %v631_v61  ;;  %v683_v52 = vld [vmem:[%s14002_s30 + $0xad8] sm:$0xff] }
 0x3bd   : > { %v687_v53 = vld [vmem:[%s14002_s30 + $0xaf8] sm:$0xff] }
 0x3be   : > { %9908 = vmatpush1.bf16.msra.mxu0 %v11939_v4  ;;  %10381 = vmatpush1.bf16.msra.mxu1 %v11941_v5  ;;  %v635_v4 = vld [vmem:[%s14002_s30 + $0x958] sm:$0xff] }
 0x3bf   : > { %9909 = vmatprep.subr.bf16.mxu0 %v11948_v6  ;;  %10382 = vmatprep.subr.bf16.mxu1 %v11950_v7  ;;  %v639_v5 = vld [vmem:[%s14002_s30 + $0x978] sm:$0xff]  ;;  %v12003_v6 = vcombine.low %v626_v58, %v630_v59  ;;  %v12005_v7 = vcombine.low %v627_v60, %v631_v61  ;;  %v690_v58 = vld [vmem:[%s14002_s30 + $0xb10] sm:$0xff] }
 0x3c0   : > { %v12014_v9 = vcombine.high %v635_v4, %v639_v5  ;;  %v694_v59 = vld [vmem:[%s14002_s30 + $0xb30] sm:$0xff]  ;;  %v691_v60 = vld [vmem:[%s14002_s30 + $0xb18] sm:$0xff] }
 0x3c1   : > { %v695_v61 = vld [vmem:[%s14002_s30 + $0xb38] sm:$0xff] }
 0x3c2   : > { %9910 = vmatpush1.bf16.msra.mxu0 %v11947_v12  ;;  %10383 = vmatpush1.bf16.msra.mxu1 %v11949_v13  ;;  %v643_v12 = vld [vmem:[%s14002_s30 + $0x998] sm:$0xff] }
 0x3c3   : > { %9911 = vmatprep.subr.bf16.mxu0 %v11956_v14  ;;  %10384 = vmatprep.subr.bf16.mxu1 %v11958_v15  ;;  %v647_v13 = vld [vmem:[%s14002_s30 + $0x9b8] sm:$0xff]  ;;  %v12011_v14 = vcombine.low %v634_v2, %v638_v3  ;;  %v12013_v15 = vcombine.low %v635_v4, %v639_v5  ;;  %v698_v2 = vld [vmem:[%s14002_s30 + $0xb50] sm:$0xff] }
 0x3c4   : > { %v12022_v17 = vcombine.high %v643_v12, %v647_v13  ;;  %v702_v3 = vld [vmem:[%s14002_s30 + $0xb70] sm:$0xff]  ;;  %v699_v4 = vld [vmem:[%s14002_s30 + $0xb58] sm:$0xff] }
 0x3c5   : > { %v703_v5 = vld [vmem:[%s14002_s30 + $0xb78] sm:$0xff] }
 0x3c6   : > { %9912 = vmatpush1.bf16.msra.mxu0 %v11955_v20  ;;  %10385 = vmatpush1.bf16.msra.mxu1 %v11957_v21  ;;  %v651_v20 = vld [vmem:[%s14002_s30 + $0x9d8] sm:$0xff] }
 0x3c7   : > { %9913 = vmatprep.subr.bf16.mxu0 %v11964_v22  ;;  %10386 = vmatprep.subr.bf16.mxu1 %v11966_v23  ;;  %v655_v21 = vld [vmem:[%s14002_s30 + $0x9f8] sm:$0xff]  ;;  %v12019_v22 = vcombine.low %v642_v10, %v646_v11  ;;  %v12021_v23 = vcombine.low %v643_v12, %v647_v13  ;;  %v706_v10 = vld [vmem:[%s14002_s30 + $0xb90] sm:$0xff] }
 0x3c8   : > { %v12030_v25 = vcombine.high %v651_v20, %v655_v21  ;;  %v710_v11 = vld [vmem:[%s14002_s30 + $0xbb0] sm:$0xff]  ;;  %v707_v12 = vld [vmem:[%s14002_s30 + $0xb98] sm:$0xff] }
 0x3c9   : > { %v711_v13 = vld [vmem:[%s14002_s30 + $0xbb8] sm:$0xff] }
 0x3ca   : > { %9914 = vmatpush1.bf16.msra.mxu0 %v11963_v28  ;;  %10387 = vmatpush1.bf16.msra.mxu1 %v11965_v29  ;;  %v659_v28 = vld [vmem:[%s14002_s30 + $0xa18] sm:$0xff] }
 0x3cb   : > { %9926 = vmatprep.subr.bf16.mxu0 %v11972_v30  ;;  %10399 = vmatprep.subr.bf16.mxu1 %v11974_v31  ;;  %v663_v29 = vld [vmem:[%s14002_s30 + $0xa38] sm:$0xff]  ;;  %v12027_v30 = vcombine.low %v650_v18, %v654_v19  ;;  %v12029_v31 = vcombine.low %v651_v20, %v655_v21  ;;  %v714_v18 = vld [vmem:[%s14002_s30 + $0xbd0] sm:$0xff] }
 0x3cc   : > { %v12038_v33 = vcombine.high %v659_v28, %v663_v29  ;;  %v718_v19 = vld [vmem:[%s14002_s30 + $0xbf0] sm:$0xff]  ;;  %v715_v20 = vld [vmem:[%s14002_s30 + $0xbd8] sm:$0xff] }
 0x3cd   : > { %9916 = vmatmul.mubr.bf16.vlgmr.msra.gmra.mrb[4].mxu0 %v13551_v42  ;;  %10389 = vmatmul.mubr.bf16.vlgmr.msra.gmra.mrb[4].mxu1 %v13551_v42  ;;  %v674_v42 = vld [vmem:[%s14002_s30 + $0xa90] sm:$0xff]  ;;  %v719_v21 = vld [vmem:[%s14002_s30 + $0xbf8] sm:$0xff] }
 0x3ce   : > { %9927 = vmatpush1.bf16.msra.mxu0 %v11971_v36  ;;  %10400 = vmatpush1.bf16.msra.mxu1 %v11973_v37  ;;  %v667_v36 = vld [vmem:[%s14002_s30 + $0xa58] sm:$0xff] }
 0x3cf   : > { %9928 = vmatprep.subr.bf16.mxu0 %v11980_v38  ;;  %10401 = vmatprep.subr.bf16.mxu1 %v11982_v39  ;;  %v671_v37 = vld [vmem:[%s14002_s30 + $0xa78] sm:$0xff]  ;;  %v12035_v38 = vcombine.low %v658_v26, %v662_v27  ;;  %v12037_v39 = vcombine.low %v659_v28, %v663_v29  ;;  %v722_v26 = vld [vmem:[%s14002_s30 + $0xc10] sm:$0xff] }
 0x3d0   : > { %9958 = vmatprep.mubr.bf16.mxu0 %v13552_v51  ;;  %10431 = vmatprep.mubr.bf16.mxu1 %v13552_v51  ;;  %v12046_v41 = vcombine.high %v667_v36, %v671_v37  ;;  %v686_v51 = vld [vmem:[%s14002_s30 + $0xaf0] sm:$0xff]  ;;  %v723_v28 = vld [vmem:[%s14002_s30 + $0xc18] sm:$0xff] }
 0x3d1   : > { %v726_v27 = vld [vmem:[%s14002_s30 + $0xc30] sm:$0xff]  ;;  %v727_v29 = vld [vmem:[%s14002_s30 + $0xc38] sm:$0xff] }
 0x3d2   : > { %9929 = vmatpush1.bf16.msra.mxu0 %v11979_v45  ;;  %10402 = vmatpush1.bf16.msra.mxu1 %v11981_v46  ;;  %v679_v45 = vld [vmem:[%s14002_s30 + $0xab8] sm:$0xff]  ;;  %v12043_v46 = vcombine.low %v666_v34, %v670_v35  ;;  %v730_v34 = vld [vmem:[%s14002_s30 + $0xc50] sm:$0xff] }
 0x3d3   : > { %9930 = vmatprep.subr.bf16.mxu0 %v11988_v47  ;;  %10403 = vmatprep.subr.bf16.mxu1 %v11990_v48  ;;  %v12045_v47 = vcombine.low %v667_v36, %v671_v37  ;;  %v12052_v48 = vcombine.high %v674_v42, %v678_v43  ;;  %v12054_v49 = vcombine.high %v675_v44, %v679_v45  ;;  %v734_v35 = vld [vmem:[%s14002_s30 + $0xc70] sm:$0xff]  ;;  %v731_v36 = vld [vmem:[%s14002_s30 + $0xc58] sm:$0xff] }
 0x3d4   : > { %v735_v37 = vld [vmem:[%s14002_s30 + $0xc78] sm:$0xff] }
 0x3d6   : > { %9931 = vmatpush1.bf16.msra.mxu0 %v11987_v54  ;;  %10404 = vmatpush1.bf16.msra.mxu1 %v11989_v55  ;;  %v12051_v54 = vcombine.low %v674_v42, %v678_v43  ;;  %v12053_v55 = vcombine.low %v675_v44, %v679_v45  ;;  %v738_v42 = vld [vmem:[%s14002_s30 + $0xc90] sm:$0xff]  ;;  %v739_v45 = vld [vmem:[%s14002_s30 + $0xc98] sm:$0xff] }
 0x3d7   : > { %9932 = vmatprep.subr.bf16.mxu0 %v11996_v56  ;;  %10405 = vmatprep.subr.bf16.mxu1 %v11998_v57  ;;  %v12060_v56 = vcombine.high %v682_v50, %v686_v51  ;;  %v12062_v57 = vcombine.high %v683_v52, %v687_v53  ;;  %v742_v43 = vld [vmem:[%s14002_s30 + $0xcb0] sm:$0xff] }
 0x3d8   : > { %v13553_v44 = vld [vmem:[%s14050_s21 + $0x10] ss:$176 sps:$4 sm:$0xff]  }
 0x3da   : > { %9933 = vmatpush1.bf16.msra.mxu0 %v11995_v62  ;;  %10406 = vmatpush1.bf16.msra.mxu1 %v11997_v63  ;;  %v12059_v62 = vcombine.low %v682_v50, %v686_v51  ;;  %v12061_v63 = vcombine.low %v683_v52, %v687_v53  ;;  %v746_v51 = vld [vmem:[%s14002_s30 + $0xcd0] sm:$0xff]  ;;  %v13554_v53 = vld [vmem:[%s14050_s21 + $0x1c] ss:$176 sps:$4 sm:$0xff]  }
 0x3db   : > { %9934 = vmatprep.subr.bf16.mxu0 %v12004_v0  ;;  %10407 = vmatprep.subr.bf16.mxu1 %v12006_v1  ;;  %v12068_v0 = vcombine.high %v690_v58, %v694_v59  ;;  %v12070_v1 = vcombine.high %v691_v60, %v695_v61  ;;  %v750_v52 = vld [vmem:[%s14002_s30 + $0xcf0] sm:$0xff] }
 0x3de   : > { %9935 = vmatpush1.bf16.msra.mxu0 %v12003_v6  ;;  %10408 = vmatpush1.bf16.msra.mxu1 %v12005_v7  ;;  %v12067_v6 = vcombine.low %v690_v58, %v694_v59  ;;  %v12069_v7 = vcombine.low %v691_v60, %v695_v61  ;;  %v12124_v58 = vcombine.high %v746_v51, %v750_v52  ;;  %v754_v60 = vld [vmem:[%s14002_s30 + $0xd10] sm:$0xff] }
 0x3df   : > { %9936 = vmatprep.subr.bf16.mxu0 %v12012_v8  ;;  %10409 = vmatprep.subr.bf16.mxu1 %v12014_v9  ;;  %v12076_v8 = vcombine.high %v698_v2, %v702_v3  ;;  %v12078_v9 = vcombine.high %v699_v4, %v703_v5  ;;  %v758_v61 = vld [vmem:[%s14002_s30 + $0xd30] sm:$0xff] }
 0x3e2   : > { %9937 = vmatpush1.bf16.msra.mxu0 %v12011_v14  ;;  %10410 = vmatpush1.bf16.msra.mxu1 %v12013_v15  ;;  %v12075_v14 = vcombine.low %v698_v2, %v702_v3  ;;  %v12077_v15 = vcombine.low %v699_v4, %v703_v5  ;;  %v12132_v2 = vcombine.high %v754_v60, %v758_v61  ;;  %v762_v4 = vld [vmem:[%s14002_s30 + $0xd50] sm:$0xff] }
 0x3e3   : > { %9938 = vmatprep.subr.bf16.mxu0 %v12020_v16  ;;  %10411 = vmatprep.subr.bf16.mxu1 %v12022_v17  ;;  %v12084_v16 = vcombine.high %v706_v10, %v710_v11  ;;  %v12086_v17 = vcombine.high %v707_v12, %v711_v13  ;;  %v766_v5 = vld [vmem:[%s14002_s30 + $0xd70] sm:$0xff] }
 0x3e6   : > { %9939 = vmatpush1.bf16.msra.mxu0 %v12019_v22  ;;  %10412 = vmatpush1.bf16.msra.mxu1 %v12021_v23  ;;  %v12083_v22 = vcombine.low %v706_v10, %v710_v11  ;;  %v12085_v23 = vcombine.low %v707_v12, %v711_v13  ;;  %v12140_v10 = vcombine.high %v762_v4, %v766_v5  ;;  %v770_v12 = vld [vmem:[%s14002_s30 + $0xd90] sm:$0xff] }
 0x3e7   : > { %9940 = vmatprep.subr.bf16.mxu0 %v12028_v24  ;;  %10413 = vmatprep.subr.bf16.mxu1 %v12030_v25  ;;  %v12092_v24 = vcombine.high %v714_v18, %v718_v19  ;;  %v12094_v25 = vcombine.high %v715_v20, %v719_v21  ;;  %v774_v13 = vld [vmem:[%s14002_s30 + $0xdb0] sm:$0xff] }
 0x3ea   : > { %9941 = vmatpush1.bf16.msra.mxu0 %v12027_v30  ;;  %10414 = vmatpush1.bf16.msra.mxu1 %v12029_v31  ;;  %v12091_v30 = vcombine.low %v714_v18, %v718_v19  ;;  %v12093_v31 = vcombine.low %v715_v20, %v719_v21  ;;  %v12139_v18 = vcombine.low %v762_v4, %v766_v5  ;;  %v321_v19 = vld [vmem:[#allocation2 + $0x8] sm:$0xff]  ;;  %v323_v20 = vld [vmem:[#allocation2 + $0x18] sm:$0xff]  ;;  %v802_v4 = vld [vmem:[%s14002_s30 + $0xe90] sm:$0xff] }
 0x3eb   : > { %9942 = vmatprep.subr.bf16.mxu0 %v12036_v32  ;;  %10415 = vmatprep.subr.bf16.mxu1 %v12038_v33  ;;  %v12100_v32 = vcombine.high %v722_v26, %v726_v27  ;;  %v12102_v33 = vcombine.high %v723_v28, %v727_v29  ;;  %v806_v5 = vld [vmem:[%s14002_s30 + $0xeb0] sm:$0xff] }
 0x3ee   : > { %9943 = vmatpush1.bf16.msra.mxu0 %v12035_v38  ;;  %10416 = vmatpush1.bf16.msra.mxu1 %v12037_v39  ;;  %v12099_v38 = vcombine.low %v722_v26, %v726_v27  ;;  %v12101_v39 = vcombine.low %v723_v28, %v727_v29  ;;  %v778_v27 = vld [vmem:[%s14002_s30 + $0xdd0] sm:$0xff] }
 0x3ef   : > { %9944 = vmatprep.subr.bf16.mxu0 %v12044_v40  ;;  %10417 = vmatprep.subr.bf16.mxu1 %v12046_v41  ;;  %v12108_v40 = vcombine.high %v730_v34, %v734_v35  ;;  %v12110_v41 = vcombine.high %v731_v36, %v735_v37  ;;  %v782_v28 = vld [vmem:[%s14002_s30 + $0xdf0] sm:$0xff] }
 0x3f2   : > { %9945 = vmatpush1.bf16.msra.mxu0 %v12043_v46  ;;  %10418 = vmatpush1.bf16.msra.mxu1 %v12045_v47  ;;  %v743_v46 = vld [vmem:[%s14002_s30 + $0xcb8] sm:$0xff]  ;;  %v12107_v47 = vcombine.low %v730_v34, %v734_v35 }
 0x3f3   : > { %9946 = vmatprep.subr.bf16.mxu0 %v12052_v48  ;;  %10419 = vmatprep.subr.bf16.mxu1 %v12054_v49  ;;  %v12109_v48 = vcombine.low %v731_v36, %v735_v37  ;;  %v12116_v49 = vcombine.high %v738_v42, %v742_v43  ;;  %v12118_v50 = vcombine.high %v739_v45, %v743_v46  ;;  %v783_v34 = vld [vmem:[%s14002_s30 + $0xdf8] sm:$0xff] }
 0x3f6   : > { %9947 = vmatpush1.bf16.msra.mxu0 %v12051_v54  ;;  %10420 = vmatpush1.bf16.msra.mxu1 %v12053_v55  ;;  %v747_v54 = vld [vmem:[%s14002_s30 + $0xcd8] sm:$0xff] }
 0x3f7   : > { %9948 = vmatprep.subr.bf16.mxu0 %v12060_v56  ;;  %10421 = vmatprep.subr.bf16.mxu1 %v12062_v57  ;;  %v751_v55 = vld [vmem:[%s14002_s30 + $0xcf8] sm:$0xff]  ;;  %v12115_v56 = vcombine.low %v738_v42, %v742_v43  ;;  %v12117_v57 = vcombine.low %v739_v45, %v743_v46  ;;  %v12156_v46 = vcombine.high %v778_v27, %v782_v28 }
 0x3f8   : > { %v12126_v59 = vcombine.high %v747_v54, %v751_v55 }
 0x3fa   : > { %9949 = vmatpush1.bf16.msra.mxu0 %v12059_v62  ;;  %10422 = vmatpush1.bf16.msra.mxu1 %v12061_v63  ;;  %v755_v62 = vld [vmem:[%s14002_s30 + $0xd18] sm:$0xff] }
 0x3fb   : > { %9950 = vmatprep.subr.bf16.mxu0 %v12068_v0  ;;  %10423 = vmatprep.subr.bf16.mxu1 %v12070_v1  ;;  %v759_v63 = vld [vmem:[%s14002_s30 + $0xd38] sm:$0xff]  ;;  %v12123_v0 = vcombine.low %v746_v51, %v750_v52  ;;  %v12125_v1 = vcombine.low %v747_v54, %v751_v55  ;;  %v786_v51 = vld [vmem:[%s14002_s30 + $0xe10] sm:$0xff] }
 0x3fc   : > { %v12134_v3 = vcombine.high %v755_v62, %v759_v63  ;;  %v790_v52 = vld [vmem:[%s14002_s30 + $0xe30] sm:$0xff]  ;;  %v787_v54 = vld [vmem:[%s14002_s30 + $0xe18] sm:$0xff] }
 0x3fd   : > { %v791_v55 = vld [vmem:[%s14002_s30 + $0xe38] sm:$0xff] }
 0x3fe   : > { %9951 = vmatpush1.bf16.msra.mxu0 %v12067_v6  ;;  %10424 = vmatpush1.bf16.msra.mxu1 %v12069_v7  ;;  %v763_v6 = vld [vmem:[%s14002_s30 + $0xd58] sm:$0xff] }
 0x3ff   : > { %9952 = vmatprep.subr.bf16.mxu0 %v12076_v8  ;;  %10425 = vmatprep.subr.bf16.mxu1 %v12078_v9  ;;  %v767_v7 = vld [vmem:[%s14002_s30 + $0xd78] sm:$0xff]  ;;  %v12131_v8 = vcombine.low %v754_v60, %v758_v61  ;;  %v12133_v9 = vcombine.low %v755_v62, %v759_v63  ;;  %v794_v60 = vld [vmem:[%s14002_s30 + $0xe50] sm:$0xff] }
 0x400   : > { %v12142_v11 = vcombine.high %v763_v6, %v767_v7  ;;  %v12141_v21 = vcombine.low %v763_v6, %v767_v7  ;;  %v798_v61 = vld [vmem:[%s14002_s30 + $0xe70] sm:$0xff]  ;;  %v795_v62 = vld [vmem:[%s14002_s30 + $0xe58] sm:$0xff] }
 0x401   : > { %v799_v63 = vld [vmem:[%s14002_s30 + $0xe78] sm:$0xff] }
 0x402   : > { %9953 = vmatpush1.bf16.msra.mxu0 %v12075_v14  ;;  %10426 = vmatpush1.bf16.msra.mxu1 %v12077_v15  ;;  %v771_v14 = vld [vmem:[%s14002_s30 + $0xd98] sm:$0xff] }
 0x403   : > { %9954 = vmatprep.subr.bf16.mxu0 %v12084_v16  ;;  %10427 = vmatprep.subr.bf16.mxu1 %v12086_v17  ;;  %v775_v15 = vld [vmem:[%s14002_s30 + $0xdb8] sm:$0xff]  ;;  %v320_v16 = vld [vmem:[#allocation2] sm:$0xff]  ;;  %v322_v17 = vld [vmem:[#allocation2 + $0x10] sm:$0xff] }
 0x404   : > { %v12150_v26 = vcombine.high %v771_v14, %v775_v15  ;;  %v803_v6 = vld [vmem:[%s14002_s30 + $0xe98] sm:$0xff] }
 0x405   : > { %v807_v7 = vld [vmem:[%s14002_s30 + $0xeb8] sm:$0xff] }
 0x406   : > { %9955 = vmatpush1.bf16.msra.mxu0 %v12083_v22  ;;  %10428 = vmatpush1.bf16.msra.mxu1 %v12085_v23  ;;  %v328_v22 = vld [vmem:[#allocation2 + $0x40] sm:$0xff]  ;;  %v12148_v23 = vcombine.high %v770_v12, %v774_v13 }
 0x407   : > { %9956 = vmatprep.subr.bf16.mxu0 %v12092_v24  ;;  %10429 = vmatprep.subr.bf16.mxu1 %v12094_v25  ;;  %v330_v25 = vld [vmem:[#allocation2 + $0x50] sm:$0xff] }
 0x40a   : > { %9957 = vmatpush1.bf16.msra.mxu0 %v12091_v30  ;;  %10430 = vmatpush1.bf16.msra.mxu1 %v12093_v31 }
 0x40b   : > { %9969 = vmatprep.subr.bf16.mxu0 %v12100_v32  ;;  %10442 = vmatprep.subr.bf16.mxu1 %v12102_v33  ;;  %v329_v32 = vld [vmem:[#allocation2 + $0x48] sm:$0xff]  ;;  %v779_v33 = vld [vmem:[%s14002_s30 + $0xdd8] sm:$0xff] }
 0x40d   : > { %9959 = vmatmul.mubr.bf16.vlgmr.msra.gmra.mrb[4].mxu0 %v13553_v44  ;;  %10432 = vmatmul.mubr.bf16.vlgmr.msra.gmra.mrb[4].mxu1 %v13553_v44 }
 0x40e   : > { %9970 = vmatpush1.bf16.msra.mxu0 %v12099_v38  ;;  %10443 = vmatpush1.bf16.msra.mxu1 %v12101_v39  ;;  %v331_v39 = vld [vmem:[#allocation2 + $0x58] sm:$0xff] }
 0x40f   : > { %9971 = vmatprep.subr.bf16.mxu0 %v12108_v40  ;;  %10444 = vmatprep.subr.bf16.mxu1 %v12110_v41  ;;  %v12147_v40 = vcombine.low %v770_v12, %v774_v13  ;;  %v12149_v41 = vcombine.low %v771_v14, %v775_v15  ;;  %v810_v12 = vld [vmem:[%s14002_s30 + $0xed0] sm:$0xff]  ;;  %v811_v14 = vld [vmem:[%s14002_s30 + $0xed8] sm:$0xff] }
 0x410   : > { %10001 = vmatprep.mubr.bf16.mxu0 %v13554_v53  ;;  %10474 = vmatprep.mubr.bf16.mxu1 %v13554_v53  ;;  %v814_v13 = vld [vmem:[%s14002_s30 + $0xef0] sm:$0xff]  ;;  %v815_v15 = vld [vmem:[%s14002_s30 + $0xef8] sm:$0xff] }
 0x412   : > { %9972 = vmatpush1.bf16.msra.mxu0 %v12107_v47  ;;  %10445 = vmatpush1.bf16.msra.mxu1 %v12109_v48 }
 0x413   : > { %9973 = vmatprep.subr.bf16.mxu0 %v12116_v49  ;;  %10446 = vmatprep.subr.bf16.mxu1 %v12118_v50  ;;  %v12158_v50 = vcombine.high %v779_v33, %v783_v34 }
 0x416   : > { %9974 = vmatpush1.bf16.msra.mxu0 %v12115_v56  ;;  %10447 = vmatpush1.bf16.msra.mxu1 %v12117_v57  ;;  %v12155_v56 = vcombine.low %v778_v27, %v782_v28  ;;  %v12157_v57 = vcombine.low %v779_v33, %v783_v34  ;;  %v826_v28 = vld [vmem:[%s14002_s30 + $0xf50] sm:$0xff] }
 0x417   : > { %9975 = vmatprep.subr.bf16.mxu0 %v12124_v58  ;;  %10448 = vmatprep.subr.bf16.mxu1 %v12126_v59  ;;  %v12164_v58 = vcombine.high %v786_v51, %v790_v52  ;;  %v12166_v59 = vcombine.high %v787_v54, %v791_v55 }
 0x41a   : > { %9976 = vmatpush1.bf16.msra.mxu0 %v12123_v0  ;;  %10449 = vmatpush1.bf16.msra.mxu1 %v12125_v1  ;;  %v12163_v0 = vcombine.low %v786_v51, %v790_v52  ;;  %v12165_v1 = vcombine.low %v787_v54, %v791_v55  ;;  %v850_v52 = vld [vmem:[%s14002_s30 + $0x1010] sm:$0xff]  ;;  %v851_v54 = vld [vmem:[%s14002_s30 + $0x1018] sm:$0xff] }
 0x41b   : > { %9977 = vmatprep.subr.bf16.mxu0 %v12132_v2  ;;  %10450 = vmatprep.subr.bf16.mxu1 %v12134_v3  ;;  %v12172_v2 = vcombine.high %v794_v60, %v798_v61  ;;  %v12174_v3 = vcombine.high %v795_v62, %v799_v63  ;;  %v855_v55 = vld [vmem:[%s14002_s30 + $0x1038] sm:$0xff] }
 0x41e   : > { %9978 = vmatpush1.bf16.msra.mxu0 %v12131_v8  ;;  %10451 = vmatpush1.bf16.msra.mxu1 %v12133_v9  ;;  %v12171_v8 = vcombine.low %v794_v60, %v798_v61  ;;  %v12173_v9 = vcombine.low %v795_v62, %v799_v63  ;;  %v858_v60 = vld [vmem:[%s14002_s30 + $0x1050] sm:$0xff]  ;;  %v859_v62 = vld [vmem:[%s14002_s30 + $0x1058] sm:$0xff] }
 0x41f   : > { %9979 = vmatprep.subr.bf16.mxu0 %v12140_v10  ;;  %10452 = vmatprep.subr.bf16.mxu1 %v12142_v11  ;;  %v12180_v10 = vcombine.high %v802_v4, %v806_v5  ;;  %v12182_v11 = vcombine.high %v803_v6, %v807_v7  ;;  %v862_v61 = vld [vmem:[%s14002_s30 + $0x1070] sm:$0xff]  ;;  %v863_v63 = vld [vmem:[%s14002_s30 + $0x1078] sm:$0xff] }
 0x420   : > { %v9358_v24 = vpop.f32.mrb[0].mxu0  ;;  %v9831_v30 = vpop.f32.mrb[0].mxu1 }
 0x421   : > { %v10786_v29 = vadd.f32 %v9358_v24, %v320_v16  ;;  %v9360_v31 = vpop.f32.mrb[1].mxu0  ;;  %v10788_v35 = vadd.f32 %v9831_v30, %v322_v17  ;;  %v9833_v37 = vpop.f32.mrb[1].mxu1  ;;  %v12179_v16 = vcombine.low %v802_v4, %v806_v5  ;;  %v12181_v17 = vcombine.low %v803_v6, %v807_v7  ;;  %v827_v30 = vld [vmem:[%s14002_s30 + $0xf58] sm:$0xff]  ;;  %v866_v4 = vld [vmem:[%s14002_s30 + $0x1090] sm:$0xff] }
 0x422   : > { %v10787_v36 = vadd.f32 %v9360_v31, %v321_v19  ;;  %v9362_v38 = vpop.f32.mrb[2].mxu0  ;;  %9980 = vmatpush1.bf16.msra.mxu0 %v12139_v18  ;;  %v10789_v42 = vadd.f32 %v9833_v37, %v323_v20  ;;  %v9835_v44 = vpop.f32.mrb[2].mxu1  ;;  %10453 = vmatpush1.bf16.msra.mxu1 %v12141_v21  ;;  %v12188_v18 = vcombine.high %v810_v12, %v814_v13  ;;  %v818_v20 = vld [vmem:[%s14002_s30 + $0xf10] sm:$0xff]  ;;  %v831_v31 = vld [vmem:[%s14002_s30 + $0xf78] sm:$0xff] }
 0x423   : > { %10802 = vst [vmem:[#allocation2] sm:$0xff] %v10786_v29  ;;  %v10794_v43 = vadd.f32 %v9362_v38, %v328_v22  ;;  %v9364_v45 = vpop.f32.mrb[3].mxu0  ;;  %9981 = vmatprep.subr.bf16.mxu0 %v12148_v23  ;;  %10804 = vst [vmem:[#allocation2 + $0x10] sm:$0xff] %v10788_v35  ;;  %v10796_v47 = vadd.f32 %v9835_v44, %v330_v25  ;;  %v9837_v49 = vpop.f32.mrb[3].mxu1  ;;  %10454 = vmatprep.subr.bf16.mxu1 %v12150_v26  ;;  %v822_v21 = vld [vmem:[%s14002_s30 + $0xf30] sm:$0xff]  ;;  %v819_v22 = vld [vmem:[%s14002_s30 + $0xf18] sm:$0xff] }
 0x424   : > { %10803 = vst [vmem:[#allocation2 + $0x8] sm:$0xff] %v10787_v36  ;;  %v10795_v48 = vadd.f32 %v9364_v45, %v329_v32  ;;  %10805 = vst [vmem:[#allocation2 + $0x18] sm:$0xff] %v10789_v42  ;;  %v10797_v53 = vadd.f32 %v9837_v49, %v331_v39  ;;  %v12190_v19 = vcombine.high %v811_v14, %v815_v15  ;;  %v823_v23 = vld [vmem:[%s14002_s30 + $0xf38] sm:$0xff]  ;;  %v830_v29 = vld [vmem:[%s14002_s30 + $0xf70] sm:$0xff] }
 0x425   : > { %10810 = vst [vmem:[#allocation2 + $0x40] sm:$0xff] %v10794_v43  ;;  %10812 = vst [vmem:[#allocation2 + $0x50] sm:$0xff] %v10796_v47  ;;  %v12187_v24 = vcombine.low %v810_v12, %v814_v13  ;;  %v12189_v25 = vcombine.low %v811_v14, %v815_v15  ;;  %v12196_v26 = vcombine.high %v818_v20, %v822_v21  ;;  %v834_v36 = vld [vmem:[%s14002_s30 + $0xf90] sm:$0xff]  ;;  %v835_v38 = vld [vmem:[%s14002_s30 + $0xf98] sm:$0xff] }
 0x426   : > { %10811 = vst [vmem:[#allocation2 + $0x48] sm:$0xff] %v10795_v48  ;;  %9982 = vmatpush1.bf16.msra.mxu0 %v12147_v40  ;;  %10813 = vst [vmem:[#allocation2 + $0x58] sm:$0xff] %v10797_v53  ;;  %10455 = vmatpush1.bf16.msra.mxu1 %v12149_v41  ;;  %v12198_v27 = vcombine.high %v819_v22, %v823_v23  ;;  %v12195_v32 = vcombine.low %v818_v20, %v822_v21  ;;  %v838_v37 = vld [vmem:[%s14002_s30 + $0xfb0] sm:$0xff]  ;;  %v839_v39 = vld [vmem:[%s14002_s30 + $0xfb8] sm:$0xff] }
 0x427   : > { %9983 = vmatprep.subr.bf16.mxu0 %v12156_v46  ;;  %10456 = vmatprep.subr.bf16.mxu1 %v12158_v50  ;;  %v12197_v33 = vcombine.low %v819_v22, %v823_v23  ;;  %v12204_v34 = vcombine.high %v826_v28, %v830_v29  ;;  %v12206_v35 = vcombine.high %v827_v30, %v831_v31  ;;  %v842_v44 = vld [vmem:[%s14002_s30 + $0xfd0] sm:$0xff]  ;;  %v843_v46 = vld [vmem:[%s14002_s30 + $0xfd8] sm:$0xff] }
 0x428   : > { %v12203_v40 = vcombine.low %v826_v28, %v830_v29  ;;  %v12205_v41 = vcombine.low %v827_v30, %v831_v31  ;;  %v12212_v42 = vcombine.high %v834_v36, %v838_v37  ;;  %v12214_v43 = vcombine.high %v835_v38, %v839_v39  ;;  %v846_v45 = vld [vmem:[%s14002_s30 + $0xff0] sm:$0xff]  ;;  %v847_v47 = vld [vmem:[%s14002_s30 + $0xff8] sm:$0xff] }
 0x429   : > { %v12211_v48 = vcombine.low %v834_v36, %v838_v37  ;;  %v12213_v49 = vcombine.low %v835_v38, %v839_v39  ;;  %v12220_v50 = vcombine.high %v842_v44, %v846_v45  ;;  %v12222_v51 = vcombine.high %v843_v46, %v847_v47  ;;  %v854_v53 = vld [vmem:[%s14002_s30 + $0x1030] sm:$0xff]  ;;  %v13555_v6 = vld [vmem:[%s14050_s21 + $0x18] ss:$176 sps:$4 sm:$0xff]  }
 0x42a   : > { %9984 = vmatpush1.bf16.msra.mxu0 %v12155_v56  ;;  %10457 = vmatpush1.bf16.msra.mxu1 %v12157_v57  ;;  %v12219_v56 = vcombine.low %v842_v44, %v846_v45  ;;  %v12221_v57 = vcombine.low %v843_v46, %v847_v47  ;;  %v870_v5 = vld [vmem:[%s14002_s30 + $0x10b0] sm:$0xff]  ;;  %v867_v7 = vld [vmem:[%s14002_s30 + $0x1098] sm:$0xff] }
 0x42b   : > { %9985 = vmatprep.subr.bf16.mxu0 %v12164_v58  ;;  %10458 = vmatprep.subr.bf16.mxu1 %v12166_v59  ;;  %v12228_v58 = vcombine.high %v850_v52, %v854_v53  ;;  %v12230_v59 = vcombine.high %v851_v54, %v855_v55  ;;  %v874_v13 = vld [vmem:[%s14002_s30 + $0x10d0] sm:$0xff] }
 0x42c   : > { %v878_v14 = vld [vmem:[%s14002_s30 + $0x10f0] sm:$0xff] }
 0x42d   : > { %v13556_v15 = vld [vmem:[%s14050_s21 + $0x24] ss:$176 sps:$4 sm:$0xff]   ;;  %v12252_v20 = vcombine.high %v874_v13, %v878_v14 }
 0x42e   : > { %9986 = vmatpush1.bf16.msra.mxu0 %v12163_v0  ;;  %10459 = vmatpush1.bf16.msra.mxu1 %v12165_v1  ;;  %v12227_v0 = vcombine.low %v850_v52, %v854_v53  ;;  %v12229_v1 = vcombine.low %v851_v54, %v855_v55  ;;  %v882_v22 = vld [vmem:[%s14002_s30 + $0x1110] sm:$0xff] }
 0x42f   : > { %9987 = vmatprep.subr.bf16.mxu0 %v12172_v2  ;;  %10460 = vmatprep.subr.bf16.mxu1 %v12174_v3  ;;  %v12236_v2 = vcombine.high %v858_v60, %v862_v61  ;;  %v12238_v3 = vcombine.high %v859_v62, %v863_v63  ;;  %v886_v23 = vld [vmem:[%s14002_s30 + $0x1130] sm:$0xff] }
 0x430   : > { %v12260_v28 = vcombine.high %v882_v22, %v886_v23  ;;  %v890_v30 = vld [vmem:[%s14002_s30 + $0x1150] sm:$0xff] }
 0x431   : > { %v894_v31 = vld [vmem:[%s14002_s30 + $0x1170] sm:$0xff] }
 0x432   : > { %9988 = vmatpush1.bf16.msra.mxu0 %v12171_v8  ;;  %10461 = vmatpush1.bf16.msra.mxu1 %v12173_v9  ;;  %v871_v8 = vld [vmem:[%s14002_s30 + $0x10b8] sm:$0xff]  ;;  %v12235_v9 = vcombine.low %v858_v60, %v862_v61  ;;  %v12268_v36 = vcombine.high %v890_v30, %v894_v31  ;;  %v898_v38 = vld [vmem:[%s14002_s30 + $0x1190] sm:$0xff] }
 0x433   : > { %9989 = vmatprep.subr.bf16.mxu0 %v12180_v10  ;;  %10462 = vmatprep.subr.bf16.mxu1 %v12182_v11  ;;  %v12237_v10 = vcombine.low %v859_v62, %v863_v63  ;;  %v12244_v11 = vcombine.high %v866_v4, %v870_v5  ;;  %v12246_v12 = vcombine.high %v867_v7, %v871_v8  ;;  %v902_v39 = vld [vmem:[%s14002_s30 + $0x11b0] sm:$0xff] }
 0x434   : > { %v12276_v44 = vcombine.high %v898_v38, %v902_v39  ;;  %v906_v46 = vld [vmem:[%s14002_s30 + $0x11d0] sm:$0xff] }
 0x435   : > { %v910_v47 = vld [vmem:[%s14002_s30 + $0x11f0] sm:$0xff] }
 0x436   : > { %9990 = vmatpush1.bf16.msra.mxu0 %v12179_v16  ;;  %10463 = vmatpush1.bf16.msra.mxu1 %v12181_v17  ;;  %v875_v16 = vld [vmem:[%s14002_s30 + $0x10d8] sm:$0xff]  ;;  %v12284_v52 = vcombine.high %v906_v46, %v910_v47  ;;  %v914_v54 = vld [vmem:[%s14002_s30 + $0x1210] sm:$0xff] }
 0x437   : > { %9991 = vmatprep.subr.bf16.mxu0 %v12188_v18  ;;  %10464 = vmatprep.subr.bf16.mxu1 %v12190_v19  ;;  %v879_v17 = vld [vmem:[%s14002_s30 + $0x10f8] sm:$0xff]  ;;  %v12243_v18 = vcombine.low %v866_v4, %v870_v5  ;;  %v12245_v19 = vcombine.low %v867_v7, %v871_v8  ;;  %v918_v55 = vld [vmem:[%s14002_s30 + $0x1230] sm:$0xff] }
 0x438   : > { %v12254_v21 = vcombine.high %v875_v16, %v879_v17  ;;  %v12292_v60 = vcombine.high %v914_v54, %v918_v55  ;;  %v922_v62 = vld [vmem:[%s14002_s30 + $0x1250] sm:$0xff]  ;;  %v931_v8 = vld [vmem:[%s14002_s30 + $0x1298] sm:$0xff] }
 0x439   : > { %v926_v63 = vld [vmem:[%s14002_s30 + $0x1270] sm:$0xff] }
 0x43a   : > { %9992 = vmatpush1.bf16.msra.mxu0 %v12187_v24  ;;  %10465 = vmatpush1.bf16.msra.mxu1 %v12189_v25  ;;  %v883_v24 = vld [vmem:[%s14002_s30 + $0x1118] sm:$0xff]  ;;  %v12300_v4 = vcombine.high %v922_v62, %v926_v63  ;;  %v934_v7 = vld [vmem:[%s14002_s30 + $0x12b0] sm:$0xff] }
 0x43b   : > { %9993 = vmatprep.subr.bf16.mxu0 %v12196_v26  ;;  %10466 = vmatprep.subr.bf16.mxu1 %v12198_v27  ;;  %v887_v25 = vld [vmem:[%s14002_s30 + $0x1138] sm:$0xff]  ;;  %v12251_v26 = vcombine.low %v874_v13, %v878_v14  ;;  %v12253_v27 = vcombine.low %v875_v16, %v879_v17  ;;  %v938_v14 = vld [vmem:[%s14002_s30 + $0x12d0] sm:$0xff] }
 0x43c   : > { %v12262_v29 = vcombine.high %v883_v24, %v887_v25  ;;  %v939_v16 = vld [vmem:[%s14002_s30 + $0x12d8] sm:$0xff] }
 0x43d   : > { %v943_v17 = vld [vmem:[%s14002_s30 + $0x12f8] sm:$0xff] }
 0x43e   : > { %9994 = vmatpush1.bf16.msra.mxu0 %v12195_v32  ;;  %10467 = vmatpush1.bf16.msra.mxu1 %v12197_v33  ;;  %v891_v32 = vld [vmem:[%s14002_s30 + $0x1158] sm:$0xff] }
 0x43f   : > { %9995 = vmatprep.subr.bf16.mxu0 %v12204_v34  ;;  %10468 = vmatprep.subr.bf16.mxu1 %v12206_v35  ;;  %v895_v33 = vld [vmem:[%s14002_s30 + $0x1178] sm:$0xff]  ;;  %v12259_v34 = vcombine.low %v882_v22, %v886_v23  ;;  %v12261_v35 = vcombine.low %v883_v24, %v887_v25  ;;  %v946_v22 = vld [vmem:[%s14002_s30 + $0x1310] sm:$0xff] }
 0x440   : > { %v12270_v37 = vcombine.high %v891_v32, %v895_v33  ;;  %v950_v23 = vld [vmem:[%s14002_s30 + $0x1330] sm:$0xff]  ;;  %v947_v24 = vld [vmem:[%s14002_s30 + $0x1318] sm:$0xff] }
 0x441   : > { %v951_v25 = vld [vmem:[%s14002_s30 + $0x1338] sm:$0xff] }
 0x442   : > { %9996 = vmatpush1.bf16.msra.mxu0 %v12203_v40  ;;  %10469 = vmatpush1.bf16.msra.mxu1 %v12205_v41  ;;  %v899_v40 = vld [vmem:[%s14002_s30 + $0x1198] sm:$0xff] }
 0x443   : > { %9997 = vmatprep.subr.bf16.mxu0 %v12212_v42  ;;  %10470 = vmatprep.subr.bf16.mxu1 %v12214_v43  ;;  %v903_v41 = vld [vmem:[%s14002_s30 + $0x11b8] sm:$0xff]  ;;  %v12267_v42 = vcombine.low %v890_v30, %v894_v31  ;;  %v12269_v43 = vcombine.low %v891_v32, %v895_v33  ;;  %v954_v30 = vld [vmem:[%s14002_s30 + $0x1350] sm:$0xff] }
 0x444   : > { %v12278_v45 = vcombine.high %v899_v40, %v903_v41  ;;  %v958_v31 = vld [vmem:[%s14002_s30 + $0x1370] sm:$0xff]  ;;  %v955_v32 = vld [vmem:[%s14002_s30 + $0x1358] sm:$0xff] }
 0x445   : > { %v959_v33 = vld [vmem:[%s14002_s30 + $0x1378] sm:$0xff] }
 0x446   : > { %9998 = vmatpush1.bf16.msra.mxu0 %v12211_v48  ;;  %10471 = vmatpush1.bf16.msra.mxu1 %v12213_v49  ;;  %v907_v48 = vld [vmem:[%s14002_s30 + $0x11d8] sm:$0xff] }
 0x447   : > { %9999 = vmatprep.subr.bf16.mxu0 %v12220_v50  ;;  %10472 = vmatprep.subr.bf16.mxu1 %v12222_v51  ;;  %v911_v49 = vld [vmem:[%s14002_s30 + $0x11f8] sm:$0xff]  ;;  %v12275_v50 = vcombine.low %v898_v38, %v902_v39  ;;  %v12277_v51 = vcombine.low %v899_v40, %v903_v41  ;;  %v962_v38 = vld [vmem:[%s14002_s30 + $0x1390] sm:$0xff] }
 0x448   : > { %v12286_v53 = vcombine.high %v907_v48, %v911_v49  ;;  %v966_v39 = vld [vmem:[%s14002_s30 + $0x13b0] sm:$0xff]  ;;  %v963_v40 = vld [vmem:[%s14002_s30 + $0x1398] sm:$0xff] }
 0x449   : > { %v967_v41 = vld [vmem:[%s14002_s30 + $0x13b8] sm:$0xff] }
 0x44a   : > { %10000 = vmatpush1.bf16.msra.mxu0 %v12219_v56  ;;  %10473 = vmatpush1.bf16.msra.mxu1 %v12221_v57  ;;  %v915_v56 = vld [vmem:[%s14002_s30 + $0x1218] sm:$0xff] }
 0x44b   : > { %10012 = vmatprep.subr.bf16.mxu0 %v12228_v58  ;;  %10485 = vmatprep.subr.bf16.mxu1 %v12230_v59  ;;  %v919_v57 = vld [vmem:[%s14002_s30 + $0x1238] sm:$0xff]  ;;  %v12283_v58 = vcombine.low %v906_v46, %v910_v47  ;;  %v12285_v59 = vcombine.low %v907_v48, %v911_v49  ;;  %v970_v46 = vld [vmem:[%s14002_s30 + $0x13d0] sm:$0xff] }
 0x44c   : > { %v12294_v61 = vcombine.high %v915_v56, %v919_v57  ;;  %v974_v47 = vld [vmem:[%s14002_s30 + $0x13f0] sm:$0xff]  ;;  %v971_v48 = vld [vmem:[%s14002_s30 + $0x13d8] sm:$0xff] }
 0x44d   : > { %10002 = vmatmul.mubr.bf16.vlgmr.msra.gmra.mrb[4].mxu0 %v13555_v6  ;;  %10475 = vmatmul.mubr.bf16.vlgmr.msra.gmra.mrb[4].mxu1 %v13555_v6  ;;  %v930_v6 = vld [vmem:[%s14002_s30 + $0x1290] sm:$0xff]  ;;  %v975_v49 = vld [vmem:[%s14002_s30 + $0x13f8] sm:$0xff] }
 0x44e   : > { %10013 = vmatpush1.bf16.msra.mxu0 %v12227_v0  ;;  %10486 = vmatpush1.bf16.msra.mxu1 %v12229_v1  ;;  %v923_v0 = vld [vmem:[%s14002_s30 + $0x1258] sm:$0xff] }
 0x44f   : > { %10014 = vmatprep.subr.bf16.mxu0 %v12236_v2  ;;  %10487 = vmatprep.subr.bf16.mxu1 %v12238_v3  ;;  %v927_v1 = vld [vmem:[%s14002_s30 + $0x1278] sm:$0xff]  ;;  %v12291_v2 = vcombine.low %v914_v54, %v918_v55  ;;  %v12293_v3 = vcombine.low %v915_v56, %v919_v57  ;;  %v978_v54 = vld [vmem:[%s14002_s30 + $0x1410] sm:$0xff] }
 0x450   : > { %10044 = vmatprep.mubr.bf16.mxu0 %v13556_v15  ;;  %10517 = vmatprep.mubr.bf16.mxu1 %v13556_v15  ;;  %v12302_v5 = vcombine.high %v923_v0, %v927_v1  ;;  %v942_v15 = vld [vmem:[%s14002_s30 + $0x12f0] sm:$0xff]  ;;  %v979_v56 = vld [vmem:[%s14002_s30 + $0x1418] sm:$0xff] }
 0x451   : > { %v982_v55 = vld [vmem:[%s14002_s30 + $0x1430] sm:$0xff]  ;;  %v983_v57 = vld [vmem:[%s14002_s30 + $0x1438] sm:$0xff] }
 0x452   : > { %10015 = vmatpush1.bf16.msra.mxu0 %v12235_v9  ;;  %10488 = vmatpush1.bf16.msra.mxu1 %v12237_v10  ;;  %v935_v9 = vld [vmem:[%s14002_s30 + $0x12b8] sm:$0xff]  ;;  %v12299_v10 = vcombine.low %v922_v62, %v926_v63  ;;  %v986_v62 = vld [vmem:[%s14002_s30 + $0x1450] sm:$0xff] }
 0x453   : > { %10016 = vmatprep.subr.bf16.mxu0 %v12244_v11  ;;  %10489 = vmatprep.subr.bf16.mxu1 %v12246_v12  ;;  %v12301_v11 = vcombine.low %v923_v0, %v927_v1  ;;  %v12308_v12 = vcombine.high %v930_v6, %v934_v7  ;;  %v12310_v13 = vcombine.high %v931_v8, %v935_v9  ;;  %v990_v63 = vld [vmem:[%s14002_s30 + $0x1470] sm:$0xff]  ;;  %v987_v0 = vld [vmem:[%s14002_s30 + $0x1458] sm:$0xff] }
 0x454   : > { %v991_v1 = vld [vmem:[%s14002_s30 + $0x1478] sm:$0xff] }
 0x456   : > { %10017 = vmatpush1.bf16.msra.mxu0 %v12243_v18  ;;  %10490 = vmatpush1.bf16.msra.mxu1 %v12245_v19  ;;  %v12307_v18 = vcombine.low %v930_v6, %v934_v7  ;;  %v12309_v19 = vcombine.low %v931_v8, %v935_v9  ;;  %v994_v6 = vld [vmem:[%s14002_s30 + $0x1490] sm:$0xff]  ;;  %v995_v9 = vld [vmem:[%s14002_s30 + $0x1498] sm:$0xff] }
 0x457   : > { %10018 = vmatprep.subr.bf16.mxu0 %v12252_v20  ;;  %10491 = vmatprep.subr.bf16.mxu1 %v12254_v21  ;;  %v12316_v20 = vcombine.high %v938_v14, %v942_v15  ;;  %v12318_v21 = vcombine.high %v939_v16, %v943_v17  ;;  %v998_v7 = vld [vmem:[%s14002_s30 + $0x14b0] sm:$0xff] }
 0x458   : > { %v13557_v8 = vld [vmem:[%s14050_s21 + $0x20] ss:$176 sps:$4 sm:$0xff]  }
 0x45a   : > { %10019 = vmatpush1.bf16.msra.mxu0 %v12251_v26  ;;  %10492 = vmatpush1.bf16.msra.mxu1 %v12253_v27  ;;  %v12315_v26 = vcombine.low %v938_v14, %v942_v15  ;;  %v12317_v27 = vcombine.low %v939_v16, %v943_v17  ;;  %v1002_v15 = vld [vmem:[%s14002_s30 + $0x14d0] sm:$0xff]  ;;  %v13558_v17 = vld [vmem:[%s14050_s21 + $0x2c] ss:$176 sps:$4 sm:$0xff]  }
 0x45b   : > { %10020 = vmatprep.subr.bf16.mxu0 %v12260_v28  ;;  %10493 = vmatprep.subr.bf16.mxu1 %v12262_v29  ;;  %v12324_v28 = vcombine.high %v946_v22, %v950_v23  ;;  %v12326_v29 = vcombine.high %v947_v24, %v951_v25  ;;  %v1006_v16 = vld [vmem:[%s14002_s30 + $0x14f0] sm:$0xff] }
 0x45e   : > { %10021 = vmatpush1.bf16.msra.mxu0 %v12259_v34  ;;  %10494 = vmatpush1.bf16.msra.mxu1 %v12261_v35  ;;  %v12323_v34 = vcombine.low %v946_v22, %v950_v23  ;;  %v12325_v35 = vcombine.low %v947_v24, %v951_v25  ;;  %v12380_v22 = vcombine.high %v1002_v15, %v1006_v16  ;;  %v1010_v24 = vld [vmem:[%s14002_s30 + $0x1510] sm:$0xff] }
 0x45f   : > { %10022 = vmatprep.subr.bf16.mxu0 %v12268_v36  ;;  %10495 = vmatprep.subr.bf16.mxu1 %v12270_v37  ;;  %v12332_v36 = vcombine.high %v954_v30, %v958_v31  ;;  %v12334_v37 = vcombine.high %v955_v32, %v959_v33  ;;  %v1014_v25 = vld [vmem:[%s14002_s30 + $0x1530] sm:$0xff] }
 0x462   : > { %10023 = vmatpush1.bf16.msra.mxu0 %v12267_v42  ;;  %10496 = vmatpush1.bf16.msra.mxu1 %v12269_v43  ;;  %v12331_v42 = vcombine.low %v954_v30, %v958_v31  ;;  %v12333_v43 = vcombine.low %v955_v32, %v959_v33  ;;  %v12388_v30 = vcombine.high %v1010_v24, %v1014_v25  ;;  %v1018_v32 = vld [vmem:[%s14002_s30 + $0x1550] sm:$0xff] }
 0x463   : > { %10024 = vmatprep.subr.bf16.mxu0 %v12276_v44  ;;  %10497 = vmatprep.subr.bf16.mxu1 %v12278_v45  ;;  %v12340_v44 = vcombine.high %v962_v38, %v966_v39  ;;  %v12342_v45 = vcombine.high %v963_v40, %v967_v41  ;;  %v1022_v33 = vld [vmem:[%s14002_s30 + $0x1570] sm:$0xff] }
 0x466   : > { %10025 = vmatpush1.bf16.msra.mxu0 %v12275_v50  ;;  %10498 = vmatpush1.bf16.msra.mxu1 %v12277_v51  ;;  %v12339_v50 = vcombine.low %v962_v38, %v966_v39  ;;  %v12341_v51 = vcombine.low %v963_v40, %v967_v41  ;;  %v12396_v38 = vcombine.high %v1018_v32, %v1022_v33  ;;  %v1026_v40 = vld [vmem:[%s14002_s30 + $0x1590] sm:$0xff] }
 0x467   : > { %10026 = vmatprep.subr.bf16.mxu0 %v12284_v52  ;;  %10499 = vmatprep.subr.bf16.mxu1 %v12286_v53  ;;  %v12348_v52 = vcombine.high %v970_v46, %v974_v47  ;;  %v12350_v53 = vcombine.high %v971_v48, %v975_v49  ;;  %v1030_v41 = vld [vmem:[%s14002_s30 + $0x15b0] sm:$0xff] }
 0x46a   : > { %10027 = vmatpush1.bf16.msra.mxu0 %v12283_v58  ;;  %10500 = vmatpush1.bf16.msra.mxu1 %v12285_v59  ;;  %v12347_v58 = vcombine.low %v970_v46, %v974_v47  ;;  %v12349_v59 = vcombine.low %v971_v48, %v975_v49  ;;  %v12404_v46 = vcombine.high %v1026_v40, %v1030_v41  ;;  %v1034_v48 = vld [vmem:[%s14002_s30 + $0x15d0] sm:$0xff] }
 0x46b   : > { %10028 = vmatprep.subr.bf16.mxu0 %v12292_v60  ;;  %10501 = vmatprep.subr.bf16.mxu1 %v12294_v61  ;;  %v12356_v60 = vcombine.high %v978_v54, %v982_v55  ;;  %v12358_v61 = vcombine.high %v979_v56, %v983_v57  ;;  %v1038_v49 = vld [vmem:[%s14002_s30 + $0x15f0] sm:$0xff] }
 0x46e   : > { %10029 = vmatpush1.bf16.msra.mxu0 %v12291_v2  ;;  %10502 = vmatpush1.bf16.msra.mxu1 %v12293_v3  ;;  %v12355_v2 = vcombine.low %v978_v54, %v982_v55  ;;  %v12357_v3 = vcombine.low %v979_v56, %v983_v57  ;;  %v12412_v54 = vcombine.high %v1034_v48, %v1038_v49  ;;  %v1042_v56 = vld [vmem:[%s14002_s30 + $0x1610] sm:$0xff] }
 0x46f   : > { %10030 = vmatprep.subr.bf16.mxu0 %v12300_v4  ;;  %10503 = vmatprep.subr.bf16.mxu1 %v12302_v5  ;;  %v12364_v4 = vcombine.high %v986_v62, %v990_v63  ;;  %v12366_v5 = vcombine.high %v987_v0, %v991_v1  ;;  %v1046_v57 = vld [vmem:[%s14002_s30 + $0x1630] sm:$0xff] }
 0x472   : > { %10031 = vmatpush1.bf16.msra.mxu0 %v12299_v10  ;;  %10504 = vmatpush1.bf16.msra.mxu1 %v12301_v11  ;;  %v999_v10 = vld [vmem:[%s14002_s30 + $0x14b8] sm:$0xff]  ;;  %v12363_v11 = vcombine.low %v986_v62, %v990_v63  ;;  %v12420_v62 = vcombine.high %v1042_v56, %v1046_v57 }
 0x473   : > { %10032 = vmatprep.subr.bf16.mxu0 %v12308_v12  ;;  %10505 = vmatprep.subr.bf16.mxu1 %v12310_v13  ;;  %v12365_v12 = vcombine.low %v987_v0, %v991_v1  ;;  %v12372_v13 = vcombine.high %v994_v6, %v998_v7  ;;  %v12374_v14 = vcombine.high %v995_v9, %v999_v10  ;;  %v1050_v0 = vld [vmem:[%s14002_s30 + $0x1650] sm:$0xff] }
 0x474   : > { %v1054_v1 = vld [vmem:[%s14002_s30 + $0x1670] sm:$0xff] }
 0x476   : > { %10033 = vmatpush1.bf16.msra.mxu0 %v12307_v18  ;;  %10506 = vmatpush1.bf16.msra.mxu1 %v12309_v19  ;;  %v1003_v18 = vld [vmem:[%s14002_s30 + $0x14d8] sm:$0xff] }
 0x477   : > { %10034 = vmatprep.subr.bf16.mxu0 %v12316_v20  ;;  %10507 = vmatprep.subr.bf16.mxu1 %v12318_v21  ;;  %v1007_v19 = vld [vmem:[%s14002_s30 + $0x14f8] sm:$0xff]  ;;  %v12371_v20 = vcombine.low %v994_v6, %v998_v7  ;;  %v12373_v21 = vcombine.low %v995_v9, %v999_v10  ;;  %v12428_v6 = vcombine.high %v1050_v0, %v1054_v1  ;;  %v1062_v9 = vld [vmem:[%s14002_s30 + $0x16b0] sm:$0xff] }
 0x478   : > { %v12382_v23 = vcombine.high %v1003_v18, %v1007_v19  ;;  %v1059_v10 = vld [vmem:[%s14002_s30 + $0x1698] sm:$0xff] }
 0x47a   : > { %10035 = vmatpush1.bf16.msra.mxu0 %v12315_v26  ;;  %10508 = vmatpush1.bf16.msra.mxu1 %v12317_v27  ;;  %v1011_v26 = vld [vmem:[%s14002_s30 + $0x1518] sm:$0xff] }
 0x47b   : > { %10036 = vmatprep.subr.bf16.mxu0 %v12324_v28  ;;  %10509 = vmatprep.subr.bf16.mxu1 %v12326_v29  ;;  %v1015_v27 = vld [vmem:[%s14002_s30 + $0x1538] sm:$0xff]  ;;  %v12379_v28 = vcombine.low %v1002_v15, %v1006_v16  ;;  %v12381_v29 = vcombine.low %v1003_v18, %v1007_v19  ;;  %v1066_v16 = vld [vmem:[%s14002_s30 + $0x16d0] sm:$0xff] }
 0x47c   : > { %v12390_v31 = vcombine.high %v1011_v26, %v1015_v27  ;;  %v1067_v18 = vld [vmem:[%s14002_s30 + $0x16d8] sm:$0xff] }
 0x47d   : > { %v1071_v19 = vld [vmem:[%s14002_s30 + $0x16f8] sm:$0xff] }
 0x47e   : > { %10037 = vmatpush1.bf16.msra.mxu0 %v12323_v34  ;;  %10510 = vmatpush1.bf16.msra.mxu1 %v12325_v35  ;;  %v1019_v34 = vld [vmem:[%s14002_s30 + $0x1558] sm:$0xff] }
 0x47f   : > { %10038 = vmatprep.subr.bf16.mxu0 %v12332_v36  ;;  %10511 = vmatprep.subr.bf16.mxu1 %v12334_v37  ;;  %v1023_v35 = vld [vmem:[%s14002_s30 + $0x1578] sm:$0xff]  ;;  %v12387_v36 = vcombine.low %v1010_v24, %v1014_v25  ;;  %v12389_v37 = vcombine.low %v1011_v26, %v1015_v27  ;;  %v1074_v24 = vld [vmem:[%s14002_s30 + $0x1710] sm:$0xff] }
 0x480   : > { %v12398_v39 = vcombine.high %v1019_v34, %v1023_v35  ;;  %v1078_v25 = vld [vmem:[%s14002_s30 + $0x1730] sm:$0xff]  ;;  %v1075_v26 = vld [vmem:[%s14002_s30 + $0x1718] sm:$0xff] }
 0x481   : > { %v1079_v27 = vld [vmem:[%s14002_s30 + $0x1738] sm:$0xff] }
 0x482   : > { %10039 = vmatpush1.bf16.msra.mxu0 %v12331_v42  ;;  %10512 = vmatpush1.bf16.msra.mxu1 %v12333_v43  ;;  %v1027_v42 = vld [vmem:[%s14002_s30 + $0x1598] sm:$0xff] }
 0x483   : > { %10040 = vmatprep.subr.bf16.mxu0 %v12340_v44  ;;  %10513 = vmatprep.subr.bf16.mxu1 %v12342_v45  ;;  %v1031_v43 = vld [vmem:[%s14002_s30 + $0x15b8] sm:$0xff]  ;;  %v12395_v44 = vcombine.low %v1018_v32, %v1022_v33  ;;  %v12397_v45 = vcombine.low %v1019_v34, %v1023_v35  ;;  %v1082_v32 = vld [vmem:[%s14002_s30 + $0x1750] sm:$0xff] }
 0x484   : > { %v12406_v47 = vcombine.high %v1027_v42, %v1031_v43  ;;  %v1086_v33 = vld [vmem:[%s14002_s30 + $0x1770] sm:$0xff]  ;;  %v1083_v34 = vld [vmem:[%s14002_s30 + $0x1758] sm:$0xff] }
 0x485   : > { %v1087_v35 = vld [vmem:[%s14002_s30 + $0x1778] sm:$0xff] }
 0x486   : > { %10041 = vmatpush1.bf16.msra.mxu0 %v12339_v50  ;;  %10514 = vmatpush1.bf16.msra.mxu1 %v12341_v51  ;;  %v1035_v50 = vld [vmem:[%s14002_s30 + $0x15d8] sm:$0xff] }
 0x487   : > { %10042 = vmatprep.subr.bf16.mxu0 %v12348_v52  ;;  %10515 = vmatprep.subr.bf16.mxu1 %v12350_v53  ;;  %v1039_v51 = vld [vmem:[%s14002_s30 + $0x15f8] sm:$0xff]  ;;  %v12403_v52 = vcombine.low %v1026_v40, %v1030_v41  ;;  %v12405_v53 = vcombine.low %v1027_v42, %v1031_v43  ;;  %v1090_v40 = vld [vmem:[%s14002_s30 + $0x1790] sm:$0xff] }
 0x488   : > { %v12414_v55 = vcombine.high %v1035_v50, %v1039_v51  ;;  %v1094_v41 = vld [vmem:[%s14002_s30 + $0x17b0] sm:$0xff]  ;;  %v1091_v42 = vld [vmem:[%s14002_s30 + $0x1798] sm:$0xff] }
 0x489   : > { %v1095_v43 = vld [vmem:[%s14002_s30 + $0x17b8] sm:$0xff] }
 0x48a   : > { %10043 = vmatpush1.bf16.msra.mxu0 %v12347_v58  ;;  %10516 = vmatpush1.bf16.msra.mxu1 %v12349_v59  ;;  %v1043_v58 = vld [vmem:[%s14002_s30 + $0x1618] sm:$0xff] }
 0x48b   : > { %10055 = vmatprep.subr.bf16.mxu0 %v12356_v60  ;;  %10528 = vmatprep.subr.bf16.mxu1 %v12358_v61  ;;  %v1047_v59 = vld [vmem:[%s14002_s30 + $0x1638] sm:$0xff]  ;;  %v12411_v60 = vcombine.low %v1034_v48, %v1038_v49  ;;  %v12413_v61 = vcombine.low %v1035_v50, %v1039_v51  ;;  %v1098_v48 = vld [vmem:[%s14002_s30 + $0x17d0] sm:$0xff] }
 0x48c   : > { %v12422_v63 = vcombine.high %v1043_v58, %v1047_v59  ;;  %v1102_v49 = vld [vmem:[%s14002_s30 + $0x17f0] sm:$0xff]  ;;  %v1099_v50 = vld [vmem:[%s14002_s30 + $0x17d8] sm:$0xff] }
 0x48d   : > { %10045 = vmatmul.mubr.bf16.vlgmr.msra.gmra.mrb[4].mxu0 %v13557_v8  ;;  %10518 = vmatmul.mubr.bf16.vlgmr.msra.gmra.mrb[4].mxu1 %v13557_v8  ;;  %v1058_v8 = vld [vmem:[%s14002_s30 + $0x1690] sm:$0xff]  ;;  %v1103_v51 = vld [vmem:[%s14002_s30 + $0x17f8] sm:$0xff] }
 0x48e   : > { %10056 = vmatpush1.bf16.msra.mxu0 %v12355_v2  ;;  %10529 = vmatpush1.bf16.msra.mxu1 %v12357_v3  ;;  %v1051_v2 = vld [vmem:[%s14002_s30 + $0x1658] sm:$0xff] }
 0x48f   : > { %10057 = vmatprep.subr.bf16.mxu0 %v12364_v4  ;;  %10530 = vmatprep.subr.bf16.mxu1 %v12366_v5  ;;  %v1055_v3 = vld [vmem:[%s14002_s30 + $0x1678] sm:$0xff]  ;;  %v12419_v4 = vcombine.low %v1042_v56, %v1046_v57  ;;  %v12421_v5 = vcombine.low %v1043_v58, %v1047_v59  ;;  %v1106_v56 = vld [vmem:[%s14002_s30 + $0x1810] sm:$0xff] }
 0x490   : > { %10087 = vmatprep.mubr.bf16.mxu0 %v13558_v17  ;;  %10560 = vmatprep.mubr.bf16.mxu1 %v13558_v17  ;;  %v12430_v7 = vcombine.high %v1051_v2, %v1055_v3  ;;  %v1070_v17 = vld [vmem:[%s14002_s30 + $0x16f0] sm:$0xff]  ;;  %v1107_v58 = vld [vmem:[%s14002_s30 + $0x1818] sm:$0xff] }
 0x491   : > { %v1110_v57 = vld [vmem:[%s14002_s30 + $0x1830] sm:$0xff]  ;;  %v1111_v59 = vld [vmem:[%s14002_s30 + $0x1838] sm:$0xff] }
 0x492   : > { %10058 = vmatpush1.bf16.msra.mxu0 %v12363_v11  ;;  %10531 = vmatpush1.bf16.msra.mxu1 %v12365_v12  ;;  %v1063_v11 = vld [vmem:[%s14002_s30 + $0x16b8] sm:$0xff]  ;;  %v12427_v12 = vcombine.low %v1050_v0, %v1054_v1  ;;  %v1114_v0 = vld [vmem:[%s14002_s30 + $0x1850] sm:$0xff] }
 0x493   : > { %10059 = vmatprep.subr.bf16.mxu0 %v12372_v13  ;;  %10532 = vmatprep.subr.bf16.mxu1 %v12374_v14  ;;  %v12429_v13 = vcombine.low %v1051_v2, %v1055_v3  ;;  %v12436_v14 = vcombine.high %v1058_v8, %v1062_v9  ;;  %v12438_v15 = vcombine.high %v1059_v10, %v1063_v11  ;;  %v1118_v1 = vld [vmem:[%s14002_s30 + $0x1870] sm:$0xff]  ;;  %v1115_v2 = vld [vmem:[%s14002_s30 + $0x1858] sm:$0xff] }
 0x494   : > { %v1119_v3 = vld [vmem:[%s14002_s30 + $0x1878] sm:$0xff] }
 0x496   : > { %10060 = vmatpush1.bf16.msra.mxu0 %v12371_v20  ;;  %10533 = vmatpush1.bf16.msra.mxu1 %v12373_v21  ;;  %v12435_v20 = vcombine.low %v1058_v8, %v1062_v9  ;;  %v12437_v21 = vcombine.low %v1059_v10, %v1063_v11  ;;  %v1122_v8 = vld [vmem:[%s14002_s30 + $0x1890] sm:$0xff]  ;;  %v13559_v10 = vld [vmem:[%s14050_s21 + $0x28] ss:$176 sps:$4 sm:$0xff]  }
 0x497   : > { %10061 = vmatprep.subr.bf16.mxu0 %v12380_v22  ;;  %10534 = vmatprep.subr.bf16.mxu1 %v12382_v23  ;;  %v12444_v22 = vcombine.high %v1066_v16, %v1070_v17  ;;  %v12446_v23 = vcombine.high %v1067_v18, %v1071_v19  ;;  %v1126_v9 = vld [vmem:[%s14002_s30 + $0x18b0] sm:$0xff]  ;;  %v1123_v11 = vld [vmem:[%s14002_s30 + $0x1898] sm:$0xff] }
 0x49a   : > { %10062 = vmatpush1.bf16.msra.mxu0 %v12379_v28  ;;  %10535 = vmatpush1.bf16.msra.mxu1 %v12381_v29  ;;  %v12443_v28 = vcombine.low %v1066_v16, %v1070_v17  ;;  %v12445_v29 = vcombine.low %v1067_v18, %v1071_v19  ;;  %v1130_v17 = vld [vmem:[%s14002_s30 + $0x18d0] sm:$0xff] }
 0x49b   : > { %10063 = vmatprep.subr.bf16.mxu0 %v12388_v30  ;;  %10536 = vmatprep.subr.bf16.mxu1 %v12390_v31  ;;  %v12452_v30 = vcombine.high %v1074_v24, %v1078_v25  ;;  %v12454_v31 = vcombine.high %v1075_v26, %v1079_v27  ;;  %v1134_v18 = vld [vmem:[%s14002_s30 + $0x18f0] sm:$0xff] }
 0x49c   : > { %v13560_v19 = vld [vmem:[%s14050_s21 + $0x34] ss:$176 sps:$4 sm:$0xff]  }
 0x49e   : > { %10064 = vmatpush1.bf16.msra.mxu0 %v12387_v36  ;;  %10537 = vmatpush1.bf16.msra.mxu1 %v12389_v37  ;;  %v12451_v36 = vcombine.low %v1074_v24, %v1078_v25  ;;  %v12453_v37 = vcombine.low %v1075_v26, %v1079_v27  ;;  %v12508_v24 = vcombine.high %v1130_v17, %v1134_v18  ;;  %v1138_v26 = vld [vmem:[%s14002_s30 + $0x1910] sm:$0xff] }
 0x49f   : > { %10065 = vmatprep.subr.bf16.mxu0 %v12396_v38  ;;  %10538 = vmatprep.subr.bf16.mxu1 %v12398_v39  ;;  %v12460_v38 = vcombine.high %v1082_v32, %v1086_v33  ;;  %v12462_v39 = vcombine.high %v1083_v34, %v1087_v35  ;;  %v1142_v27 = vld [vmem:[%s14002_s30 + $0x1930] sm:$0xff] }
 0x4a2   : > { %10066 = vmatpush1.bf16.msra.mxu0 %v12395_v44  ;;  %10539 = vmatpush1.bf16.msra.mxu1 %v12397_v45  ;;  %v12459_v44 = vcombine.low %v1082_v32, %v1086_v33  ;;  %v12461_v45 = vcombine.low %v1083_v34, %v1087_v35  ;;  %v12516_v32 = vcombine.high %v1138_v26, %v1142_v27  ;;  %v1146_v34 = vld [vmem:[%s14002_s30 + $0x1950] sm:$0xff] }
 0x4a3   : > { %10067 = vmatprep.subr.bf16.mxu0 %v12404_v46  ;;  %10540 = vmatprep.subr.bf16.mxu1 %v12406_v47  ;;  %v12468_v46 = vcombine.high %v1090_v40, %v1094_v41  ;;  %v12470_v47 = vcombine.high %v1091_v42, %v1095_v43  ;;  %v1150_v35 = vld [vmem:[%s14002_s30 + $0x1970] sm:$0xff] }
 0x4a6   : > { %10068 = vmatpush1.bf16.msra.mxu0 %v12403_v52  ;;  %10541 = vmatpush1.bf16.msra.mxu1 %v12405_v53  ;;  %v12467_v52 = vcombine.low %v1090_v40, %v1094_v41  ;;  %v12469_v53 = vcombine.low %v1091_v42, %v1095_v43  ;;  %v12524_v40 = vcombine.high %v1146_v34, %v1150_v35  ;;  %v1154_v42 = vld [vmem:[%s14002_s30 + $0x1990] sm:$0xff] }
 0x4a7   : > { %10069 = vmatprep.subr.bf16.mxu0 %v12412_v54  ;;  %10542 = vmatprep.subr.bf16.mxu1 %v12414_v55  ;;  %v12476_v54 = vcombine.high %v1098_v48, %v1102_v49  ;;  %v12478_v55 = vcombine.high %v1099_v50, %v1103_v51  ;;  %v1158_v43 = vld [vmem:[%s14002_s30 + $0x19b0] sm:$0xff] }
 0x4aa   : > { %10070 = vmatpush1.bf16.msra.mxu0 %v12411_v60  ;;  %10543 = vmatpush1.bf16.msra.mxu1 %v12413_v61  ;;  %v12475_v60 = vcombine.low %v1098_v48, %v1102_v49  ;;  %v12477_v61 = vcombine.low %v1099_v50, %v1103_v51  ;;  %v12532_v48 = vcombine.high %v1154_v42, %v1158_v43  ;;  %v1162_v50 = vld [vmem:[%s14002_s30 + $0x19d0] sm:$0xff] }
 0x4ab   : > { %10071 = vmatprep.subr.bf16.mxu0 %v12420_v62  ;;  %10544 = vmatprep.subr.bf16.mxu1 %v12422_v63  ;;  %v12484_v62 = vcombine.high %v1106_v56, %v1110_v57  ;;  %v12486_v63 = vcombine.high %v1107_v58, %v1111_v59  ;;  %v1166_v51 = vld [vmem:[%s14002_s30 + $0x19f0] sm:$0xff] }
 0x4ae   : > { %10072 = vmatpush1.bf16.msra.mxu0 %v12419_v4  ;;  %10545 = vmatpush1.bf16.msra.mxu1 %v12421_v5  ;;  %v12483_v4 = vcombine.low %v1106_v56, %v1110_v57  ;;  %v12485_v5 = vcombine.low %v1107_v58, %v1111_v59  ;;  %v12540_v56 = vcombine.high %v1162_v50, %v1166_v51  ;;  %v1170_v58 = vld [vmem:[%s14002_s30 + $0x1a10] sm:$0xff] }
 0x4af   : > { %10073 = vmatprep.subr.bf16.mxu0 %v12428_v6  ;;  %10546 = vmatprep.subr.bf16.mxu1 %v12430_v7  ;;  %v12492_v6 = vcombine.high %v1114_v0, %v1118_v1  ;;  %v12494_v7 = vcombine.high %v1115_v2, %v1119_v3  ;;  %v1174_v59 = vld [vmem:[%s14002_s30 + $0x1a30] sm:$0xff] }
 0x4b2   : > { %10074 = vmatpush1.bf16.msra.mxu0 %v12427_v12  ;;  %10547 = vmatpush1.bf16.msra.mxu1 %v12429_v13  ;;  %v1127_v12 = vld [vmem:[%s14002_s30 + $0x18b8] sm:$0xff]  ;;  %v12491_v13 = vcombine.low %v1114_v0, %v1118_v1  ;;  %v12548_v0 = vcombine.high %v1170_v58, %v1174_v59 }
 0x4b3   : > { %10075 = vmatprep.subr.bf16.mxu0 %v12436_v14  ;;  %10548 = vmatprep.subr.bf16.mxu1 %v12438_v15  ;;  %v12493_v14 = vcombine.low %v1115_v2, %v1119_v3  ;;  %v12500_v15 = vcombine.high %v1122_v8, %v1126_v9  ;;  %v12502_v16 = vcombine.high %v1123_v11, %v1127_v12  ;;  %v1178_v2 = vld [vmem:[%s14002_s30 + $0x1a50] sm:$0xff] }
 0x4b4   : > { %v1182_v3 = vld [vmem:[%s14002_s30 + $0x1a70] sm:$0xff] }
 0x4b6   : > { %10076 = vmatpush1.bf16.msra.mxu0 %v12435_v20  ;;  %10549 = vmatpush1.bf16.msra.mxu1 %v12437_v21  ;;  %v1131_v20 = vld [vmem:[%s14002_s30 + $0x18d8] sm:$0xff] }
 0x4b7   : > { %10077 = vmatprep.subr.bf16.mxu0 %v12444_v22  ;;  %10550 = vmatprep.subr.bf16.mxu1 %v12446_v23  ;;  %v1135_v21 = vld [vmem:[%s14002_s30 + $0x18f8] sm:$0xff]  ;;  %v12499_v22 = vcombine.low %v1122_v8, %v1126_v9  ;;  %v12501_v23 = vcombine.low %v1123_v11, %v1127_v12  ;;  %v12556_v8 = vcombine.high %v1178_v2, %v1182_v3  ;;  %v1190_v11 = vld [vmem:[%s14002_s30 + $0x1ab0] sm:$0xff] }
 0x4b8   : > { %v12510_v25 = vcombine.high %v1131_v20, %v1135_v21  ;;  %v1187_v12 = vld [vmem:[%s14002_s30 + $0x1a98] sm:$0xff] }
 0x4ba   : > { %10078 = vmatpush1.bf16.msra.mxu0 %v12443_v28  ;;  %10551 = vmatpush1.bf16.msra.mxu1 %v12445_v29  ;;  %v1139_v28 = vld [vmem:[%s14002_s30 + $0x1918] sm:$0xff] }
 0x4bb   : > { %10079 = vmatprep.subr.bf16.mxu0 %v12452_v30  ;;  %10552 = vmatprep.subr.bf16.mxu1 %v12454_v31  ;;  %v1143_v29 = vld [vmem:[%s14002_s30 + $0x1938] sm:$0xff]  ;;  %v12507_v30 = vcombine.low %v1130_v17, %v1134_v18  ;;  %v12509_v31 = vcombine.low %v1131_v20, %v1135_v21  ;;  %v1194_v18 = vld [vmem:[%s14002_s30 + $0x1ad0] sm:$0xff] }
 0x4bc   : > { %v12518_v33 = vcombine.high %v1139_v28, %v1143_v29  ;;  %v1195_v20 = vld [vmem:[%s14002_s30 + $0x1ad8] sm:$0xff] }
 0x4bd   : > { %v1199_v21 = vld [vmem:[%s14002_s30 + $0x1af8] sm:$0xff] }
 0x4be   : > { %10080 = vmatpush1.bf16.msra.mxu0 %v12451_v36  ;;  %10553 = vmatpush1.bf16.msra.mxu1 %v12453_v37  ;;  %v1147_v36 = vld [vmem:[%s14002_s30 + $0x1958] sm:$0xff] }
 0x4bf   : > { %10081 = vmatprep.subr.bf16.mxu0 %v12460_v38  ;;  %10554 = vmatprep.subr.bf16.mxu1 %v12462_v39  ;;  %v1151_v37 = vld [vmem:[%s14002_s30 + $0x1978] sm:$0xff]  ;;  %v12515_v38 = vcombine.low %v1138_v26, %v1142_v27  ;;  %v12517_v39 = vcombine.low %v1139_v28, %v1143_v29  ;;  %v1202_v26 = vld [vmem:[%s14002_s30 + $0x1b10] sm:$0xff] }
 0x4c0   : > { %v12526_v41 = vcombine.high %v1147_v36, %v1151_v37  ;;  %v1206_v27 = vld [vmem:[%s14002_s30 + $0x1b30] sm:$0xff]  ;;  %v1203_v28 = vld [vmem:[%s14002_s30 + $0x1b18] sm:$0xff] }
 0x4c1   : > { %v1207_v29 = vld [vmem:[%s14002_s30 + $0x1b38] sm:$0xff] }
 0x4c2   : > { %10082 = vmatpush1.bf16.msra.mxu0 %v12459_v44  ;;  %10555 = vmatpush1.bf16.msra.mxu1 %v12461_v45  ;;  %v1155_v44 = vld [vmem:[%s14002_s30 + $0x1998] sm:$0xff] }
 0x4c3   : > { %10083 = vmatprep.subr.bf16.mxu0 %v12468_v46  ;;  %10556 = vmatprep.subr.bf16.mxu1 %v12470_v47  ;;  %v1159_v45 = vld [vmem:[%s14002_s30 + $0x19b8] sm:$0xff]  ;;  %v12523_v46 = vcombine.low %v1146_v34, %v1150_v35  ;;  %v12525_v47 = vcombine.low %v1147_v36, %v1151_v37  ;;  %v1210_v34 = vld [vmem:[%s14002_s30 + $0x1b50] sm:$0xff] }
 0x4c4   : > { %v12534_v49 = vcombine.high %v1155_v44, %v1159_v45  ;;  %v1214_v35 = vld [vmem:[%s14002_s30 + $0x1b70] sm:$0xff]  ;;  %v1211_v36 = vld [vmem:[%s14002_s30 + $0x1b58] sm:$0xff] }
 0x4c5   : > { %v1215_v37 = vld [vmem:[%s14002_s30 + $0x1b78] sm:$0xff] }
 0x4c6   : > { %10084 = vmatpush1.bf16.msra.mxu0 %v12467_v52  ;;  %10557 = vmatpush1.bf16.msra.mxu1 %v12469_v53  ;;  %v1163_v52 = vld [vmem:[%s14002_s30 + $0x19d8] sm:$0xff] }
 0x4c7   : > { %10085 = vmatprep.subr.bf16.mxu0 %v12476_v54  ;;  %10558 = vmatprep.subr.bf16.mxu1 %v12478_v55  ;;  %v1167_v53 = vld [vmem:[%s14002_s30 + $0x19f8] sm:$0xff]  ;;  %v12531_v54 = vcombine.low %v1154_v42, %v1158_v43  ;;  %v12533_v55 = vcombine.low %v1155_v44, %v1159_v45  ;;  %v1218_v42 = vld [vmem:[%s14002_s30 + $0x1b90] sm:$0xff] }
 0x4c8   : > { %v12542_v57 = vcombine.high %v1163_v52, %v1167_v53  ;;  %v1222_v43 = vld [vmem:[%s14002_s30 + $0x1bb0] sm:$0xff]  ;;  %v1219_v44 = vld [vmem:[%s14002_s30 + $0x1b98] sm:$0xff] }
 0x4c9   : > { %v1223_v45 = vld [vmem:[%s14002_s30 + $0x1bb8] sm:$0xff] }
 0x4ca   : > { %10086 = vmatpush1.bf16.msra.mxu0 %v12475_v60  ;;  %10559 = vmatpush1.bf16.msra.mxu1 %v12477_v61  ;;  %v1171_v60 = vld [vmem:[%s14002_s30 + $0x1a18] sm:$0xff] }
 0x4cb   : > { %10098 = vmatprep.subr.bf16.mxu0 %v12484_v62  ;;  %10571 = vmatprep.subr.bf16.mxu1 %v12486_v63  ;;  %v1175_v61 = vld [vmem:[%s14002_s30 + $0x1a38] sm:$0xff]  ;;  %v12539_v62 = vcombine.low %v1162_v50, %v1166_v51  ;;  %v12541_v63 = vcombine.low %v1163_v52, %v1167_v53  ;;  %v1226_v50 = vld [vmem:[%s14002_s30 + $0x1bd0] sm:$0xff] }
 0x4cc   : > { %v12550_v1 = vcombine.high %v1171_v60, %v1175_v61  ;;  %v1230_v51 = vld [vmem:[%s14002_s30 + $0x1bf0] sm:$0xff]  ;;  %v1227_v52 = vld [vmem:[%s14002_s30 + $0x1bd8] sm:$0xff] }
 0x4cd   : > { %10088 = vmatmul.mubr.bf16.vlgmr.msra.gmra.mrb[4].mxu0 %v13559_v10  ;;  %10561 = vmatmul.mubr.bf16.vlgmr.msra.gmra.mrb[4].mxu1 %v13559_v10  ;;  %v1186_v10 = vld [vmem:[%s14002_s30 + $0x1a90] sm:$0xff]  ;;  %v1231_v53 = vld [vmem:[%s14002_s30 + $0x1bf8] sm:$0xff] }
 0x4ce   : > { %10099 = vmatpush1.bf16.msra.mxu0 %v12483_v4  ;;  %10572 = vmatpush1.bf16.msra.mxu1 %v12485_v5  ;;  %v1179_v4 = vld [vmem:[%s14002_s30 + $0x1a58] sm:$0xff] }
 0x4cf   : > { %10100 = vmatprep.subr.bf16.mxu0 %v12492_v6  ;;  %10573 = vmatprep.subr.bf16.mxu1 %v12494_v7  ;;  %v1183_v5 = vld [vmem:[%s14002_s30 + $0x1a78] sm:$0xff]  ;;  %v12547_v6 = vcombine.low %v1170_v58, %v1174_v59  ;;  %v12549_v7 = vcombine.low %v1171_v60, %v1175_v61  ;;  %v1234_v58 = vld [vmem:[%s14002_s30 + $0x1c10] sm:$0xff] }
 0x4d0   : > { %10130 = vmatprep.mubr.bf16.mxu0 %v13560_v19  ;;  %10603 = vmatprep.mubr.bf16.mxu1 %v13560_v19  ;;  %v12558_v9 = vcombine.high %v1179_v4, %v1183_v5  ;;  %v1198_v19 = vld [vmem:[%s14002_s30 + $0x1af0] sm:$0xff]  ;;  %v1235_v60 = vld [vmem:[%s14002_s30 + $0x1c18] sm:$0xff] }
 0x4d1   : > { %v1238_v59 = vld [vmem:[%s14002_s30 + $0x1c30] sm:$0xff]  ;;  %v1239_v61 = vld [vmem:[%s14002_s30 + $0x1c38] sm:$0xff] }
 0x4d2   : > { %10101 = vmatpush1.bf16.msra.mxu0 %v12491_v13  ;;  %10574 = vmatpush1.bf16.msra.mxu1 %v12493_v14  ;;  %v1191_v13 = vld [vmem:[%s14002_s30 + $0x1ab8] sm:$0xff]  ;;  %v12555_v14 = vcombine.low %v1178_v2, %v1182_v3  ;;  %v1242_v2 = vld [vmem:[%s14002_s30 + $0x1c50] sm:$0xff] }
 0x4d3   : > { %10102 = vmatprep.subr.bf16.mxu0 %v12500_v15  ;;  %10575 = vmatprep.subr.bf16.mxu1 %v12502_v16  ;;  %v12557_v15 = vcombine.low %v1179_v4, %v1183_v5  ;;  %v12564_v16 = vcombine.high %v1186_v10, %v1190_v11  ;;  %v12566_v17 = vcombine.high %v1187_v12, %v1191_v13  ;;  %v1246_v3 = vld [vmem:[%s14002_s30 + $0x1c70] sm:$0xff]  ;;  %v1243_v4 = vld [vmem:[%s14002_s30 + $0x1c58] sm:$0xff] }
 0x4d4   : > { %v1247_v5 = vld [vmem:[%s14002_s30 + $0x1c78] sm:$0xff] }
 0x4d6   : > { %10103 = vmatpush1.bf16.msra.mxu0 %v12499_v22  ;;  %10576 = vmatpush1.bf16.msra.mxu1 %v12501_v23  ;;  %v12563_v22 = vcombine.low %v1186_v10, %v1190_v11  ;;  %v12565_v23 = vcombine.low %v1187_v12, %v1191_v13  ;;  %v1250_v10 = vld [vmem:[%s14002_s30 + $0x1c90] sm:$0xff]  ;;  %v1251_v13 = vld [vmem:[%s14002_s30 + $0x1c98] sm:$0xff] }
 0x4d7   : > { %10104 = vmatprep.subr.bf16.mxu0 %v12508_v24  ;;  %10577 = vmatprep.subr.bf16.mxu1 %v12510_v25  ;;  %v12572_v24 = vcombine.high %v1194_v18, %v1198_v19  ;;  %v12574_v25 = vcombine.high %v1195_v20, %v1199_v21  ;;  %v1254_v11 = vld [vmem:[%s14002_s30 + $0x1cb0] sm:$0xff] }
 0x4d8   : > { %v13561_v12 = vld [vmem:[%s14050_s21 + $0x30] ss:$176 sps:$4 sm:$0xff]  }
 0x4da   : > { %10105 = vmatpush1.bf16.msra.mxu0 %v12507_v30  ;;  %10578 = vmatpush1.bf16.msra.mxu1 %v12509_v31  ;;  %v12571_v30 = vcombine.low %v1194_v18, %v1198_v19  ;;  %v12573_v31 = vcombine.low %v1195_v20, %v1199_v21  ;;  %v1258_v19 = vld [vmem:[%s14002_s30 + $0x1cd0] sm:$0xff]  ;;  %v13562_v21 = vld [vmem:[%s14050_s21 + $0x3c] ss:$176 sps:$4 sm:$0xff]  }
 0x4db   : > { %10106 = vmatprep.subr.bf16.mxu0 %v12516_v32  ;;  %10579 = vmatprep.subr.bf16.mxu1 %v12518_v33  ;;  %v12580_v32 = vcombine.high %v1202_v26, %v1206_v27  ;;  %v12582_v33 = vcombine.high %v1203_v28, %v1207_v29  ;;  %v1262_v20 = vld [vmem:[%s14002_s30 + $0x1cf0] sm:$0xff] }
 0x4de   : > { %10107 = vmatpush1.bf16.msra.mxu0 %v12515_v38  ;;  %10580 = vmatpush1.bf16.msra.mxu1 %v12517_v39  ;;  %v12579_v38 = vcombine.low %v1202_v26, %v1206_v27  ;;  %v12581_v39 = vcombine.low %v1203_v28, %v1207_v29  ;;  %v12636_v26 = vcombine.high %v1258_v19, %v1262_v20  ;;  %v1266_v28 = vld [vmem:[%s14002_s30 + $0x1d10] sm:$0xff] }
 0x4df   : > { %10108 = vmatprep.subr.bf16.mxu0 %v12524_v40  ;;  %10581 = vmatprep.subr.bf16.mxu1 %v12526_v41  ;;  %v12588_v40 = vcombine.high %v1210_v34, %v1214_v35  ;;  %v12590_v41 = vcombine.high %v1211_v36, %v1215_v37  ;;  %v1270_v29 = vld [vmem:[%s14002_s30 + $0x1d30] sm:$0xff] }
 0x4e2   : > { %10109 = vmatpush1.bf16.msra.mxu0 %v12523_v46  ;;  %10582 = vmatpush1.bf16.msra.mxu1 %v12525_v47  ;;  %v12587_v46 = vcombine.low %v1210_v34, %v1214_v35  ;;  %v12589_v47 = vcombine.low %v1211_v36, %v1215_v37  ;;  %v12644_v34 = vcombine.high %v1266_v28, %v1270_v29  ;;  %v1274_v36 = vld [vmem:[%s14002_s30 + $0x1d50] sm:$0xff] }
 0x4e3   : > { %10110 = vmatprep.subr.bf16.mxu0 %v12532_v48  ;;  %10583 = vmatprep.subr.bf16.mxu1 %v12534_v49  ;;  %v12596_v48 = vcombine.high %v1218_v42, %v1222_v43  ;;  %v12598_v49 = vcombine.high %v1219_v44, %v1223_v45  ;;  %v1278_v37 = vld [vmem:[%s14002_s30 + $0x1d70] sm:$0xff] }
 0x4e6   : > { %10111 = vmatpush1.bf16.msra.mxu0 %v12531_v54  ;;  %10584 = vmatpush1.bf16.msra.mxu1 %v12533_v55  ;;  %v12595_v54 = vcombine.low %v1218_v42, %v1222_v43  ;;  %v12597_v55 = vcombine.low %v1219_v44, %v1223_v45  ;;  %v12652_v42 = vcombine.high %v1274_v36, %v1278_v37  ;;  %v1282_v44 = vld [vmem:[%s14002_s30 + $0x1d90] sm:$0xff] }
 0x4e7   : > { %10112 = vmatprep.subr.bf16.mxu0 %v12540_v56  ;;  %10585 = vmatprep.subr.bf16.mxu1 %v12542_v57  ;;  %v12604_v56 = vcombine.high %v1226_v50, %v1230_v51  ;;  %v12606_v57 = vcombine.high %v1227_v52, %v1231_v53  ;;  %v1286_v45 = vld [vmem:[%s14002_s30 + $0x1db0] sm:$0xff] }
 0x4ea   : > { %10113 = vmatpush1.bf16.msra.mxu0 %v12539_v62  ;;  %10586 = vmatpush1.bf16.msra.mxu1 %v12541_v63  ;;  %v12603_v62 = vcombine.low %v1226_v50, %v1230_v51  ;;  %v12605_v63 = vcombine.low %v1227_v52, %v1231_v53  ;;  %v12660_v50 = vcombine.high %v1282_v44, %v1286_v45  ;;  %v1290_v52 = vld [vmem:[%s14002_s30 + $0x1dd0] sm:$0xff] }
 0x4eb   : > { %10114 = vmatprep.subr.bf16.mxu0 %v12548_v0  ;;  %10587 = vmatprep.subr.bf16.mxu1 %v12550_v1  ;;  %v12612_v0 = vcombine.high %v1234_v58, %v1238_v59  ;;  %v12614_v1 = vcombine.high %v1235_v60, %v1239_v61  ;;  %v1294_v53 = vld [vmem:[%s14002_s30 + $0x1df0] sm:$0xff] }
 0x4ee   : > { %10115 = vmatpush1.bf16.msra.mxu0 %v12547_v6  ;;  %10588 = vmatpush1.bf16.msra.mxu1 %v12549_v7  ;;  %v12611_v6 = vcombine.low %v1234_v58, %v1238_v59  ;;  %v12613_v7 = vcombine.low %v1235_v60, %v1239_v61  ;;  %v12668_v58 = vcombine.high %v1290_v52, %v1294_v53  ;;  %v1298_v60 = vld [vmem:[%s14002_s30 + $0x1e10] sm:$0xff] }
 0x4ef   : > { %10116 = vmatprep.subr.bf16.mxu0 %v12556_v8  ;;  %10589 = vmatprep.subr.bf16.mxu1 %v12558_v9  ;;  %v12620_v8 = vcombine.high %v1242_v2, %v1246_v3  ;;  %v12622_v9 = vcombine.high %v1243_v4, %v1247_v5  ;;  %v1302_v61 = vld [vmem:[%s14002_s30 + $0x1e30] sm:$0xff] }
 0x4f2   : > { %10117 = vmatpush1.bf16.msra.mxu0 %v12555_v14  ;;  %10590 = vmatpush1.bf16.msra.mxu1 %v12557_v15  ;;  %v1255_v14 = vld [vmem:[%s14002_s30 + $0x1cb8] sm:$0xff]  ;;  %v12619_v15 = vcombine.low %v1242_v2, %v1246_v3  ;;  %v12676_v2 = vcombine.high %v1298_v60, %v1302_v61 }
 0x4f3   : > { %10118 = vmatprep.subr.bf16.mxu0 %v12564_v16  ;;  %10591 = vmatprep.subr.bf16.mxu1 %v12566_v17  ;;  %v12621_v16 = vcombine.low %v1243_v4, %v1247_v5  ;;  %v12628_v17 = vcombine.high %v1250_v10, %v1254_v11  ;;  %v12630_v18 = vcombine.high %v1251_v13, %v1255_v14  ;;  %v1306_v4 = vld [vmem:[%s14002_s30 + $0x1e50] sm:$0xff] }
 0x4f4   : > { %v1310_v5 = vld [vmem:[%s14002_s30 + $0x1e70] sm:$0xff] }
 0x4f6   : > { %10119 = vmatpush1.bf16.msra.mxu0 %v12563_v22  ;;  %10592 = vmatpush1.bf16.msra.mxu1 %v12565_v23  ;;  %v1259_v22 = vld [vmem:[%s14002_s30 + $0x1cd8] sm:$0xff] }
 0x4f7   : > { %10120 = vmatprep.subr.bf16.mxu0 %v12572_v24  ;;  %10593 = vmatprep.subr.bf16.mxu1 %v12574_v25  ;;  %v1263_v23 = vld [vmem:[%s14002_s30 + $0x1cf8] sm:$0xff]  ;;  %v12627_v24 = vcombine.low %v1250_v10, %v1254_v11  ;;  %v12629_v25 = vcombine.low %v1251_v13, %v1255_v14  ;;  %v12684_v10 = vcombine.high %v1306_v4, %v1310_v5  ;;  %v1318_v13 = vld [vmem:[%s14002_s30 + $0x1eb0] sm:$0xff] }
 0x4f8   : > { %v12638_v27 = vcombine.high %v1259_v22, %v1263_v23  ;;  %v1315_v14 = vld [vmem:[%s14002_s30 + $0x1e98] sm:$0xff] }
 0x4fa   : > { %10121 = vmatpush1.bf16.msra.mxu0 %v12571_v30  ;;  %10594 = vmatpush1.bf16.msra.mxu1 %v12573_v31  ;;  %v1267_v30 = vld [vmem:[%s14002_s30 + $0x1d18] sm:$0xff] }
 0x4fb   : > { %10122 = vmatprep.subr.bf16.mxu0 %v12580_v32  ;;  %10595 = vmatprep.subr.bf16.mxu1 %v12582_v33  ;;  %v1271_v31 = vld [vmem:[%s14002_s30 + $0x1d38] sm:$0xff]  ;;  %v12635_v32 = vcombine.low %v1258_v19, %v1262_v20  ;;  %v12637_v33 = vcombine.low %v1259_v22, %v1263_v23  ;;  %v1322_v20 = vld [vmem:[%s14002_s30 + $0x1ed0] sm:$0xff] }
 0x4fc   : > { %v12646_v35 = vcombine.high %v1267_v30, %v1271_v31  ;;  %v1323_v22 = vld [vmem:[%s14002_s30 + $0x1ed8] sm:$0xff] }
 0x4fd   : > { %v1327_v23 = vld [vmem:[%s14002_s30 + $0x1ef8] sm:$0xff] }
 0x4fe   : > { %10123 = vmatpush1.bf16.msra.mxu0 %v12579_v38  ;;  %10596 = vmatpush1.bf16.msra.mxu1 %v12581_v39  ;;  %v1275_v38 = vld [vmem:[%s14002_s30 + $0x1d58] sm:$0xff] }
 0x4ff   : > { %10124 = vmatprep.subr.bf16.mxu0 %v12588_v40  ;;  %10597 = vmatprep.subr.bf16.mxu1 %v12590_v41  ;;  %v1279_v39 = vld [vmem:[%s14002_s30 + $0x1d78] sm:$0xff]  ;;  %v12643_v40 = vcombine.low %v1266_v28, %v1270_v29  ;;  %v12645_v41 = vcombine.low %v1267_v30, %v1271_v31  ;;  %v1330_v28 = vld [vmem:[%s14002_s30 + $0x1f10] sm:$0xff] }
 0x500   : > { %v12654_v43 = vcombine.high %v1275_v38, %v1279_v39  ;;  %v1334_v29 = vld [vmem:[%s14002_s30 + $0x1f30] sm:$0xff]  ;;  %v1331_v30 = vld [vmem:[%s14002_s30 + $0x1f18] sm:$0xff] }
 0x501   : > { %v1335_v31 = vld [vmem:[%s14002_s30 + $0x1f38] sm:$0xff] }
 0x502   : > { %10125 = vmatpush1.bf16.msra.mxu0 %v12587_v46  ;;  %10598 = vmatpush1.bf16.msra.mxu1 %v12589_v47  ;;  %v1283_v46 = vld [vmem:[%s14002_s30 + $0x1d98] sm:$0xff] }
 0x503   : > { %10126 = vmatprep.subr.bf16.mxu0 %v12596_v48  ;;  %10599 = vmatprep.subr.bf16.mxu1 %v12598_v49  ;;  %v1287_v47 = vld [vmem:[%s14002_s30 + $0x1db8] sm:$0xff]  ;;  %v12651_v48 = vcombine.low %v1274_v36, %v1278_v37  ;;  %v12653_v49 = vcombine.low %v1275_v38, %v1279_v39  ;;  %v1338_v36 = vld [vmem:[%s14002_s30 + $0x1f50] sm:$0xff] }
 0x504   : > { %v12662_v51 = vcombine.high %v1283_v46, %v1287_v47  ;;  %v1342_v37 = vld [vmem:[%s14002_s30 + $0x1f70] sm:$0xff]  ;;  %v1339_v38 = vld [vmem:[%s14002_s30 + $0x1f58] sm:$0xff] }
 0x505   : > { %v1343_v39 = vld [vmem:[%s14002_s30 + $0x1f78] sm:$0xff] }
 0x506   : > { %10127 = vmatpush1.bf16.msra.mxu0 %v12595_v54  ;;  %10600 = vmatpush1.bf16.msra.mxu1 %v12597_v55  ;;  %v1291_v54 = vld [vmem:[%s14002_s30 + $0x1dd8] sm:$0xff] }
 0x507   : > { %10128 = vmatprep.subr.bf16.mxu0 %v12604_v56  ;;  %10601 = vmatprep.subr.bf16.mxu1 %v12606_v57  ;;  %v1295_v55 = vld [vmem:[%s14002_s30 + $0x1df8] sm:$0xff]  ;;  %v12659_v56 = vcombine.low %v1282_v44, %v1286_v45  ;;  %v12661_v57 = vcombine.low %v1283_v46, %v1287_v47  ;;  %v1346_v44 = vld [vmem:[%s14002_s30 + $0x1f90] sm:$0xff] }
 0x508   : > { %v12670_v59 = vcombine.high %v1291_v54, %v1295_v55  ;;  %v1350_v45 = vld [vmem:[%s14002_s30 + $0x1fb0] sm:$0xff]  ;;  %v1347_v46 = vld [vmem:[%s14002_s30 + $0x1f98] sm:$0xff] }
 0x509   : > { %v1351_v47 = vld [vmem:[%s14002_s30 + $0x1fb8] sm:$0xff] }
 0x50a   : > { %10129 = vmatpush1.bf16.msra.mxu0 %v12603_v62  ;;  %10602 = vmatpush1.bf16.msra.mxu1 %v12605_v63  ;;  %v1299_v62 = vld [vmem:[%s14002_s30 + $0x1e18] sm:$0xff] }
 0x50b   : > { %10141 = vmatprep.subr.bf16.mxu0 %v12612_v0  ;;  %10614 = vmatprep.subr.bf16.mxu1 %v12614_v1  ;;  %v1303_v63 = vld [vmem:[%s14002_s30 + $0x1e38] sm:$0xff]  ;;  %v12667_v0 = vcombine.low %v1290_v52, %v1294_v53  ;;  %v12669_v1 = vcombine.low %v1291_v54, %v1295_v55  ;;  %v1354_v52 = vld [vmem:[%s14002_s30 + $0x1fd0] sm:$0xff] }
 0x50c   : > { %v12678_v3 = vcombine.high %v1299_v62, %v1303_v63  ;;  %v1358_v53 = vld [vmem:[%s14002_s30 + $0x1ff0] sm:$0xff]  ;;  %v1355_v54 = vld [vmem:[%s14002_s30 + $0x1fd8] sm:$0xff] }
 0x50d   : > { %10131 = vmatmul.mubr.bf16.vlgmr.msra.gmra.mrb[4].mxu0 %v13561_v12  ;;  %10604 = vmatmul.mubr.bf16.vlgmr.msra.gmra.mrb[4].mxu1 %v13561_v12  ;;  %v1314_v12 = vld [vmem:[%s14002_s30 + $0x1e90] sm:$0xff]  ;;  %v1359_v55 = vld [vmem:[%s14002_s30 + $0x1ff8] sm:$0xff] }
 0x50e   : > { %10142 = vmatpush1.bf16.msra.mxu0 %v12611_v6  ;;  %10615 = vmatpush1.bf16.msra.mxu1 %v12613_v7  ;;  %v1307_v6 = vld [vmem:[%s14002_s30 + $0x1e58] sm:$0xff] }
 0x50f   : > { %10143 = vmatprep.subr.bf16.mxu0 %v12620_v8  ;;  %10616 = vmatprep.subr.bf16.mxu1 %v12622_v9  ;;  %v1311_v7 = vld [vmem:[%s14002_s30 + $0x1e78] sm:$0xff]  ;;  %v12675_v8 = vcombine.low %v1298_v60, %v1302_v61  ;;  %v12677_v9 = vcombine.low %v1299_v62, %v1303_v63  ;;  %v1362_v60 = vld [vmem:[%s14002_s30 + $0x2010] sm:$0xff] }
 0x510   : > { %10173 = vmatprep.mubr.bf16.mxu0 %v13562_v21  ;;  %10646 = vmatprep.mubr.bf16.mxu1 %v13562_v21  ;;  %v12686_v11 = vcombine.high %v1307_v6, %v1311_v7  ;;  %v1326_v21 = vld [vmem:[%s14002_s30 + $0x1ef0] sm:$0xff]  ;;  %v1363_v62 = vld [vmem:[%s14002_s30 + $0x2018] sm:$0xff] }
 0x511   : > { %v1366_v61 = vld [vmem:[%s14002_s30 + $0x2030] sm:$0xff]  ;;  %v1367_v63 = vld [vmem:[%s14002_s30 + $0x2038] sm:$0xff] }
 0x512   : > { %10144 = vmatpush1.bf16.msra.mxu0 %v12619_v15  ;;  %10617 = vmatpush1.bf16.msra.mxu1 %v12621_v16  ;;  %v1319_v15 = vld [vmem:[%s14002_s30 + $0x1eb8] sm:$0xff]  ;;  %v12683_v16 = vcombine.low %v1306_v4, %v1310_v5  ;;  %v1370_v4 = vld [vmem:[%s14002_s30 + $0x2050] sm:$0xff] }
 0x513   : > { %10145 = vmatprep.subr.bf16.mxu0 %v12628_v17  ;;  %10618 = vmatprep.subr.bf16.mxu1 %v12630_v18  ;;  %v12685_v17 = vcombine.low %v1307_v6, %v1311_v7  ;;  %v12692_v18 = vcombine.high %v1314_v12, %v1318_v13  ;;  %v12694_v19 = vcombine.high %v1315_v14, %v1319_v15  ;;  %v1374_v5 = vld [vmem:[%s14002_s30 + $0x2070] sm:$0xff]  ;;  %v1371_v6 = vld [vmem:[%s14002_s30 + $0x2058] sm:$0xff] }
 0x514   : > { %v1375_v7 = vld [vmem:[%s14002_s30 + $0x2078] sm:$0xff] }
 0x516   : > { %10146 = vmatpush1.bf16.msra.mxu0 %v12627_v24  ;;  %10619 = vmatpush1.bf16.msra.mxu1 %v12629_v25  ;;  %v12691_v24 = vcombine.low %v1314_v12, %v1318_v13  ;;  %v12693_v25 = vcombine.low %v1315_v14, %v1319_v15  ;;  %v1378_v12 = vld [vmem:[%s14002_s30 + $0x2090] sm:$0xff]  ;;  %v13563_v14 = vld [vmem:[%s14050_s21 + $0x38] ss:$176 sps:$4 sm:$0xff]  }
 0x517   : > { %10147 = vmatprep.subr.bf16.mxu0 %v12636_v26  ;;  %10620 = vmatprep.subr.bf16.mxu1 %v12638_v27  ;;  %v12700_v26 = vcombine.high %v1322_v20, %v1326_v21  ;;  %v12702_v27 = vcombine.high %v1323_v22, %v1327_v23  ;;  %v1382_v13 = vld [vmem:[%s14002_s30 + $0x20b0] sm:$0xff]  ;;  %v1379_v15 = vld [vmem:[%s14002_s30 + $0x2098] sm:$0xff] }
 0x51a   : > { %10148 = vmatpush1.bf16.msra.mxu0 %v12635_v32  ;;  %10621 = vmatpush1.bf16.msra.mxu1 %v12637_v33  ;;  %v12699_v32 = vcombine.low %v1322_v20, %v1326_v21  ;;  %v12701_v33 = vcombine.low %v1323_v22, %v1327_v23  ;;  %v1386_v21 = vld [vmem:[%s14002_s30 + $0x20d0] sm:$0xff] }
 0x51b   : > { %10149 = vmatprep.subr.bf16.mxu0 %v12644_v34  ;;  %10622 = vmatprep.subr.bf16.mxu1 %v12646_v35  ;;  %v12708_v34 = vcombine.high %v1330_v28, %v1334_v29  ;;  %v12710_v35 = vcombine.high %v1331_v30, %v1335_v31  ;;  %v1390_v22 = vld [vmem:[%s14002_s30 + $0x20f0] sm:$0xff] }
 0x51c   : > { %v13564_v23 = vld [vmem:[%s14050_s21 + $0x44] ss:$176 sps:$4 sm:$0xff]  }
 0x51e   : > { %10150 = vmatpush1.bf16.msra.mxu0 %v12643_v40  ;;  %10623 = vmatpush1.bf16.msra.mxu1 %v12645_v41  ;;  %v12707_v40 = vcombine.low %v1330_v28, %v1334_v29  ;;  %v12709_v41 = vcombine.low %v1331_v30, %v1335_v31  ;;  %v12764_v28 = vcombine.high %v1386_v21, %v1390_v22  ;;  %v1394_v30 = vld [vmem:[%s14002_s30 + $0x2110] sm:$0xff] }
 0x51f   : > { %10151 = vmatprep.subr.bf16.mxu0 %v12652_v42  ;;  %10624 = vmatprep.subr.bf16.mxu1 %v12654_v43  ;;  %v12716_v42 = vcombine.high %v1338_v36, %v1342_v37  ;;  %v12718_v43 = vcombine.high %v1339_v38, %v1343_v39  ;;  %v1398_v31 = vld [vmem:[%s14002_s30 + $0x2130] sm:$0xff] }
 0x522   : > { %10152 = vmatpush1.bf16.msra.mxu0 %v12651_v48  ;;  %10625 = vmatpush1.bf16.msra.mxu1 %v12653_v49  ;;  %v12715_v48 = vcombine.low %v1338_v36, %v1342_v37  ;;  %v12717_v49 = vcombine.low %v1339_v38, %v1343_v39  ;;  %v12772_v36 = vcombine.high %v1394_v30, %v1398_v31  ;;  %v1402_v38 = vld [vmem:[%s14002_s30 + $0x2150] sm:$0xff] }
 0x523   : > { %10153 = vmatprep.subr.bf16.mxu0 %v12660_v50  ;;  %10626 = vmatprep.subr.bf16.mxu1 %v12662_v51  ;;  %v12724_v50 = vcombine.high %v1346_v44, %v1350_v45  ;;  %v12726_v51 = vcombine.high %v1347_v46, %v1351_v47  ;;  %v1406_v39 = vld [vmem:[%s14002_s30 + $0x2170] sm:$0xff] }
 0x526   : > { %10154 = vmatpush1.bf16.msra.mxu0 %v12659_v56  ;;  %10627 = vmatpush1.bf16.msra.mxu1 %v12661_v57  ;;  %v12723_v56 = vcombine.low %v1346_v44, %v1350_v45  ;;  %v12725_v57 = vcombine.low %v1347_v46, %v1351_v47  ;;  %v12780_v44 = vcombine.high %v1402_v38, %v1406_v39  ;;  %v1410_v46 = vld [vmem:[%s14002_s30 + $0x2190] sm:$0xff] }
 0x527   : > { %10155 = vmatprep.subr.bf16.mxu0 %v12668_v58  ;;  %10628 = vmatprep.subr.bf16.mxu1 %v12670_v59  ;;  %v12732_v58 = vcombine.high %v1354_v52, %v1358_v53  ;;  %v12734_v59 = vcombine.high %v1355_v54, %v1359_v55  ;;  %v1414_v47 = vld [vmem:[%s14002_s30 + $0x21b0] sm:$0xff] }
 0x52a   : > { %10156 = vmatpush1.bf16.msra.mxu0 %v12667_v0  ;;  %10629 = vmatpush1.bf16.msra.mxu1 %v12669_v1  ;;  %v12731_v0 = vcombine.low %v1354_v52, %v1358_v53  ;;  %v12733_v1 = vcombine.low %v1355_v54, %v1359_v55  ;;  %v12788_v52 = vcombine.high %v1410_v46, %v1414_v47  ;;  %v1418_v54 = vld [vmem:[%s14002_s30 + $0x21d0] sm:$0xff] }
 0x52b   : > { %10157 = vmatprep.subr.bf16.mxu0 %v12676_v2  ;;  %10630 = vmatprep.subr.bf16.mxu1 %v12678_v3  ;;  %v12740_v2 = vcombine.high %v1362_v60, %v1366_v61  ;;  %v12742_v3 = vcombine.high %v1363_v62, %v1367_v63  ;;  %v1422_v55 = vld [vmem:[%s14002_s30 + $0x21f0] sm:$0xff] }
 0x52e   : > { %10158 = vmatpush1.bf16.msra.mxu0 %v12675_v8  ;;  %10631 = vmatpush1.bf16.msra.mxu1 %v12677_v9  ;;  %v12739_v8 = vcombine.low %v1362_v60, %v1366_v61  ;;  %v12741_v9 = vcombine.low %v1363_v62, %v1367_v63  ;;  %v12796_v60 = vcombine.high %v1418_v54, %v1422_v55  ;;  %v1426_v62 = vld [vmem:[%s14002_s30 + $0x2210] sm:$0xff] }
 0x52f   : > { %10159 = vmatprep.subr.bf16.mxu0 %v12684_v10  ;;  %10632 = vmatprep.subr.bf16.mxu1 %v12686_v11  ;;  %v12748_v10 = vcombine.high %v1370_v4, %v1374_v5  ;;  %v12750_v11 = vcombine.high %v1371_v6, %v1375_v7  ;;  %v1430_v63 = vld [vmem:[%s14002_s30 + $0x2230] sm:$0xff] }
 0x532   : > { %10160 = vmatpush1.bf16.msra.mxu0 %v12683_v16  ;;  %10633 = vmatpush1.bf16.msra.mxu1 %v12685_v17  ;;  %v1383_v16 = vld [vmem:[%s14002_s30 + $0x20b8] sm:$0xff]  ;;  %v12747_v17 = vcombine.low %v1370_v4, %v1374_v5  ;;  %v12804_v4 = vcombine.high %v1426_v62, %v1430_v63 }
 0x533   : > { %10161 = vmatprep.subr.bf16.mxu0 %v12692_v18  ;;  %10634 = vmatprep.subr.bf16.mxu1 %v12694_v19  ;;  %v12749_v18 = vcombine.low %v1371_v6, %v1375_v7  ;;  %v12756_v19 = vcombine.high %v1378_v12, %v1382_v13  ;;  %v12758_v20 = vcombine.high %v1379_v15, %v1383_v16  ;;  %v1434_v6 = vld [vmem:[%s14002_s30 + $0x2250] sm:$0xff] }
 0x534   : > { %v1438_v7 = vld [vmem:[%s14002_s30 + $0x2270] sm:$0xff] }
 0x536   : > { %10162 = vmatpush1.bf16.msra.mxu0 %v12691_v24  ;;  %10635 = vmatpush1.bf16.msra.mxu1 %v12693_v25  ;;  %v1387_v24 = vld [vmem:[%s14002_s30 + $0x20d8] sm:$0xff] }
 0x537   : > { %10163 = vmatprep.subr.bf16.mxu0 %v12700_v26  ;;  %10636 = vmatprep.subr.bf16.mxu1 %v12702_v27  ;;  %v1391_v25 = vld [vmem:[%s14002_s30 + $0x20f8] sm:$0xff]  ;;  %v12755_v26 = vcombine.low %v1378_v12, %v1382_v13  ;;  %v12757_v27 = vcombine.low %v1379_v15, %v1383_v16  ;;  %v12812_v12 = vcombine.high %v1434_v6, %v1438_v7  ;;  %v1446_v15 = vld [vmem:[%s14002_s30 + $0x22b0] sm:$0xff] }
 0x538   : > { %v12766_v29 = vcombine.high %v1387_v24, %v1391_v25  ;;  %v1443_v16 = vld [vmem:[%s14002_s30 + $0x2298] sm:$0xff] }
 0x53a   : > { %10164 = vmatpush1.bf16.msra.mxu0 %v12699_v32  ;;  %10637 = vmatpush1.bf16.msra.mxu1 %v12701_v33  ;;  %v1395_v32 = vld [vmem:[%s14002_s30 + $0x2118] sm:$0xff] }
 0x53b   : > { %10165 = vmatprep.subr.bf16.mxu0 %v12708_v34  ;;  %10638 = vmatprep.subr.bf16.mxu1 %v12710_v35  ;;  %v1399_v33 = vld [vmem:[%s14002_s30 + $0x2138] sm:$0xff]  ;;  %v12763_v34 = vcombine.low %v1386_v21, %v1390_v22  ;;  %v12765_v35 = vcombine.low %v1387_v24, %v1391_v25  ;;  %v1450_v22 = vld [vmem:[%s14002_s30 + $0x22d0] sm:$0xff] }
 0x53c   : > { %v12774_v37 = vcombine.high %v1395_v32, %v1399_v33  ;;  %v1451_v24 = vld [vmem:[%s14002_s30 + $0x22d8] sm:$0xff] }
 0x53d   : > { %v1455_v25 = vld [vmem:[%s14002_s30 + $0x22f8] sm:$0xff] }
 0x53e   : > { %10166 = vmatpush1.bf16.msra.mxu0 %v12707_v40  ;;  %10639 = vmatpush1.bf16.msra.mxu1 %v12709_v41  ;;  %v1403_v40 = vld [vmem:[%s14002_s30 + $0x2158] sm:$0xff] }
 0x53f   : > { %10167 = vmatprep.subr.bf16.mxu0 %v12716_v42  ;;  %10640 = vmatprep.subr.bf16.mxu1 %v12718_v43  ;;  %v1407_v41 = vld [vmem:[%s14002_s30 + $0x2178] sm:$0xff]  ;;  %v12771_v42 = vcombine.low %v1394_v30, %v1398_v31  ;;  %v12773_v43 = vcombine.low %v1395_v32, %v1399_v33  ;;  %v1458_v30 = vld [vmem:[%s14002_s30 + $0x2310] sm:$0xff] }
 0x540   : > { %v12782_v45 = vcombine.high %v1403_v40, %v1407_v41  ;;  %v1462_v31 = vld [vmem:[%s14002_s30 + $0x2330] sm:$0xff]  ;;  %v1459_v32 = vld [vmem:[%s14002_s30 + $0x2318] sm:$0xff] }
 0x541   : > { %v1463_v33 = vld [vmem:[%s14002_s30 + $0x2338] sm:$0xff] }
 0x542   : > { %10168 = vmatpush1.bf16.msra.mxu0 %v12715_v48  ;;  %10641 = vmatpush1.bf16.msra.mxu1 %v12717_v49  ;;  %v1411_v48 = vld [vmem:[%s14002_s30 + $0x2198] sm:$0xff] }
 0x543   : > { %10169 = vmatprep.subr.bf16.mxu0 %v12724_v50  ;;  %10642 = vmatprep.subr.bf16.mxu1 %v12726_v51  ;;  %v1415_v49 = vld [vmem:[%s14002_s30 + $0x21b8] sm:$0xff]  ;;  %v12779_v50 = vcombine.low %v1402_v38, %v1406_v39  ;;  %v12781_v51 = vcombine.low %v1403_v40, %v1407_v41  ;;  %v1466_v38 = vld [vmem:[%s14002_s30 + $0x2350] sm:$0xff] }
 0x544   : > { %v12790_v53 = vcombine.high %v1411_v48, %v1415_v49  ;;  %v1470_v39 = vld [vmem:[%s14002_s30 + $0x2370] sm:$0xff]  ;;  %v1467_v40 = vld [vmem:[%s14002_s30 + $0x2358] sm:$0xff] }
 0x545   : > { %v1471_v41 = vld [vmem:[%s14002_s30 + $0x2378] sm:$0xff] }
 0x546   : > { %10170 = vmatpush1.bf16.msra.mxu0 %v12723_v56  ;;  %10643 = vmatpush1.bf16.msra.mxu1 %v12725_v57  ;;  %v1419_v56 = vld [vmem:[%s14002_s30 + $0x21d8] sm:$0xff] }
 0x547   : > { %10171 = vmatprep.subr.bf16.mxu0 %v12732_v58  ;;  %10644 = vmatprep.subr.bf16.mxu1 %v12734_v59  ;;  %v1423_v57 = vld [vmem:[%s14002_s30 + $0x21f8] sm:$0xff]  ;;  %v12787_v58 = vcombine.low %v1410_v46, %v1414_v47  ;;  %v12789_v59 = vcombine.low %v1411_v48, %v1415_v49  ;;  %v1474_v46 = vld [vmem:[%s14002_s30 + $0x2390] sm:$0xff] }
 0x548   : > { %v12798_v61 = vcombine.high %v1419_v56, %v1423_v57  ;;  %v1478_v47 = vld [vmem:[%s14002_s30 + $0x23b0] sm:$0xff]  ;;  %v1475_v48 = vld [vmem:[%s14002_s30 + $0x2398] sm:$0xff] }
 0x549   : > { %v1479_v49 = vld [vmem:[%s14002_s30 + $0x23b8] sm:$0xff] }
 0x54a   : > { %10172 = vmatpush1.bf16.msra.mxu0 %v12731_v0  ;;  %10645 = vmatpush1.bf16.msra.mxu1 %v12733_v1  ;;  %v1427_v0 = vld [vmem:[%s14002_s30 + $0x2218] sm:$0xff] }
 0x54b   : > { %10184 = vmatprep.subr.bf16.mxu0 %v12740_v2  ;;  %10657 = vmatprep.subr.bf16.mxu1 %v12742_v3  ;;  %v1431_v1 = vld [vmem:[%s14002_s30 + $0x2238] sm:$0xff]  ;;  %v12795_v2 = vcombine.low %v1418_v54, %v1422_v55  ;;  %v12797_v3 = vcombine.low %v1419_v56, %v1423_v57  ;;  %v1482_v54 = vld [vmem:[%s14002_s30 + $0x23d0] sm:$0xff] }
 0x54c   : > { %v12806_v5 = vcombine.high %v1427_v0, %v1431_v1  ;;  %v1486_v55 = vld [vmem:[%s14002_s30 + $0x23f0] sm:$0xff]  ;;  %v1483_v56 = vld [vmem:[%s14002_s30 + $0x23d8] sm:$0xff] }
 0x54d   : > { %10174 = vmatmul.mubr.bf16.vlgmr.msra.gmra.mrb[4].mxu0 %v13563_v14  ;;  %10647 = vmatmul.mubr.bf16.vlgmr.msra.gmra.mrb[4].mxu1 %v13563_v14  ;;  %v1442_v14 = vld [vmem:[%s14002_s30 + $0x2290] sm:$0xff]  ;;  %v1487_v57 = vld [vmem:[%s14002_s30 + $0x23f8] sm:$0xff] }
 0x54e   : > { %10185 = vmatpush1.bf16.msra.mxu0 %v12739_v8  ;;  %10658 = vmatpush1.bf16.msra.mxu1 %v12741_v9  ;;  %v1435_v8 = vld [vmem:[%s14002_s30 + $0x2258] sm:$0xff] }
 0x54f   : > { %10186 = vmatprep.subr.bf16.mxu0 %v12748_v10  ;;  %10659 = vmatprep.subr.bf16.mxu1 %v12750_v11  ;;  %v1439_v9 = vld [vmem:[%s14002_s30 + $0x2278] sm:$0xff]  ;;  %v12803_v10 = vcombine.low %v1426_v62, %v1430_v63  ;;  %v12805_v11 = vcombine.low %v1427_v0, %v1431_v1  ;;  %v1490_v62 = vld [vmem:[%s14002_s30 + $0x2410] sm:$0xff] }
 0x550   : > { %10216 = vmatprep.mubr.bf16.mxu0 %v13564_v23  ;;  %10689 = vmatprep.mubr.bf16.mxu1 %v13564_v23  ;;  %v12814_v13 = vcombine.high %v1435_v8, %v1439_v9  ;;  %v1454_v23 = vld [vmem:[%s14002_s30 + $0x22f0] sm:$0xff]  ;;  %v1491_v0 = vld [vmem:[%s14002_s30 + $0x2418] sm:$0xff] }
 0x551   : > { %v1494_v63 = vld [vmem:[%s14002_s30 + $0x2430] sm:$0xff]  ;;  %v1495_v1 = vld [vmem:[%s14002_s30 + $0x2438] sm:$0xff] }
 0x552   : > { %10187 = vmatpush1.bf16.msra.mxu0 %v12747_v17  ;;  %10660 = vmatpush1.bf16.msra.mxu1 %v12749_v18  ;;  %v1447_v17 = vld [vmem:[%s14002_s30 + $0x22b8] sm:$0xff]  ;;  %v12811_v18 = vcombine.low %v1434_v6, %v1438_v7  ;;  %v1498_v6 = vld [vmem:[%s14002_s30 + $0x2450] sm:$0xff] }
 0x553   : > { %10188 = vmatprep.subr.bf16.mxu0 %v12756_v19  ;;  %10661 = vmatprep.subr.bf16.mxu1 %v12758_v20  ;;  %v12813_v19 = vcombine.low %v1435_v8, %v1439_v9  ;;  %v12820_v20 = vcombine.high %v1442_v14, %v1446_v15  ;;  %v12822_v21 = vcombine.high %v1443_v16, %v1447_v17  ;;  %v1502_v7 = vld [vmem:[%s14002_s30 + $0x2470] sm:$0xff]  ;;  %v1499_v8 = vld [vmem:[%s14002_s30 + $0x2458] sm:$0xff] }
 0x554   : > { %v1503_v9 = vld [vmem:[%s14002_s30 + $0x2478] sm:$0xff] }
 0x556   : > { %10189 = vmatpush1.bf16.msra.mxu0 %v12755_v26  ;;  %10662 = vmatpush1.bf16.msra.mxu1 %v12757_v27  ;;  %v12819_v26 = vcombine.low %v1442_v14, %v1446_v15  ;;  %v12821_v27 = vcombine.low %v1443_v16, %v1447_v17  ;;  %v1506_v14 = vld [vmem:[%s14002_s30 + $0x2490] sm:$0xff]  ;;  %v1507_v17 = vld [vmem:[%s14002_s30 + $0x2498] sm:$0xff] }
 0x557   : > { %10190 = vmatprep.subr.bf16.mxu0 %v12764_v28  ;;  %10663 = vmatprep.subr.bf16.mxu1 %v12766_v29  ;;  %v12828_v28 = vcombine.high %v1450_v22, %v1454_v23  ;;  %v12830_v29 = vcombine.high %v1451_v24, %v1455_v25  ;;  %v1510_v15 = vld [vmem:[%s14002_s30 + $0x24b0] sm:$0xff] }
 0x558   : > { %v13565_v16 = vld [vmem:[%s14050_s21 + $0x40] ss:$176 sps:$4 sm:$0xff]  }
 0x55a   : > { %10191 = vmatpush1.bf16.msra.mxu0 %v12763_v34  ;;  %10664 = vmatpush1.bf16.msra.mxu1 %v12765_v35  ;;  %v12827_v34 = vcombine.low %v1450_v22, %v1454_v23  ;;  %v12829_v35 = vcombine.low %v1451_v24, %v1455_v25  ;;  %v1514_v23 = vld [vmem:[%s14002_s30 + $0x24d0] sm:$0xff]  ;;  %v13566_v25 = vld [vmem:[%s14050_s21 + $0x4c] ss:$176 sps:$4 sm:$0xff]  }
 0x55b   : > { %10192 = vmatprep.subr.bf16.mxu0 %v12772_v36  ;;  %10665 = vmatprep.subr.bf16.mxu1 %v12774_v37  ;;  %v12836_v36 = vcombine.high %v1458_v30, %v1462_v31  ;;  %v12838_v37 = vcombine.high %v1459_v32, %v1463_v33  ;;  %v1518_v24 = vld [vmem:[%s14002_s30 + $0x24f0] sm:$0xff] }
 0x55e   : > { %10193 = vmatpush1.bf16.msra.mxu0 %v12771_v42  ;;  %10666 = vmatpush1.bf16.msra.mxu1 %v12773_v43  ;;  %v12835_v42 = vcombine.low %v1458_v30, %v1462_v31  ;;  %v12837_v43 = vcombine.low %v1459_v32, %v1463_v33  ;;  %v12892_v30 = vcombine.high %v1514_v23, %v1518_v24  ;;  %v1522_v32 = vld [vmem:[%s14002_s30 + $0x2510] sm:$0xff] }
 0x55f   : > { %10194 = vmatprep.subr.bf16.mxu0 %v12780_v44  ;;  %10667 = vmatprep.subr.bf16.mxu1 %v12782_v45  ;;  %v12844_v44 = vcombine.high %v1466_v38, %v1470_v39  ;;  %v12846_v45 = vcombine.high %v1467_v40, %v1471_v41  ;;  %v1526_v33 = vld [vmem:[%s14002_s30 + $0x2530] sm:$0xff] }
 0x562   : > { %10195 = vmatpush1.bf16.msra.mxu0 %v12779_v50  ;;  %10668 = vmatpush1.bf16.msra.mxu1 %v12781_v51  ;;  %v12843_v50 = vcombine.low %v1466_v38, %v1470_v39  ;;  %v12845_v51 = vcombine.low %v1467_v40, %v1471_v41  ;;  %v12900_v38 = vcombine.high %v1522_v32, %v1526_v33  ;;  %v1530_v40 = vld [vmem:[%s14002_s30 + $0x2550] sm:$0xff] }
 0x563   : > { %10196 = vmatprep.subr.bf16.mxu0 %v12788_v52  ;;  %10669 = vmatprep.subr.bf16.mxu1 %v12790_v53  ;;  %v12852_v52 = vcombine.high %v1474_v46, %v1478_v47  ;;  %v12854_v53 = vcombine.high %v1475_v48, %v1479_v49  ;;  %v1534_v41 = vld [vmem:[%s14002_s30 + $0x2570] sm:$0xff] }
 0x566   : > { %10197 = vmatpush1.bf16.msra.mxu0 %v12787_v58  ;;  %10670 = vmatpush1.bf16.msra.mxu1 %v12789_v59  ;;  %v12851_v58 = vcombine.low %v1474_v46, %v1478_v47  ;;  %v12853_v59 = vcombine.low %v1475_v48, %v1479_v49  ;;  %v12908_v46 = vcombine.high %v1530_v40, %v1534_v41  ;;  %v1538_v48 = vld [vmem:[%s14002_s30 + $0x2590] sm:$0xff] }
 0x567   : > { %10198 = vmatprep.subr.bf16.mxu0 %v12796_v60  ;;  %10671 = vmatprep.subr.bf16.mxu1 %v12798_v61  ;;  %v12860_v60 = vcombine.high %v1482_v54, %v1486_v55  ;;  %v12862_v61 = vcombine.high %v1483_v56, %v1487_v57  ;;  %v1542_v49 = vld [vmem:[%s14002_s30 + $0x25b0] sm:$0xff] }
 0x56a   : > { %10199 = vmatpush1.bf16.msra.mxu0 %v12795_v2  ;;  %10672 = vmatpush1.bf16.msra.mxu1 %v12797_v3  ;;  %v12859_v2 = vcombine.low %v1482_v54, %v1486_v55  ;;  %v12861_v3 = vcombine.low %v1483_v56, %v1487_v57  ;;  %v12916_v54 = vcombine.high %v1538_v48, %v1542_v49  ;;  %v1546_v56 = vld [vmem:[%s14002_s30 + $0x25d0] sm:$0xff] }
 0x56b   : > { %10200 = vmatprep.subr.bf16.mxu0 %v12804_v4  ;;  %10673 = vmatprep.subr.bf16.mxu1 %v12806_v5  ;;  %v12868_v4 = vcombine.high %v1490_v62, %v1494_v63  ;;  %v12870_v5 = vcombine.high %v1491_v0, %v1495_v1  ;;  %v1550_v57 = vld [vmem:[%s14002_s30 + $0x25f0] sm:$0xff] }
 0x56e   : > { %10201 = vmatpush1.bf16.msra.mxu0 %v12803_v10  ;;  %10674 = vmatpush1.bf16.msra.mxu1 %v12805_v11  ;;  %v12867_v10 = vcombine.low %v1490_v62, %v1494_v63  ;;  %v12869_v11 = vcombine.low %v1491_v0, %v1495_v1  ;;  %v12924_v62 = vcombine.high %v1546_v56, %v1550_v57  ;;  %v1554_v0 = vld [vmem:[%s14002_s30 + $0x2610] sm:$0xff] }
 0x56f   : > { %10202 = vmatprep.subr.bf16.mxu0 %v12812_v12  ;;  %10675 = vmatprep.subr.bf16.mxu1 %v12814_v13  ;;  %v12876_v12 = vcombine.high %v1498_v6, %v1502_v7  ;;  %v12878_v13 = vcombine.high %v1499_v8, %v1503_v9  ;;  %v1558_v1 = vld [vmem:[%s14002_s30 + $0x2630] sm:$0xff] }
 0x572   : > { %10203 = vmatpush1.bf16.msra.mxu0 %v12811_v18  ;;  %10676 = vmatpush1.bf16.msra.mxu1 %v12813_v19  ;;  %v1511_v18 = vld [vmem:[%s14002_s30 + $0x24b8] sm:$0xff]  ;;  %v12875_v19 = vcombine.low %v1498_v6, %v1502_v7  ;;  %v12932_v6 = vcombine.high %v1554_v0, %v1558_v1 }
 0x573   : > { %10204 = vmatprep.subr.bf16.mxu0 %v12820_v20  ;;  %10677 = vmatprep.subr.bf16.mxu1 %v12822_v21  ;;  %v12877_v20 = vcombine.low %v1499_v8, %v1503_v9  ;;  %v12884_v21 = vcombine.high %v1506_v14, %v1510_v15  ;;  %v12886_v22 = vcombine.high %v1507_v17, %v1511_v18  ;;  %v1562_v8 = vld [vmem:[%s14002_s30 + $0x2650] sm:$0xff] }
 0x574   : > { %v1566_v9 = vld [vmem:[%s14002_s30 + $0x2670] sm:$0xff] }
 0x576   : > { %10205 = vmatpush1.bf16.msra.mxu0 %v12819_v26  ;;  %10678 = vmatpush1.bf16.msra.mxu1 %v12821_v27  ;;  %v1515_v26 = vld [vmem:[%s14002_s30 + $0x24d8] sm:$0xff] }
 0x577   : > { %10206 = vmatprep.subr.bf16.mxu0 %v12828_v28  ;;  %10679 = vmatprep.subr.bf16.mxu1 %v12830_v29  ;;  %v1519_v27 = vld [vmem:[%s14002_s30 + $0x24f8] sm:$0xff]  ;;  %v12883_v28 = vcombine.low %v1506_v14, %v1510_v15  ;;  %v12885_v29 = vcombine.low %v1507_v17, %v1511_v18  ;;  %v12940_v14 = vcombine.high %v1562_v8, %v1566_v9  ;;  %v1574_v17 = vld [vmem:[%s14002_s30 + $0x26b0] sm:$0xff] }
 0x578   : > { %v12894_v31 = vcombine.high %v1515_v26, %v1519_v27  ;;  %v1571_v18 = vld [vmem:[%s14002_s30 + $0x2698] sm:$0xff] }
 0x57a   : > { %10207 = vmatpush1.bf16.msra.mxu0 %v12827_v34  ;;  %10680 = vmatpush1.bf16.msra.mxu1 %v12829_v35  ;;  %v1523_v34 = vld [vmem:[%s14002_s30 + $0x2518] sm:$0xff] }
 0x57b   : > { %10208 = vmatprep.subr.bf16.mxu0 %v12836_v36  ;;  %10681 = vmatprep.subr.bf16.mxu1 %v12838_v37  ;;  %v1527_v35 = vld [vmem:[%s14002_s30 + $0x2538] sm:$0xff]  ;;  %v12891_v36 = vcombine.low %v1514_v23, %v1518_v24  ;;  %v12893_v37 = vcombine.low %v1515_v26, %v1519_v27  ;;  %v1578_v24 = vld [vmem:[%s14002_s30 + $0x26d0] sm:$0xff] }
 0x57c   : > { %v12902_v39 = vcombine.high %v1523_v34, %v1527_v35  ;;  %v1579_v26 = vld [vmem:[%s14002_s30 + $0x26d8] sm:$0xff] }
 0x57d   : > { %v1583_v27 = vld [vmem:[%s14002_s30 + $0x26f8] sm:$0xff] }
 0x57e   : > { %10209 = vmatpush1.bf16.msra.mxu0 %v12835_v42  ;;  %10682 = vmatpush1.bf16.msra.mxu1 %v12837_v43  ;;  %v1531_v42 = vld [vmem:[%s14002_s30 + $0x2558] sm:$0xff] }
 0x57f   : > { %10210 = vmatprep.subr.bf16.mxu0 %v12844_v44  ;;  %10683 = vmatprep.subr.bf16.mxu1 %v12846_v45  ;;  %v1535_v43 = vld [vmem:[%s14002_s30 + $0x2578] sm:$0xff]  ;;  %v12899_v44 = vcombine.low %v1522_v32, %v1526_v33  ;;  %v12901_v45 = vcombine.low %v1523_v34, %v1527_v35  ;;  %v1586_v32 = vld [vmem:[%s14002_s30 + $0x2710] sm:$0xff] }
 0x580   : > { %v12910_v47 = vcombine.high %v1531_v42, %v1535_v43  ;;  %v1590_v33 = vld [vmem:[%s14002_s30 + $0x2730] sm:$0xff]  ;;  %v1587_v34 = vld [vmem:[%s14002_s30 + $0x2718] sm:$0xff] }
 0x581   : > { %v1591_v35 = vld [vmem:[%s14002_s30 + $0x2738] sm:$0xff] }
 0x582   : > { %10211 = vmatpush1.bf16.msra.mxu0 %v12843_v50  ;;  %10684 = vmatpush1.bf16.msra.mxu1 %v12845_v51  ;;  %v1539_v50 = vld [vmem:[%s14002_s30 + $0x2598] sm:$0xff] }
 0x583   : > { %10212 = vmatprep.subr.bf16.mxu0 %v12852_v52  ;;  %10685 = vmatprep.subr.bf16.mxu1 %v12854_v53  ;;  %v1543_v51 = vld [vmem:[%s14002_s30 + $0x25b8] sm:$0xff]  ;;  %v12907_v52 = vcombine.low %v1530_v40, %v1534_v41  ;;  %v12909_v53 = vcombine.low %v1531_v42, %v1535_v43  ;;  %v1594_v40 = vld [vmem:[%s14002_s30 + $0x2750] sm:$0xff] }
 0x584   : > { %v12918_v55 = vcombine.high %v1539_v50, %v1543_v51  ;;  %v1598_v41 = vld [vmem:[%s14002_s30 + $0x2770] sm:$0xff]  ;;  %v1595_v42 = vld [vmem:[%s14002_s30 + $0x2758] sm:$0xff] }
 0x585   : > { %v1599_v43 = vld [vmem:[%s14002_s30 + $0x2778] sm:$0xff] }
 0x586   : > { %10213 = vmatpush1.bf16.msra.mxu0 %v12851_v58  ;;  %10686 = vmatpush1.bf16.msra.mxu1 %v12853_v59  ;;  %v1547_v58 = vld [vmem:[%s14002_s30 + $0x25d8] sm:$0xff] }
 0x587   : > { %10214 = vmatprep.subr.bf16.mxu0 %v12860_v60  ;;  %10687 = vmatprep.subr.bf16.mxu1 %v12862_v61  ;;  %v1551_v59 = vld [vmem:[%s14002_s30 + $0x25f8] sm:$0xff]  ;;  %v12915_v60 = vcombine.low %v1538_v48, %v1542_v49  ;;  %v12917_v61 = vcombine.low %v1539_v50, %v1543_v51  ;;  %v1602_v48 = vld [vmem:[%s14002_s30 + $0x2790] sm:$0xff] }
 0x588   : > { %v12926_v63 = vcombine.high %v1547_v58, %v1551_v59  ;;  %v1606_v49 = vld [vmem:[%s14002_s30 + $0x27b0] sm:$0xff]  ;;  %v1603_v50 = vld [vmem:[%s14002_s30 + $0x2798] sm:$0xff] }
 0x589   : > { %v1607_v51 = vld [vmem:[%s14002_s30 + $0x27b8] sm:$0xff] }
 0x58a   : > { %10215 = vmatpush1.bf16.msra.mxu0 %v12859_v2  ;;  %10688 = vmatpush1.bf16.msra.mxu1 %v12861_v3  ;;  %v1555_v2 = vld [vmem:[%s14002_s30 + $0x2618] sm:$0xff] }
 0x58b   : > { %10227 = vmatprep.subr.bf16.mxu0 %v12868_v4  ;;  %10700 = vmatprep.subr.bf16.mxu1 %v12870_v5  ;;  %v1559_v3 = vld [vmem:[%s14002_s30 + $0x2638] sm:$0xff]  ;;  %v12923_v4 = vcombine.low %v1546_v56, %v1550_v57  ;;  %v12925_v5 = vcombine.low %v1547_v58, %v1551_v59  ;;  %v1610_v56 = vld [vmem:[%s14002_s30 + $0x27d0] sm:$0xff] }
 0x58c   : > { %v12934_v7 = vcombine.high %v1555_v2, %v1559_v3  ;;  %v1614_v57 = vld [vmem:[%s14002_s30 + $0x27f0] sm:$0xff]  ;;  %v1611_v58 = vld [vmem:[%s14002_s30 + $0x27d8] sm:$0xff] }
 0x58d   : > { %10217 = vmatmul.mubr.bf16.vlgmr.msra.gmra.mrb[4].mxu0 %v13565_v16  ;;  %10690 = vmatmul.mubr.bf16.vlgmr.msra.gmra.mrb[4].mxu1 %v13565_v16  ;;  %v1570_v16 = vld [vmem:[%s14002_s30 + $0x2690] sm:$0xff]  ;;  %v1615_v59 = vld [vmem:[%s14002_s30 + $0x27f8] sm:$0xff] }
 0x58e   : > { %10228 = vmatpush1.bf16.msra.mxu0 %v12867_v10  ;;  %10701 = vmatpush1.bf16.msra.mxu1 %v12869_v11  ;;  %v1563_v10 = vld [vmem:[%s14002_s30 + $0x2658] sm:$0xff] }
 0x58f   : > { %10229 = vmatprep.subr.bf16.mxu0 %v12876_v12  ;;  %10702 = vmatprep.subr.bf16.mxu1 %v12878_v13  ;;  %v1567_v11 = vld [vmem:[%s14002_s30 + $0x2678] sm:$0xff]  ;;  %v12931_v12 = vcombine.low %v1554_v0, %v1558_v1  ;;  %v12933_v13 = vcombine.low %v1555_v2, %v1559_v3  ;;  %v1618_v0 = vld [vmem:[%s14002_s30 + $0x2810] sm:$0xff] }
 0x590   : > { %10259 = vmatprep.mubr.bf16.mxu0 %v13566_v25  ;;  %10732 = vmatprep.mubr.bf16.mxu1 %v13566_v25  ;;  %v12942_v15 = vcombine.high %v1563_v10, %v1567_v11  ;;  %v1582_v25 = vld [vmem:[%s14002_s30 + $0x26f0] sm:$0xff]  ;;  %v1619_v2 = vld [vmem:[%s14002_s30 + $0x2818] sm:$0xff] }
 0x591   : > { %v1622_v1 = vld [vmem:[%s14002_s30 + $0x2830] sm:$0xff]  ;;  %v1623_v3 = vld [vmem:[%s14002_s30 + $0x2838] sm:$0xff] }
 0x592   : > { %10230 = vmatpush1.bf16.msra.mxu0 %v12875_v19  ;;  %10703 = vmatpush1.bf16.msra.mxu1 %v12877_v20  ;;  %v1575_v19 = vld [vmem:[%s14002_s30 + $0x26b8] sm:$0xff]  ;;  %v12939_v20 = vcombine.low %v1562_v8, %v1566_v9  ;;  %v1626_v8 = vld [vmem:[%s14002_s30 + $0x2850] sm:$0xff] }
 0x593   : > { %10231 = vmatprep.subr.bf16.mxu0 %v12884_v21  ;;  %10704 = vmatprep.subr.bf16.mxu1 %v12886_v22  ;;  %v12941_v21 = vcombine.low %v1563_v10, %v1567_v11  ;;  %v12948_v22 = vcombine.high %v1570_v16, %v1574_v17  ;;  %v12950_v23 = vcombine.high %v1571_v18, %v1575_v19  ;;  %v1630_v9 = vld [vmem:[%s14002_s30 + $0x2870] sm:$0xff]  ;;  %v1627_v10 = vld [vmem:[%s14002_s30 + $0x2858] sm:$0xff] }
 0x594   : > { %v1631_v11 = vld [vmem:[%s14002_s30 + $0x2878] sm:$0xff] }
 0x596   : > { %10232 = vmatpush1.bf16.msra.mxu0 %v12883_v28  ;;  %10705 = vmatpush1.bf16.msra.mxu1 %v12885_v29  ;;  %v12947_v28 = vcombine.low %v1570_v16, %v1574_v17  ;;  %v12949_v29 = vcombine.low %v1571_v18, %v1575_v19  ;;  %v1634_v16 = vld [vmem:[%s14002_s30 + $0x2890] sm:$0xff]  ;;  %v13567_v18 = vld [vmem:[%s14050_s21 + $0x48] ss:$176 sps:$4 sm:$0xff]  }
 0x597   : > { %10233 = vmatprep.subr.bf16.mxu0 %v12892_v30  ;;  %10706 = vmatprep.subr.bf16.mxu1 %v12894_v31  ;;  %v12956_v30 = vcombine.high %v1578_v24, %v1582_v25  ;;  %v12958_v31 = vcombine.high %v1579_v26, %v1583_v27  ;;  %v1638_v17 = vld [vmem:[%s14002_s30 + $0x28b0] sm:$0xff]  ;;  %v1635_v19 = vld [vmem:[%s14002_s30 + $0x2898] sm:$0xff] }
 0x59a   : > { %10234 = vmatpush1.bf16.msra.mxu0 %v12891_v36  ;;  %10707 = vmatpush1.bf16.msra.mxu1 %v12893_v37  ;;  %v12955_v36 = vcombine.low %v1578_v24, %v1582_v25  ;;  %v12957_v37 = vcombine.low %v1579_v26, %v1583_v27  ;;  %v1642_v25 = vld [vmem:[%s14002_s30 + $0x28d0] sm:$0xff] }
 0x59b   : > { %10235 = vmatprep.subr.bf16.mxu0 %v12900_v38  ;;  %10708 = vmatprep.subr.bf16.mxu1 %v12902_v39  ;;  %v12964_v38 = vcombine.high %v1586_v32, %v1590_v33  ;;  %v12966_v39 = vcombine.high %v1587_v34, %v1591_v35  ;;  %v1646_v26 = vld [vmem:[%s14002_s30 + $0x28f0] sm:$0xff] }
 0x59c   : > { %v13568_v27 = vld [vmem:[%s14050_s21 + $0x54] ss:$176 sps:$4 sm:$0xff]  }
 0x59e   : > { %10236 = vmatpush1.bf16.msra.mxu0 %v12899_v44  ;;  %10709 = vmatpush1.bf16.msra.mxu1 %v12901_v45  ;;  %v12963_v44 = vcombine.low %v1586_v32, %v1590_v33  ;;  %v12965_v45 = vcombine.low %v1587_v34, %v1591_v35  ;;  %v13020_v32 = vcombine.high %v1642_v25, %v1646_v26  ;;  %v1650_v34 = vld [vmem:[%s14002_s30 + $0x2910] sm:$0xff] }
 0x59f   : > { %10237 = vmatprep.subr.bf16.mxu0 %v12908_v46  ;;  %10710 = vmatprep.subr.bf16.mxu1 %v12910_v47  ;;  %v12972_v46 = vcombine.high %v1594_v40, %v1598_v41  ;;  %v12974_v47 = vcombine.high %v1595_v42, %v1599_v43  ;;  %v1654_v35 = vld [vmem:[%s14002_s30 + $0x2930] sm:$0xff] }
 0x5a2   : > { %10238 = vmatpush1.bf16.msra.mxu0 %v12907_v52  ;;  %10711 = vmatpush1.bf16.msra.mxu1 %v12909_v53  ;;  %v12971_v52 = vcombine.low %v1594_v40, %v1598_v41  ;;  %v12973_v53 = vcombine.low %v1595_v42, %v1599_v43  ;;  %v13028_v40 = vcombine.high %v1650_v34, %v1654_v35  ;;  %v1658_v42 = vld [vmem:[%s14002_s30 + $0x2950] sm:$0xff] }
 0x5a3   : > { %10239 = vmatprep.subr.bf16.mxu0 %v12916_v54  ;;  %10712 = vmatprep.subr.bf16.mxu1 %v12918_v55  ;;  %v12980_v54 = vcombine.high %v1602_v48, %v1606_v49  ;;  %v12982_v55 = vcombine.high %v1603_v50, %v1607_v51  ;;  %v1662_v43 = vld [vmem:[%s14002_s30 + $0x2970] sm:$0xff] }
 0x5a6   : > { %10240 = vmatpush1.bf16.msra.mxu0 %v12915_v60  ;;  %10713 = vmatpush1.bf16.msra.mxu1 %v12917_v61  ;;  %v12979_v60 = vcombine.low %v1602_v48, %v1606_v49  ;;  %v12981_v61 = vcombine.low %v1603_v50, %v1607_v51  ;;  %v13036_v48 = vcombine.high %v1658_v42, %v1662_v43  ;;  %v1666_v50 = vld [vmem:[%s14002_s30 + $0x2990] sm:$0xff] }
 0x5a7   : > { %10241 = vmatprep.subr.bf16.mxu0 %v12924_v62  ;;  %10714 = vmatprep.subr.bf16.mxu1 %v12926_v63  ;;  %v12988_v62 = vcombine.high %v1610_v56, %v1614_v57  ;;  %v12990_v63 = vcombine.high %v1611_v58, %v1615_v59  ;;  %v1670_v51 = vld [vmem:[%s14002_s30 + $0x29b0] sm:$0xff] }
 0x5aa   : > { %10242 = vmatpush1.bf16.msra.mxu0 %v12923_v4  ;;  %10715 = vmatpush1.bf16.msra.mxu1 %v12925_v5  ;;  %v12987_v4 = vcombine.low %v1610_v56, %v1614_v57  ;;  %v12989_v5 = vcombine.low %v1611_v58, %v1615_v59  ;;  %v13044_v56 = vcombine.high %v1666_v50, %v1670_v51  ;;  %v1674_v58 = vld [vmem:[%s14002_s30 + $0x29d0] sm:$0xff] }
 0x5ab   : > { %10243 = vmatprep.subr.bf16.mxu0 %v12932_v6  ;;  %10716 = vmatprep.subr.bf16.mxu1 %v12934_v7  ;;  %v12996_v6 = vcombine.high %v1618_v0, %v1622_v1  ;;  %v12998_v7 = vcombine.high %v1619_v2, %v1623_v3  ;;  %v1678_v59 = vld [vmem:[%s14002_s30 + $0x29f0] sm:$0xff] }
 0x5ae   : > { %10244 = vmatpush1.bf16.msra.mxu0 %v12931_v12  ;;  %10717 = vmatpush1.bf16.msra.mxu1 %v12933_v13  ;;  %v12995_v12 = vcombine.low %v1618_v0, %v1622_v1  ;;  %v12997_v13 = vcombine.low %v1619_v2, %v1623_v3  ;;  %v13052_v0 = vcombine.high %v1674_v58, %v1678_v59  ;;  %v1682_v2 = vld [vmem:[%s14002_s30 + $0x2a10] sm:$0xff] }
 0x5af   : > { %10245 = vmatprep.subr.bf16.mxu0 %v12940_v14  ;;  %10718 = vmatprep.subr.bf16.mxu1 %v12942_v15  ;;  %v13004_v14 = vcombine.high %v1626_v8, %v1630_v9  ;;  %v13006_v15 = vcombine.high %v1627_v10, %v1631_v11  ;;  %v1686_v3 = vld [vmem:[%s14002_s30 + $0x2a30] sm:$0xff] }
 0x5b2   : > { %10246 = vmatpush1.bf16.msra.mxu0 %v12939_v20  ;;  %10719 = vmatpush1.bf16.msra.mxu1 %v12941_v21  ;;  %v1639_v20 = vld [vmem:[%s14002_s30 + $0x28b8] sm:$0xff]  ;;  %v13003_v21 = vcombine.low %v1626_v8, %v1630_v9  ;;  %v13060_v8 = vcombine.high %v1682_v2, %v1686_v3 }
 0x5b3   : > { %10247 = vmatprep.subr.bf16.mxu0 %v12948_v22  ;;  %10720 = vmatprep.subr.bf16.mxu1 %v12950_v23  ;;  %v13005_v22 = vcombine.low %v1627_v10, %v1631_v11  ;;  %v13012_v23 = vcombine.high %v1634_v16, %v1638_v17  ;;  %v13014_v24 = vcombine.high %v1635_v19, %v1639_v20  ;;  %v1690_v10 = vld [vmem:[%s14002_s30 + $0x2a50] sm:$0xff] }
 0x5b4   : > { %v1694_v11 = vld [vmem:[%s14002_s30 + $0x2a70] sm:$0xff] }
 0x5b6   : > { %10248 = vmatpush1.bf16.msra.mxu0 %v12947_v28  ;;  %10721 = vmatpush1.bf16.msra.mxu1 %v12949_v29  ;;  %v1643_v28 = vld [vmem:[%s14002_s30 + $0x28d8] sm:$0xff] }
 0x5b7   : > { %10249 = vmatprep.subr.bf16.mxu0 %v12956_v30  ;;  %10722 = vmatprep.subr.bf16.mxu1 %v12958_v31  ;;  %v1647_v29 = vld [vmem:[%s14002_s30 + $0x28f8] sm:$0xff]  ;;  %v13011_v30 = vcombine.low %v1634_v16, %v1638_v17  ;;  %v13013_v31 = vcombine.low %v1635_v19, %v1639_v20  ;;  %v13068_v16 = vcombine.high %v1690_v10, %v1694_v11  ;;  %v1702_v19 = vld [vmem:[%s14002_s30 + $0x2ab0] sm:$0xff] }
 0x5b8   : > { %v13022_v33 = vcombine.high %v1643_v28, %v1647_v29  ;;  %v1699_v20 = vld [vmem:[%s14002_s30 + $0x2a98] sm:$0xff] }
 0x5ba   : > { %10250 = vmatpush1.bf16.msra.mxu0 %v12955_v36  ;;  %10723 = vmatpush1.bf16.msra.mxu1 %v12957_v37  ;;  %v1651_v36 = vld [vmem:[%s14002_s30 + $0x2918] sm:$0xff] }
 0x5bb   : > { %10251 = vmatprep.subr.bf16.mxu0 %v12964_v38  ;;  %10724 = vmatprep.subr.bf16.mxu1 %v12966_v39  ;;  %v1655_v37 = vld [vmem:[%s14002_s30 + $0x2938] sm:$0xff]  ;;  %v13019_v38 = vcombine.low %v1642_v25, %v1646_v26  ;;  %v13021_v39 = vcombine.low %v1643_v28, %v1647_v29  ;;  %v1706_v26 = vld [vmem:[%s14002_s30 + $0x2ad0] sm:$0xff] }
 0x5bc   : > { %v13030_v41 = vcombine.high %v1651_v36, %v1655_v37  ;;  %v1707_v28 = vld [vmem:[%s14002_s30 + $0x2ad8] sm:$0xff] }
 0x5bd   : > { %v1711_v29 = vld [vmem:[%s14002_s30 + $0x2af8] sm:$0xff] }
 0x5be   : > { %10252 = vmatpush1.bf16.msra.mxu0 %v12963_v44  ;;  %10725 = vmatpush1.bf16.msra.mxu1 %v12965_v45  ;;  %v1659_v44 = vld [vmem:[%s14002_s30 + $0x2958] sm:$0xff] }
 0x5bf   : > { %10253 = vmatprep.subr.bf16.mxu0 %v12972_v46  ;;  %10726 = vmatprep.subr.bf16.mxu1 %v12974_v47  ;;  %v1663_v45 = vld [vmem:[%s14002_s30 + $0x2978] sm:$0xff]  ;;  %v13027_v46 = vcombine.low %v1650_v34, %v1654_v35  ;;  %v13029_v47 = vcombine.low %v1651_v36, %v1655_v37  ;;  %v1714_v34 = vld [vmem:[%s14002_s30 + $0x2b10] sm:$0xff] }
 0x5c0   : > { %v13038_v49 = vcombine.high %v1659_v44, %v1663_v45  ;;  %v1718_v35 = vld [vmem:[%s14002_s30 + $0x2b30] sm:$0xff]  ;;  %v1715_v36 = vld [vmem:[%s14002_s30 + $0x2b18] sm:$0xff] }
 0x5c1   : > { %v1719_v37 = vld [vmem:[%s14002_s30 + $0x2b38] sm:$0xff] }
 0x5c2   : > { %10254 = vmatpush1.bf16.msra.mxu0 %v12971_v52  ;;  %10727 = vmatpush1.bf16.msra.mxu1 %v12973_v53  ;;  %v1667_v52 = vld [vmem:[%s14002_s30 + $0x2998] sm:$0xff] }
 0x5c3   : > { %10255 = vmatprep.subr.bf16.mxu0 %v12980_v54  ;;  %10728 = vmatprep.subr.bf16.mxu1 %v12982_v55  ;;  %v1671_v53 = vld [vmem:[%s14002_s30 + $0x29b8] sm:$0xff]  ;;  %v13035_v54 = vcombine.low %v1658_v42, %v1662_v43  ;;  %v13037_v55 = vcombine.low %v1659_v44, %v1663_v45  ;;  %v1722_v42 = vld [vmem:[%s14002_s30 + $0x2b50] sm:$0xff] }
 0x5c4   : > { %v13046_v57 = vcombine.high %v1667_v52, %v1671_v53  ;;  %v1726_v43 = vld [vmem:[%s14002_s30 + $0x2b70] sm:$0xff]  ;;  %v1723_v44 = vld [vmem:[%s14002_s30 + $0x2b58] sm:$0xff] }
 0x5c5   : > { %v1727_v45 = vld [vmem:[%s14002_s30 + $0x2b78] sm:$0xff] }
 0x5c6   : > { %10256 = vmatpush1.bf16.msra.mxu0 %v12979_v60  ;;  %10729 = vmatpush1.bf16.msra.mxu1 %v12981_v61  ;;  %v1675_v60 = vld [vmem:[%s14002_s30 + $0x29d8] sm:$0xff] }
 0x5c7   : > { %10257 = vmatprep.subr.bf16.mxu0 %v12988_v62  ;;  %10730 = vmatprep.subr.bf16.mxu1 %v12990_v63  ;;  %v1679_v61 = vld [vmem:[%s14002_s30 + $0x29f8] sm:$0xff]  ;;  %v13043_v62 = vcombine.low %v1666_v50, %v1670_v51  ;;  %v13045_v63 = vcombine.low %v1667_v52, %v1671_v53  ;;  %v1730_v50 = vld [vmem:[%s14002_s30 + $0x2b90] sm:$0xff] }
 0x5c8   : > { %v13054_v1 = vcombine.high %v1675_v60, %v1679_v61  ;;  %v1734_v51 = vld [vmem:[%s14002_s30 + $0x2bb0] sm:$0xff]  ;;  %v1731_v52 = vld [vmem:[%s14002_s30 + $0x2b98] sm:$0xff] }
 0x5c9   : > { %v1735_v53 = vld [vmem:[%s14002_s30 + $0x2bb8] sm:$0xff] }
 0x5ca   : > { %10258 = vmatpush1.bf16.msra.mxu0 %v12987_v4  ;;  %10731 = vmatpush1.bf16.msra.mxu1 %v12989_v5  ;;  %v1683_v4 = vld [vmem:[%s14002_s30 + $0x2a18] sm:$0xff] }
 0x5cb   : > { %10270 = vmatprep.subr.bf16.mxu0 %v12996_v6  ;;  %10743 = vmatprep.subr.bf16.mxu1 %v12998_v7  ;;  %v1687_v5 = vld [vmem:[%s14002_s30 + $0x2a38] sm:$0xff]  ;;  %v13051_v6 = vcombine.low %v1674_v58, %v1678_v59  ;;  %v13053_v7 = vcombine.low %v1675_v60, %v1679_v61  ;;  %v1738_v58 = vld [vmem:[%s14002_s30 + $0x2bd0] sm:$0xff] }
 0x5cc   : > { %v13062_v9 = vcombine.high %v1683_v4, %v1687_v5  ;;  %v1742_v59 = vld [vmem:[%s14002_s30 + $0x2bf0] sm:$0xff]  ;;  %v1739_v60 = vld [vmem:[%s14002_s30 + $0x2bd8] sm:$0xff] }
 0x5cd   : > { %10260 = vmatmul.mubr.bf16.vlgmr.msra.gmra.mrb[4].mxu0 %v13567_v18  ;;  %10733 = vmatmul.mubr.bf16.vlgmr.msra.gmra.mrb[4].mxu1 %v13567_v18  ;;  %v1698_v18 = vld [vmem:[%s14002_s30 + $0x2a90] sm:$0xff]  ;;  %v1743_v61 = vld [vmem:[%s14002_s30 + $0x2bf8] sm:$0xff] }
 0x5ce   : > { %10271 = vmatpush1.bf16.msra.mxu0 %v12995_v12  ;;  %10744 = vmatpush1.bf16.msra.mxu1 %v12997_v13  ;;  %v1691_v12 = vld [vmem:[%s14002_s30 + $0x2a58] sm:$0xff] }
 0x5cf   : > { %10272 = vmatprep.subr.bf16.mxu0 %v13004_v14  ;;  %10745 = vmatprep.subr.bf16.mxu1 %v13006_v15  ;;  %v1695_v13 = vld [vmem:[%s14002_s30 + $0x2a78] sm:$0xff]  ;;  %v13059_v14 = vcombine.low %v1682_v2, %v1686_v3  ;;  %v13061_v15 = vcombine.low %v1683_v4, %v1687_v5  ;;  %v13115_v2 = vcombine.low %v1738_v58, %v1742_v59  ;;  %v13569_v4 = vld [vmem:[%s14050_s21 + $0x50] ss:$176 sps:$4 sm:$0xff]  }
 0x5d0   : > { %10302 = vmatprep.mubr.bf16.mxu0 %v13568_v27  ;;  %10775 = vmatprep.mubr.bf16.mxu1 %v13568_v27  ;;  %v13070_v17 = vcombine.high %v1691_v12, %v1695_v13  ;;  %v1710_v27 = vld [vmem:[%s14002_s30 + $0x2af0] sm:$0xff]  ;;  %v13117_v3 = vcombine.low %v1739_v60, %v1743_v61  ;;  %v324_v5 = vld [vmem:[#allocation2 + $0x20] sm:$0xff] }
 0x5d2   : > { %10273 = vmatpush1.bf16.msra.mxu0 %v13003_v21  ;;  %10746 = vmatpush1.bf16.msra.mxu1 %v13005_v22  ;;  %v1703_v21 = vld [vmem:[%s14002_s30 + $0x2ab8] sm:$0xff]  ;;  %v13067_v22 = vcombine.low %v1690_v10, %v1694_v11  ;;  %v332_v10 = vld [vmem:[#allocation2 + $0x60] sm:$0xff] }
 0x5d3   : > { %10274 = vmatprep.subr.bf16.mxu0 %v13012_v23  ;;  %10747 = vmatprep.subr.bf16.mxu1 %v13014_v24  ;;  %v13069_v23 = vcombine.low %v1691_v12, %v1695_v13  ;;  %v13076_v24 = vcombine.high %v1698_v18, %v1702_v19  ;;  %v13078_v25 = vcombine.high %v1699_v20, %v1703_v21 }
 0x5d6   : > { %10275 = vmatpush1.bf16.msra.mxu0 %v13011_v30  ;;  %10748 = vmatpush1.bf16.msra.mxu1 %v13013_v31  ;;  %v13075_v30 = vcombine.low %v1698_v18, %v1702_v19  ;;  %v13077_v31 = vcombine.low %v1699_v20, %v1703_v21  ;;  %v335_v20 = vld [vmem:[#allocation2 + $0x78] sm:$0xff] }
 0x5d7   : > { %10276 = vmatprep.subr.bf16.mxu0 %v13020_v32  ;;  %10749 = vmatprep.subr.bf16.mxu1 %v13022_v33  ;;  %v13084_v32 = vcombine.high %v1706_v26, %v1710_v27  ;;  %v13086_v33 = vcombine.high %v1707_v28, %v1711_v29 }
 0x5da   : > { %10277 = vmatpush1.bf16.msra.mxu0 %v13019_v38  ;;  %10750 = vmatpush1.bf16.msra.mxu1 %v13021_v39  ;;  %v13083_v38 = vcombine.low %v1706_v26, %v1710_v27  ;;  %v13085_v39 = vcombine.low %v1707_v28, %v1711_v29  ;;  %v13570_v29 = vld [vmem:[#allocation7 + $0x40] sm:$0xff] (!%p13119_p11)  }
 0x5db   : > { %10278 = vmatprep.subr.bf16.mxu0 %v13028_v40  ;;  %10751 = vmatprep.subr.bf16.mxu1 %v13030_v41  ;;  %v13092_v40 = vcombine.high %v1714_v34, %v1718_v35  ;;  %v13094_v41 = vcombine.high %v1715_v36, %v1719_v37 }
 0x5de   : > { %10279 = vmatpush1.bf16.msra.mxu0 %v13027_v46  ;;  %10752 = vmatpush1.bf16.msra.mxu1 %v13029_v47  ;;  %v13091_v46 = vcombine.low %v1714_v34, %v1718_v35  ;;  %v13093_v47 = vcombine.low %v1715_v36, %v1719_v37  ;;  %v13575_v34 = vld [vmem:[#allocation7 + $0xc8] sm:$0xff] (!%p13119_p11)   ;;  %v13578_v37 = vld [vmem:[#allocation7 + $0x50] sm:$0xff] (!%p13119_p11)  }
 0x5df   : > { %10280 = vmatprep.subr.bf16.mxu0 %v13036_v48  ;;  %10753 = vmatprep.subr.bf16.mxu1 %v13038_v49  ;;  %v13100_v48 = vcombine.high %v1722_v42, %v1726_v43  ;;  %v13102_v49 = vcombine.high %v1723_v44, %v1727_v45  ;;  %v13576_v35 = vld [vmem:[#allocation7 + $0x8] sm:$0xff] (!%p13119_p11)  }
 0x5e0   : > { %v13577_v36 = vld [vmem:[#allocation7 + $0x88] sm:$0xff] (!%p13119_p11)  }
 0x5e2   : > { %10281 = vmatpush1.bf16.msra.mxu0 %v13035_v54  ;;  %10754 = vmatpush1.bf16.msra.mxu1 %v13037_v55  ;;  %v13099_v54 = vcombine.low %v1722_v42, %v1726_v43  ;;  %v13101_v55 = vcombine.low %v1723_v44, %v1727_v45  ;;  %v13583_v42 = vld [vmem:[#allocation7 + $0xd8] sm:$0xff] (!%p13119_p11)   ;;  %v13586_v45 = vld [vmem:[#allocation7 + $0x60] sm:$0xff] (!%p13119_p11)  }
 0x5e3   : > { %10282 = vmatprep.subr.bf16.mxu0 %v13044_v56  ;;  %10755 = vmatprep.subr.bf16.mxu1 %v13046_v57  ;;  %v13108_v56 = vcombine.high %v1730_v50, %v1734_v51  ;;  %v13110_v57 = vcombine.high %v1731_v52, %v1735_v53  ;;  %v13584_v43 = vld [vmem:[#allocation7 + $0x18] sm:$0xff] (!%p13119_p11)  }
 0x5e4   : > { %v13585_v44 = vld [vmem:[#allocation7 + $0x98] sm:$0xff] (!%p13119_p11)  }
 0x5e6   : > { %10283 = vmatpush1.bf16.msra.mxu0 %v13043_v62  ;;  %10756 = vmatpush1.bf16.msra.mxu1 %v13045_v63  ;;  %v13107_v62 = vcombine.low %v1730_v50, %v1734_v51  ;;  %v13109_v63 = vcombine.low %v1731_v52, %v1735_v53  ;;  %v13590_v50 = vld [vmem:[#allocation7 + $0x68] sm:$0xff] (!%p13119_p11)  }
 0x5e7   : > { %10284 = vmatprep.subr.bf16.mxu0 %v13052_v0  ;;  %10757 = vmatprep.subr.bf16.mxu1 %v13054_v1  ;;  %v13116_v0 = vcombine.high %v1738_v58, %v1742_v59  ;;  %v13118_v1 = vcombine.high %v1739_v60, %v1743_v61  ;;  %v13591_v51 = vld [vmem:[#allocation7 + $0xe8] sm:$0xff] (!%p13119_p11)   ;;  %v13597_v59 = vld [vmem:[#allocation7 + $0xb0] sm:$0xff] (!%p13119_p11)   ;;  %v13598_v61 = vld [vmem:[#allocation7 + $0x78] sm:$0xff] (!%p13119_p11)  }
 0x5e8   : > { %v13592_v52 = vld [vmem:[#allocation7 + $0x28] sm:$0xff] (!%p13119_p11)  }
 0x5ea   : > { %10285 = vmatpush1.bf16.msra.mxu0 %v13051_v6  ;;  %10758 = vmatpush1.bf16.msra.mxu1 %v13053_v7  ;;  %v326_v6 = vld [vmem:[#allocation2 + $0x30] sm:$0xff]  ;;  %v325_v7 = vld [vmem:[#allocation2 + $0x28] sm:$0xff] }
 0x5eb   : > { %10286 = vmatprep.subr.bf16.mxu0 %v13060_v8  ;;  %10759 = vmatprep.subr.bf16.mxu1 %v13062_v9  ;;  %v327_v9 = vld [vmem:[#allocation2 + $0x38] sm:$0xff] }
 0x5ee   : > { %10287 = vmatpush1.bf16.msra.mxu0 %v13059_v14  ;;  %10760 = vmatpush1.bf16.msra.mxu1 %v13061_v15  ;;  %v334_v14 = vld [vmem:[#allocation2 + $0x70] sm:$0xff]  ;;  %v333_v15 = vld [vmem:[#allocation2 + $0x68] sm:$0xff] }
 0x5ef   : > { %10288 = vmatprep.subr.bf16.mxu0 %v13068_v16  ;;  %10761 = vmatprep.subr.bf16.mxu1 %v13070_v17 }
 0x5f2   : > { %10289 = vmatpush1.bf16.msra.mxu0 %v13067_v22  ;;  %10762 = vmatpush1.bf16.msra.mxu1 %v13069_v23 }
 0x5f3   : > { %10290 = vmatprep.subr.bf16.mxu0 %v13076_v24  ;;  %10763 = vmatprep.subr.bf16.mxu1 %v13078_v25 }
 0x5f6   : > { %10291 = vmatpush1.bf16.msra.mxu0 %v13075_v30  ;;  %10764 = vmatpush1.bf16.msra.mxu1 %v13077_v31  ;;  %v13571_v30 = vld [vmem:[#allocation7 + $0xc0] sm:$0xff] (!%p13119_p11)  }
 0x5f7   : > { %10292 = vmatprep.subr.bf16.mxu0 %v13084_v32  ;;  %10765 = vmatprep.subr.bf16.mxu1 %v13086_v33  ;;  %v13572_v31 = vld [vmem:[#allocation7] sm:$0xff] (!%p13119_p11)   ;;  %v13574_v33 = vld [vmem:[#allocation7 + $0x48] sm:$0xff] (!%p13119_p11)  }
 0x5f8   : > { %v13573_v32 = vld [vmem:[#allocation7 + $0x80] sm:$0xff] (!%p13119_p11)  }
 0x5fa   : > { %10293 = vmatpush1.bf16.msra.mxu0 %v13083_v38  ;;  %10766 = vmatpush1.bf16.msra.mxu1 %v13085_v39  ;;  %v13579_v38 = vld [vmem:[#allocation7 + $0xd0] sm:$0xff] (!%p13119_p11)  }
 0x5fb   : > { %10294 = vmatprep.subr.bf16.mxu0 %v13092_v40  ;;  %10767 = vmatprep.subr.bf16.mxu1 %v13094_v41  ;;  %v13580_v39 = vld [vmem:[#allocation7 + $0x10] sm:$0xff] (!%p13119_p11)   ;;  %v13582_v41 = vld [vmem:[#allocation7 + $0x58] sm:$0xff] (!%p13119_p11)  }
 0x5fc   : > { %v13581_v40 = vld [vmem:[#allocation7 + $0x90] sm:$0xff] (!%p13119_p11)  }
 0x5fe   : > { %10295 = vmatpush1.bf16.msra.mxu0 %v13091_v46  ;;  %10768 = vmatpush1.bf16.msra.mxu1 %v13093_v47  ;;  %v13587_v46 = vld [vmem:[#allocation7 + $0xe0] sm:$0xff] (!%p13119_p11)  }
 0x5ff   : > { %10296 = vmatprep.subr.bf16.mxu0 %v13100_v48  ;;  %10769 = vmatprep.subr.bf16.mxu1 %v13102_v49  ;;  %v13588_v47 = vld [vmem:[#allocation7 + $0x20] sm:$0xff] (!%p13119_p11)   ;;  %v10840_v48 = vlaneseq (!%p13119_p11) }
 0x600   : > { %v13589_v49 = vld [vmem:[#allocation7 + $0xa0] sm:$0xff] (!%p13119_p11)  }
 0x601   : > { %v15477_v53 = vshrl.u32 (!%p13119_p11), %v10840_v48, 7  ;;  %v13614_v48 = vld [vmem:[#allocation7 + $0x158] sm:$0xff] (!%p13119_p11)  }
 0x602   : > { %10297 = vmatpush1.bf16.msra.mxu0 %v13099_v54  ;;  %10770 = vmatpush1.bf16.msra.mxu1 %v13101_v55  ;;  %v13593_v54 = vld [vmem:[#allocation7 + $0xa8] sm:$0xff] (!%p13119_p11)   ;;  %v13594_v55 = vld [vmem:[#allocation7 + $0x70] sm:$0xff] (!%p13119_p11)  }
 0x603   : > { %10298 = vmatprep.subr.bf16.mxu0 %v13108_v56  ;;  %10771 = vmatprep.subr.bf16.mxu1 %v13110_v57  ;;  %v13595_v56 = vld [vmem:[#allocation7 + $0xf0] sm:$0xff] (!%p13119_p11)   ;;  %v10846_v58 = vsub.s32 (!%p13119_p11), 1, %v15477_v53  ;;  %v10854_v60 = vsub.s32 (!%p13119_p11), 3, %v15477_v53 }
 0x604   : > { %v13596_v57 = vld [vmem:[#allocation7 + $0x30] sm:$0xff] (!%p13119_p11)  }
 0x606   : > { %10299 = vmatpush1.bf16.msra.mxu0 %v13107_v62  ;;  %10772 = vmatpush1.bf16.msra.mxu1 %v13109_v63  ;;  %v10842_v62 = vsub.s32 (!%p13119_p11), 0, %v15477_v53  ;;  %v13599_v63 = vld [vmem:[#allocation7 + $0xf8] sm:$0xff] (!%p13119_p11)  }
 0x607   : > { %10300 = vmatprep.subr.bf16.mxu0 %v13116_v0  ;;  %10773 = vmatprep.subr.bf16.mxu1 %v13118_v1  ;;  %v10850_v0 = vsub.s32 (!%p13119_p11), 2, %v15477_v53  ;;  %v13600_v1 = vld [vmem:[#allocation7 + $0x38] sm:$0xff] (!%p13119_p11)  }
 0x60a   : > { %10301 = vmatpush1.bf16.msra.mxu0 %v13115_v2  ;;  %10774 = vmatpush1.bf16.msra.mxu1 %v13117_v3  ;;  %v13601_v2 = vld [vmem:[#allocation7 + $0xb8] sm:$0xff] (!%p13119_p11)   ;;  %v10823_v3 = vld [vmem:[#allocation2 + $0x8] sm:$0xff] (!%p13119_p11) }
 0x60b   : > { %13190 = vmatprep.subr.bf16.mxu0 (!%p13119_p11), %v13570_v29  ;;  %13212 = vmatprep.subr.bf16.mxu1 (!%p13119_p11), %v13571_v30 }
 0x60d   : > { %10303 = vmatmul.mubr.bf16.vlgmr.msra.gmra.mrb[4].mxu0 %v13569_v4  ;;  %10776 = vmatmul.mubr.bf16.vlgmr.msra.gmra.mrb[4].mxu1 %v13569_v4  ;;  %v10831_v4 = vld [vmem:[#allocation2 + $0x48] sm:$0xff] (!%p13119_p11) }
 0x60e   : > { %13191 = vmatpush3.bf16.msra.mxu0 (!%p13119_p11), %v13572_v31  ;;  %13213 = vmatpush3.bf16.msra.mxu1 (!%p13119_p11), %v13573_v32 }
 0x60f   : > { %13192 = vmatprep.subr.bf16.mxu0 (!%p13119_p11), %v13574_v33  ;;  %13214 = vmatprep.subr.bf16.mxu1 (!%p13119_p11), %v13575_v34 }
 0x612   : > { %13193 = vmatpush3.bf16.msra.mxu0 (!%p13119_p11), %v13576_v35  ;;  %13215 = vmatpush3.bf16.msra.mxu1 (!%p13119_p11), %v13577_v36  ;;  %v13604_v36 = vld [vmem:[#allocation7 + $0x100] sm:$0xff] (!%p13119_p11)  }
 0x613   : > { %13194 = vmatprep.subr.bf16.mxu0 (!%p13119_p11), %v13578_v37  ;;  %13216 = vmatprep.subr.bf16.mxu1 (!%p13119_p11), %v13579_v38 }
 0x616   : > { %13195 = vmatpush3.bf16.msra.mxu0 (!%p13119_p11), %v13580_v39  ;;  %13217 = vmatpush3.bf16.msra.mxu1 (!%p13119_p11), %v13581_v40  ;;  %v13605_v39 = vld [vmem:[#allocation7 + $0x180] sm:$0xff] (!%p13119_p11)   ;;  %v13606_v40 = vld [vmem:[#allocation7 + $0x148] sm:$0xff] (!%p13119_p11)  }
 0x617   : > { %13196 = vmatprep.subr.bf16.mxu0 (!%p13119_p11), %v13582_v41  ;;  %13218 = vmatprep.subr.bf16.mxu1 (!%p13119_p11), %v13583_v42  ;;  %v13607_v41 = vld [vmem:[#allocation7 + $0x1c8] sm:$0xff] (!%p13119_p11)  }
 0x618   : > { %v13608_v42 = vld [vmem:[#allocation7 + $0x108] sm:$0xff] (!%p13119_p11)  }
 0x61a   : > { %13197 = vmatpush3.bf16.msra.mxu0 (!%p13119_p11), %v13584_v43  ;;  %13219 = vmatpush3.bf16.msra.mxu1 (!%p13119_p11), %v13585_v44  ;;  %v13609_v43 = vld [vmem:[#allocation7 + $0x188] sm:$0xff] (!%p13119_p11)   ;;  %v13610_v44 = vld [vmem:[#allocation7 + $0x150] sm:$0xff] (!%p13119_p11)  }
 0x61b   : > { %13198 = vmatprep.subr.bf16.mxu0 (!%p13119_p11), %v13586_v45  ;;  %13220 = vmatprep.subr.bf16.mxu1 (!%p13119_p11), %v13587_v46  ;;  %v13611_v45 = vld [vmem:[#allocation7 + $0x1d0] sm:$0xff] (!%p13119_p11)  }
 0x61c   : > { %v13612_v46 = vld [vmem:[#allocation7 + $0x110] sm:$0xff] (!%p13119_p11)  }
 0x61e   : > { %13199 = vmatpush3.bf16.msra.mxu0 (!%p13119_p11), %v13588_v47  ;;  %13221 = vmatpush3.bf16.msra.mxu1 (!%p13119_p11), %v13589_v49  ;;  %v13613_v47 = vld [vmem:[#allocation7 + $0x190] sm:$0xff] (!%p13119_p11)   ;;  %v13615_v49 = vld [vmem:[#allocation7 + $0x1d8] sm:$0xff] (!%p13119_p11)  }
 0x61f   : > { %13200 = vmatprep.subr.bf16.mxu0 (!%p13119_p11), %v13590_v50  ;;  %13222 = vmatprep.subr.bf16.mxu1 (!%p13119_p11), %v13591_v51  ;;  %v13616_v50 = vld [vmem:[#allocation7 + $0x118] sm:$0xff] (!%p13119_p11)  }
 0x620   : > { %v13617_v51 = vld [vmem:[#allocation7 + $0x198] sm:$0xff] (!%p13119_p11)  }
 0x622   : > { %13201 = vmatpush3.bf16.msra.mxu0 (!%p13119_p11), %v13592_v52  ;;  %13223 = vmatpush3.bf16.msra.mxu1 (!%p13119_p11), %v13593_v54  ;;  %v13618_v52 = vld [vmem:[#allocation7 + $0x160] sm:$0xff] (!%p13119_p11)  }
 0x623   : > { %13202 = vmatprep.subr.bf16.mxu0 (!%p13119_p11), %v13594_v55  ;;  %13224 = vmatprep.subr.bf16.mxu1 (!%p13119_p11), %v13595_v56  ;;  %v13619_v54 = vld [vmem:[#allocation7 + $0x1e0] sm:$0xff] (!%p13119_p11)  }
 0x624   : > { %v13620_v55 = vld [vmem:[#allocation7 + $0x120] sm:$0xff] (!%p13119_p11)  }
 0x625   : > { %v13621_v56 = vld [vmem:[#allocation7 + $0x1a0] sm:$0xff] (!%p13119_p11)  }
 0x626   : > { %13203 = vmatpush3.bf16.msra.mxu0 (!%p13119_p11), %v13596_v57  ;;  %13225 = vmatpush3.bf16.msra.mxu1 (!%p13119_p11), %v13597_v59  ;;  %v13622_v57 = vld [vmem:[#allocation7 + $0x168] sm:$0xff] (!%p13119_p11)  }
 0x627   : > { %13204 = vmatprep.subr.bf16.mxu0 (!%p13119_p11), %v13598_v61  ;;  %13226 = vmatprep.subr.bf16.mxu1 (!%p13119_p11), %v13599_v63  ;;  %v13624_v59 = vld [vmem:[#allocation7 + $0x128] sm:$0xff] (!%p13119_p11)   ;;  %v10862_v61 = vsub.s32 (!%p13119_p11), 5, %v15477_v53  ;;  %v10870_v63 = vsub.s32 (!%p13119_p11), 7, %v15477_v53 }
 0x62a   : > { %13205 = vmatpush3.bf16.msra.mxu0 (!%p13119_p11), %v13600_v1  ;;  %13227 = vmatpush3.bf16.msra.mxu1 (!%p13119_p11), %v13601_v2  ;;  %v10858_v1 = vsub.s32 (!%p13119_p11), 4, %v15477_v53  ;;  %v13628_v2 = vld [vmem:[#allocation7 + $0x130] sm:$0xff] (!%p13119_p11)  }
 0x6e0   : > { %v10304_v8 = vpop.f32.mrb[4].mxu0  ;;  %v10777_v12 = vpop.f32.mrb[4].mxu1  ;;  %10821 = sbr.rel (%p13119_p11) target bundleno = 2026 (0x7ea), region = 64 }
 0x6e1   : > { %v10790_v11 = vadd.f32 %v10304_v8, %v324_v5  ;;  %v10306_v13 = vpop.f32.mrb[5].mxu0  ;;  %v10792_v16 = vadd.f32 %v10777_v12, %v326_v6  ;;  %v10779_v18 = vpop.f32.mrb[5].mxu1  ;;  %v15483_v5 = vld [vmem:[#allocation5] sm:$0xff] (!%p13119_p11)  ;;  %v10833_v8 = vld [vmem:[#allocation2 + $0x58] sm:$0xff] (!%p13119_p11) }
 0x6e2   : > { %v10791_v17 = vadd.f32 %v10306_v13, %v325_v7  ;;  %v10308_v19 = vpop.f32.mrb[6].mxu0  ;;  %v10793_v21 = vadd.f32 %v10779_v18, %v327_v9  ;;  %v10781_v23 = vpop.f32.mrb[6].mxu1  ;;  %v10847_v6 = vrot.slane (!%p13119_p11), %v15483_v5, %v10846_v58  ;;  %v10825_v7 = vld [vmem:[#allocation2 + $0x18] sm:$0xff] (!%p13119_p11)  ;;  %v10855_v9 = vrot.slane (!%p13119_p11), %v15483_v5, %v10854_v60  ;;  %v10830_v13 = vld [vmem:[#allocation2 + $0x40] sm:$0xff] (!%p13119_p11)  ;;  %v13623_v58 = vld [vmem:[#allocation7 + $0x1e8] sm:$0xff] (!%p13119_p11)  }
 0x6e3   : > { %10806 = vst [vmem:[#allocation2 + $0x20] sm:$0xff] %v10790_v11  ;;  %v10798_v22 = vadd.f32 %v10308_v19, %v332_v10  ;;  %v10310_v24 = vpop.f32.mrb[7].mxu0  ;;  %10808 = vst [vmem:[#allocation2 + $0x30] sm:$0xff] %v10792_v16  ;;  %v10800_v25 = vadd.f32 %v10781_v23, %v334_v14  ;;  %v10783_v27 = vpop.f32.mrb[7].mxu1  ;;  %v10822_v10 = vld [vmem:[#allocation2] sm:$0xff] (!%p13119_p11)  ;;  %v10843_v11 = vrot.slane (!%p13119_p11), %v15483_v5, %v10842_v62  ;;  %v10824_v14 = vld [vmem:[#allocation2 + $0x10] sm:$0xff] (!%p13119_p11) }
 0x6e4   : > { %10807 = vst [vmem:[#allocation2 + $0x28] sm:$0xff] %v10791_v17  ;;  %v10799_v26 = vadd.f32 %v10310_v24, %v333_v15  ;;  %10809 = vst [vmem:[#allocation2 + $0x38] sm:$0xff] %v10793_v21  ;;  %v10801_v28 = vadd.f32 %v10783_v27, %v335_v20  ;;  %v10851_v12 = vrot.slane (!%p13119_p11), %v15483_v5, %v10850_v0  ;;  %v10832_v15 = vld [vmem:[#allocation2 + $0x50] sm:$0xff] (!%p13119_p11)  ;;  %v13602_v20 = vld [vmem:[#allocation7 + $0x140] sm:$0xff] (!%p13119_p11)  }
 0x6e5   : > { %10814 = vst [vmem:[#allocation2 + $0x60] sm:$0xff] %v10798_v22  ;;  %10816 = vst [vmem:[#allocation2 + $0x70] sm:$0xff] %v10800_v25  ;;  %v10881_v16 = vadd.f32 (!%p13119_p11), %v10847_v6, %v10823_v3  ;;  %v10889_v17 = vadd.f32 (!%p13119_p11), %v10847_v6, %v10831_v4  ;;  %v10883_v18 = vadd.f32 (!%p13119_p11), %v10855_v9, %v10825_v7  ;;  %v13603_v25 = vld [vmem:[#allocation7 + $0x1c0] sm:$0xff] (!%p13119_p11)   ;;  %13234 = vmatprep.subr.bf16.mxu0 (!%p13119_p11), %v13602_v20  ;;  %v13625_v60 = vld [vmem:[#allocation7 + $0x1a8] sm:$0xff] (!%p13119_p11)  }
 0x6e6   : > { %10815 = vst [vmem:[#allocation2 + $0x68] sm:$0xff] %v10799_v26  ;;  %10817 = vst [vmem:[#allocation2 + $0x78] sm:$0xff] %v10801_v28  ;;  %v10891_v19 = vadd.f32 (!%p13119_p11), %v10855_v9, %v10833_v8  ;;  %v10880_v21 = vadd.f32 (!%p13119_p11), %v10843_v11, %v10822_v10  ;;  %v10888_v22 = vadd.f32 (!%p13119_p11), %v10843_v11, %v10830_v13  ;;  %13256 = vmatprep.subr.bf16.mxu1 (!%p13119_p11), %v13603_v25  ;;  %v13626_v62 = vld [vmem:[#allocation7 + $0x170] sm:$0xff] (!%p13119_p11)   ;;  %v13630_v6 = vld [vmem:[#allocation7 + $0x178] sm:$0xff] (!%p13119_p11)  }
 0x6e7   : > { %v10882_v23 = vadd.f32 %v10851_v12, %v10824_v14  ;;  %v10890_v24 = vadd.f32 %v10851_v12, %v10832_v15  ;;  %v10897_v26 = vmax.f32 %v10881_v16, 0.0  ;;  %v10905_v27 = vmax.f32 %v10889_v17, 0.0  ;;  %v13627_v0 = vld [vmem:[#allocation7 + $0x1f0] sm:$0xff]   ;;  %v13631_v8 = vld [vmem:[#allocation7 + $0x1f8] sm:$0xff]  }
 0x6e8   : > { %v10899_v28 = vmax.f32 %v10883_v18, 0.0  ;;  %v10907_v29 = vmax.f32 %v10891_v19, 0.0  ;;  %v10896_v30 = vmax.f32 %v10880_v21, 0.0  ;;  %v10904_v31 = vmax.f32 %v10888_v22, 0.0  ;;  %v13629_v4 = vld [vmem:[#allocation7 + $0x1b0] sm:$0xff]   ;;  %v13632_v11 = vld [vmem:[#allocation7 + $0x138] sm:$0xff]  }
 0x6e9   : > { %v10898_v32 = vmax.f32 %v10882_v23, 0.0  ;;  %v10906_v33 = vmax.f32 %v10890_v24, 0.0  ;;  %v10913_v34 = vpack.c.bf16 %v10905_v27, %v10897_v26  ;;  %v10866_v3 = vsub.s32 6, %v15477_v53  ;;  %v13633_v13 = vld [vmem:[#allocation7 + $0x1b8] sm:$0xff]  }
 0x6ea   : > { %v10915_v35 = vpack.c.bf16 %v10907_v29, %v10899_v28  ;;  %v10912_v37 = vpack.c.bf16 %v10904_v31, %v10896_v30  ;;  %v10863_v7 = vrot.slane %v15483_v5, %v10862_v61  ;;  %v10871_v9 = vrot.slane %v15483_v5, %v10870_v63  ;;  %v10826_v19 = vld [vmem:[#allocation2 + $0x20] sm:$0xff]  ;;  %v10828_v24 = vld [vmem:[#allocation2 + $0x30] sm:$0xff] }
 0x6eb   : > { %v10914_v38 = vpack.c.bf16 %v10906_v33, %v10898_v32  ;;  %11471 = vmatprep.mubr.bf16.mxu0 %v10913_v34  ;;  %v10859_v10 = vrot.slane %v15483_v5, %v10858_v1  ;;  %v10867_v12 = vrot.slane %v15483_v5, %v10866_v3  ;;  %v10827_v53 = vld [vmem:[#allocation2 + $0x28] sm:$0xff]  ;;  %v10829_v17 = vld [vmem:[#allocation2 + $0x38] sm:$0xff] }
 0x6ec   : > { %11512 = vmatprep.mubr.bf16.mxu1 %v10915_v35  ;;  %11472 = vmatmul.mubr.bf16.vlgmr.msra.gmra.mrb[0].mxu0 %v10912_v37  ;;  %v10885_v15 = vadd.f32 %v10863_v7, %v10827_v53  ;;  %v10887_v20 = vadd.f32 %v10871_v9, %v10829_v17  ;;  %v10834_v22 = vld [vmem:[#allocation2 + $0x60] sm:$0xff]  ;;  %v10836_v25 = vld [vmem:[#allocation2 + $0x70] sm:$0xff] }
 0x6ed   : > { %11513 = vmatmul.mubr.bf16.vlgmr.msra.gmra.mrb[0].mxu1 %v10914_v38  ;;  %13235 = vmatpush3.bf16.msra.mxu0 %v13604_v36  ;;  %v10835_v14 = vld [vmem:[#allocation2 + $0x68] sm:$0xff]  ;;  %v10837_v18 = vld [vmem:[#allocation2 + $0x78] sm:$0xff]  ;;  %v10884_v23 = vadd.f32 %v10859_v10, %v10826_v19  ;;  %v10892_v27 = vadd.f32 %v10859_v10, %v10834_v22  ;;  %v10886_v28 = vadd.f32 %v10867_v12, %v10828_v24 }
 0x6ee   : > { %13257 = vmatpush3.bf16.msra.mxu1 %v13605_v39  ;;  %13236 = vmatprep.subr.bf16.mxu0 %v13606_v40  ;;  %v10893_v16 = vadd.f32 %v10863_v7, %v10835_v14  ;;  %v10895_v21 = vadd.f32 %v10871_v9, %v10837_v18  ;;  %v10901_v26 = vmax.f32 %v10885_v15, 0.0  ;;  %v10903_v29 = vmax.f32 %v10887_v20, 0.0 }
 0x6ef   : > { %13258 = vmatprep.subr.bf16.mxu1 %v13607_v41  ;;  %v10900_v31 = vmax.f32 %v10884_v23, 0.0  ;;  %v10894_v32 = vadd.f32 %v10867_v12, %v10836_v25  ;;  %v10908_v34 = vmax.f32 %v10892_v27, 0.0  ;;  %v10902_v35 = vmax.f32 %v10886_v28, 0.0 }
 0x6f0   : > { %v10909_v5 = vmax.f32 %v10893_v16, 0.0  ;;  %v10911_v30 = vmax.f32 %v10895_v21, 0.0 }
 0x6f1   : > { %13237 = vmatpush3.bf16.msra.mxu0 %v13608_v42  ;;  %v10910_v37 = vmax.f32 %v10894_v32, 0.0  ;;  %v10916_v38 = vpack.c.bf16 %v10908_v34, %v10900_v31  ;;  %v13120_v42 = vld [vmem:[#allocation8] ss:$0 sm:$0xff] }
 0x6f2   : > { %13259 = vmatpush3.bf16.msra.mxu1 %v13609_v43  ;;  %13238 = vmatprep.subr.bf16.mxu0 %v13610_v44  ;;  %v10917_v33 = vpack.c.bf16 %v10909_v5, %v10901_v26  ;;  %v10919_v36 = vpack.c.bf16 %v10911_v30, %v10903_v29 }
 0x6f3   : > { %13260 = vmatprep.subr.bf16.mxu1 %v13611_v45  ;;  %v10918_v39 = vpack.c.bf16 %v10910_v37, %v10902_v35 }
 0x6f4   : > { %11553 = vmatprep.mubr.bf16.mxu0 %v10917_v33  ;;  %11594 = vmatprep.mubr.bf16.mxu1 %v10919_v36 }
 0x6f5   : > { %13239 = vmatpush3.bf16.msra.mxu0 %v13612_v46 }
 0x6f6   : > { %13261 = vmatpush3.bf16.msra.mxu1 %v13613_v47  ;;  %13240 = vmatprep.subr.bf16.mxu0 %v13614_v48 }
 0x6f7   : > { %13262 = vmatprep.subr.bf16.mxu1 %v13615_v49 }
 0x6f9   : > { %13241 = vmatpush3.bf16.msra.mxu0 %v13616_v50 }
 0x6fa   : > { %13263 = vmatpush3.bf16.msra.mxu1 %v13617_v51  ;;  %13242 = vmatprep.subr.bf16.mxu0 %v13618_v52 }
 0x6fb   : > { %13264 = vmatprep.subr.bf16.mxu1 %v13619_v54 }
 0x6fd   : > { %13243 = vmatpush3.bf16.msra.mxu0 %v13620_v55 }
 0x6fe   : > { %13265 = vmatpush3.bf16.msra.mxu1 %v13621_v56  ;;  %13244 = vmatprep.subr.bf16.mxu0 %v13622_v57 }
 0x6ff   : > { %13266 = vmatprep.subr.bf16.mxu1 %v13623_v58 }
 0x701   : > { %13245 = vmatpush3.bf16.msra.mxu0 %v13624_v59 }
 0x702   : > { %13267 = vmatpush3.bf16.msra.mxu1 %v13625_v60  ;;  %13246 = vmatprep.subr.bf16.mxu0 %v13626_v62 }
 0x703   : > { %13268 = vmatprep.subr.bf16.mxu1 %v13627_v0 }
 0x705   : > { %13247 = vmatpush3.bf16.msra.mxu0 %v13628_v2 }
 0x706   : > { %13269 = vmatpush3.bf16.msra.mxu1 %v13629_v4  ;;  %13248 = vmatprep.subr.bf16.mxu0 %v13630_v6 }
 0x707   : > { %13270 = vmatprep.subr.bf16.mxu1 %v13631_v8 }
 0x709   : > { %13249 = vmatpush3.bf16.msra.mxu0 %v13632_v11 }
 0x70a   : > { %13271 = vmatpush3.bf16.msra.mxu1 %v13633_v13 }
 0x70c   : > { %11554 = vmatmul.mubr.bf16.vlgmr.msra.gmra.mrb[4].mxu0 %v10916_v38 }
 0x70d   : > { %11595 = vmatmul.mubr.bf16.vlgmr.msra.gmra.mrb[4].mxu1 %v10918_v39 }
 0x7bf   : > { %v13206_v40 = vpop.f32.mrb[0].mxu0 }
 0x7c0   : > { %v13228_v41 = vpop.f32.mrb[0].mxu1  ;;  %v13207_v43 = vpop.f32.mrb[1].mxu0 }
 0x7c1   : > { %v13229_v44 = vpop.f32.mrb[1].mxu1  ;;  %v13208_v45 = vadd.f32 %v13207_v43, %v13206_v40  ;;  %v13209_v47 = vpop.f32.mrb[2].mxu0 }
 0x7c2   : > { %v13230_v46 = vadd.f32 %v13229_v44, %v13228_v41  ;;  %v13231_v48 = vpop.f32.mrb[2].mxu1  ;;  %v13210_v49 = vpop.f32.mrb[3].mxu0 }
 0x7c3   : > { %v13232_v50 = vpop.f32.mrb[3].mxu1  ;;  %v11474_v51 = vadd.f32 %v13208_v45, %v13120_v42  ;;  %v13211_v52 = vadd.f32 %v13210_v49, %v13209_v47 }
 0x7c4   : > { %v13233_v54 = vadd.f32 %v13232_v50, %v13231_v48 }
 0x7c5   : > { %v11515_v55 = vadd.f32 %v13230_v46, %v11474_v51  ;;  %v11477_v56 = vadd.f32 %v13211_v52, %v13120_v42 }
 0x7c7   : > { %v11518_v57 = vadd.f32 %v13233_v54, %v11477_v56 }
 0x7df   : > { %v13250_v58 = vpop.f32.mrb[4].mxu0 }
 0x7e0   : > { %v13272_v59 = vpop.f32.mrb[4].mxu1  ;;  %v13251_v60 = vpop.f32.mrb[5].mxu0 }
 0x7e1   : > { %v13252_v61 = vadd.f32 %v13251_v60, %v13250_v58  ;;  %v13273_v62 = vpop.f32.mrb[5].mxu1  ;;  %v13253_v63 = vpop.f32.mrb[6].mxu0 }
 0x7e2   : > { %v13274_v0 = vadd.f32 %v13273_v62, %v13272_v59  ;;  %v13275_v1 = vpop.f32.mrb[6].mxu1  ;;  %v13254_v2 = vpop.f32.mrb[7].mxu0 }
 0x7e3   : > { %v11556_v3 = vadd.f32 %v13252_v61, %v11515_v55  ;;  %v13255_v4 = vadd.f32 %v13254_v2, %v13253_v63  ;;  %v13276_v6 = vpop.f32.mrb[7].mxu1 }
 0x7e4   : > { %v13277_v7 = vadd.f32 %v13276_v6, %v13275_v1 }
 0x7e5   : > { %v11597_v8 = vadd.f32 %v13274_v0, %v11556_v3  ;;  %v11559_v9 = vadd.f32 %v13255_v4, %v11518_v57 }
 0x7e7   : > { %11603 = vst [vmem:[%s15521_s5] sm:$0xff] %v11597_v8  ;;  %v11600_v10 = vadd.f32 %v13277_v7, %v11559_v9 }
 0x7e9   : > { %11604 = vst [vmem:[%s15521_s5 + $0x8] sm:$0xff] %v11600_v10 }
 0x7ea PF: > { %p17_p1 = scmp.ge.s32.totalorder %s13946_s12, 4   ;;  %s15537_s18 = smov %s13782_s19 }
 0x7eb   : > { %s15538_s19 = smov %s13786_s20  ;;  %s15539_s20 = smov %s13956_s29 }
 0x7ec   : > { %s15540_s21 = smov %s13946_s12  ;;  %19 = sbr.rel (!%p17_p1) target bundleno = 5 (0x5), region = 97 }
 0x7f3   :  { %11616 = vsyncpa [#allocation4], 1 }
 0x7f4   :  { %11618 = vsyncpa [#allocation4 + $0x1], 1 }
 0x7f5   :  { %11619 = vsyncpa [#allocation6], 1 }
 0x7f6   :  { %11620 = vsyncpa [#allocation9], 1 }

</bundles_post_ra>
